<compile_context>
chip_gen: v7x
topology: tpu7x:2x2x1
jax: 0.10.0
libtpu: 0.0.40
codegen_flags: <defaults>
</compile_context>

<pallas_src>
import functools

import jax
import jax.numpy as jnp
from jax.experimental import pallas as pl


# (padded-input row offset, kernel tap index) pairs contributing to even/odd output rows
# (and, symmetrically, columns) of a ConvTranspose2d with kernel=4, stride=2, padding=1:
#   out[2m + 0] = xpad[m + 0] * W[..., 3] + xpad[m + 1] * W[..., 1]
#   out[2m + 1] = xpad[m + 1] * W[..., 2] + xpad[m + 2] * W[..., 0]
_TAPS = (((0, 3), (1, 1)), ((1, 2), (2, 0)))

_BN_EPS = 1e-5


def _elu(y):
    # ELU(alpha=1). expm1(x) = tanh(x/2) * (exp(x) + 1): stable for small |x| (matches
    # torch's expm1-based ELU) using only exp/tanh, which have solid Mosaic lowerings.
    yn = jnp.minimum(y, 0.0)
    return jnp.where(y > 0, y, jnp.tanh(0.5 * yn) * (jnp.exp(yn) + 1.0))


# --------------------------------------------------------------------------------------
# Head kernel: (optional Linear) + ConvTranspose2d(1x1 -> 4x4, k=4, s=1, p=0) + BN + ELU.
# The 1x1-input transposed conv is a pure matmul: out[b, (y*4+x)*Cout+o] = feat[b,:] @ W1m.
# --------------------------------------------------------------------------------------
def _head_tail(feat_bf16, w1_ref, scale_ref, shift_ref, out_ref):
    h = jnp.dot(feat_bf16, w1_ref[...], preferred_element_type=jnp.float32)
    out_ref[...] = _elu(h * scale_ref[...] + shift_ref[...]).astype(out_ref.dtype)


def _head_kernel_linear(x_ref, wl_ref, bl_ref, w1_ref, scale_ref, shift_ref, out_ref):
    feat = jnp.dot(x_ref[...], wl_ref[...], preferred_element_type=jnp.float32)
    feat = (feat + bl_ref[...]).astype(jnp.bfloat16)
    _head_tail(feat, w1_ref, scale_ref, shift_ref, out_ref)


def _head_kernel_identity(x_ref, w1_ref, scale_ref, shift_ref, out_ref):
    _head_tail(x_ref[...], w1_ref, scale_ref, shift_ref, out_ref)


# --------------------------------------------------------------------------------------
# Stride-2 transposed-conv kernel: ConvTranspose2d(k=4, s=2, p=1) + scale/shift + act.
#   shifts_ref: [9, N, Cin]  bf16  3x3 shifted views of the zero-padded input, rows
#                                  flattened over (batch, H, W); view index s = py*3 + px.
#   w_ref:      [16, Cin, Cout] bf16  one matrix per kernel tap, t = ky*4 + kx.
#   out_ref:    [4, N, Cout]        one slab per output sub-grid, s = dy*2 + dx, where the
#                                  full-resolution output is out[b, 2m+dy, 2n+dx, :].
# Each sub-grid is a sum of 4 plain 2-D MXU matmuls; BN/bias and the nonlinearity are
# fused so activations never round-trip through HBM between those steps.
# --------------------------------------------------------------------------------------
def _convt_s2_kernel(shifts_ref, w_ref, scale_ref, shift_ref, out_ref, *, act):
    for dy in range(2):
        for dx in range(2):
            acc = None
            for (py, ky) in _TAPS[dy]:
                for (px, kx) in _TAPS[dx]:
                    t = jnp.dot(shifts_ref[py * 3 + px], w_ref[ky * 4 + kx],
                                preferred_element_type=jnp.float32)
                    acc = t if acc is None else acc + t
            y = acc * scale_ref[...] + shift_ref[...]
            y = _elu(y) if act == "elu" else jnp.tanh(y)
            out_ref[dy * 2 + dx] = y.astype(out_ref.dtype)


def _full_spec(shape):
    return pl.BlockSpec(shape, lambda: (0,) * len(shape))


# --------------------------------------------------------------------------------------
# Wrappers (pure layout plumbing around the kernels).
# --------------------------------------------------------------------------------------
def _head(x, wl, bl, w1, scale, shift):
    """x: [B, in]; wl: [in, F] or None; w1: [F, F, 4, 4]  ->  [B, 4, 4, F] bf16 (NHWC)."""
    b = x.shape[0]
    cin, cout = w1.shape[0], w1.shape[1]
    # Linearize the 1x1 -> 4x4 transposed conv: W1m[c, (y*4+x)*Cout + o] = W1[c, o, y, x].
    w1m = jnp.transpose(w1, (0, 2, 3, 1)).reshape(cin, 16 * cout).astype(jnp.bfloat16)
    scale_t = jnp.tile(scale.astype(jnp.float32), 16).reshape(1, 16 * cout)
    shift_t = jnp.tile(shift.astype(jnp.float32), 16).reshape(1, 16 * cout)

    has_linear = wl is not None
    args = [x.astype(jnp.bfloat16)]
    if has_linear:
        args += [wl.astype(jnp.bfloat16), bl.astype(jnp.float32).reshape(1, -1)]
    args += [w1m, scale_t, shift_t]
    kernel = _head_kernel_linear if has_linear else _head_kernel_identity

    out = pl.pallas_call(
        kernel,
        out_shape=jax.ShapeDtypeStruct((b, 16 * cout), jnp.bfloat16),
        in_specs=[_full_spec(a.shape) for a in args],
        out_specs=_full_spec((b, 16 * cout)),
    )(*args)
    return out.reshape(b, 4, 4, cout)   # (b, y, x, o) — contiguous, free reshape


def _convt_s2(x_nhwc, w, scale, shift, *, act, out_dtype):
    """x_nhwc: [B, H, W, Cin]; w: [Cin, Cout, 4, 4]  ->  [B, 2H, 2W, Cout]."""
    b, h, wd, cin = x_nhwc.shape
    cout = w.shape[1]
    n = b * h * wd
    xp = jnp.pad(x_nhwc, ((0, 0), (1, 1), (1, 1), (0, 0)))
    # 3x3 shifted views of the padded input, flattened to lane-major [N, Cin] slabs.
    shifts = jnp.stack(
        [xp[:, py:py + h, px:px + wd, :].reshape(n, cin)
         for py in range(3) for px in range(3)], axis=0).astype(jnp.bfloat16)
    # One [Cin, Cout] matrix per kernel tap (ky, kx).
    wsub = jnp.stack([w[:, :, ky, kx] for ky in range(4) for kx in range(4)],
                     axis=0).astype(jnp.bfloat16)
    scale2 = scale.astype(jnp.float32).reshape(1, cout)
    shift2 = shift.astype(jnp.float32).reshape(1, cout)

    sub = pl.pallas_call(
        functools.partial(_convt_s2_kernel, act=act),
        out_shape=jax.ShapeDtypeStruct((4, n, cout), out_dtype),
        in_specs=[_full_spec(shifts.shape), _full_spec(wsub.shape),
                  _full_spec(scale2.shape), _full_spec(shift2.shape)],
        out_specs=_full_spec((4, n, cout)),
    )(shifts, wsub, scale2, shift2)

    # Interleave sub-grids: out[b, 2m+dy, 2n+dx, c] = sub[dy*2+dx, (b*h + m)*wd + n, c].
    return (sub.reshape(2, 2, b, h, wd, cout)
               .transpose(2, 3, 0, 4, 1, 5)
               .reshape(b, 2 * h, 2 * wd, cout))


def _fold_bn(bn):
    # Eval-mode BatchNorm2d folded to a per-channel affine: y = x * s + t.
    # TODO(synk): training-mode BatchNorm (batch statistics) is not implemented.
    s = bn["gamma"] / jnp.sqrt(bn["var"] + _BN_EPS)
    return s, bn["beta"] - bn["mean"] * s


def decoder_forward(x, params):
    """Decoder forward. x: [B, input_size] f32 -> [B, 3, 32, 32] f32 (NCHW, like PyTorch)."""
    s1, t1 = _fold_bn(params["bn1"])
    s2, t2 = _fold_bn(params["bn2"])
    s3, t3 = _fold_bn(params["bn3"])
    h = _head(x, params.get("wl"), params.get("bl"), params["w1"], s1, t1)        # [B, 4, 4, F]
    h = _convt_s2(h, params["w2"], s2, t2, act="elu", out_dtype=jnp.bfloat16)     # [B, 8, 8, F]
    h = _convt_s2(h, params["w3"], s3, t3, act="elu", out_dtype=jnp.bfloat16)     # [B,16,16, F]
    ones_out = jnp.ones((params["w4"].shape[1],), jnp.float32)
    y = _convt_s2(h, params["w4"], ones_out, params["b4"], act="tanh",
                  out_dtype=jnp.float32)                                          # [B,32,32, 3]
    return jnp.transpose(y, (0, 3, 1, 2))


if __name__ == "__main__":
    batch, input_size, feat_size = 2, 32, 16   # input_size != feat_size -> Linear path runs

    key = jax.random.PRNGKey(0)
    ks = jax.random.split(key, 12)
    rn = lambda k, shape, s=0.1: s * jax.random.normal(k, shape, dtype=jnp.float32)

    def bn_params(k):
        a, b, c, d = jax.random.split(k, 4)
        return {"gamma": 1.0 + rn(a, (feat_size,)), "beta": rn(b, (feat_size,)),
                "mean": rn(c, (feat_size,)),
                "var": 0.5 + jnp.abs(rn(d, (feat_size,), 1.0))}

    x = jax.random.normal(ks[0], (batch, input_size), dtype=jnp.float32)
    params = {
        # LinearLayer(input_size -> feat_size, nonlinear=Identity); weight stored [in, out].
        "wl": rn(ks[1], (input_size, feat_size)),
        "bl": rn(ks[2], (feat_size,)),
        # ConvTranspose2d weights in PyTorch layout [C_in, C_out, kH, kW].
        "w1": rn(ks[3], (feat_size, feat_size, 4, 4)),
        "w2": rn(ks[4], (feat_size, feat_size, 4, 4)),
        "w3": rn(ks[5], (feat_size, feat_size, 4, 4)),
        "w4": rn(ks[6], (feat_size, 3, 4, 4)),
        "b4": rn(ks[7], (3,)),
        "bn1": bn_params(ks[8]),
        "bn2": bn_params(ks[9]),
        "bn3": bn_params(ks[10]),
    }

    out = jax.jit(decoder_forward)(x, params)
    jax.block_until_ready(out)

    assert out.shape == (batch, 3, 32, 32), out.shape
    assert bool(jnp.all(jnp.isfinite(out)))
    assert bool(jnp.all(jnp.abs(out) <= 1.0 + 1e-6))   # Tanh output range
    print("KERNEL_OK")
</pallas_src>

<mosaic_0001>
module attributes {stable_mosaic.version = 11 : i64} {
  func.func @_head_kernel_linear(%arg0: memref<2x32xbf16, #tpu.memory_space<vmem>>, %arg1: memref<32x16xbf16, #tpu.memory_space<vmem>>, %arg2: memref<1x16xf32, #tpu.memory_space<vmem>>, %arg3: memref<16x256xbf16, #tpu.memory_space<vmem>>, %arg4: memref<1x256xf32, #tpu.memory_space<vmem>>, %arg5: memref<1x256xf32, #tpu.memory_space<vmem>>, %arg6: memref<2x256xbf16, #tpu.memory_space<vmem>>) attributes {dimension_semantics = [], scalar_prefetch = 0 : i64, scratch_operands = 0 : i64, tpu.core_type = #tpu.core_type<tc>} {
    %c0 = arith.constant 0 : index
    %c0_0 = arith.constant 0 : index
    %0 = vector.load %arg0[%c0, %c0_0] : memref<2x32xbf16, #tpu.memory_space<vmem>>, vector<2x32xbf16>
    %c0_1 = arith.constant 0 : index
    %c0_2 = arith.constant 0 : index
    %1 = vector.load %arg1[%c0_1, %c0_2] : memref<32x16xbf16, #tpu.memory_space<vmem>>, vector<32x16xbf16>
    %cst = arith.constant dense<0.000000e+00> : vector<2x16xf32>
    %2 = tpu.matmul %0, %1, %cst {dimension_numbers = #tpu.dot_dimension_numbers<[1], [0], [0], [1], [0, 0, 1, 1], [], []>} : vector<2x32xbf16>, vector<32x16xbf16>, vector<2x16xf32> -> vector<2x16xf32>
    %c0_3 = arith.constant 0 : index
    %c0_4 = arith.constant 0 : index
    %3 = vector.load %arg2[%c0_3, %c0_4] : memref<1x16xf32, #tpu.memory_space<vmem>>, vector<1x16xf32>
    %4 = vector.broadcast %3 : vector<1x16xf32> to vector<2x16xf32>
    %5 = arith.addf %2, %4 : vector<2x16xf32>
    %6 = arith.truncf %5 : vector<2x16xf32> to vector<2x16xbf16>
    %c0_5 = arith.constant 0 : index
    %c0_6 = arith.constant 0 : index
    %7 = vector.load %arg3[%c0_5, %c0_6] : memref<16x256xbf16, #tpu.memory_space<vmem>>, vector<16x256xbf16>
    %cst_7 = arith.constant dense<0.000000e+00> : vector<2x256xf32>
    %8 = tpu.matmul %6, %7, %cst_7 {dimension_numbers = #tpu.dot_dimension_numbers<[1], [0], [0], [1], [0, 0, 1, 1], [], []>} : vector<2x16xbf16>, vector<16x256xbf16>, vector<2x256xf32> -> vector<2x256xf32>
    %c0_8 = arith.constant 0 : index
    %c0_9 = arith.constant 0 : index
    %9 = vector.load %arg4[%c0_8, %c0_9] : memref<1x256xf32, #tpu.memory_space<vmem>>, vector<1x256xf32>
    %10 = vector.broadcast %9 : vector<1x256xf32> to vector<2x256xf32>
    %11 = arith.mulf %8, %10 : vector<2x256xf32>
    %c0_10 = arith.constant 0 : index
    %c0_11 = arith.constant 0 : index
    %12 = vector.load %arg5[%c0_10, %c0_11] : memref<1x256xf32, #tpu.memory_space<vmem>>, vector<1x256xf32>
    %13 = vector.broadcast %12 : vector<1x256xf32> to vector<2x256xf32>
    %14 = arith.addf %11, %13 : vector<2x256xf32>
    %cst_12 = arith.constant 0.000000e+00 : f32
    %15 = vector.broadcast %cst_12 : f32 to vector<2x256xf32>
    %16 = arith.minimumf %14, %15 : vector<2x256xf32>
    %cst_13 = arith.constant 0.000000e+00 : f32
    %17 = vector.broadcast %cst_13 : f32 to vector<2x256xf32>
    %18 = arith.cmpf ogt, %14, %17 : vector<2x256xf32>
    %cst_14 = arith.constant 5.000000e-01 : f32
    %19 = vector.broadcast %cst_14 : f32 to vector<2x256xf32>
    %20 = arith.mulf %19, %16 : vector<2x256xf32>
    %21 = math.tanh %20 : vector<2x256xf32>
    %22 = math.exp %16 : vector<2x256xf32>
    %cst_15 = arith.constant 1.000000e+00 : f32
    %23 = vector.broadcast %cst_15 : f32 to vector<2x256xf32>
    %24 = arith.addf %22, %23 : vector<2x256xf32>
    %25 = arith.mulf %21, %24 : vector<2x256xf32>
    %26 = arith.select %18, %14, %25 : vector<2x256xi1>, vector<2x256xf32>
    %27 = arith.truncf %26 : vector<2x256xf32> to vector<2x256xbf16>
    %c0_16 = arith.constant 0 : index
    %c0_17 = arith.constant 0 : index
    %28 = vector.load %arg6[%c0_16, %c0_17] : memref<2x256xbf16, #tpu.memory_space<vmem>>, vector<2x256xbf16>
    tpu.vector_store %arg6[%c0_16, %c0_17], %27 {strides = array<i32>} : memref<2x256xbf16, #tpu.memory_space<vmem>>, vector<2x256xbf16>,
    return
  }
}

module attributes {stable_mosaic.version = 11 : i64} {
  func.func @_convt_s2_kernel(%arg0: memref<9x32x16xbf16, #tpu.memory_space<vmem>>, %arg1: memref<16x16x16xbf16, #tpu.memory_space<vmem>>, %arg2: memref<1x16xf32, #tpu.memory_space<vmem>>, %arg3: memref<1x16xf32, #tpu.memory_space<vmem>>, %arg4: memref<4x32x16xbf16, #tpu.memory_space<vmem>>) attributes {dimension_semantics = [], scalar_prefetch = 0 : i64, scratch_operands = 0 : i64, tpu.core_type = #tpu.core_type<tc>} {
    %c0 = arith.constant 0 : index
    %c0_0 = arith.constant 0 : index
    %c0_1 = arith.constant 0 : index
    %0 = vector.load %arg0[%c0, %c0_0, %c0_1] : memref<9x32x16xbf16, #tpu.memory_space<vmem>>, vector<1x32x16xbf16>
    %1 = vector.shape_cast %0 : vector<1x32x16xbf16> to vector<32x16xbf16>
    %c15 = arith.constant 15 : index
    %c0_2 = arith.constant 0 : index
    %c0_3 = arith.constant 0 : index
    %2 = vector.load %arg1[%c15, %c0_2, %c0_3] : memref<16x16x16xbf16, #tpu.memory_space<vmem>>, vector<1x16x16xbf16>
    %3 = vector.shape_cast %2 : vector<1x16x16xbf16> to vector<16x16xbf16>
    %cst = arith.constant dense<0.000000e+00> : vector<32x16xf32>
    %4 = tpu.matmul %1, %3, %cst {dimension_numbers = #tpu.dot_dimension_numbers<[1], [0], [0], [1], [0, 0, 1, 1], [], []>} : vector<32x16xbf16>, vector<16x16xbf16>, vector<32x16xf32> -> vector<32x16xf32>
    %c1 = arith.constant 1 : index
    %c0_4 = arith.constant 0 : index
    %c0_5 = arith.constant 0 : index
    %5 = vector.load %arg0[%c1, %c0_4, %c0_5] : memref<9x32x16xbf16, #tpu.memory_space<vmem>>, vector<1x32x16xbf16>
    %6 = vector.shape_cast %5 : vector<1x32x16xbf16> to vector<32x16xbf16>
    %c13 = arith.constant 13 : index
    %c0_6 = arith.constant 0 : index
    %c0_7 = arith.constant 0 : index
    %7 = vector.load %arg1[%c13, %c0_6, %c0_7] : memref<16x16x16xbf16, #tpu.memory_space<vmem>>, vector<1x16x16xbf16>
    %8 = vector.shape_cast %7 : vector<1x16x16xbf16> to vector<16x16xbf16>
    %cst_8 = arith.constant dense<0.000000e+00> : vector<32x16xf32>
    %9 = tpu.matmul %6, %8, %cst_8 {dimension_numbers = #tpu.dot_dimension_numbers<[1], [0], [0], [1], [0, 0, 1, 1], [], []>} : vector<32x16xbf16>, vector<16x16xbf16>, vector<32x16xf32> -> vector<32x16xf32>
    %10 = arith.addf %4, %9 : vector<32x16xf32>
    %c3 = arith.constant 3 : index
    %c0_9 = arith.constant 0 : index
    %c0_10 = arith.constant 0 : index
    %11 = vector.load %arg0[%c3, %c0_9, %c0_10] : memref<9x32x16xbf16, #tpu.memory_space<vmem>>, vector<1x32x16xbf16>
    %12 = vector.shape_cast %11 : vector<1x32x16xbf16> to vector<32x16xbf16>
    %c7 = arith.constant 7 : index
    %c0_11 = arith.constant 0 : index
    %c0_12 = arith.constant 0 : index
    %13 = vector.load %arg1[%c7, %c0_11, %c0_12] : memref<16x16x16xbf16, #tpu.memory_space<vmem>>, vector<1x16x16xbf16>
    %14 = vector.shape_cast %13 : vector<1x16x16xbf16> to vector<16x16xbf16>
    %cst_13 = arith.constant dense<0.000000e+00> : vector<32x16xf32>
    %15 = tpu.matmul %12, %14, %cst_13 {dimension_numbers = #tpu.dot_dimension_numbers<[1], [0], [0], [1], [0, 0, 1, 1], [], []>} : vector<32x16xbf16>, vector<16x16xbf16>, vector<32x16xf32> -> vector<32x16xf32>
    %16 = arith.addf %10, %15 : vector<32x16xf32>
    %c4 = arith.constant 4 : index
    %c0_14 = arith.constant 0 : index
    %c0_15 = arith.constant 0 : index
    %17 = vector.load %arg0[%c4, %c0_14, %c0_15] : memref<9x32x16xbf16, #tpu.memory_space<vmem>>, vector<1x32x16xbf16>
    %18 = vector.shape_cast %17 : vector<1x32x16xbf16> to vector<32x16xbf16>
    %c5 = arith.constant 5 : index
    %c0_16 = arith.constant 0 : index
    %c0_17 = arith.constant 0 : index
    %19 = vector.load %arg1[%c5, %c0_16, %c0_17] : memref<16x16x16xbf16, #tpu.memory_space<vmem>>, vector<1x16x16xbf16>
    %20 = vector.shape_cast %19 : vector<1x16x16xbf16> to vector<16x16xbf16>
    %cst_18 = arith.constant dense<0.000000e+00> : vector<32x16xf32>
    %21 = tpu.matmul %18, %20, %cst_18 {dimension_numbers = #tpu.dot_dimension_numbers<[1], [0], [0], [1], [0, 0, 1, 1], [], []>} : vector<32x16xbf16>, vector<16x16xbf16>, vector<32x16xf32> -> vector<32x16xf32>
    %22 = arith.addf %16, %21 : vector<32x16xf32>
    %c0_19 = arith.constant 0 : index
    %c0_20 = arith.constant 0 : index
    %23 = vector.load %arg2[%c0_19, %c0_20] : memref<1x16xf32, #tpu.memory_space<vmem>>, vector<1x16xf32>
    %24 = vector.broadcast %23 : vector<1x16xf32> to vector<32x16xf32>
    %25 = arith.mulf %22, %24 : vector<32x16xf32>
    %c0_21 = arith.constant 0 : index
    %c0_22 = arith.constant 0 : index
    %26 = vector.load %arg3[%c0_21, %c0_22] : memref<1x16xf32, #tpu.memory_space<vmem>>, vector<1x16xf32>
    %27 = vector.broadcast %26 : vector<1x16xf32> to vector<32x16xf32>
    %28 = arith.addf %25, %27 : vector<32x16xf32>
    %cst_23 = arith.constant 0.000000e+00 : f32
    %29 = vector.broadcast %cst_23 : f32 to vector<32x16xf32>
    %30 = arith.minimumf %28, %29 : vector<32x16xf32>
    %cst_24 = arith.constant 0.000000e+00 : f32
    %31 = vector.broadcast %cst_24 : f32 to vector<32x16xf32>
    %32 = arith.cmpf ogt, %28, %31 : vector<32x16xf32>
    %cst_25 = arith.constant 5.000000e-01 : f32
    %33 = vector.broadcast %cst_25 : f32 to vector<32x16xf32>
    %34 = arith.mulf %33, %30 : vector<32x16xf32>
    %35 = math.tanh %34 : vector<32x16xf32>
    %36 = math.exp %30 : vector<32x16xf32>
    %cst_26 = arith.constant 1.000000e+00 : f32
    %37 = vector.broadcast %cst_26 : f32 to vector<32x16xf32>
    %38 = arith.addf %36, %37 : vector<32x16xf32>
    %39 = arith.mulf %35, %38 : vector<32x16xf32>
    %40 = arith.select %32, %28, %39 : vector<32x16xi1>, vector<32x16xf32>
    %41 = arith.truncf %40 : vector<32x16xf32> to vector<32x16xbf16>
    %c0_27 = arith.constant 0 : index
    %c0_28 = arith.constant 0 : index
    %c0_29 = arith.constant 0 : index
    %42 = vector.load %arg4[%c0_27, %c0_28, %c0_29] : memref<4x32x16xbf16, #tpu.memory_space<vmem>>, vector<1x32x16xbf16>
    %43 = vector.shape_cast %42 : vector<1x32x16xbf16> to vector<32x16xbf16>
    %44 = vector.shape_cast %41 : vector<32x16xbf16> to vector<1x32x16xbf16>
    tpu.vector_store %arg4[%c0_27, %c0_28, %c0_29], %44 {strides = array<i32>} : memref<4x32x16xbf16, #tpu.memory_space<vmem>>, vector<1x32x16xbf16>,
    %c1_30 = arith.constant 1 : index
    %c0_31 = arith.constant 0 : index
    %c0_32 = arith.constant 0 : index
    %45 = vector.load %arg0[%c1_30, %c0_31, %c0_32] : memref<9x32x16xbf16, #tpu.memory_space<vmem>>, vector<1x32x16xbf16>
    %46 = vector.shape_cast %45 : vector<1x32x16xbf16> to vector<32x16xbf16>
    %c14 = arith.constant 14 : index
    %c0_33 = arith.constant 0 : index
    %c0_34 = arith.constant 0 : index
    %47 = vector.load %arg1[%c14, %c0_33, %c0_34] : memref<16x16x16xbf16, #tpu.memory_space<vmem>>, vector<1x16x16xbf16>
    %48 = vector.shape_cast %47 : vector<1x16x16xbf16> to vector<16x16xbf16>
    %cst_35 = arith.constant dense<0.000000e+00> : vector<32x16xf32>
    %49 = tpu.matmul %46, %48, %cst_35 {dimension_numbers = #tpu.dot_dimension_numbers<[1], [0], [0], [1], [0, 0, 1, 1], [], []>} : vector<32x16xbf16>, vector<16x16xbf16>, vector<32x16xf32> -> vector<32x16xf32>
    %c2 = arith.constant 2 : index
    %c0_36 = arith.constant 0 : index
    %c0_37 = arith.constant 0 : index
    %50 = vector.load %arg0[%c2, %c0_36, %c0_37] : memref<9x32x16xbf16, #tpu.memory_space<vmem>>, vector<1x32x16xbf16>
    %51 = vector.shape_cast %50 : vector<1x32x16xbf16> to vector<32x16xbf16>
    %c12 = arith.constant 12 : index
    %c0_38 = arith.constant 0 : index
    %c0_39 = arith.constant 0 : index
    %52 = vector.load %arg1[%c12, %c0_38, %c0_39] : memref<16x16x16xbf16, #tpu.memory_space<vmem>>, vector<1x16x16xbf16>
    %53 = vector.shape_cast %52 : vector<1x16x16xbf16> to vector<16x16xbf16>
    %cst_40 = arith.constant dense<0.000000e+00> : vector<32x16xf32>
    %54 = tpu.matmul %51, %53, %cst_40 {dimension_numbers = #tpu.dot_dimension_numbers<[1], [0], [0], [1], [0, 0, 1, 1], [], []>} : vector<32x16xbf16>, vector<16x16xbf16>, vector<32x16xf32> -> vector<32x16xf32>
    %55 = arith.addf %49, %54 : vector<32x16xf32>
    %c4_41 = arith.constant 4 : index
    %c0_42 = arith.constant 0 : index
    %c0_43 = arith.constant 0 : index
    %56 = vector.load %arg0[%c4_41, %c0_42, %c0_43] : memref<9x32x16xbf16, #tpu.memory_space<vmem>>, vector<1x32x16xbf16>
    %57 = vector.shape_cast %56 : vector<1x32x16xbf16> to vector<32x16xbf16>
    %c6 = arith.constant 6 : index
    %c0_44 = arith.constant 0 : index
    %c0_45 = arith.constant 0 : index
    %58 = vector.load %arg1[%c6, %c0_44, %c0_45] : memref<16x16x16xbf16, #tpu.memory_space<vmem>>, vector<1x16x16xbf16>
    %59 = vector.shape_cast %58 : vector<1x16x16xbf16> to vector<16x16xbf16>
    %cst_46 = arith.constant dense<0.000000e+00> : vector<32x16xf32>
    %60 = tpu.matmul %57, %59, %cst_46 {dimension_numbers = #tpu.dot_dimension_numbers<[1], [0], [0], [1], [0, 0, 1, 1], [], []>} : vector<32x16xbf16>, vector<16x16xbf16>, vector<32x16xf32> -> vector<32x16xf32>
    %61 = arith.addf %55, %60 : vector<32x16xf32>
    %c5_47 = arith.constant 5 : index
    %c0_48 = arith.constant 0 : index
    %c0_49 = arith.constant 0 : index
    %62 = vector.load %arg0[%c5_47, %c0_48, %c0_49] : memref<9x32x16xbf16, #tpu.memory_space<vmem>>, vector<1x32x16xbf16>
    %63 = vector.shape_cast %62 : vector<1x32x16xbf16> to vector<32x16xbf16>
    %c4_50 = arith.constant 4 : index
    %c0_51 = arith.constant 0 : index
    %c0_52 = arith.constant 0 : index
    %64 = vector.load %arg1[%c4_50, %c0_51, %c0_52] : memref<16x16x16xbf16, #tpu.memory_space<vmem>>, vector<1x16x16xbf16>
    %65 = vector.shape_cast %64 : vector<1x16x16xbf16> to vector<16x16xbf16>
    %cst_53 = arith.constant dense<0.000000e+00> : vector<32x16xf32>
    %66 = tpu.matmul %63, %65, %cst_53 {dimension_numbers = #tpu.dot_dimension_numbers<[1], [0], [0], [1], [0, 0, 1, 1], [], []>} : vector<32x16xbf16>, vector<16x16xbf16>, vector<32x16xf32> -> vector<32x16xf32>
    %67 = arith.addf %61, %66 : vector<32x16xf32>
    %c0_54 = arith.constant 0 : index
    %c0_55 = arith.constant 0 : index
    %68 = vector.load %arg2[%c0_54, %c0_55] : memref<1x16xf32, #tpu.memory_space<vmem>>, vector<1x16xf32>
    %69 = vector.broadcast %68 : vector<1x16xf32> to vector<32x16xf32>
    %70 = arith.mulf %67, %69 : vector<32x16xf32>
    %c0_56 = arith.constant 0 : index
    %c0_57 = arith.constant 0 : index
    %71 = vector.load %arg3[%c0_56, %c0_57] : memref<1x16xf32, #tpu.memory_space<vmem>>, vector<1x16xf32>
    %72 = vector.broadcast %71 : vector<1x16xf32> to vector<32x16xf32>
    %73 = arith.addf %70, %72 : vector<32x16xf32>
    %cst_58 = arith.constant 0.000000e+00 : f32
    %74 = vector.broadcast %cst_58 : f32 to vector<32x16xf32>
    %75 = arith.minimumf %73, %74 : vector<32x16xf32>
    %cst_59 = arith.constant 0.000000e+00 : f32
    %76 = vector.broadcast %cst_59 : f32 to vector<32x16xf32>
    %77 = arith.cmpf ogt, %73, %76 : vector<32x16xf32>
    %cst_60 = arith.constant 5.000000e-01 : f32
    %78 = vector.broadcast %cst_60 : f32 to vector<32x16xf32>
    %79 = arith.mulf %78, %75 : vector<32x16xf32>
    %80 = math.tanh %79 : vector<32x16xf32>
    %81 = math.exp %75 : vector<32x16xf32>
    %cst_61 = arith.constant 1.000000e+00 : f32
    %82 = vector.broadcast %cst_61 : f32 to vector<32x16xf32>
    %83 = arith.addf %81, %82 : vector<32x16xf32>
    %84 = arith.mulf %80, %83 : vector<32x16xf32>
    %85 = arith.select %77, %73, %84 : vector<32x16xi1>, vector<32x16xf32>
    %86 = arith.truncf %85 : vector<32x16xf32> to vector<32x16xbf16>
    %c1_62 = arith.constant 1 : index
    %c0_63 = arith.constant 0 : index
    %c0_64 = arith.constant 0 : index
    %87 = vector.load %arg4[%c1_62, %c0_63, %c0_64] : memref<4x32x16xbf16, #tpu.memory_space<vmem>>, vector<1x32x16xbf16>
    %88 = vector.shape_cast %87 : vector<1x32x16xbf16> to vector<32x16xbf16>
    %89 = vector.shape_cast %86 : vector<32x16xbf16> to vector<1x32x16xbf16>
    tpu.vector_store %arg4[%c1_62, %c0_63, %c0_64], %89 {strides = array<i32>} : memref<4x32x16xbf16, #tpu.memory_space<vmem>>, vector<1x32x16xbf16>,
    %c3_65 = arith.constant 3 : index
    %c0_66 = arith.constant 0 : index
    %c0_67 = arith.constant 0 : index
    %90 = vector.load %arg0[%c3_65, %c0_66, %c0_67] : memref<9x32x16xbf16, #tpu.memory_space<vmem>>, vector<1x32x16xbf16>
    %91 = vector.shape_cast %90 : vector<1x32x16xbf16> to vector<32x16xbf16>
    %c11 = arith.constant 11 : index
    %c0_68 = arith.constant 0 : index
    %c0_69 = arith.constant 0 : index
    %92 = vector.load %arg1[%c11, %c0_68, %c0_69] : memref<16x16x16xbf16, #tpu.memory_space<vmem>>, vector<1x16x16xbf16>
    %93 = vector.shape_cast %92 : vector<1x16x16xbf16> to vector<16x16xbf16>
    %cst_70 = arith.constant dense<0.000000e+00> : vector<32x16xf32>
    %94 = tpu.matmul %91, %93, %cst_70 {dimension_numbers = #tpu.dot_dimension_numbers<[1], [0], [0], [1], [0, 0, 1, 1], [], []>} : vector<32x16xbf16>, vector<16x16xbf16>, vector<32x16xf32> -> vector<32x16xf32>
    %c4_71 = arith.constant 4 : index
    %c0_72 = arith.constant 0 : index
    %c0_73 = arith.constant 0 : index
    %95 = vector.load %arg0[%c4_71, %c0_72, %c0_73] : memref<9x32x16xbf16, #tpu.memory_space<vmem>>, vector<1x32x16xbf16>
    %96 = vector.shape_cast %95 : vector<1x32x16xbf16> to vector<32x16xbf16>
    %c9 = arith.constant 9 : index
    %c0_74 = arith.constant 0 : index
    %c0_75 = arith.constant 0 : index
    %97 = vector.load %arg1[%c9, %c0_74, %c0_75] : memref<16x16x16xbf16, #tpu.memory_space<vmem>>, vector<1x16x16xbf16>
    %98 = vector.shape_cast %97 : vector<1x16x16xbf16> to vector<16x16xbf16>
    %cst_76 = arith.constant dense<0.000000e+00> : vector<32x16xf32>
    %99 = tpu.matmul %96, %98, %cst_76 {dimension_numbers = #tpu.dot_dimension_numbers<[1], [0], [0], [1], [0, 0, 1, 1], [], []>} : vector<32x16xbf16>, vector<16x16xbf16>, vector<32x16xf32> -> vector<32x16xf32>
    %100 = arith.addf %94, %99 : vector<32x16xf32>
    %c6_77 = arith.constant 6 : index
    %c0_78 = arith.constant 0 : index
    %c0_79 = arith.constant 0 : index
    %101 = vector.load %arg0[%c6_77, %c0_78, %c0_79] : memref<9x32x16xbf16, #tpu.memory_space<vmem>>, vector<1x32x16xbf16>
    %102 = vector.shape_cast %101 : vector<1x32x16xbf16> to vector<32x16xbf16>
    %c3_80 = arith.constant 3 : index
    %c0_81 = arith.constant 0 : index
    %c0_82 = arith.constant 0 : index
    %103 = vector.load %arg1[%c3_80, %c0_81, %c0_82] : memref<16x16x16xbf16, #tpu.memory_space<vmem>>, vector<1x16x16xbf16>
    %104 = vector.shape_cast %103 : vector<1x16x16xbf16> to vector<16x16xbf16>
    %cst_83 = arith.constant dense<0.000000e+00> : vector<32x16xf32>
    %105 = tpu.matmul %102, %104, %cst_83 {dimension_numbers = #tpu.dot_dimension_numbers<[1], [0], [0], [1], [0, 0, 1, 1], [], []>} : vector<32x16xbf16>, vector<16x16xbf16>, vector<32x16xf32> -> vector<32x16xf32>
    %106 = arith.addf %100, %105 : vector<32x16xf32>
    %c7_84 = arith.constant 7 : index
    %c0_85 = arith.constant 0 : index
    %c0_86 = arith.constant 0 : index
    %107 = vector.load %arg0[%c7_84, %c0_85, %c0_86] : memref<9x32x16xbf16, #tpu.memory_space<vmem>>, vector<1x32x16xbf16>
    %108 = vector.shape_cast %107 : vector<1x32x16xbf16> to vector<32x16xbf16>
    %c1_87 = arith.constant 1 : index
    %c0_88 = arith.constant 0 : index
    %c0_89 = arith.constant 0 : index
    %109 = vector.load %arg1[%c1_87, %c0_88, %c0_89] : memref<16x16x16xbf16, #tpu.memory_space<vmem>>, vector<1x16x16xbf16>
    %110 = vector.shape_cast %109 : vector<1x16x16xbf16> to vector<16x16xbf16>
    %cst_90 = arith.constant dense<0.000000e+00> : vector<32x16xf32>
    %111 = tpu.matmul %108, %110, %cst_90 {dimension_numbers = #tpu.dot_dimension_numbers<[1], [0], [0], [1], [0, 0, 1, 1], [], []>} : vector<32x16xbf16>, vector<16x16xbf16>, vector<32x16xf32> -> vector<32x16xf32>
    %112 = arith.addf %106, %111 : vector<32x16xf32>
    %c0_91 = arith.constant 0 : index
    %c0_92 = arith.constant 0 : index
    %113 = vector.load %arg2[%c0_91, %c0_92] : memref<1x16xf32, #tpu.memory_space<vmem>>, vector<1x16xf32>
    %114 = vector.broadcast %113 : vector<1x16xf32> to vector<32x16xf32>
    %115 = arith.mulf %112, %114 : vector<32x16xf32>
    %c0_93 = arith.constant 0 : index
    %c0_94 = arith.constant 0 : index
    %116 = vector.load %arg3[%c0_93, %c0_94] : memref<1x16xf32, #tpu.memory_space<vmem>>, vector<1x16xf32>
    %117 = vector.broadcast %116 : vector<1x16xf32> to vector<32x16xf32>
    %118 = arith.addf %115, %117 : vector<32x16xf32>
    %cst_95 = arith.constant 0.000000e+00 : f32
    %119 = vector.broadcast %cst_95 : f32 to vector<32x16xf32>
    %120 = arith.minimumf %118, %119 : vector<32x16xf32>
    %cst_96 = arith.constant 0.000000e+00 : f32
    %121 = vector.broadcast %cst_96 : f32 to vector<32x16xf32>
    %122 = arith.cmpf ogt, %118, %121 : vector<32x16xf32>
    %cst_97 = arith.constant 5.000000e-01 : f32
    %123 = vector.broadcast %cst_97 : f32 to vector<32x16xf32>
    %124 = arith.mulf %123, %120 : vector<32x16xf32>
    %125 = math.tanh %124 : vector<32x16xf32>
    %126 = math.exp %120 : vector<32x16xf32>
    %cst_98 = arith.constant 1.000000e+00 : f32
    %127 = vector.broadcast %cst_98 : f32 to vector<32x16xf32>
    %128 = arith.addf %126, %127 : vector<32x16xf32>
    %129 = arith.mulf %125, %128 : vector<32x16xf32>
    %130 = arith.select %122, %118, %129 : vector<32x16xi1>, vector<32x16xf32>
    %131 = arith.truncf %130 : vector<32x16xf32> to vector<32x16xbf16>
    %c2_99 = arith.constant 2 : index
    %c0_100 = arith.constant 0 : index
    %c0_101 = arith.constant 0 : index
    %132 = vector.load %arg4[%c2_99, %c0_100, %c0_101] : memref<4x32x16xbf16, #tpu.memory_space<vmem>>, vector<1x32x16xbf16>
    %133 = vector.shape_cast %132 : vector<1x32x16xbf16> to vector<32x16xbf16>
    %134 = vector.shape_cast %131 : vector<32x16xbf16> to vector<1x32x16xbf16>
    tpu.vector_store %arg4[%c2_99, %c0_100, %c0_101], %134 {strides = array<i32>} : memref<4x32x16xbf16, #tpu.memory_space<vmem>>, vector<1x32x16xbf16>,
    %c4_102 = arith.constant 4 : index
    %c0_103 = arith.constant 0 : index
    %c0_104 = arith.constant 0 : index
    %135 = vector.load %arg0[%c4_102, %c0_103, %c0_104] : memref<9x32x16xbf16, #tpu.memory_space<vmem>>, vector<1x32x16xbf16>
    %136 = vector.shape_cast %135 : vector<1x32x16xbf16> to vector<32x16xbf16>
    %c10 = arith.constant 10 : index
    %c0_105 = arith.constant 0 : index
    %c0_106 = arith.constant 0 : index
    %137 = vector.load %arg1[%c10, %c0_105, %c0_106] : memref<16x16x16xbf16, #tpu.memory_space<vmem>>, vector<1x16x16xbf16>
    %138 = vector.shape_cast %137 : vector<1x16x16xbf16> to vector<16x16xbf16>
    %cst_107 = arith.constant dense<0.000000e+00> : vector<32x16xf32>
    %139 = tpu.matmul %136, %138, %cst_107 {dimension_numbers = #tpu.dot_dimension_numbers<[1], [0], [0], [1], [0, 0, 1, 1], [], []>} : vector<32x16xbf16>, vector<16x16xbf16>, vector<32x16xf32> -> vector<32x16xf32>
    %c5_108 = arith.constant 5 : index
    %c0_109 = arith.constant 0 : index
    %c0_110 = arith.constant 0 : index
    %140 = vector.load %arg0[%c5_108, %c0_109, %c0_110] : memref<9x32x16xbf16, #tpu.memory_space<vmem>>, vector<1x32x16xbf16>
    %141 = vector.shape_cast %140 : vector<1x32x16xbf16> to vector<32x16xbf16>
    %c8 = arith.constant 8 : index
    %c0_111 = arith.constant 0 : index
    %c0_112 = arith.constant 0 : index
    %142 = vector.load %arg1[%c8, %c0_111, %c0_112] : memref<16x16x16xbf16, #tpu.memory_space<vmem>>, vector<1x16x16xbf16>
    %143 = vector.shape_cast %142 : vector<1x16x16xbf16> to vector<16x16xbf16>
    %cst_113 = arith.constant dense<0.000000e+00> : vector<32x16xf32>
    %144 = tpu.matmul %141, %143, %cst_113 {dimension_numbers = #tpu.dot_dimension_numbers<[1], [0], [0], [1], [0, 0, 1, 1], [], []>} : vector<32x16xbf16>, vector<16x16xbf16>, vector<32x16xf32> -> vector<32x16xf32>
    %145 = arith.addf %139, %144 : vector<32x16xf32>
    %c7_114 = arith.constant 7 : index
    %c0_115 = arith.constant 0 : index
    %c0_116 = arith.constant 0 : index
    %146 = vector.load %arg0[%c7_114, %c0_115, %c0_116] : memref<9x32x16xbf16, #tpu.memory_space<vmem>>, vector<1x32x16xbf16>
    %147 = vector.shape_cast %146 : vector<1x32x16xbf16> to vector<32x16xbf16>
    %c2_117 = arith.constant 2 : index
    %c0_118 = arith.constant 0 : index
    %c0_119 = arith.constant 0 : index
    %148 = vector.load %arg1[%c2_117, %c0_118, %c0_119] : memref<16x16x16xbf16, #tpu.memory_space<vmem>>, vector<1x16x16xbf16>
    %149 = vector.shape_cast %148 : vector<1x16x16xbf16> to vector<16x16xbf16>
    %cst_120 = arith.constant dense<0.000000e+00> : vector<32x16xf32>
    %150 = tpu.matmul %147, %149, %cst_120 {dimension_numbers = #tpu.dot_dimension_numbers<[1], [0], [0], [1], [0, 0, 1, 1], [], []>} : vector<32x16xbf16>, vector<16x16xbf16>, vector<32x16xf32> -> vector<32x16xf32>
    %151 = arith.addf %145, %150 : vector<32x16xf32>
    %c8_121 = arith.constant 8 : index
    %c0_122 = arith.constant 0 : index
    %c0_123 = arith.constant 0 : index
    %152 = vector.load %arg0[%c8_121, %c0_122, %c0_123] : memref<9x32x16xbf16, #tpu.memory_space<vmem>>, vector<1x32x16xbf16>
    %153 = vector.shape_cast %152 : vector<1x32x16xbf16> to vector<32x16xbf16>
    %c0_124 = arith.constant 0 : index
    %c0_125 = arith.constant 0 : index
    %c0_126 = arith.constant 0 : index
    %154 = vector.load %arg1[%c0_124, %c0_125, %c0_126] : memref<16x16x16xbf16, #tpu.memory_space<vmem>>, vector<1x16x16xbf16>
    %155 = vector.shape_cast %154 : vector<1x16x16xbf16> to vector<16x16xbf16>
    %cst_127 = arith.constant dense<0.000000e+00> : vector<32x16xf32>
    %156 = tpu.matmul %153, %155, %cst_127 {dimension_numbers = #tpu.dot_dimension_numbers<[1], [0], [0], [1], [0, 0, 1, 1], [], []>} : vector<32x16xbf16>, vector<16x16xbf16>, vector<32x16xf32> -> vector<32x16xf32>
    %157 = arith.addf %151, %156 : vector<32x16xf32>
    %c0_128 = arith.constant 0 : index
    %c0_129 = arith.constant 0 : index
    %158 = vector.load %arg2[%c0_128, %c0_129] : memref<1x16xf32, #tpu.memory_space<vmem>>, vector<1x16xf32>
    %159 = vector.broadcast %158 : vector<1x16xf32> to vector<32x16xf32>
    %160 = arith.mulf %157, %159 : vector<32x16xf32>
    %c0_130 = arith.constant 0 : index
    %c0_131 = arith.constant 0 : index
    %161 = vector.load %arg3[%c0_130, %c0_131] : memref<1x16xf32, #tpu.memory_space<vmem>>, vector<1x16xf32>
    %162 = vector.broadcast %161 : vector<1x16xf32> to vector<32x16xf32>
    %163 = arith.addf %160, %162 : vector<32x16xf32>
    %cst_132 = arith.constant 0.000000e+00 : f32
    %164 = vector.broadcast %cst_132 : f32 to vector<32x16xf32>
    %165 = arith.minimumf %163, %164 : vector<32x16xf32>
    %cst_133 = arith.constant 0.000000e+00 : f32
    %166 = vector.broadcast %cst_133 : f32 to vector<32x16xf32>
    %167 = arith.cmpf ogt, %163, %166 : vector<32x16xf32>
    %cst_134 = arith.constant 5.000000e-01 : f32
    %168 = vector.broadcast %cst_134 : f32 to vector<32x16xf32>
    %169 = arith.mulf %168, %165 : vector<32x16xf32>
    %170 = math.tanh %169 : vector<32x16xf32>
    %171 = math.exp %165 : vector<32x16xf32>
    %cst_135 = arith.constant 1.000000e+00 : f32
    %172 = vector.broadcast %cst_135 : f32 to vector<32x16xf32>
    %173 = arith.addf %171, %172 : vector<32x16xf32>
    %174 = arith.mulf %170, %173 : vector<32x16xf32>
    %175 = arith.select %167, %163, %174 : vector<32x16xi1>, vector<32x16xf32>
    %176 = arith.truncf %175 : vector<32x16xf32> to vector<32x16xbf16>
    %c3_136 = arith.constant 3 : index
    %c0_137 = arith.constant 0 : index
    %c0_138 = arith.constant 0 : index
    %177 = vector.load %arg4[%c3_136, %c0_137, %c0_138] : memref<4x32x16xbf16, #tpu.memory_space<vmem>>, vector<1x32x16xbf16>
    %178 = vector.shape_cast %177 : vector<1x32x16xbf16> to vector<32x16xbf16>
    %179 = vector.shape_cast %176 : vector<32x16xbf16> to vector<1x32x16xbf16>
    tpu.vector_store %arg4[%c3_136, %c0_137, %c0_138], %179 {strides = array<i32>} : memref<4x32x16xbf16, #tpu.memory_space<vmem>>, vector<1x32x16xbf16>,
    return
  }
}

module attributes {stable_mosaic.version = 11 : i64} {
  func.func @_convt_s2_kernel(%arg0: memref<9x128x16xbf16, #tpu.memory_space<vmem>>, %arg1: memref<16x16x16xbf16, #tpu.memory_space<vmem>>, %arg2: memref<1x16xf32, #tpu.memory_space<vmem>>, %arg3: memref<1x16xf32, #tpu.memory_space<vmem>>, %arg4: memref<4x128x16xbf16, #tpu.memory_space<vmem>>) attributes {dimension_semantics = [], scalar_prefetch = 0 : i64, scratch_operands = 0 : i64, tpu.core_type = #tpu.core_type<tc>} {
    %c0 = arith.constant 0 : index
    %c0_0 = arith.constant 0 : index
    %c0_1 = arith.constant 0 : index
    %0 = vector.load %arg0[%c0, %c0_0, %c0_1] : memref<9x128x16xbf16, #tpu.memory_space<vmem>>, vector<1x128x16xbf16>
    %1 = vector.shape_cast %0 : vector<1x128x16xbf16> to vector<128x16xbf16>
    %c15 = arith.constant 15 : index
    %c0_2 = arith.constant 0 : index
    %c0_3 = arith.constant 0 : index
    %2 = vector.load %arg1[%c15, %c0_2, %c0_3] : memref<16x16x16xbf16, #tpu.memory_space<vmem>>, vector<1x16x16xbf16>
    %3 = vector.shape_cast %2 : vector<1x16x16xbf16> to vector<16x16xbf16>
    %cst = arith.constant dense<0.000000e+00> : vector<128x16xf32>
    %4 = tpu.matmul %1, %3, %cst {dimension_numbers = #tpu.dot_dimension_numbers<[1], [0], [0], [1], [0, 0, 1, 1], [], []>} : vector<128x16xbf16>, vector<16x16xbf16>, vector<128x16xf32> -> vector<128x16xf32>
    %c1 = arith.constant 1 : index
    %c0_4 = arith.constant 0 : index
    %c0_5 = arith.constant 0 : index
    %5 = vector.load %arg0[%c1, %c0_4, %c0_5] : memref<9x128x16xbf16, #tpu.memory_space<vmem>>, vector<1x128x16xbf16>
    %6 = vector.shape_cast %5 : vector<1x128x16xbf16> to vector<128x16xbf16>
    %c13 = arith.constant 13 : index
    %c0_6 = arith.constant 0 : index
    %c0_7 = arith.constant 0 : index
    %7 = vector.load %arg1[%c13, %c0_6, %c0_7] : memref<16x16x16xbf16, #tpu.memory_space<vmem>>, vector<1x16x16xbf16>
    %8 = vector.shape_cast %7 : vector<1x16x16xbf16> to vector<16x16xbf16>
    %cst_8 = arith.constant dense<0.000000e+00> : vector<128x16xf32>
    %9 = tpu.matmul %6, %8, %cst_8 {dimension_numbers = #tpu.dot_dimension_numbers<[1], [0], [0], [1], [0, 0, 1, 1], [], []>} : vector<128x16xbf16>, vector<16x16xbf16>, vector<128x16xf32> -> vector<128x16xf32>
    %10 = arith.addf %4, %9 : vector<128x16xf32>
    %c3 = arith.constant 3 : index
    %c0_9 = arith.constant 0 : index
    %c0_10 = arith.constant 0 : index
    %11 = vector.load %arg0[%c3, %c0_9, %c0_10] : memref<9x128x16xbf16, #tpu.memory_space<vmem>>, vector<1x128x16xbf16>
    %12 = vector.shape_cast %11 : vector<1x128x16xbf16> to vector<128x16xbf16>
    %c7 = arith.constant 7 : index
    %c0_11 = arith.constant 0 : index
    %c0_12 = arith.constant 0 : index
    %13 = vector.load %arg1[%c7, %c0_11, %c0_12] : memref<16x16x16xbf16, #tpu.memory_space<vmem>>, vector<1x16x16xbf16>
    %14 = vector.shape_cast %13 : vector<1x16x16xbf16> to vector<16x16xbf16>
    %cst_13 = arith.constant dense<0.000000e+00> : vector<128x16xf32>
    %15 = tpu.matmul %12, %14, %cst_13 {dimension_numbers = #tpu.dot_dimension_numbers<[1], [0], [0], [1], [0, 0, 1, 1], [], []>} : vector<128x16xbf16>, vector<16x16xbf16>, vector<128x16xf32> -> vector<128x16xf32>
    %16 = arith.addf %10, %15 : vector<128x16xf32>
    %c4 = arith.constant 4 : index
    %c0_14 = arith.constant 0 : index
    %c0_15 = arith.constant 0 : index
    %17 = vector.load %arg0[%c4, %c0_14, %c0_15] : memref<9x128x16xbf16, #tpu.memory_space<vmem>>, vector<1x128x16xbf16>
    %18 = vector.shape_cast %17 : vector<1x128x16xbf16> to vector<128x16xbf16>
    %c5 = arith.constant 5 : index
    %c0_16 = arith.constant 0 : index
    %c0_17 = arith.constant 0 : index
    %19 = vector.load %arg1[%c5, %c0_16, %c0_17] : memref<16x16x16xbf16, #tpu.memory_space<vmem>>, vector<1x16x16xbf16>
    %20 = vector.shape_cast %19 : vector<1x16x16xbf16> to vector<16x16xbf16>
    %cst_18 = arith.constant dense<0.000000e+00> : vector<128x16xf32>
    %21 = tpu.matmul %18, %20, %cst_18 {dimension_numbers = #tpu.dot_dimension_numbers<[1], [0], [0], [1], [0, 0, 1, 1], [], []>} : vector<128x16xbf16>, vector<16x16xbf16>, vector<128x16xf32> -> vector<128x16xf32>
    %22 = arith.addf %16, %21 : vector<128x16xf32>
    %c0_19 = arith.constant 0 : index
    %c0_20 = arith.constant 0 : index
    %23 = vector.load %arg2[%c0_19, %c0_20] : memref<1x16xf32, #tpu.memory_space<vmem>>, vector<1x16xf32>
    %24 = vector.broadcast %23 : vector<1x16xf32> to vector<128x16xf32>
    %25 = arith.mulf %22, %24 : vector<128x16xf32>
    %c0_21 = arith.constant 0 : index
    %c0_22 = arith.constant 0 : index
    %26 = vector.load %arg3[%c0_21, %c0_22] : memref<1x16xf32, #tpu.memory_space<vmem>>, vector<1x16xf32>
    %27 = vector.broadcast %26 : vector<1x16xf32> to vector<128x16xf32>
    %28 = arith.addf %25, %27 : vector<128x16xf32>
    %cst_23 = arith.constant 0.000000e+00 : f32
    %29 = vector.broadcast %cst_23 : f32 to vector<128x16xf32>
    %30 = arith.minimumf %28, %29 : vector<128x16xf32>
    %cst_24 = arith.constant 0.000000e+00 : f32
    %31 = vector.broadcast %cst_24 : f32 to vector<128x16xf32>
    %32 = arith.cmpf ogt, %28, %31 : vector<128x16xf32>
    %cst_25 = arith.constant 5.000000e-01 : f32
    %33 = vector.broadcast %cst_25 : f32 to vector<128x16xf32>
    %34 = arith.mulf %33, %30 : vector<128x16xf32>
    %35 = math.tanh %34 : vector<128x16xf32>
    %36 = math.exp %30 : vector<128x16xf32>
    %cst_26 = arith.constant 1.000000e+00 : f32
    %37 = vector.broadcast %cst_26 : f32 to vector<128x16xf32>
    %38 = arith.addf %36, %37 : vector<128x16xf32>
    %39 = arith.mulf %35, %38 : vector<128x16xf32>
    %40 = arith.select %32, %28, %39 : vector<128x16xi1>, vector<128x16xf32>
    %41 = arith.truncf %40 : vector<128x16xf32> to vector<128x16xbf16>
    %c0_27 = arith.constant 0 : index
    %c0_28 = arith.constant 0 : index
    %c0_29 = arith.constant 0 : index
    %42 = vector.load %arg4[%c0_27, %c0_28, %c0_29] : memref<4x128x16xbf16, #tpu.memory_space<vmem>>, vector<1x128x16xbf16>
    %43 = vector.shape_cast %42 : vector<1x128x16xbf16> to vector<128x16xbf16>
    %44 = vector.shape_cast %41 : vector<128x16xbf16> to vector<1x128x16xbf16>
    tpu.vector_store %arg4[%c0_27, %c0_28, %c0_29], %44 {strides = array<i32>} : memref<4x128x16xbf16, #tpu.memory_space<vmem>>, vector<1x128x16xbf16>,
    %c1_30 = arith.constant 1 : index
    %c0_31 = arith.constant 0 : index
    %c0_32 = arith.constant 0 : index
    %45 = vector.load %arg0[%c1_30, %c0_31, %c0_32] : memref<9x128x16xbf16, #tpu.memory_space<vmem>>, vector<1x128x16xbf16>
    %46 = vector.shape_cast %45 : vector<1x128x16xbf16> to vector<128x16xbf16>
    %c14 = arith.constant 14 : index
    %c0_33 = arith.constant 0 : index
    %c0_34 = arith.constant 0 : index
    %47 = vector.load %arg1[%c14, %c0_33, %c0_34] : memref<16x16x16xbf16, #tpu.memory_space<vmem>>, vector<1x16x16xbf16>
    %48 = vector.shape_cast %47 : vector<1x16x16xbf16> to vector<16x16xbf16>
    %cst_35 = arith.constant dense<0.000000e+00> : vector<128x16xf32>
    %49 = tpu.matmul %46, %48, %cst_35 {dimension_numbers = #tpu.dot_dimension_numbers<[1], [0], [0], [1], [0, 0, 1, 1], [], []>} : vector<128x16xbf16>, vector<16x16xbf16>, vector<128x16xf32> -> vector<128x16xf32>
    %c2 = arith.constant 2 : index
    %c0_36 = arith.constant 0 : index
    %c0_37 = arith.constant 0 : index
    %50 = vector.load %arg0[%c2, %c0_36, %c0_37] : memref<9x128x16xbf16, #tpu.memory_space<vmem>>, vector<1x128x16xbf16>
    %51 = vector.shape_cast %50 : vector<1x128x16xbf16> to vector<128x16xbf16>
    %c12 = arith.constant 12 : index
    %c0_38 = arith.constant 0 : index
    %c0_39 = arith.constant 0 : index
    %52 = vector.load %arg1[%c12, %c0_38, %c0_39] : memref<16x16x16xbf16, #tpu.memory_space<vmem>>, vector<1x16x16xbf16>
    %53 = vector.shape_cast %52 : vector<1x16x16xbf16> to vector<16x16xbf16>
    %cst_40 = arith.constant dense<0.000000e+00> : vector<128x16xf32>
    %54 = tpu.matmul %51, %53, %cst_40 {dimension_numbers = #tpu.dot_dimension_numbers<[1], [0], [0], [1], [0, 0, 1, 1], [], []>} : vector<128x16xbf16>, vector<16x16xbf16>, vector<128x16xf32> -> vector<128x16xf32>
    %55 = arith.addf %49, %54 : vector<128x16xf32>
    %c4_41 = arith.constant 4 : index
    %c0_42 = arith.constant 0 : index
    %c0_43 = arith.constant 0 : index
    %56 = vector.load %arg0[%c4_41, %c0_42, %c0_43] : memref<9x128x16xbf16, #tpu.memory_space<vmem>>, vector<1x128x16xbf16>
    %57 = vector.shape_cast %56 : vector<1x128x16xbf16> to vector<128x16xbf16>
    %c6 = arith.constant 6 : index
    %c0_44 = arith.constant 0 : index
    %c0_45 = arith.constant 0 : index
    %58 = vector.load %arg1[%c6, %c0_44, %c0_45] : memref<16x16x16xbf16, #tpu.memory_space<vmem>>, vector<1x16x16xbf16>
    %59 = vector.shape_cast %58 : vector<1x16x16xbf16> to vector<16x16xbf16>
    %cst_46 = arith.constant dense<0.000000e+00> : vector<128x16xf32>
    %60 = tpu.matmul %57, %59, %cst_46 {dimension_numbers = #tpu.dot_dimension_numbers<[1], [0], [0], [1], [0, 0, 1, 1], [], []>} : vector<128x16xbf16>, vector<16x16xbf16>, vector<128x16xf32> -> vector<128x16xf32>
    %61 = arith.addf %55, %60 : vector<128x16xf32>
    %c5_47 = arith.constant 5 : index
    %c0_48 = arith.constant 0 : index
    %c0_49 = arith.constant 0 : index
    %62 = vector.load %arg0[%c5_47, %c0_48, %c0_49] : memref<9x128x16xbf16, #tpu.memory_space<vmem>>, vector<1x128x16xbf16>
    %63 = vector.shape_cast %62 : vector<1x128x16xbf16> to vector<128x16xbf16>
    %c4_50 = arith.constant 4 : index
    %c0_51 = arith.constant 0 : index
    %c0_52 = arith.constant 0 : index
    %64 = vector.load %arg1[%c4_50, %c0_51, %c0_52] : memref<16x16x16xbf16, #tpu.memory_space<vmem>>, vector<1x16x16xbf16>
    %65 = vector.shape_cast %64 : vector<1x16x16xbf16> to vector<16x16xbf16>
    %cst_53 = arith.constant dense<0.000000e+00> : vector<128x16xf32>
    %66 = tpu.matmul %63, %65, %cst_53 {dimension_numbers = #tpu.dot_dimension_numbers<[1], [0], [0], [1], [0, 0, 1, 1], [], []>} : vector<128x16xbf16>, vector<16x16xbf16>, vector<128x16xf32> -> vector<128x16xf32>
    %67 = arith.addf %61, %66 : vector<128x16xf32>
    %c0_54 = arith.constant 0 : index
    %c0_55 = arith.constant 0 : index
    %68 = vector.load %arg2[%c0_54, %c0_55] : memref<1x16xf32, #tpu.memory_space<vmem>>, vector<1x16xf32>
    %69 = vector.broadcast %68 : vector<1x16xf32> to vector<128x16xf32>
    %70 = arith.mulf %67, %69 : vector<128x16xf32>
    %c0_56 = arith.constant 0 : index
    %c0_57 = arith.constant 0 : index
    %71 = vector.load %arg3[%c0_56, %c0_57] : memref<1x16xf32, #tpu.memory_space<vmem>>, vector<1x16xf32>
    %72 = vector.broadcast %71 : vector<1x16xf32> to vector<128x16xf32>
    %73 = arith.addf %70, %72 : vector<128x16xf32>
    %cst_58 = arith.constant 0.000000e+00 : f32
    %74 = vector.broadcast %cst_58 : f32 to vector<128x16xf32>
    %75 = arith.minimumf %73, %74 : vector<128x16xf32>
    %cst_59 = arith.constant 0.000000e+00 : f32
    %76 = vector.broadcast %cst_59 : f32 to vector<128x16xf32>
    %77 = arith.cmpf ogt, %73, %76 : vector<128x16xf32>
    %cst_60 = arith.constant 5.000000e-01 : f32
    %78 = vector.broadcast %cst_60 : f32 to vector<128x16xf32>
    %79 = arith.mulf %78, %75 : vector<128x16xf32>
    %80 = math.tanh %79 : vector<128x16xf32>
    %81 = math.exp %75 : vector<128x16xf32>
    %cst_61 = arith.constant 1.000000e+00 : f32
    %82 = vector.broadcast %cst_61 : f32 to vector<128x16xf32>
    %83 = arith.addf %81, %82 : vector<128x16xf32>
    %84 = arith.mulf %80, %83 : vector<128x16xf32>
    %85 = arith.select %77, %73, %84 : vector<128x16xi1>, vector<128x16xf32>
    %86 = arith.truncf %85 : vector<128x16xf32> to vector<128x16xbf16>
    %c1_62 = arith.constant 1 : index
    %c0_63 = arith.constant 0 : index
    %c0_64 = arith.constant 0 : index
    %87 = vector.load %arg4[%c1_62, %c0_63, %c0_64] : memref<4x128x16xbf16, #tpu.memory_space<vmem>>, vector<1x128x16xbf16>
    %88 = vector.shape_cast %87 : vector<1x128x16xbf16> to vector<128x16xbf16>
    %89 = vector.shape_cast %86 : vector<128x16xbf16> to vector<1x128x16xbf16>
    tpu.vector_store %arg4[%c1_62, %c0_63, %c0_64], %89 {strides = array<i32>} : memref<4x128x16xbf16, #tpu.memory_space<vmem>>, vector<1x128x16xbf16>,
    %c3_65 = arith.constant 3 : index
    %c0_66 = arith.constant 0 : index
    %c0_67 = arith.constant 0 : index
    %90 = vector.load %arg0[%c3_65, %c0_66, %c0_67] : memref<9x128x16xbf16, #tpu.memory_space<vmem>>, vector<1x128x16xbf16>
    %91 = vector.shape_cast %90 : vector<1x128x16xbf16> to vector<128x16xbf16>
    %c11 = arith.constant 11 : index
    %c0_68 = arith.constant 0 : index
    %c0_69 = arith.constant 0 : index
    %92 = vector.load %arg1[%c11, %c0_68, %c0_69] : memref<16x16x16xbf16, #tpu.memory_space<vmem>>, vector<1x16x16xbf16>
    %93 = vector.shape_cast %92 : vector<1x16x16xbf16> to vector<16x16xbf16>
    %cst_70 = arith.constant dense<0.000000e+00> : vector<128x16xf32>
    %94 = tpu.matmul %91, %93, %cst_70 {dimension_numbers = #tpu.dot_dimension_numbers<[1], [0], [0], [1], [0, 0, 1, 1], [], []>} : vector<128x16xbf16>, vector<16x16xbf16>, vector<128x16xf32> -> vector<128x16xf32>
    %c4_71 = arith.constant 4 : index
    %c0_72 = arith.constant 0 : index
    %c0_73 = arith.constant 0 : index
    %95 = vector.load %arg0[%c4_71, %c0_72, %c0_73] : memref<9x128x16xbf16, #tpu.memory_space<vmem>>, vector<1x128x16xbf16>
    %96 = vector.shape_cast %95 : vector<1x128x16xbf16> to vector<128x16xbf16>
    %c9 = arith.constant 9 : index
    %c0_74 = arith.constant 0 : index
    %c0_75 = arith.constant 0 : index
    %97 = vector.load %arg1[%c9, %c0_74, %c0_75] : memref<16x16x16xbf16, #tpu.memory_space<vmem>>, vector<1x16x16xbf16>
    %98 = vector.shape_cast %97 : vector<1x16x16xbf16> to vector<16x16xbf16>
    %cst_76 = arith.constant dense<0.000000e+00> : vector<128x16xf32>
    %99 = tpu.matmul %96, %98, %cst_76 {dimension_numbers = #tpu.dot_dimension_numbers<[1], [0], [0], [1], [0, 0, 1, 1], [], []>} : vector<128x16xbf16>, vector<16x16xbf16>, vector<128x16xf32> -> vector<128x16xf32>
    %100 = arith.addf %94, %99 : vector<128x16xf32>
    %c6_77 = arith.constant 6 : index
    %c0_78 = arith.constant 0 : index
    %c0_79 = arith.constant 0 : index
    %101 = vector.load %arg0[%c6_77, %c0_78, %c0_79] : memref<9x128x16xbf16, #tpu.memory_space<vmem>>, vector<1x128x16xbf16>
    %102 = vector.shape_cast %101 : vector<1x128x16xbf16> to vector<128x16xbf16>
    %c3_80 = arith.constant 3 : index
    %c0_81 = arith.constant 0 : index
    %c0_82 = arith.constant 0 : index
    %103 = vector.load %arg1[%c3_80, %c0_81, %c0_82] : memref<16x16x16xbf16, #tpu.memory_space<vmem>>, vector<1x16x16xbf16>
    %104 = vector.shape_cast %103 : vector<1x16x16xbf16> to vector<16x16xbf16>
    %cst_83 = arith.constant dense<0.000000e+00> : vector<128x16xf32>
    %105 = tpu.matmul %102, %104, %cst_83 {dimension_numbers = #tpu.dot_dimension_numbers<[1], [0], [0], [1], [0, 0, 1, 1], [], []>} : vector<128x16xbf16>, vector<16x16xbf16>, vector<128x16xf32> -> vector<128x16xf32>
    %106 = arith.addf %100, %105 : vector<128x16xf32>
    %c7_84 = arith.constant 7 : index
    %c0_85 = arith.constant 0 : index
    %c0_86 = arith.constant 0 : index
    %107 = vector.load %arg0[%c7_84, %c0_85, %c0_86] : memref<9x128x16xbf16, #tpu.memory_space<vmem>>, vector<1x128x16xbf16>
    %108 = vector.shape_cast %107 : vector<1x128x16xbf16> to vector<128x16xbf16>
    %c1_87 = arith.constant 1 : index
    %c0_88 = arith.constant 0 : index
    %c0_89 = arith.constant 0 : index
    %109 = vector.load %arg1[%c1_87, %c0_88, %c0_89] : memref<16x16x16xbf16, #tpu.memory_space<vmem>>, vector<1x16x16xbf16>
    %110 = vector.shape_cast %109 : vector<1x16x16xbf16> to vector<16x16xbf16>
    %cst_90 = arith.constant dense<0.000000e+00> : vector<128x16xf32>
    %111 = tpu.matmul %108, %110, %cst_90 {dimension_numbers = #tpu.dot_dimension_numbers<[1], [0], [0], [1], [0, 0, 1, 1], [], []>} : vector<128x16xbf16>, vector<16x16xbf16>, vector<128x16xf32> -> vector<128x16xf32>
    %112 = arith.addf %106, %111 : vector<128x16xf32>
    %c0_91 = arith.constant 0 : index
    %c0_92 = arith.constant 0 : index
    %113 = vector.load %arg2[%c0_91, %c0_92] : memref<1x16xf32, #tpu.memory_space<vmem>>, vector<1x16xf32>
    %114 = vector.broadcast %113 : vector<1x16xf32> to vector<128x16xf32>
    %115 = arith.mulf %112, %114 : vector<128x16xf32>
    %c0_93 = arith.constant 0 : index
    %c0_94 = arith.constant 0 : index
    %116 = vector.load %arg3[%c0_93, %c0_94] : memref<1x16xf32, #tpu.memory_space<vmem>>, vector<1x16xf32>
    %117 = vector.broadcast %116 : vector<1x16xf32> to vector<128x16xf32>
    %118 = arith.addf %115, %117 : vector<128x16xf32>
    %cst_95 = arith.constant 0.000000e+00 : f32
    %119 = vector.broadcast %cst_95 : f32 to vector<128x16xf32>
    %120 = arith.minimumf %118, %119 : vector<128x16xf32>
    %cst_96 = arith.constant 0.000000e+00 : f32
    %121 = vector.broadcast %cst_96 : f32 to vector<128x16xf32>
    %122 = arith.cmpf ogt, %118, %121 : vector<128x16xf32>
    %cst_97 = arith.constant 5.000000e-01 : f32
    %123 = vector.broadcast %cst_97 : f32 to vector<128x16xf32>
    %124 = arith.mulf %123, %120 : vector<128x16xf32>
    %125 = math.tanh %124 : vector<128x16xf32>
    %126 = math.exp %120 : vector<128x16xf32>
    %cst_98 = arith.constant 1.000000e+00 : f32
    %127 = vector.broadcast %cst_98 : f32 to vector<128x16xf32>
    %128 = arith.addf %126, %127 : vector<128x16xf32>
    %129 = arith.mulf %125, %128 : vector<128x16xf32>
    %130 = arith.select %122, %118, %129 : vector<128x16xi1>, vector<128x16xf32>
    %131 = arith.truncf %130 : vector<128x16xf32> to vector<128x16xbf16>
    %c2_99 = arith.constant 2 : index
    %c0_100 = arith.constant 0 : index
    %c0_101 = arith.constant 0 : index
    %132 = vector.load %arg4[%c2_99, %c0_100, %c0_101] : memref<4x128x16xbf16, #tpu.memory_space<vmem>>, vector<1x128x16xbf16>
    %133 = vector.shape_cast %132 : vector<1x128x16xbf16> to vector<128x16xbf16>
    %134 = vector.shape_cast %131 : vector<128x16xbf16> to vector<1x128x16xbf16>
    tpu.vector_store %arg4[%c2_99, %c0_100, %c0_101], %134 {strides = array<i32>} : memref<4x128x16xbf16, #tpu.memory_space<vmem>>, vector<1x128x16xbf16>,
    %c4_102 = arith.constant 4 : index
    %c0_103 = arith.constant 0 : index
    %c0_104 = arith.constant 0 : index
    %135 = vector.load %arg0[%c4_102, %c0_103, %c0_104] : memref<9x128x16xbf16, #tpu.memory_space<vmem>>, vector<1x128x16xbf16>
    %136 = vector.shape_cast %135 : vector<1x128x16xbf16> to vector<128x16xbf16>
    %c10 = arith.constant 10 : index
    %c0_105 = arith.constant 0 : index
    %c0_106 = arith.constant 0 : index
    %137 = vector.load %arg1[%c10, %c0_105, %c0_106] : memref<16x16x16xbf16, #tpu.memory_space<vmem>>, vector<1x16x16xbf16>
    %138 = vector.shape_cast %137 : vector<1x16x16xbf16> to vector<16x16xbf16>
    %cst_107 = arith.constant dense<0.000000e+00> : vector<128x16xf32>
    %139 = tpu.matmul %136, %138, %cst_107 {dimension_numbers = #tpu.dot_dimension_numbers<[1], [0], [0], [1], [0, 0, 1, 1], [], []>} : vector<128x16xbf16>, vector<16x16xbf16>, vector<128x16xf32> -> vector<128x16xf32>
    %c5_108 = arith.constant 5 : index
    %c0_109 = arith.constant 0 : index
    %c0_110 = arith.constant 0 : index
    %140 = vector.load %arg0[%c5_108, %c0_109, %c0_110] : memref<9x128x16xbf16, #tpu.memory_space<vmem>>, vector<1x128x16xbf16>
    %141 = vector.shape_cast %140 : vector<1x128x16xbf16> to vector<128x16xbf16>
    %c8 = arith.constant 8 : index
    %c0_111 = arith.constant 0 : index
    %c0_112 = arith.constant 0 : index
    %142 = vector.load %arg1[%c8, %c0_111, %c0_112] : memref<16x16x16xbf16, #tpu.memory_space<vmem>>, vector<1x16x16xbf16>
    %143 = vector.shape_cast %142 : vector<1x16x16xbf16> to vector<16x16xbf16>
    %cst_113 = arith.constant dense<0.000000e+00> : vector<128x16xf32>
    %144 = tpu.matmul %141, %143, %cst_113 {dimension_numbers = #tpu.dot_dimension_numbers<[1], [0], [0], [1], [0, 0, 1, 1], [], []>} : vector<128x16xbf16>, vector<16x16xbf16>, vector<128x16xf32> -> vector<128x16xf32>
    %145 = arith.addf %139, %144 : vector<128x16xf32>
    %c7_114 = arith.constant 7 : index
    %c0_115 = arith.constant 0 : index
    %c0_116 = arith.constant 0 : index
    %146 = vector.load %arg0[%c7_114, %c0_115, %c0_116] : memref<9x128x16xbf16, #tpu.memory_space<vmem>>, vector<1x128x16xbf16>
    %147 = vector.shape_cast %146 : vector<1x128x16xbf16> to vector<128x16xbf16>
    %c2_117 = arith.constant 2 : index
    %c0_118 = arith.constant 0 : index
    %c0_119 = arith.constant 0 : index
    %148 = vector.load %arg1[%c2_117, %c0_118, %c0_119] : memref<16x16x16xbf16, #tpu.memory_space<vmem>>, vector<1x16x16xbf16>
    %149 = vector.shape_cast %148 : vector<1x16x16xbf16> to vector<16x16xbf16>
    %cst_120 = arith.constant dense<0.000000e+00> : vector<128x16xf32>
    %150 = tpu.matmul %147, %149, %cst_120 {dimension_numbers = #tpu.dot_dimension_numbers<[1], [0], [0], [1], [0, 0, 1, 1], [], []>} : vector<128x16xbf16>, vector<16x16xbf16>, vector<128x16xf32> -> vector<128x16xf32>
    %151 = arith.addf %145, %150 : vector<128x16xf32>
    %c8_121 = arith.constant 8 : index
    %c0_122 = arith.constant 0 : index
    %c0_123 = arith.constant 0 : index
    %152 = vector.load %arg0[%c8_121, %c0_122, %c0_123] : memref<9x128x16xbf16, #tpu.memory_space<vmem>>, vector<1x128x16xbf16>
    %153 = vector.shape_cast %152 : vector<1x128x16xbf16> to vector<128x16xbf16>
    %c0_124 = arith.constant 0 : index
    %c0_125 = arith.constant 0 : index
    %c0_126 = arith.constant 0 : index
    %154 = vector.load %arg1[%c0_124, %c0_125, %c0_126] : memref<16x16x16xbf16, #tpu.memory_space<vmem>>, vector<1x16x16xbf16>
    %155 = vector.shape_cast %154 : vector<1x16x16xbf16> to vector<16x16xbf16>
    %cst_127 = arith.constant dense<0.000000e+00> : vector<128x16xf32>
    %156 = tpu.matmul %153, %155, %cst_127 {dimension_numbers = #tpu.dot_dimension_numbers<[1], [0], [0], [1], [0, 0, 1, 1], [], []>} : vector<128x16xbf16>, vector<16x16xbf16>, vector<128x16xf32> -> vector<128x16xf32>
    %157 = arith.addf %151, %156 : vector<128x16xf32>
    %c0_128 = arith.constant 0 : index
    %c0_129 = arith.constant 0 : index
    %158 = vector.load %arg2[%c0_128, %c0_129] : memref<1x16xf32, #tpu.memory_space<vmem>>, vector<1x16xf32>
    %159 = vector.broadcast %158 : vector<1x16xf32> to vector<128x16xf32>
    %160 = arith.mulf %157, %159 : vector<128x16xf32>
    %c0_130 = arith.constant 0 : index
    %c0_131 = arith.constant 0 : index
    %161 = vector.load %arg3[%c0_130, %c0_131] : memref<1x16xf32, #tpu.memory_space<vmem>>, vector<1x16xf32>
    %162 = vector.broadcast %161 : vector<1x16xf32> to vector<128x16xf32>
    %163 = arith.addf %160, %162 : vector<128x16xf32>
    %cst_132 = arith.constant 0.000000e+00 : f32
    %164 = vector.broadcast %cst_132 : f32 to vector<128x16xf32>
    %165 = arith.minimumf %163, %164 : vector<128x16xf32>
    %cst_133 = arith.constant 0.000000e+00 : f32
    %166 = vector.broadcast %cst_133 : f32 to vector<128x16xf32>
    %167 = arith.cmpf ogt, %163, %166 : vector<128x16xf32>
    %cst_134 = arith.constant 5.000000e-01 : f32
    %168 = vector.broadcast %cst_134 : f32 to vector<128x16xf32>
    %169 = arith.mulf %168, %165 : vector<128x16xf32>
    %170 = math.tanh %169 : vector<128x16xf32>
    %171 = math.exp %165 : vector<128x16xf32>
    %cst_135 = arith.constant 1.000000e+00 : f32
    %172 = vector.broadcast %cst_135 : f32 to vector<128x16xf32>
    %173 = arith.addf %171, %172 : vector<128x16xf32>
    %174 = arith.mulf %170, %173 : vector<128x16xf32>
    %175 = arith.select %167, %163, %174 : vector<128x16xi1>, vector<128x16xf32>
    %176 = arith.truncf %175 : vector<128x16xf32> to vector<128x16xbf16>
    %c3_136 = arith.constant 3 : index
    %c0_137 = arith.constant 0 : index
    %c0_138 = arith.constant 0 : index
    %177 = vector.load %arg4[%c3_136, %c0_137, %c0_138] : memref<4x128x16xbf16, #tpu.memory_space<vmem>>, vector<1x128x16xbf16>
    %178 = vector.shape_cast %177 : vector<1x128x16xbf16> to vector<128x16xbf16>
    %179 = vector.shape_cast %176 : vector<128x16xbf16> to vector<1x128x16xbf16>
    tpu.vector_store %arg4[%c3_136, %c0_137, %c0_138], %179 {strides = array<i32>} : memref<4x128x16xbf16, #tpu.memory_space<vmem>>, vector<1x128x16xbf16>,
    return
  }
}

module attributes {stable_mosaic.version = 11 : i64} {
  func.func @_convt_s2_kernel(%arg0: memref<9x512x16xbf16, #tpu.memory_space<vmem>>, %arg1: memref<16x16x3xbf16, #tpu.memory_space<vmem>>, %arg2: memref<1x3xf32, #tpu.memory_space<vmem>>, %arg3: memref<1x3xf32, #tpu.memory_space<vmem>>, %arg4: memref<4x512x3xf32, #tpu.memory_space<vmem>>) attributes {dimension_semantics = [], scalar_prefetch = 0 : i64, scratch_operands = 0 : i64, tpu.core_type = #tpu.core_type<tc>} {
    %c0 = arith.constant 0 : index
    %c0_0 = arith.constant 0 : index
    %c0_1 = arith.constant 0 : index
    %0 = vector.load %arg0[%c0, %c0_0, %c0_1] : memref<9x512x16xbf16, #tpu.memory_space<vmem>>, vector<1x512x16xbf16>
    %1 = vector.shape_cast %0 : vector<1x512x16xbf16> to vector<512x16xbf16>
    %c15 = arith.constant 15 : index
    %c0_2 = arith.constant 0 : index
    %c0_3 = arith.constant 0 : index
    %2 = vector.load %arg1[%c15, %c0_2, %c0_3] : memref<16x16x3xbf16, #tpu.memory_space<vmem>>, vector<1x16x3xbf16>
    %3 = vector.shape_cast %2 : vector<1x16x3xbf16> to vector<16x3xbf16>
    %cst = arith.constant dense<0.000000e+00> : vector<512x3xf32>
    %4 = tpu.matmul %1, %3, %cst {dimension_numbers = #tpu.dot_dimension_numbers<[1], [0], [0], [1], [0, 0, 1, 1], [], []>} : vector<512x16xbf16>, vector<16x3xbf16>, vector<512x3xf32> -> vector<512x3xf32>
    %c1 = arith.constant 1 : index
    %c0_4 = arith.constant 0 : index
    %c0_5 = arith.constant 0 : index
    %5 = vector.load %arg0[%c1, %c0_4, %c0_5] : memref<9x512x16xbf16, #tpu.memory_space<vmem>>, vector<1x512x16xbf16>
    %6 = vector.shape_cast %5 : vector<1x512x16xbf16> to vector<512x16xbf16>
    %c13 = arith.constant 13 : index
    %c0_6 = arith.constant 0 : index
    %c0_7 = arith.constant 0 : index
    %7 = vector.load %arg1[%c13, %c0_6, %c0_7] : memref<16x16x3xbf16, #tpu.memory_space<vmem>>, vector<1x16x3xbf16>
    %8 = vector.shape_cast %7 : vector<1x16x3xbf16> to vector<16x3xbf16>
    %cst_8 = arith.constant dense<0.000000e+00> : vector<512x3xf32>
    %9 = tpu.matmul %6, %8, %cst_8 {dimension_numbers = #tpu.dot_dimension_numbers<[1], [0], [0], [1], [0, 0, 1, 1], [], []>} : vector<512x16xbf16>, vector<16x3xbf16>, vector<512x3xf32> -> vector<512x3xf32>
    %10 = arith.addf %4, %9 : vector<512x3xf32>
    %c3 = arith.constant 3 : index
    %c0_9 = arith.constant 0 : index
    %c0_10 = arith.constant 0 : index
    %11 = vector.load %arg0[%c3, %c0_9, %c0_10] : memref<9x512x16xbf16, #tpu.memory_space<vmem>>, vector<1x512x16xbf16>
    %12 = vector.shape_cast %11 : vector<1x512x16xbf16> to vector<512x16xbf16>
    %c7 = arith.constant 7 : index
    %c0_11 = arith.constant 0 : index
    %c0_12 = arith.constant 0 : index
    %13 = vector.load %arg1[%c7, %c0_11, %c0_12] : memref<16x16x3xbf16, #tpu.memory_space<vmem>>, vector<1x16x3xbf16>
    %14 = vector.shape_cast %13 : vector<1x16x3xbf16> to vector<16x3xbf16>
    %cst_13 = arith.constant dense<0.000000e+00> : vector<512x3xf32>
    %15 = tpu.matmul %12, %14, %cst_13 {dimension_numbers = #tpu.dot_dimension_numbers<[1], [0], [0], [1], [0, 0, 1, 1], [], []>} : vector<512x16xbf16>, vector<16x3xbf16>, vector<512x3xf32> -> vector<512x3xf32>
    %16 = arith.addf %10, %15 : vector<512x3xf32>
    %c4 = arith.constant 4 : index
    %c0_14 = arith.constant 0 : index
    %c0_15 = arith.constant 0 : index
    %17 = vector.load %arg0[%c4, %c0_14, %c0_15] : memref<9x512x16xbf16, #tpu.memory_space<vmem>>, vector<1x512x16xbf16>
    %18 = vector.shape_cast %17 : vector<1x512x16xbf16> to vector<512x16xbf16>
    %c5 = arith.constant 5 : index
    %c0_16 = arith.constant 0 : index
    %c0_17 = arith.constant 0 : index
    %19 = vector.load %arg1[%c5, %c0_16, %c0_17] : memref<16x16x3xbf16, #tpu.memory_space<vmem>>, vector<1x16x3xbf16>
    %20 = vector.shape_cast %19 : vector<1x16x3xbf16> to vector<16x3xbf16>
    %cst_18 = arith.constant dense<0.000000e+00> : vector<512x3xf32>
    %21 = tpu.matmul %18, %20, %cst_18 {dimension_numbers = #tpu.dot_dimension_numbers<[1], [0], [0], [1], [0, 0, 1, 1], [], []>} : vector<512x16xbf16>, vector<16x3xbf16>, vector<512x3xf32> -> vector<512x3xf32>
    %22 = arith.addf %16, %21 : vector<512x3xf32>
    %c0_19 = arith.constant 0 : index
    %c0_20 = arith.constant 0 : index
    %23 = vector.load %arg2[%c0_19, %c0_20] : memref<1x3xf32, #tpu.memory_space<vmem>>, vector<1x3xf32>
    %24 = vector.broadcast %23 : vector<1x3xf32> to vector<512x3xf32>
    %25 = arith.mulf %22, %24 : vector<512x3xf32>
    %c0_21 = arith.constant 0 : index
    %c0_22 = arith.constant 0 : index
    %26 = vector.load %arg3[%c0_21, %c0_22] : memref<1x3xf32, #tpu.memory_space<vmem>>, vector<1x3xf32>
    %27 = vector.broadcast %26 : vector<1x3xf32> to vector<512x3xf32>
    %28 = arith.addf %25, %27 : vector<512x3xf32>
    %29 = math.tanh %28 : vector<512x3xf32>
    %c0_23 = arith.constant 0 : index
    %c0_24 = arith.constant 0 : index
    %c0_25 = arith.constant 0 : index
    %30 = vector.load %arg4[%c0_23, %c0_24, %c0_25] : memref<4x512x3xf32, #tpu.memory_space<vmem>>, vector<1x512x3xf32>
    %31 = vector.shape_cast %30 : vector<1x512x3xf32> to vector<512x3xf32>
    %32 = vector.shape_cast %29 : vector<512x3xf32> to vector<1x512x3xf32>
    tpu.vector_store %arg4[%c0_23, %c0_24, %c0_25], %32 {strides = array<i32>} : memref<4x512x3xf32, #tpu.memory_space<vmem>>, vector<1x512x3xf32>,
    %c1_26 = arith.constant 1 : index
    %c0_27 = arith.constant 0 : index
    %c0_28 = arith.constant 0 : index
    %33 = vector.load %arg0[%c1_26, %c0_27, %c0_28] : memref<9x512x16xbf16, #tpu.memory_space<vmem>>, vector<1x512x16xbf16>
    %34 = vector.shape_cast %33 : vector<1x512x16xbf16> to vector<512x16xbf16>
    %c14 = arith.constant 14 : index
    %c0_29 = arith.constant 0 : index
    %c0_30 = arith.constant 0 : index
    %35 = vector.load %arg1[%c14, %c0_29, %c0_30] : memref<16x16x3xbf16, #tpu.memory_space<vmem>>, vector<1x16x3xbf16>
    %36 = vector.shape_cast %35 : vector<1x16x3xbf16> to vector<16x3xbf16>
    %cst_31 = arith.constant dense<0.000000e+00> : vector<512x3xf32>
    %37 = tpu.matmul %34, %36, %cst_31 {dimension_numbers = #tpu.dot_dimension_numbers<[1], [0], [0], [1], [0, 0, 1, 1], [], []>} : vector<512x16xbf16>, vector<16x3xbf16>, vector<512x3xf32> -> vector<512x3xf32>
    %c2 = arith.constant 2 : index
    %c0_32 = arith.constant 0 : index
    %c0_33 = arith.constant 0 : index
    %38 = vector.load %arg0[%c2, %c0_32, %c0_33] : memref<9x512x16xbf16, #tpu.memory_space<vmem>>, vector<1x512x16xbf16>
    %39 = vector.shape_cast %38 : vector<1x512x16xbf16> to vector<512x16xbf16>
    %c12 = arith.constant 12 : index
    %c0_34 = arith.constant 0 : index
    %c0_35 = arith.constant 0 : index
    %40 = vector.load %arg1[%c12, %c0_34, %c0_35] : memref<16x16x3xbf16, #tpu.memory_space<vmem>>, vector<1x16x3xbf16>
    %41 = vector.shape_cast %40 : vector<1x16x3xbf16> to vector<16x3xbf16>
    %cst_36 = arith.constant dense<0.000000e+00> : vector<512x3xf32>
    %42 = tpu.matmul %39, %41, %cst_36 {dimension_numbers = #tpu.dot_dimension_numbers<[1], [0], [0], [1], [0, 0, 1, 1], [], []>} : vector<512x16xbf16>, vector<16x3xbf16>, vector<512x3xf32> -> vector<512x3xf32>
    %43 = arith.addf %37, %42 : vector<512x3xf32>
    %c4_37 = arith.constant 4 : index
    %c0_38 = arith.constant 0 : index
    %c0_39 = arith.constant 0 : index
    %44 = vector.load %arg0[%c4_37, %c0_38, %c0_39] : memref<9x512x16xbf16, #tpu.memory_space<vmem>>, vector<1x512x16xbf16>
    %45 = vector.shape_cast %44 : vector<1x512x16xbf16> to vector<512x16xbf16>
    %c6 = arith.constant 6 : index
    %c0_40 = arith.constant 0 : index
    %c0_41 = arith.constant 0 : index
    %46 = vector.load %arg1[%c6, %c0_40, %c0_41] : memref<16x16x3xbf16, #tpu.memory_space<vmem>>, vector<1x16x3xbf16>
    %47 = vector.shape_cast %46 : vector<1x16x3xbf16> to vector<16x3xbf16>
    %cst_42 = arith.constant dense<0.000000e+00> : vector<512x3xf32>
    %48 = tpu.matmul %45, %47, %cst_42 {dimension_numbers = #tpu.dot_dimension_numbers<[1], [0], [0], [1], [0, 0, 1, 1], [], []>} : vector<512x16xbf16>, vector<16x3xbf16>, vector<512x3xf32> -> vector<512x3xf32>
    %49 = arith.addf %43, %48 : vector<512x3xf32>
    %c5_43 = arith.constant 5 : index
    %c0_44 = arith.constant 0 : index
    %c0_45 = arith.constant 0 : index
    %50 = vector.load %arg0[%c5_43, %c0_44, %c0_45] : memref<9x512x16xbf16, #tpu.memory_space<vmem>>, vector<1x512x16xbf16>
    %51 = vector.shape_cast %50 : vector<1x512x16xbf16> to vector<512x16xbf16>
    %c4_46 = arith.constant 4 : index
    %c0_47 = arith.constant 0 : index
    %c0_48 = arith.constant 0 : index
    %52 = vector.load %arg1[%c4_46, %c0_47, %c0_48] : memref<16x16x3xbf16, #tpu.memory_space<vmem>>, vector<1x16x3xbf16>
    %53 = vector.shape_cast %52 : vector<1x16x3xbf16> to vector<16x3xbf16>
    %cst_49 = arith.constant dense<0.000000e+00> : vector<512x3xf32>
    %54 = tpu.matmul %51, %53, %cst_49 {dimension_numbers = #tpu.dot_dimension_numbers<[1], [0], [0], [1], [0, 0, 1, 1], [], []>} : vector<512x16xbf16>, vector<16x3xbf16>, vector<512x3xf32> -> vector<512x3xf32>
    %55 = arith.addf %49, %54 : vector<512x3xf32>
    %c0_50 = arith.constant 0 : index
    %c0_51 = arith.constant 0 : index
    %56 = vector.load %arg2[%c0_50, %c0_51] : memref<1x3xf32, #tpu.memory_space<vmem>>, vector<1x3xf32>
    %57 = vector.broadcast %56 : vector<1x3xf32> to vector<512x3xf32>
    %58 = arith.mulf %55, %57 : vector<512x3xf32>
    %c0_52 = arith.constant 0 : index
    %c0_53 = arith.constant 0 : index
    %59 = vector.load %arg3[%c0_52, %c0_53] : memref<1x3xf32, #tpu.memory_space<vmem>>, vector<1x3xf32>
    %60 = vector.broadcast %59 : vector<1x3xf32> to vector<512x3xf32>
    %61 = arith.addf %58, %60 : vector<512x3xf32>
    %62 = math.tanh %61 : vector<512x3xf32>
    %c1_54 = arith.constant 1 : index
    %c0_55 = arith.constant 0 : index
    %c0_56 = arith.constant 0 : index
    %63 = vector.load %arg4[%c1_54, %c0_55, %c0_56] : memref<4x512x3xf32, #tpu.memory_space<vmem>>, vector<1x512x3xf32>
    %64 = vector.shape_cast %63 : vector<1x512x3xf32> to vector<512x3xf32>
    %65 = vector.shape_cast %62 : vector<512x3xf32> to vector<1x512x3xf32>
    tpu.vector_store %arg4[%c1_54, %c0_55, %c0_56], %65 {strides = array<i32>} : memref<4x512x3xf32, #tpu.memory_space<vmem>>, vector<1x512x3xf32>,
    %c3_57 = arith.constant 3 : index
    %c0_58 = arith.constant 0 : index
    %c0_59 = arith.constant 0 : index
    %66 = vector.load %arg0[%c3_57, %c0_58, %c0_59] : memref<9x512x16xbf16, #tpu.memory_space<vmem>>, vector<1x512x16xbf16>
    %67 = vector.shape_cast %66 : vector<1x512x16xbf16> to vector<512x16xbf16>
    %c11 = arith.constant 11 : index
    %c0_60 = arith.constant 0 : index
    %c0_61 = arith.constant 0 : index
    %68 = vector.load %arg1[%c11, %c0_60, %c0_61] : memref<16x16x3xbf16, #tpu.memory_space<vmem>>, vector<1x16x3xbf16>
    %69 = vector.shape_cast %68 : vector<1x16x3xbf16> to vector<16x3xbf16>
    %cst_62 = arith.constant dense<0.000000e+00> : vector<512x3xf32>
    %70 = tpu.matmul %67, %69, %cst_62 {dimension_numbers = #tpu.dot_dimension_numbers<[1], [0], [0], [1], [0, 0, 1, 1], [], []>} : vector<512x16xbf16>, vector<16x3xbf16>, vector<512x3xf32> -> vector<512x3xf32>
    %c4_63 = arith.constant 4 : index
    %c0_64 = arith.constant 0 : index
    %c0_65 = arith.constant 0 : index
    %71 = vector.load %arg0[%c4_63, %c0_64, %c0_65] : memref<9x512x16xbf16, #tpu.memory_space<vmem>>, vector<1x512x16xbf16>
    %72 = vector.shape_cast %71 : vector<1x512x16xbf16> to vector<512x16xbf16>
    %c9 = arith.constant 9 : index
    %c0_66 = arith.constant 0 : index
    %c0_67 = arith.constant 0 : index
    %73 = vector.load %arg1[%c9, %c0_66, %c0_67] : memref<16x16x3xbf16, #tpu.memory_space<vmem>>, vector<1x16x3xbf16>
    %74 = vector.shape_cast %73 : vector<1x16x3xbf16> to vector<16x3xbf16>
    %cst_68 = arith.constant dense<0.000000e+00> : vector<512x3xf32>
    %75 = tpu.matmul %72, %74, %cst_68 {dimension_numbers = #tpu.dot_dimension_numbers<[1], [0], [0], [1], [0, 0, 1, 1], [], []>} : vector<512x16xbf16>, vector<16x3xbf16>, vector<512x3xf32> -> vector<512x3xf32>
    %76 = arith.addf %70, %75 : vector<512x3xf32>
    %c6_69 = arith.constant 6 : index
    %c0_70 = arith.constant 0 : index
    %c0_71 = arith.constant 0 : index
    %77 = vector.load %arg0[%c6_69, %c0_70, %c0_71] : memref<9x512x16xbf16, #tpu.memory_space<vmem>>, vector<1x512x16xbf16>
    %78 = vector.shape_cast %77 : vector<1x512x16xbf16> to vector<512x16xbf16>
    %c3_72 = arith.constant 3 : index
    %c0_73 = arith.constant 0 : index
    %c0_74 = arith.constant 0 : index
    %79 = vector.load %arg1[%c3_72, %c0_73, %c0_74] : memref<16x16x3xbf16, #tpu.memory_space<vmem>>, vector<1x16x3xbf16>
    %80 = vector.shape_cast %79 : vector<1x16x3xbf16> to vector<16x3xbf16>
    %cst_75 = arith.constant dense<0.000000e+00> : vector<512x3xf32>
    %81 = tpu.matmul %78, %80, %cst_75 {dimension_numbers = #tpu.dot_dimension_numbers<[1], [0], [0], [1], [0, 0, 1, 1], [], []>} : vector<512x16xbf16>, vector<16x3xbf16>, vector<512x3xf32> -> vector<512x3xf32>
    %82 = arith.addf %76, %81 : vector<512x3xf32>
    %c7_76 = arith.constant 7 : index
    %c0_77 = arith.constant 0 : index
    %c0_78 = arith.constant 0 : index
    %83 = vector.load %arg0[%c7_76, %c0_77, %c0_78] : memref<9x512x16xbf16, #tpu.memory_space<vmem>>, vector<1x512x16xbf16>
    %84 = vector.shape_cast %83 : vector<1x512x16xbf16> to vector<512x16xbf16>
    %c1_79 = arith.constant 1 : index
    %c0_80 = arith.constant 0 : index
    %c0_81 = arith.constant 0 : index
    %85 = vector.load %arg1[%c1_79, %c0_80, %c0_81] : memref<16x16x3xbf16, #tpu.memory_space<vmem>>, vector<1x16x3xbf16>
    %86 = vector.shape_cast %85 : vector<1x16x3xbf16> to vector<16x3xbf16>
    %cst_82 = arith.constant dense<0.000000e+00> : vector<512x3xf32>
    %87 = tpu.matmul %84, %86, %cst_82 {dimension_numbers = #tpu.dot_dimension_numbers<[1], [0], [0], [1], [0, 0, 1, 1], [], []>} : vector<512x16xbf16>, vector<16x3xbf16>, vector<512x3xf32> -> vector<512x3xf32>
    %88 = arith.addf %82, %87 : vector<512x3xf32>
    %c0_83 = arith.constant 0 : index
    %c0_84 = arith.constant 0 : index
    %89 = vector.load %arg2[%c0_83, %c0_84] : memref<1x3xf32, #tpu.memory_space<vmem>>, vector<1x3xf32>
    %90 = vector.broadcast %89 : vector<1x3xf32> to vector<512x3xf32>
    %91 = arith.mulf %88, %90 : vector<512x3xf32>
    %c0_85 = arith.constant 0 : index
    %c0_86 = arith.constant 0 : index
    %92 = vector.load %arg3[%c0_85, %c0_86] : memref<1x3xf32, #tpu.memory_space<vmem>>, vector<1x3xf32>
    %93 = vector.broadcast %92 : vector<1x3xf32> to vector<512x3xf32>
    %94 = arith.addf %91, %93 : vector<512x3xf32>
    %95 = math.tanh %94 : vector<512x3xf32>
    %c2_87 = arith.constant 2 : index
    %c0_88 = arith.constant 0 : index
    %c0_89 = arith.constant 0 : index
    %96 = vector.load %arg4[%c2_87, %c0_88, %c0_89] : memref<4x512x3xf32, #tpu.memory_space<vmem>>, vector<1x512x3xf32>
    %97 = vector.shape_cast %96 : vector<1x512x3xf32> to vector<512x3xf32>
    %98 = vector.shape_cast %95 : vector<512x3xf32> to vector<1x512x3xf32>
    tpu.vector_store %arg4[%c2_87, %c0_88, %c0_89], %98 {strides = array<i32>} : memref<4x512x3xf32, #tpu.memory_space<vmem>>, vector<1x512x3xf32>,
    %c4_90 = arith.constant 4 : index
    %c0_91 = arith.constant 0 : index
    %c0_92 = arith.constant 0 : index
    %99 = vector.load %arg0[%c4_90, %c0_91, %c0_92] : memref<9x512x16xbf16, #tpu.memory_space<vmem>>, vector<1x512x16xbf16>
    %100 = vector.shape_cast %99 : vector<1x512x16xbf16> to vector<512x16xbf16>
    %c10 = arith.constant 10 : index
    %c0_93 = arith.constant 0 : index
    %c0_94 = arith.constant 0 : index
    %101 = vector.load %arg1[%c10, %c0_93, %c0_94] : memref<16x16x3xbf16, #tpu.memory_space<vmem>>, vector<1x16x3xbf16>
    %102 = vector.shape_cast %101 : vector<1x16x3xbf16> to vector<16x3xbf16>
    %cst_95 = arith.constant dense<0.000000e+00> : vector<512x3xf32>
    %103 = tpu.matmul %100, %102, %cst_95 {dimension_numbers = #tpu.dot_dimension_numbers<[1], [0], [0], [1], [0, 0, 1, 1], [], []>} : vector<512x16xbf16>, vector<16x3xbf16>, vector<512x3xf32> -> vector<512x3xf32>
    %c5_96 = arith.constant 5 : index
    %c0_97 = arith.constant 0 : index
    %c0_98 = arith.constant 0 : index
    %104 = vector.load %arg0[%c5_96, %c0_97, %c0_98] : memref<9x512x16xbf16, #tpu.memory_space<vmem>>, vector<1x512x16xbf16>
    %105 = vector.shape_cast %104 : vector<1x512x16xbf16> to vector<512x16xbf16>
    %c8 = arith.constant 8 : index
    %c0_99 = arith.constant 0 : index
    %c0_100 = arith.constant 0 : index
    %106 = vector.load %arg1[%c8, %c0_99, %c0_100] : memref<16x16x3xbf16, #tpu.memory_space<vmem>>, vector<1x16x3xbf16>
    %107 = vector.shape_cast %106 : vector<1x16x3xbf16> to vector<16x3xbf16>
    %cst_101 = arith.constant dense<0.000000e+00> : vector<512x3xf32>
    %108 = tpu.matmul %105, %107, %cst_101 {dimension_numbers = #tpu.dot_dimension_numbers<[1], [0], [0], [1], [0, 0, 1, 1], [], []>} : vector<512x16xbf16>, vector<16x3xbf16>, vector<512x3xf32> -> vector<512x3xf32>
    %109 = arith.addf %103, %108 : vector<512x3xf32>
    %c7_102 = arith.constant 7 : index
    %c0_103 = arith.constant 0 : index
    %c0_104 = arith.constant 0 : index
    %110 = vector.load %arg0[%c7_102, %c0_103, %c0_104] : memref<9x512x16xbf16, #tpu.memory_space<vmem>>, vector<1x512x16xbf16>
    %111 = vector.shape_cast %110 : vector<1x512x16xbf16> to vector<512x16xbf16>
    %c2_105 = arith.constant 2 : index
    %c0_106 = arith.constant 0 : index
    %c0_107 = arith.constant 0 : index
    %112 = vector.load %arg1[%c2_105, %c0_106, %c0_107] : memref<16x16x3xbf16, #tpu.memory_space<vmem>>, vector<1x16x3xbf16>
    %113 = vector.shape_cast %112 : vector<1x16x3xbf16> to vector<16x3xbf16>
    %cst_108 = arith.constant dense<0.000000e+00> : vector<512x3xf32>
    %114 = tpu.matmul %111, %113, %cst_108 {dimension_numbers = #tpu.dot_dimension_numbers<[1], [0], [0], [1], [0, 0, 1, 1], [], []>} : vector<512x16xbf16>, vector<16x3xbf16>, vector<512x3xf32> -> vector<512x3xf32>
    %115 = arith.addf %109, %114 : vector<512x3xf32>
    %c8_109 = arith.constant 8 : index
    %c0_110 = arith.constant 0 : index
    %c0_111 = arith.constant 0 : index
    %116 = vector.load %arg0[%c8_109, %c0_110, %c0_111] : memref<9x512x16xbf16, #tpu.memory_space<vmem>>, vector<1x512x16xbf16>
    %117 = vector.shape_cast %116 : vector<1x512x16xbf16> to vector<512x16xbf16>
    %c0_112 = arith.constant 0 : index
    %c0_113 = arith.constant 0 : index
    %c0_114 = arith.constant 0 : index
    %118 = vector.load %arg1[%c0_112, %c0_113, %c0_114] : memref<16x16x3xbf16, #tpu.memory_space<vmem>>, vector<1x16x3xbf16>
    %119 = vector.shape_cast %118 : vector<1x16x3xbf16> to vector<16x3xbf16>
    %cst_115 = arith.constant dense<0.000000e+00> : vector<512x3xf32>
    %120 = tpu.matmul %117, %119, %cst_115 {dimension_numbers = #tpu.dot_dimension_numbers<[1], [0], [0], [1], [0, 0, 1, 1], [], []>} : vector<512x16xbf16>, vector<16x3xbf16>, vector<512x3xf32> -> vector<512x3xf32>
    %121 = arith.addf %115, %120 : vector<512x3xf32>
    %c0_116 = arith.constant 0 : index
    %c0_117 = arith.constant 0 : index
    %122 = vector.load %arg2[%c0_116, %c0_117] : memref<1x3xf32, #tpu.memory_space<vmem>>, vector<1x3xf32>
    %123 = vector.broadcast %122 : vector<1x3xf32> to vector<512x3xf32>
    %124 = arith.mulf %121, %123 : vector<512x3xf32>
    %c0_118 = arith.constant 0 : index
    %c0_119 = arith.constant 0 : index
    %125 = vector.load %arg3[%c0_118, %c0_119] : memref<1x3xf32, #tpu.memory_space<vmem>>, vector<1x3xf32>
    %126 = vector.broadcast %125 : vector<1x3xf32> to vector<512x3xf32>
    %127 = arith.addf %124, %126 : vector<512x3xf32>
    %128 = math.tanh %127 : vector<512x3xf32>
    %c3_120 = arith.constant 3 : index
    %c0_121 = arith.constant 0 : index
    %c0_122 = arith.constant 0 : index
    %129 = vector.load %arg4[%c3_120, %c0_121, %c0_122] : memref<4x512x3xf32, #tpu.memory_space<vmem>>, vector<1x512x3xf32>
    %130 = vector.shape_cast %129 : vector<1x512x3xf32> to vector<512x3xf32>
    %131 = vector.shape_cast %128 : vector<512x3xf32> to vector<1x512x3xf32>
    tpu.vector_store %arg4[%c3_120, %c0_121, %c0_122], %131 {strides = array<i32>} : memref<4x512x3xf32, #tpu.memory_space<vmem>>, vector<1x512x3xf32>,
    return
  }
}

</mosaic_0001>

<bundles_post_ra>
// kernel: tile.13
= control target key start
LH: loop header
LB: loop body
LE: loop exit
PB: predicated region body
PF: predicated region fallthrough
CT: control target
= control target key end

     0   :  { %s28_s0 = inlined_call_operand.vmem [shape: f32[16], index: 0, kind: input, shape index: {}]   ;;  %s29_s1 = inlined_call_operand.vmem [shape: f32[16,16], index: 1, kind: output, shape index: {}]  }
   0x1   :  { %v4_v0 = vld [vmem:[%s28_s0] ss:$0 sm:$0xff] }
   0x2   :  { %5 = vst [vmem:[%s29_s1] sm:$0xff] %v4_v0  ;;  %8 = vst [vmem:[%s29_s1 + $0x8] sm:$0xff] %v4_v0 }

// kernel: tile.14
= control target key start
LH: loop header
LB: loop body
LE: loop exit
PB: predicated region body
PF: predicated region fallthrough
CT: control target
= control target key end

     0   :  { %s7_s6 = smov 3  ;;  %s21_s9 = smov 3  ;;  %vm4_vm0 = vcmask 130048   ;;  %vm11_vm1 = vcmask 1048448   ;;  %vm18_vm2 = vcmask 917248   ;;  %vm25_vm3 = vcmask 786048   ;;  %s128_s0 = inlined_call_operand.vmem [shape: f32[16,16], index: 0, kind: input, shape index: {}]   ;;  %s129_s1 = inlined_call_operand.vmem [shape: f32[1,256], index: 1, kind: output, shape index: {}]  }
   0x1   :  { %v66_v0 = vld [vmem:[%s128_s0 + $0x7] ss:$8 sm:%s7_s6]   ;;  %s81_s10 = smov 112   ;;  %v68_v1 = vld [vmem:[%s128_s0 + $0x5] ss:$8 sm:%s21_s9]   ;;  %s14_s13 = smov 3 }
   0x2   :  { %9 = vrot.lane.b32.xlu0 %v66_v0, %s81_s10  ;;  %s82_s14 = smov 80   ;;  %v67_v2 = vld [vmem:[%s128_s0 + $0x6] ss:$8 sm:%s14_s13]   ;;  %s28_s17 = smov 3  ;;  %vm32_vm4 = vcmask 654848   ;;  %vm39_vm5 = vcmask 523648  }
   0x3   :  { %23 = vrot.lane.b32.xlu1 %v68_v1, %s82_s14  ;;  %v69_v3 = vld [vmem:[%s128_s0 + $0x4] ss:$8 sm:%s28_s17]   ;;  %s35_s20 = smov 3  ;;  %s42_s21 = smov 3  ;;  %vm46_vm6 = vcmask 392448   ;;  %vm53_vm7 = vcmask 261248  }
   0x4   :  { %s83_s22 = smov 96   ;;  %s84_s23 = smov 64   ;;  %v70_v4 = vld [vmem:[%s128_s0 + $0x3] ss:$8 sm:%s35_s20]   ;;  %v71_v5 = vld [vmem:[%s128_s0 + $0x2] ss:$8 sm:%s42_s21]  }
   0x5   :  { %s2_s26 = smov 3  ;;  %s49_s29 = smov 3 }
   0x6   :  { %16 = vrot.lane.b32.xlu0 %v67_v2, %s83_s22  ;;  %v3_v6 = vld [vmem:[%s128_s0] ss:$8 sm:%s2_s26]   ;;  %s85_s3 = smov 48   ;;  %s86_s4 = smov 32  }
   0x7   :  { %30 = vrot.lane.b32.xlu1 %v69_v3, %s84_s23  ;;  %5 = vst.msk [vmem:[#allocation0] ss:$8 sm:$0x3] %vm4_vm0, %v3_v6   ;;  %v72_v7 = vld [vmem:[%s128_s0 + $0x1] ss:$8 sm:%s49_s29]   ;;  %s87_s0 = smov 16  }
   0xa   :  { %37 = vrot.lane.b32.xlu0 %v70_v4, %s85_s3 }
   0xb   :  { %44 = vrot.lane.b32.xlu1 %v71_v5, %s86_s4 }
   0xe   :  { %51 = vrot.lane.b32.xlu0 %v72_v7, %s87_s0 }
  0x74   :  { %v10_v8 = vpop.permute.xlu0 %9  }
  0x75   :  { %12 = vst.msk [vmem:[#allocation0] ss:$8 sm:$0x3] %vm11_vm1, %v10_v8   ;;  %v24_v9 = vpop.permute.xlu1 %23  }
  0x78   :  { %v17_v10 = vpop.permute.xlu0 %16  }
  0x79   :  { %19 = vst.msk [vmem:[#allocation0] ss:$8 sm:$0x3] %vm18_vm2, %v17_v10   ;;  %v31_v11 = vpop.permute.xlu1 %30  }
  0x7a   :  { %26 = vst.msk [vmem:[#allocation0] ss:$8 sm:$0x3] %vm25_vm3, %v24_v9  }
  0x7b   :  { %33 = vst.msk [vmem:[#allocation0] ss:$8 sm:$0x3] %vm32_vm4, %v31_v11  }
  0x7c   :  { %v38_v12 = vpop.permute.xlu0 %37  }
  0x7d   :  { %40 = vst.msk [vmem:[#allocation0] ss:$8 sm:$0x3] %vm39_vm5, %v38_v12   ;;  %v45_v13 = vpop.permute.xlu1 %44  }
  0x7e   :  { %47 = vst.msk [vmem:[#allocation0] ss:$8 sm:$0x3] %vm46_vm6, %v45_v13  }
  0x80   :  { %v52_v14 = vpop.permute.xlu0 %51  }
  0x81   :  { %54 = vst.msk [vmem:[#allocation0] ss:$8 sm:$0x3] %vm53_vm7, %v52_v14  }
  0x88   :  { %v58_v15 = vld [vmem:[#allocation0] sm:$0x1]  ;;  %v62_v16 = vld [vmem:[#allocation0 + $0x8] sm:$0x1] }
  0x89   :  { %60 = vst [vmem:[%s129_s1] sm:$0x1] %v58_v15  ;;  %73 = vst [vmem:[%s129_s1 + $0x1] sm:$0x1] %v62_v16 }

// kernel: decoder_forward.4
= control target key start
LH: loop header
LB: loop body
LE: loop exit
PB: predicated region body
PF: predicated region fallthrough
CT: control target
= control target key end

     0   :  { %11 = vsyncpa [#allocation3], 0  ;;  %s296_s21 = smov [#allocation2]   ;;  %s372_s0 = inlined_call_operand.vmem [shape: bf16[2,32], index: 0, kind: input, shape index: {}]   ;;  %s373_s1 = inlined_call_operand.vmem [shape: bf16[32,16], index: 1, kind: input, shape index: {}]   ;;  %s374_s2 = inlined_call_operand.hbm [shape: f32[1,16], index: 2, kind: input, shape index: {}]   ;;  %s375_s3 = inlined_call_operand.vmem [shape: bf16[16,256], index: 3, kind: input, shape index: {}]   ;;  %s376_s4 = inlined_call_operand.vmem [shape: f32[1,256], index: 4, kind: input, shape index: {}]   ;;  %s377_s5 = inlined_call_operand.vmem [shape: f32[1,256], index: 5, kind: input, shape index: {}]   ;;  %s378_s6 = inlined_call_operand.vmem [shape: bf16[2,256], index: 6, kind: output, shape index: {}]  }
   0x1   :  { %s22_s22 = sshll.u32 %s296_s21, 4  ;;  %s272_s25 = scalar_lea.hbm %s374_s2, 16  ;;  %s23_s22 = int_to_ptr.vmem [resolvable:$true] %s22_s22 }
   0x2   :  { %p273_p0 = scmp.ne.s32.totalorder %s374_s2, %s272_s25  ;;  %p276_p1 = scmp.lt.u32.totalorder %s272_s25, %s374_s2 }
   0x4   :  { %p278_p2 = pnand %p276_p1, %p273_p0 }
   0x6   :  { %281 = shalt.err (!%p278_p2)
}
   0x7   :  { %s282_s30 = scalar_lea.vmem %s23_s22, 16  ;;  %s286_s7 = scalar_lea.vmem %s23_s22, 32 }
   0x8   :  { %p283_p3 = scmp.ne.s32.totalorder %s23_s22, %s282_s30  ;;  %p287_p4 = scmp.lt.s32.totalorder %s23_s22, %s23_s22 }
   0x9   :  { %p288_p5 = scmp.lt.s32.totalorder %s286_s7, %s282_s30 }
   0xb   :  { %p289_p6 = por %p288_p5, %p287_p4 }
   0xd   :  { %p290_p7 = pnand %p289_p6, %p283_p3 }
   0xf   :  { %293 = shalt.err (!%p290_p7)
}
  0x10   :  { %25 = dma.hbm_to_vmem [thread:$0]  %s374_s2, 16, %s23_s22, [#allocation3]  }
  0x11   :  { %294 = dma.done.wait [#allocation3], 16  }
  0x12   :  { %295 = vsyncadd [#allocation3], 4294967280  ;;  %v297_v0 = vmov 0.0   ;;  %vm298_vm0 = vmmov 0   ;;  %v259_v1 = vld [vmem:[%s373_s1] sm:$0xff]   ;;  %v260_v2 = vld [vmem:[%s373_s1 + $0x8] sm:$0xff]   ;;  %v164_v14 = vlaneseq }
  0x13   :  { %246 = vmatprep.subr.bf16.mxu0 %v297_v0  ;;  %250 = vmatprep.mubr.msk.bf16.mxu0 %vm298_vm0, %v297_v0  ;;  %v36_v3 = vld [vmem:[%s372_s0] sm:$0x1]  ;;  %vm60_vm1 = vcmask 261120   ;;  %v261_v4 = vld [vmem:[%s375_s3 + $0x4] ss:$8 sps:$4 sm:$0xff]   ;;  %v299_v6 = vmov 0  }
  0x14   :  { %247 = vmatpush3.bf16.msra.mxu0 %v259_v1  ;;  %v263_v5 = vld [vmem:[%s375_s3] ss:$8 sps:$4 sm:$0xff]   ;;  %121 = vmatprep.subr.bf16.mxu1 %v261_v4  ;;  %vm117_vm2 = vcmask 130048   ;;  %v165_v15 = vshrl.u32 %v164_v14, 7  ;;  %v300_v38 = vmov 1966171168  }
  0x15   :  { %248 = vmatprep.subr.bf16.mxu0 %v297_v0  ;;  %122 = vmatpush1.bf16.msra.mxu1 %v263_v5  ;;  %v234_v7 = vld [vmem:[#allocation2] ss:$0 sm:$0xff]  ;;  %v214_v39 = vunpack.c.l.s4 %v300_v38 }
  0x16   :  { %153 = vmatprep.mubr.bf16.mxu1 %v299_v6  ;;  %v166_v16 = vsub.s32 0, %v165_v15  ;;  %v162_v17 = vld [vmem:[%s376_s4] sm:$0x3]  ;;  %v170_v18 = vsub.s32 1, %v165_v15 }
  0x17   :  { %v176_v19 = vld [vmem:[%s377_s5] sm:$0x3]  ;;  %v215_v44 = vunpack.c.0.s8 %v214_v39 }
  0x18   :  { %249 = vmatpush3.bf16.msra.mxu0 %v260_v2  ;;  %v167_v20 = vrot.slane %v162_v17, %v166_v16  ;;  %v171_v21 = vrot.slane %v162_v17, %v170_v18  ;;  %v181_v22 = vrot.slane %v176_v19, %v166_v16  ;;  %v185_v24 = vrot.slane %v176_v19, %v170_v18 }
  0x19   :  { %v218_v50 = vsub.s32 %v215_v44, %v165_v15 }
  0x1b   :  { %251 = vmatmul.mubr.msk.bf16.vlgmr.msra.gmra.mrb[0].mxu0 %vm60_vm1, %v36_v3 }
  0xee   :  { %v98_v8 = vpop.f32.mrb[0].mxu0 }
  0xef   :  { %v99_v9 = vadd.f32 %v234_v7, %v98_v8  ;;  %v252_v10 = vpop.f32.mrb[1].mxu0 }
  0xf0   :  { %v101_v11 = vpop.f32.mrb[2].mxu0 }
  0xf1   :  { %v104_v12 = vpack.c.bf16 %v99_v9, %v99_v9  ;;  %v253_v13 = vpop.f32.mrb[3].mxu0 }
  0xf3   :  { %240 = vmatmul.mubr.msk.bf16.vlgmr.msra.gmra.mrb[0].mxu1 %vm117_vm2, %v104_v12 }
 0x1c6   :  { %v155_v23 = vpop.f32.mrb[0].mxu1 }
 0x1c7   :  { %v174_v25 = vmul.f32 %v167_v20, %v155_v23  ;;  %v157_v26 = vpop.f32.mrb[1].mxu1 }
 0x1c8   :  { %v175_v27 = vmul.f32 %v171_v21, %v157_v26  ;;  %v159_v28 = vpop.f32.mrb[2].mxu1 }
 0x1c9   :  { %v188_v29 = vadd.f32 %v181_v22, %v174_v25  ;;  %v160_v30 = vpop.f32.mrb[3].mxu1 }
 0x1ca   :  { %v189_v31 = vadd.f32 %v185_v24, %v175_v27 }
 0x1cb   :  { %v190_v32 = vmin.f32 %v188_v29, 0.0  ;;  %vm192_vm3 = vcmp.gt.f32.partialorder %v188_v29, 0.0 }
 0x1cc   :  { %v191_v33 = vmin.f32 %v189_v31, 0.0  ;;  %vm193_vm4 = vcmp.gt.f32.partialorder %v189_v31, 0.0 }
 0x1cd   :  { %v194_v34 = vmul.f32 0.5, %v190_v32  ;;  %v198_v35 = vmul.f32 1.442695, %v190_v32 }
 0x1ce   :  { %v200_v36 = vmul.f32 1.442695, %v191_v33  ;;  %v195_v37 = vmul.f32 0.5, %v191_v33 }
 0x1cf   :  { %264 = vpow2.f32 %v198_v35 }
 0x1d0   :  { %266 = vtanh.f32 %v194_v34 }
 0x1d1   :  { %268 = vpow2.f32 %v200_v36 }
 0x1d2   :  { %270 = vtanh.f32 %v195_v37 }
 0x1d9   :  { %v265_v40 = vpop.eup %264 }
 0x1da   :  { %v267_v41 = vpop.eup %266  ;;  %v202_v42 = vadd.f32 1.0, %v265_v40 }
 0x1db   :  { %v269_v43 = vpop.eup %268 }
 0x1dc   :  { %v204_v45 = vmul.f32 %v267_v41, %v202_v42  ;;  %v203_v46 = vadd.f32 1.0, %v269_v43  ;;  %v271_v47 = vpop.eup %270 }
 0x1de   :  { %v206_v48 = vsel %vm192_vm3, %v188_v29, %v204_v45  ;;  %v205_v49 = vmul.f32 %v271_v47, %v203_v46 }
 0x1e0   :  { %v207_v51 = vsel %vm193_vm4, %v189_v31, %v205_v49 }
 0x1e1   :  { %v241_v52 = vpack.c.bf16 %v207_v51, %v206_v48 }
 0x1e3   :  { %v219_v53 = vrot.slane %v241_v52, %v218_v50 }
 0x1e5   :  { %242 = vst.sshfl [vmem:[%s378_s6] sm:$0x5 pattern:$0x73625140] %v219_v53 }
 0x1e6   :  { %233 = vsyncpa [#allocation3], 1 }

// kernel: decoder_forward.5
= control target key start
LH: loop header
LB: loop body
LE: loop exit
PB: predicated region body
PF: predicated region fallthrough
CT: control target
= control target key end

     0   :  { %vm49_vm0 = vcmask 130048   ;;  %vm416_vm2 = vcmask 125952   ;;  %s2539_s1 = inlined_call_operand.vmem [shape: bf16[16,16,16], index: 1, kind: input, shape index: {}]   ;;  %s2540_s0 = inlined_call_operand.vmem [shape: bf16[9,32,16], index: 0, kind: input, shape index: {}]   ;;  %s2541_s2 = inlined_call_operand.vmem [shape: f32[1,16], index: 2, kind: input, shape index: {}]   ;;  %s2542_s3 = inlined_call_operand.vmem [shape: f32[1,16], index: 3, kind: input, shape index: {}]   ;;  %s2543_s4 = inlined_call_operand.vmem [shape: bf16[4,32,16], index: 4, kind: output, shape index: {}]  }
   0x1   :  { %v2040_v0 = vld [vmem:[%s2539_s1 + $0x68] sm:$0xff]   ;;  %v2041_v1 = vld [vmem:[%s2539_s1 + $0x60] sm:$0xff]   ;;  %v2042_v2 = vld [vmem:[%s2540_s0 + $0x10] sm:$0xff]  }
   0x2   :  { %1896 = vmatprep.subr.bf16.mxu0 %v2040_v0  ;;  %1920 = vmatprep.subr.bf16.mxu1 %v2041_v1  ;;  %v2043_v3 = vld [vmem:[%s2540_s0 + $0x20] sm:$0xff]   ;;  %v2044_v4 = vld [vmem:[%s2540_s0 + $0x18] sm:$0xff]   ;;  %v2046_v6 = vld [vmem:[%s2540_s0 + $0x28] sm:$0xff]  }
   0x3   :  { %1897 = vmatpush3.bf16.msra.mxu0 %v2040_v0  ;;  %1921 = vmatpush3.bf16.msra.mxu1 %v2041_v1  ;;  %v2045_v5 = vld [vmem:[%s2539_s1 + $0x78] sm:$0xff]   ;;  %v2047_v7 = vld [vmem:[%s2539_s1 + $0x70] sm:$0xff]   ;;  %v2048_v8 = vld [vmem:[%s2540_s0] sm:$0xff]  }
   0x4   :  { %1898 = vmatprep.mubr.msk.bf16.mxu0 %vm49_vm0, %v2042_v2  ;;  %1922 = vmatprep.mubr.msk.bf16.mxu1 %vm49_vm0, %v2043_v3  ;;  %v2049_v9 = vld [vmem:[%s2540_s0 + $0x10] sm:$0xff]   ;;  %v2051_v10 = vld [vmem:[%s2539_s1 + $0x38] sm:$0xff]   ;;  %v2050_v11 = vld [vmem:[%s2540_s0 + $0x8] sm:$0xff]  }
   0x5   :  { %1902 = vmatprep.subr.bf16.mxu0 %v2045_v5  ;;  %1926 = vmatprep.subr.bf16.mxu1 %v2047_v7  ;;  %v2053_v12 = vld [vmem:[%s2539_s1 + $0x30] sm:$0xff]   ;;  %v2052_v13 = vld [vmem:[%s2540_s0 + $0x18] sm:$0xff]   ;;  %v2055_v15 = vld [vmem:[%s2540_s0 + $0x40] sm:$0xff]  }
   0x6   :  { %1899 = vmatmul.mubr.msk.bf16.vlgmr.msra.gmra.mrb[0].mxu0 %vm49_vm0, %v2044_v4  ;;  %1923 = vmatmul.mubr.msk.bf16.vlgmr.msra.gmra.mrb[0].mxu1 %vm49_vm0, %v2046_v6  ;;  %v2054_v14 = vld [vmem:[%s2540_s0 + $0x30] sm:$0xff]   ;;  %v2057_v16 = vld [vmem:[%s2539_s1 + $0x28] sm:$0xff]   ;;  %v2059_v17 = vld [vmem:[%s2539_s1 + $0x20] sm:$0xff]  }
   0x7   :  { %1903 = vmatpush3.bf16.msra.mxu0 %v2045_v5  ;;  %1927 = vmatpush3.bf16.msra.mxu1 %v2047_v7  ;;  %v2056_v18 = vld [vmem:[%s2540_s0 + $0x38] sm:$0xff]   ;;  %v2058_v19 = vld [vmem:[%s2540_s0 + $0x48] sm:$0xff]   ;;  %v2060_v20 = vld [vmem:[%s2540_s0 + $0x40] sm:$0xff]  }
   0x8   :  { %1904 = vmatprep.mubr.msk.bf16.mxu0 %vm49_vm0, %v2048_v8  ;;  %1928 = vmatprep.mubr.msk.bf16.mxu1 %vm49_vm0, %v2049_v9  ;;  %v2064_v21 = vld [vmem:[%s2539_s1 + $0x48] sm:$0xff]   ;;  %v2061_v22 = vld [vmem:[%s2540_s0 + $0x50] sm:$0xff]   ;;  %v2065_v23 = vld [vmem:[%s2539_s1 + $0x40] sm:$0xff]  }
   0x9   :  { %1908 = vmatprep.subr.bf16.mxu0 %v2051_v10  ;;  %1932 = vmatprep.subr.bf16.mxu1 %v2053_v12  ;;  %v2062_v24 = vld [vmem:[%s2540_s0 + $0x48] sm:$0xff]   ;;  %v2063_v25 = vld [vmem:[%s2540_s0 + $0x58] sm:$0xff]   ;;  %v2066_v26 = vld [vmem:[%s2540_s0 + $0x40] sm:$0xff]  }
   0xa   :  { %v2069_v27 = vld [vmem:[%s2539_s1 + $0x58] sm:$0xff]   ;;  %v2067_v28 = vld [vmem:[%s2540_s0 + $0x50] sm:$0xff]   ;;  %v2068_v30 = vld [vmem:[%s2540_s0 + $0x48] sm:$0xff]  }
   0xb   :  { %v2071_v29 = vld [vmem:[%s2539_s1 + $0x50] sm:$0xff]   ;;  %v2070_v32 = vld [vmem:[%s2540_s0 + $0x58] sm:$0xff]   ;;  %v2073_v34 = vld [vmem:[%s2540_s0 + $0x40] sm:$0xff]  }
   0xc   :  { %v2072_v31 = vld [vmem:[%s2540_s0 + $0x30] sm:$0xff]   ;;  %v2075_v33 = vld [vmem:[%s2539_s1 + $0x18] sm:$0xff]   ;;  %v2078_v37 = vld [vmem:[%s2540_s0 + $0x60] sm:$0xff]  }
   0xd   :  { %v2077_v35 = vld [vmem:[%s2539_s1 + $0x10] sm:$0xff]   ;;  %v2074_v36 = vld [vmem:[%s2540_s0 + $0x38] sm:$0xff]   ;;  %v2076_v38 = vld [vmem:[%s2540_s0 + $0x48] sm:$0xff]  }
   0xe   :  { %v2081_v39 = vld [vmem:[%s2539_s1 + $0x8] sm:$0xff]   ;;  %v2079_v40 = vld [vmem:[%s2540_s0 + $0x70] sm:$0xff]   ;;  %v2083_v41 = vld [vmem:[%s2539_s1] sm:$0xff]  }
   0xf   :  { %v2080_v42 = vld [vmem:[%s2540_s0 + $0x68] sm:$0xff]   ;;  %v2084_v43 = vld [vmem:[%s2540_s0 + $0x70] sm:$0xff]   ;;  %v2082_v44 = vld [vmem:[%s2540_s0 + $0x78] sm:$0xff]  }
  0x10   :  { %v2085_v45 = vld [vmem:[%s2540_s0 + $0x80] sm:$0xff]   ;;  %v2086_v46 = vld [vmem:[%s2540_s0 + $0x78] sm:$0xff]   ;;  %v2087_v47 = vld [vmem:[%s2540_s0 + $0x88] sm:$0xff]  }
  0x11   :  { %v2356_v48 = vld [vmem:[%s2541_s2] ss:$0 sm:$0xff] }
  0x12   :  { %1905 = vmatmul.mubr.msk.bf16.vlgmr.msra.gmra.mrb[0].mxu0 %vm49_vm0, %v2050_v11  ;;  %1929 = vmatmul.mubr.msk.bf16.vlgmr.msra.gmra.mrb[0].mxu1 %vm49_vm0, %v2052_v13  ;;  %v2361_v50 = vld [vmem:[%s2542_s3] ss:$0 sm:$0xff] }
  0x13   :  { %1909 = vmatpush3.bf16.msra.mxu0 %v2051_v10  ;;  %1910 = vmatprep.mubr.msk.bf16.mxu0 %vm49_vm0, %v2054_v14 }
  0x14   :  { %1914 = vmatprep.subr.bf16.mxu0 %v2057_v16  ;;  %1933 = vmatpush3.bf16.msra.mxu1 %v2053_v12 }
  0x15   :  { %1934 = vmatprep.mubr.msk.bf16.mxu1 %vm49_vm0, %v2055_v15  ;;  %1938 = vmatprep.subr.bf16.mxu1 %v2059_v17 }
  0x1e   :  { %1911 = vmatmul.mubr.msk.bf16.vlgmr.msra.gmra.mrb[0].mxu0 %vm49_vm0, %v2056_v18  ;;  %1935 = vmatmul.mubr.msk.bf16.vlgmr.msra.gmra.mrb[0].mxu1 %vm49_vm0, %v2058_v19 }
  0x1f   :  { %1915 = vmatpush3.bf16.msra.mxu0 %v2057_v16  ;;  %1916 = vmatprep.mubr.msk.bf16.mxu0 %vm49_vm0, %v2060_v20 }
  0x20   :  { %1944 = vmatprep.subr.bf16.mxu0 %v2064_v21  ;;  %1939 = vmatpush3.bf16.msra.mxu1 %v2059_v17 }
  0x21   :  { %1940 = vmatprep.mubr.msk.bf16.mxu1 %vm49_vm0, %v2061_v22  ;;  %1968 = vmatprep.subr.bf16.mxu1 %v2065_v23 }
  0x2a   :  { %1917 = vmatmul.mubr.msk.bf16.vlgmr.msra.gmra.mrb[0].mxu0 %vm49_vm0, %v2062_v24  ;;  %1941 = vmatmul.mubr.msk.bf16.vlgmr.msra.gmra.mrb[0].mxu1 %vm49_vm0, %v2063_v25 }
  0x2b   :  { %1945 = vmatpush3.bf16.msra.mxu0 %v2064_v21  ;;  %1946 = vmatprep.mubr.msk.bf16.mxu0 %vm49_vm0, %v2066_v26 }
  0x2c   :  { %1950 = vmatprep.subr.bf16.mxu0 %v2069_v27  ;;  %1969 = vmatpush3.bf16.msra.mxu1 %v2065_v23 }
  0x2d   :  { %1970 = vmatprep.mubr.msk.bf16.mxu1 %vm49_vm0, %v2067_v28  ;;  %1974 = vmatprep.subr.bf16.mxu1 %v2071_v29 }
  0x32   :  { %1947 = vmatmul.mubr.msk.bf16.vlgmr.msra.gmra.mrb[4].mxu0 %vm49_vm0, %v2068_v30  ;;  %1971 = vmatmul.mubr.msk.bf16.vlgmr.msra.gmra.mrb[4].mxu1 %vm49_vm0, %v2070_v32 }
  0x33   :  { %1951 = vmatpush3.bf16.msra.mxu0 %v2069_v27  ;;  %1952 = vmatprep.mubr.msk.bf16.mxu0 %vm49_vm0, %v2072_v31 }
  0x34   :  { %1956 = vmatprep.subr.bf16.mxu0 %v2075_v33  ;;  %1975 = vmatpush3.bf16.msra.mxu1 %v2071_v29 }
  0x35   :  { %1976 = vmatprep.mubr.msk.bf16.mxu1 %vm49_vm0, %v2073_v34  ;;  %1980 = vmatprep.subr.bf16.mxu1 %v2077_v35 }
  0x3e   :  { %1953 = vmatmul.mubr.msk.bf16.vlgmr.msra.gmra.mrb[4].mxu0 %vm49_vm0, %v2074_v36  ;;  %1977 = vmatmul.mubr.msk.bf16.vlgmr.msra.gmra.mrb[4].mxu1 %vm49_vm0, %v2076_v38 }
  0x3f   :  { %1957 = vmatpush3.bf16.msra.mxu0 %v2075_v33  ;;  %1958 = vmatprep.mubr.msk.bf16.mxu0 %vm49_vm0, %v2078_v37 }
  0x40   :  { %1962 = vmatprep.subr.bf16.mxu0 %v2081_v39  ;;  %1981 = vmatpush3.bf16.msra.mxu1 %v2077_v35 }
  0x41   :  { %1982 = vmatprep.mubr.msk.bf16.mxu1 %vm49_vm0, %v2079_v40  ;;  %1986 = vmatprep.subr.bf16.mxu1 %v2083_v41 }
  0x4a   :  { %1959 = vmatmul.mubr.msk.bf16.vlgmr.msra.gmra.mrb[4].mxu0 %vm49_vm0, %v2080_v42  ;;  %1983 = vmatmul.mubr.msk.bf16.vlgmr.msra.gmra.mrb[4].mxu1 %vm49_vm0, %v2082_v44 }
  0x4b   :  { %1963 = vmatpush3.bf16.msra.mxu0 %v2081_v39  ;;  %1964 = vmatprep.mubr.msk.bf16.mxu0 %vm49_vm0, %v2084_v43 }
  0x4c   :  { %1987 = vmatpush3.bf16.msra.mxu1 %v2083_v41  ;;  %1988 = vmatprep.mubr.msk.bf16.mxu1 %vm49_vm0, %v2085_v45 }
  0x56   :  { %1965 = vmatmul.mubr.msk.bf16.vlgmr.msra.gmra.mrb[4].mxu0 %vm49_vm0, %v2086_v46  ;;  %1989 = vmatmul.mubr.msk.bf16.vlgmr.msra.gmra.mrb[4].mxu1 %vm49_vm0, %v2087_v47 }
  0xfd   :  { %v1918_v49 = vpop.f32.mrb[0].mxu0  ;;  %v1942_v53 = vpop.f32.mrb[0].mxu1 }
  0xfe   :  { %v351_v51 = vmul.f32 %v1918_v49, %v2356_v48  ;;  %v323_v52 = vpop.f32.mrb[1].mxu0  ;;  %v752_v57 = vmul.f32 %v1942_v53, %v2356_v48  ;;  %v724_v58 = vpop.f32.mrb[1].mxu1 }
  0xff   :  { %v349_v54 = vmul.f32 %v2356_v48, %v323_v52  ;;  %v1919_v55 = vpop.f32.mrb[2].mxu0  ;;  %v750_v62 = vmul.f32 %v2356_v48, %v724_v58  ;;  %v1943_v63 = vpop.f32.mrb[2].mxu1 }
 0x100   :  { %v2366_v56 = vadd.f32 %v2361_v50, %v351_v51  ;;  %v352_v59 = vmul.f32 %v1919_v55, %v2356_v48  ;;  %v326_v60 = vpop.f32.mrb[3].mxu0  ;;  %v2376_v1 = vadd.f32 %v2361_v50, %v752_v57  ;;  %v727_v2 = vpop.f32.mrb[3].mxu1  ;;  %v753_v9 = vmul.f32 %v1943_v63, %v2356_v48 }
 0x101   :  { %v2371_v61 = vadd.f32 %v2361_v50, %v349_v54  ;;  %v2380_v4 = vadd.f32 %v2361_v50, %v750_v62  ;;  %v350_v11 = vmul.f32 %v2356_v48, %v326_v60  ;;  %v751_v20 = vmul.f32 %v2356_v48, %v727_v2 }
 0x102   :  { %v366_v0 = vmin.f32 %v2366_v56, 0.0  ;;  %v2383_v5 = vadd.f32 %v2361_v50, %v352_v59  ;;  %v767_v8 = vmin.f32 %v2376_v1, 0.0  ;;  %v2391_v17 = vadd.f32 %v2361_v50, %v753_v9 }
 0x103   :  { %v364_v3 = vmin.f32 %v2371_v61, 0.0  ;;  %v765_v10 = vmin.f32 %v2380_v4, 0.0  ;;  %v2394_v19 = vadd.f32 %v2361_v50, %v350_v11  ;;  %v2400_v25 = vadd.f32 %v2361_v50, %v751_v20 }
 0x104   :  { %v374_v6 = vmul.f32 0.5, %v366_v0  ;;  %v384_v7 = vmul.f32 1.442695, %v366_v0  ;;  %v775_v12 = vmul.f32 0.5, %v767_v8  ;;  %v785_v13 = vmul.f32 1.442695, %v767_v8 }
 0x105   :  { %v380_v14 = vmul.f32 1.442695, %v364_v3  ;;  %v367_v15 = vmin.f32 %v2383_v5, 0.0  ;;  %v372_v16 = vmul.f32 0.5, %v364_v3  ;;  %v781_v18 = vmul.f32 1.442695, %v765_v10 }
 0x106   :  { %2088 = vpow2.f32 %v384_v7  ;;  %v773_v21 = vmul.f32 0.5, %v765_v10  ;;  %v768_v22 = vmin.f32 %v2391_v17, 0.0  ;;  %v365_v24 = vmin.f32 %v2394_v19, 0.0 }
 0x107   :  { %2090 = vtanh.f32 %v374_v6  ;;  %v386_v23 = vmul.f32 1.442695, %v367_v15  ;;  %v375_v26 = vmul.f32 0.5, %v367_v15  ;;  %v766_v28 = vmin.f32 %v2400_v25, 0.0 }
 0x108   :  { %2092 = vpow2.f32 %v785_v13  ;;  %v787_v27 = vmul.f32 1.442695, %v768_v22  ;;  %v776_v29 = vmul.f32 0.5, %v768_v22  ;;  %v382_v30 = vmul.f32 1.442695, %v365_v24 }
 0x109   :  { %2094 = vtanh.f32 %v775_v12  ;;  %v373_v31 = vmul.f32 0.5, %v365_v24  ;;  %v783_v33 = vmul.f32 1.442695, %v766_v28  ;;  %v774_v37 = vmul.f32 0.5, %v766_v28 }
 0x10a   :  { %2096 = vpow2.f32 %v380_v14  ;;  %vm370_vm1 = vcmp.gt.f32.partialorder %v2366_v56, 0.0  ;;  %vm771_vm3 = vcmp.gt.f32.partialorder %v2376_v1, 0.0  ;;  %vm368_vm4 = vcmp.gt.f32.partialorder %v2371_v61, 0.0 }
 0x10b   :  { %2098 = vtanh.f32 %v372_v16  ;;  %vm769_vm5 = vcmp.gt.f32.partialorder %v2380_v4, 0.0  ;;  %vm371_vm6 = vcmp.gt.f32.partialorder %v2383_v5, 0.0  ;;  %vm772_vm7 = vcmp.gt.f32.partialorder %v2391_v17, 0.0 }
 0x10c   :  { %2100 = vpow2.f32 %v781_v18  ;;  %vm369_vm8 = vcmp.gt.f32.partialorder %v2394_v19, 0.0  ;;  %vm770_vm9 = vcmp.gt.f32.partialorder %v2400_v25, 0.0 }
 0x10d   :  { %2102 = vtanh.f32 %v773_v21 }
 0x10e   :  { %2104 = vpow2.f32 %v386_v23 }
 0x10f   :  { %2106 = vtanh.f32 %v375_v26 }
 0x110   :  { %v2089_v32 = vpop.eup %2088  ;;  %2108 = vpow2.f32 %v787_v27 }
 0x111   :  { %v2091_v34 = vpop.eup %2090  ;;  %v390_v35 = vadd.f32 1.0, %v2089_v32  ;;  %2110 = vtanh.f32 %v776_v29 }
 0x112   :  { %v2093_v36 = vpop.eup %2092  ;;  %2112 = vpow2.f32 %v382_v30 }
 0x113   :  { %v2095_v38 = vpop.eup %2094  ;;  %v394_v39 = vmul.f32 %v2091_v34, %v390_v35  ;;  %v791_v40 = vadd.f32 1.0, %v2093_v36  ;;  %2114 = vtanh.f32 %v373_v31 }
 0x114   :  { %v2097_v41 = vpop.eup %2096  ;;  %2116 = vpow2.f32 %v783_v33 }
 0x115   :  { %v2099_v42 = vpop.eup %2098  ;;  %v398_v43 = vsel %vm370_vm1, %v2366_v56, %v394_v39  ;;  %v795_v44 = vmul.f32 %v2095_v38, %v791_v40  ;;  %v388_v45 = vadd.f32 1.0, %v2097_v41  ;;  %2118 = vtanh.f32 %v774_v37 }
 0x116   :  { %v2101_v46 = vpop.eup %2100  ;;  %v1834_v47 = vpack.c.bf16 %v398_v43, %v398_v43 }
 0x117   :  { %v2103_v49 = vpop.eup %2102  ;;  %v799_v51 = vsel %vm771_vm3, %v2376_v1, %v795_v44  ;;  %v392_v52 = vmul.f32 %v2099_v42, %v388_v45  ;;  %v789_v53 = vadd.f32 1.0, %v2101_v46 }
 0x118   :  { %v2105_v54 = vpop.eup %2104  ;;  %419 = vst.msk [vmem:[%s2543_s4 + $0x8] sm:$0xf] %vm416_vm2, %v1834_v47  ;;  %v1838_v55 = vpack.c.bf16 %v799_v51, %v799_v51 }
 0x119   :  { %v2107_v56 = vpop.eup %2106  ;;  %v396_v57 = vsel %vm368_vm4, %v2371_v61, %v392_v52  ;;  %v793_v58 = vmul.f32 %v2103_v49, %v789_v53  ;;  %v391_v59 = vadd.f32 1.0, %v2105_v54 }
 0x11a   :  { %v2109_v60 = vpop.eup %2108  ;;  %1724 = vst.msk [vmem:[%s2543_s4 + $0x18] sm:$0xf] %vm416_vm2, %v1838_v55  ;;  %v1832_v62 = vpack.c.bf16 %v396_v57, %v396_v57 }
 0x11b   :  { %v2111_v63 = vpop.eup %2110  ;;  %v797_v0 = vsel %vm769_vm5, %v2380_v4, %v793_v58  ;;  %v395_v1 = vmul.f32 %v2107_v56, %v391_v59  ;;  %v792_v2 = vadd.f32 1.0, %v2109_v60 }
 0x11c   :  { %v2113_v3 = vpop.eup %2112  ;;  %417 = vst.msk [vmem:[%s2543_s4] sm:$0xf] %vm416_vm2, %v1832_v62  ;;  %v1836_v61 = vpack.c.bf16 %v797_v0, %v797_v0 }
 0x11d   :  { %v2115_v6 = vpop.eup %2114  ;;  %v399_v7 = vsel %vm371_vm6, %v2383_v5, %v395_v1  ;;  %v796_v8 = vmul.f32 %v2111_v63, %v792_v2  ;;  %v389_v9 = vadd.f32 1.0, %v2113_v3 }
 0x11e   :  { %v2117_v10 = vpop.eup %2116  ;;  %1722 = vst.msk [vmem:[%s2543_s4 + $0x10] sm:$0xf] %vm416_vm2, %v1836_v61  ;;  %v1835_v4 = vpack.c.bf16 %v399_v7, %v399_v7 }
 0x11f   :  { %v800_v11 = vsel %vm772_vm7, %v2391_v17, %v796_v8  ;;  %v393_v12 = vmul.f32 %v2115_v6, %v389_v9  ;;  %v790_v13 = vadd.f32 1.0, %v2117_v10  ;;  %v2119_v14 = vpop.eup %2118 }
 0x120   :  { %420 = vst.msk [vmem:[%s2543_s4 + $0xc] sm:$0xf] %vm416_vm2, %v1835_v4  ;;  %v1839_v5 = vpack.c.bf16 %v800_v11, %v800_v11 }
 0x121   :  { %v397_v15 = vsel %vm369_vm8, %v2394_v19, %v393_v12  ;;  %v794_v16 = vmul.f32 %v2119_v14, %v790_v13 }
 0x122   :  { %1725 = vst.msk [vmem:[%s2543_s4 + $0x1c] sm:$0xf] %vm416_vm2, %v1839_v5  ;;  %v1833_v17 = vpack.c.bf16 %v397_v15, %v397_v15 }
 0x123   :  { %v798_v18 = vsel %vm770_vm9, %v2400_v25, %v794_v16 }
 0x124   :  { %418 = vst.msk [vmem:[%s2543_s4 + $0x4] sm:$0xf] %vm416_vm2, %v1833_v17  ;;  %v1837_v20 = vpack.c.bf16 %v798_v18, %v798_v18 }
 0x126   :  { %1723 = vst.msk [vmem:[%s2543_s4 + $0x14] sm:$0xf] %vm416_vm2, %v1837_v20 }
 0x129   :  { %v1966_v19 = vpop.f32.mrb[4].mxu0  ;;  %v1990_v23 = vpop.f32.mrb[4].mxu1 }
 0x12a   :  { %v1153_v21 = vmul.f32 %v1966_v19, %v2356_v48  ;;  %v1125_v22 = vpop.f32.mrb[5].mxu0  ;;  %v1552_v27 = vmul.f32 %v1990_v23, %v2356_v48  ;;  %v1524_v28 = vpop.f32.mrb[5].mxu1 }
 0x12b   :  { %v1151_v24 = vmul.f32 %v2356_v48, %v1125_v22  ;;  %v1967_v26 = vpop.f32.mrb[6].mxu0  ;;  %v1550_v32 = vmul.f32 %v2356_v48, %v1524_v28  ;;  %v1991_v33 = vpop.f32.mrb[6].mxu1 }
 0x12c   :  { %v2454_v25 = vadd.f32 %v2361_v50, %v1153_v21  ;;  %v1154_v29 = vmul.f32 %v1967_v26, %v2356_v48  ;;  %v1128_v30 = vpop.f32.mrb[7].mxu0  ;;  %v2464_v35 = vadd.f32 %v2361_v50, %v1552_v27  ;;  %v1527_v36 = vpop.f32.mrb[7].mxu1  ;;  %v1553_v43 = vmul.f32 %v1991_v33, %v2356_v48 }
 0x12d   :  { %v2459_v31 = vadd.f32 %v2361_v50, %v1151_v24  ;;  %v2468_v38 = vadd.f32 %v2361_v50, %v1550_v32  ;;  %v1152_v45 = vmul.f32 %v2356_v48, %v1128_v30  ;;  %v1551_v56 = vmul.f32 %v2356_v48, %v1527_v36 }
 0x12e   :  { %v1168_v34 = vmin.f32 %v2454_v25, 0.0  ;;  %v2471_v39 = vadd.f32 %v2361_v50, %v1154_v29  ;;  %v1567_v42 = vmin.f32 %v2464_v35, 0.0  ;;  %v2479_v53 = vadd.f32 %v2361_v50, %v1553_v43 }
 0x12f   :  { %v1166_v37 = vmin.f32 %v2459_v31, 0.0  ;;  %v1565_v44 = vmin.f32 %v2468_v38, 0.0  ;;  %v2482_v55 = vadd.f32 %v2361_v50, %v1152_v45  ;;  %v2488_v62 = vadd.f32 %v2361_v50, %v1551_v56 }
 0x130   :  { %v1176_v40 = vmul.f32 0.5, %v1168_v34  ;;  %v1186_v41 = vmul.f32 1.442695, %v1168_v34  ;;  %v1575_v46 = vmul.f32 0.5, %v1567_v42  ;;  %v1585_v47 = vmul.f32 1.442695, %v1567_v42 }
 0x131   :  { %v1182_v49 = vmul.f32 1.442695, %v1166_v37  ;;  %v1169_v51 = vmin.f32 %v2471_v39, 0.0  ;;  %v1174_v52 = vmul.f32 0.5, %v1166_v37  ;;  %v1581_v54 = vmul.f32 1.442695, %v1565_v44 }
 0x132   :  { %2120 = vpow2.f32 %v1186_v41  ;;  %v1573_v57 = vmul.f32 0.5, %v1565_v44  ;;  %v1568_v58 = vmin.f32 %v2479_v53, 0.0  ;;  %v1167_v60 = vmin.f32 %v2482_v55, 0.0 }
 0x133   :  { %2122 = vtanh.f32 %v1176_v40  ;;  %v1188_v59 = vmul.f32 1.442695, %v1169_v51  ;;  %v1177_v63 = vmul.f32 0.5, %v1169_v51  ;;  %v1566_v1 = vmin.f32 %v2488_v62, 0.0 }
 0x134   :  { %2124 = vpow2.f32 %v1585_v47  ;;  %v1587_v0 = vmul.f32 1.442695, %v1568_v58  ;;  %v1576_v2 = vmul.f32 0.5, %v1568_v58  ;;  %v1184_v48 = vmul.f32 1.442695, %v1167_v60 }
 0x135   :  { %2126 = vtanh.f32 %v1575_v46  ;;  %v1175_v3 = vmul.f32 0.5, %v1167_v60  ;;  %v1583_v6 = vmul.f32 1.442695, %v1566_v1  ;;  %v1574_v9 = vmul.f32 0.5, %v1566_v1 }
 0x136   :  { %2128 = vpow2.f32 %v1182_v49  ;;  %vm1172_vm10 = vcmp.gt.f32.partialorder %v2454_v25, 0.0  ;;  %vm1571_vm11 = vcmp.gt.f32.partialorder %v2464_v35, 0.0  ;;  %vm1170_vm12 = vcmp.gt.f32.partialorder %v2459_v31, 0.0 }
 0x137   :  { %2130 = vtanh.f32 %v1174_v52  ;;  %vm1569_vm13 = vcmp.gt.f32.partialorder %v2468_v38, 0.0  ;;  %vm1173_vm14 = vcmp.gt.f32.partialorder %v2471_v39, 0.0  ;;  %vm1572_vm15 = vcmp.gt.f32.partialorder %v2479_v53, 0.0 }
 0x138   :  { %2132 = vpow2.f32 %v1581_v54  ;;  %vm1171_vm0 = vcmp.gt.f32.partialorder %v2482_v55, 0.0  ;;  %vm1570_vm1 = vcmp.gt.f32.partialorder %v2488_v62, 0.0 }
 0x139   :  { %2134 = vtanh.f32 %v1573_v57 }
 0x13a   :  { %2136 = vpow2.f32 %v1188_v59 }
 0x13b   :  { %2138 = vtanh.f32 %v1177_v63 }
 0x13c   :  { %v2121_v61 = vpop.eup %2120  ;;  %2140 = vpow2.f32 %v1587_v0 }
 0x13d   :  { %v2123_v7 = vpop.eup %2122  ;;  %v1192_v8 = vadd.f32 1.0, %v2121_v61  ;;  %2142 = vtanh.f32 %v1576_v2 }
 0x13e   :  { %v2125_v50 = vpop.eup %2124  ;;  %2144 = vpow2.f32 %v1184_v48 }
 0x13f   :  { %v2127_v10 = vpop.eup %2126  ;;  %v1196_v4 = vmul.f32 %v2123_v7, %v1192_v8  ;;  %v1591_v11 = vadd.f32 1.0, %v2125_v50  ;;  %2146 = vtanh.f32 %v1175_v3 }
 0x140   :  { %v2129_v12 = vpop.eup %2128  ;;  %2148 = vpow2.f32 %v1583_v6 }
 0x141   :  { %v2131_v13 = vpop.eup %2130  ;;  %v1200_v14 = vsel %vm1172_vm10, %v2454_v25, %v1196_v4  ;;  %v1595_v5 = vmul.f32 %v2127_v10, %v1591_v11  ;;  %v1190_v15 = vadd.f32 1.0, %v2129_v12  ;;  %2150 = vtanh.f32 %v1574_v9 }
 0x142   :  { %v2133_v16 = vpop.eup %2132  ;;  %v1842_v17 = vpack.c.bf16 %v1200_v14, %v1200_v14 }
 0x143   :  { %v2135_v18 = vpop.eup %2134  ;;  %v1599_v20 = vsel %vm1571_vm11, %v2464_v35, %v1595_v5  ;;  %v1194_v19 = vmul.f32 %v2131_v13, %v1190_v15  ;;  %v1589_v21 = vadd.f32 1.0, %v2133_v16 }
 0x144   :  { %v2137_v22 = vpop.eup %2136  ;;  %1778 = vst.msk [vmem:[%s2543_s4 + $0x28] sm:$0xf] %vm416_vm2, %v1842_v17  ;;  %v1846_v23 = vpack.c.bf16 %v1599_v20, %v1599_v20 }
 0x145   :  { %v2139_v24 = vpop.eup %2138  ;;  %v1198_v26 = vsel %vm1170_vm12, %v2459_v31, %v1194_v19  ;;  %v1593_v25 = vmul.f32 %v2135_v18, %v1589_v21  ;;  %v1193_v27 = vadd.f32 1.0, %v2137_v22 }
 0x146   :  { %v2141_v28 = vpop.eup %2140  ;;  %1830 = vst.msk [vmem:[%s2543_s4 + $0x38] sm:$0xf] %vm416_vm2, %v1846_v23  ;;  %v1840_v29 = vpack.c.bf16 %v1198_v26, %v1198_v26 }
 0x147   :  { %v2143_v30 = vpop.eup %2142  ;;  %v1597_v32 = vsel %vm1569_vm13, %v2468_v38, %v1593_v25  ;;  %v1197_v33 = vmul.f32 %v2139_v24, %v1193_v27  ;;  %v1592_v34 = vadd.f32 1.0, %v2141_v28 }
 0x148   :  { %v2145_v35 = vpop.eup %2144  ;;  %1776 = vst.msk [vmem:[%s2543_s4 + $0x20] sm:$0xf] %vm416_vm2, %v1840_v29  ;;  %v1844_v31 = vpack.c.bf16 %v1597_v32, %v1597_v32 }
 0x149   :  { %v2147_v36 = vpop.eup %2146  ;;  %v1201_v37 = vsel %vm1173_vm14, %v2471_v39, %v1197_v33  ;;  %v1596_v40 = vmul.f32 %v2143_v30, %v1592_v34  ;;  %v1191_v41 = vadd.f32 1.0, %v2145_v35 }
 0x14a   :  { %v2149_v42 = vpop.eup %2148  ;;  %1828 = vst.msk [vmem:[%s2543_s4 + $0x30] sm:$0xf] %vm416_vm2, %v1844_v31  ;;  %v1843_v38 = vpack.c.bf16 %v1201_v37, %v1201_v37 }
 0x14b   :  { %v1600_v43 = vsel %vm1572_vm15, %v2479_v53, %v1596_v40  ;;  %v1195_v44 = vmul.f32 %v2147_v36, %v1191_v41  ;;  %v1590_v45 = vadd.f32 1.0, %v2149_v42  ;;  %v2151_v46 = vpop.eup %2150 }
 0x14c   :  { %1779 = vst.msk [vmem:[%s2543_s4 + $0x2c] sm:$0xf] %vm416_vm2, %v1843_v38  ;;  %v1847_v39 = vpack.c.bf16 %v1600_v43, %v1600_v43 }
 0x14d   :  { %v1199_v47 = vsel %vm1171_vm0, %v2482_v55, %v1195_v44  ;;  %v1594_v49 = vmul.f32 %v2151_v46, %v1590_v45 }
 0x14e   :  { %1831 = vst.msk [vmem:[%s2543_s4 + $0x3c] sm:$0xf] %vm416_vm2, %v1847_v39  ;;  %v1841_v51 = vpack.c.bf16 %v1199_v47, %v1199_v47 }
 0x14f   :  { %v1598_v52 = vsel %vm1570_vm1, %v2488_v62, %v1594_v49 }
 0x150   :  { %1777 = vst.msk [vmem:[%s2543_s4 + $0x24] sm:$0xf] %vm416_vm2, %v1841_v51  ;;  %v1845_v53 = vpack.c.bf16 %v1598_v52, %v1598_v52 }
 0x152   :  { %1829 = vst.msk [vmem:[%s2543_s4 + $0x34] sm:$0xf] %vm416_vm2, %v1845_v53 }

// kernel: decoder_forward.6
= control target key start
LH: loop header
LB: loop body
LE: loop exit
PB: predicated region body
PF: predicated region fallthrough
CT: control target
= control target key end

     0   :  { %vm103_vm0 = vcmask 130048   ;;  %vm1052_vm1 = vcmask 125952   ;;  %s7479_s1 = inlined_call_operand.vmem [shape: bf16[16,16,16], index: 1, kind: input, shape index: {}]   ;;  %s7480_s0 = inlined_call_operand.vmem [shape: bf16[9,128,16], index: 0, kind: input, shape index: {}]   ;;  %s7481_s2 = inlined_call_operand.vmem [shape: f32[1,16], index: 2, kind: input, shape index: {}]   ;;  %s7482_s3 = inlined_call_operand.vmem [shape: f32[1,16], index: 3, kind: input, shape index: {}]   ;;  %s7483_s4 = inlined_call_operand.vmem [shape: bf16[4,128,16], index: 4, kind: output, shape index: {}]  }
   0x1   :  { %v5568_v0 = vld [vmem:[%s7479_s1 + $0x68] sm:$0xff]   ;;  %v5569_v1 = vld [vmem:[%s7479_s1 + $0x60] sm:$0xff]   ;;  %v5573_v5 = vld [vmem:[%s7479_s1 + $0x78] sm:$0xff]  }
   0x2   :  { %5088 = vmatprep.subr.bf16.mxu0 %v5568_v0  ;;  %v5570_v2 = vld [vmem:[%s7480_s0 + $0x40] sm:$0xff]   ;;  %5160 = vmatprep.subr.bf16.mxu1 %v5569_v1  ;;  %v5572_v4 = vld [vmem:[%s7480_s0 + $0x48] sm:$0xff]   ;;  %v5575_v7 = vld [vmem:[%s7479_s1 + $0x70] sm:$0xff]  }
   0x3   :  { %5089 = vmatpush3.bf16.msra.mxu0 %v5568_v0  ;;  %v5571_v3 = vld [vmem:[%s7480_s0 + $0x80] sm:$0xff]   ;;  %5161 = vmatpush3.bf16.msra.mxu1 %v5569_v1  ;;  %v5574_v6 = vld [vmem:[%s7480_s0 + $0x88] sm:$0xff]   ;;  %v5576_v8 = vld [vmem:[%s7480_s0 + $0x50] sm:$0xff]  }
   0x4   :  { %5090 = vmatprep.mubr.msk.bf16.mxu0 %vm103_vm0, %v5570_v2  ;;  %5162 = vmatprep.mubr.msk.bf16.mxu1 %vm103_vm0, %v5571_v3  ;;  %v5577_v9 = vld [vmem:[%s7480_s0 + $0x90] sm:$0xff]   ;;  %v5578_v10 = vld [vmem:[%s7480_s0 + $0x58] sm:$0xff]   ;;  %v5580_v12 = vld [vmem:[%s7480_s0 + $0x60] sm:$0xff]  }
   0x5   :  { %5106 = vmatprep.subr.bf16.mxu0 %v5573_v5  ;;  %5178 = vmatprep.subr.bf16.mxu1 %v5575_v7  ;;  %v5579_v11 = vld [vmem:[%s7480_s0 + $0x98] sm:$0xff]   ;;  %v5581_v13 = vld [vmem:[%s7480_s0 + $0xa0] sm:$0xff]   ;;  %v5582_v14 = vld [vmem:[%s7480_s0 + $0x68] sm:$0xff]  }
   0x6   :  { %5091 = vmatmul.mubr.msk.bf16.vlgmr.msra.gmra.mrb[0].mxu0 %vm103_vm0, %v5572_v4  ;;  %5163 = vmatmul.mubr.msk.bf16.vlgmr.msra.gmra.mrb[0].mxu1 %vm103_vm0, %v5574_v6  ;;  %v5584_v15 = vld [vmem:[%s7480_s0 + $0x70] sm:$0xff]   ;;  %v5583_v16 = vld [vmem:[%s7480_s0 + $0xa8] sm:$0xff]   ;;  %v5591_v18 = vld [vmem:[%s7479_s1 + $0x38] sm:$0xff]  }
   0x7   :  { %5107 = vmatpush3.bf16.msra.mxu0 %v5573_v5  ;;  %5179 = vmatpush3.bf16.msra.mxu1 %v5575_v7  ;;  %v5585_v17 = vld [vmem:[%s7480_s0 + $0xb0] sm:$0xff]   ;;  %v5586_v20 = vld [vmem:[%s7480_s0 + $0x78] sm:$0xff]   ;;  %v5588_v21 = vld [vmem:[%s7480_s0] sm:$0xff]  }
   0x8   :  { %5094 = vmatprep.mubr.msk.bf16.mxu0 %vm103_vm0, %v5576_v8  ;;  %5166 = vmatprep.mubr.msk.bf16.mxu1 %vm103_vm0, %v5577_v9  ;;  %v5593_v19 = vld [vmem:[%s7479_s1 + $0x30] sm:$0xff]   ;;  %v5587_v22 = vld [vmem:[%s7480_s0 + $0xb8] sm:$0xff]   ;;  %v5589_v23 = vld [vmem:[%s7480_s0 + $0x40] sm:$0xff]  }
   0x9   :  { %5124 = vmatprep.subr.bf16.mxu0 %v5591_v18  ;;  %5196 = vmatprep.subr.bf16.mxu1 %v5593_v19  ;;  %v5590_v24 = vld [vmem:[%s7480_s0 + $0x8] sm:$0xff]   ;;  %v5594_v25 = vld [vmem:[%s7480_s0 + $0x10] sm:$0xff]   ;;  %v5596_v28 = vld [vmem:[%s7480_s0 + $0x18] sm:$0xff]  }
   0xa   :  { %v5592_v26 = vld [vmem:[%s7480_s0 + $0x48] sm:$0xff]   ;;  %v5595_v27 = vld [vmem:[%s7480_s0 + $0x50] sm:$0xff]   ;;  %v5598_v30 = vld [vmem:[%s7480_s0 + $0x20] sm:$0xff]  }
   0xb   :  { %v5609_v29 = vld [vmem:[%s7479_s1 + $0x28] sm:$0xff]   ;;  %v5611_v31 = vld [vmem:[%s7479_s1 + $0x20] sm:$0xff]   ;;  %v5597_v32 = vld [vmem:[%s7480_s0 + $0x58] sm:$0xff]  }
   0xc   :  { %v5599_v33 = vld [vmem:[%s7480_s0 + $0x60] sm:$0xff]   ;;  %v5600_v34 = vld [vmem:[%s7480_s0 + $0x28] sm:$0xff]   ;;  %v5602_v35 = vld [vmem:[%s7480_s0 + $0x30] sm:$0xff]  }
   0xd   :  { %v5601_v36 = vld [vmem:[%s7480_s0 + $0x68] sm:$0xff]   ;;  %v5603_v37 = vld [vmem:[%s7480_s0 + $0x70] sm:$0xff]   ;;  %v5604_v38 = vld [vmem:[%s7480_s0 + $0x38] sm:$0xff]  }
   0xe   :  { %5095 = vmatmul.mubr.msk.bf16.gmra.mrb[4].mxu0 %vm103_vm0, %v5578_v10  ;;  %5167 = vmatmul.mubr.msk.bf16.gmra.mrb[4].mxu1 %vm103_vm0, %v5579_v11  ;;  %v5606_v39 = vld [vmem:[%s7480_s0 + $0xc0] sm:$0xff]   ;;  %v5605_v40 = vld [vmem:[%s7480_s0 + $0x78] sm:$0xff]   ;;  %v5608_v42 = vld [vmem:[%s7480_s0 + $0xc8] sm:$0xff]  }
   0xf   :  { %5098 = vmatprep.mubr.msk.bf16.mxu0 %vm103_vm0, %v5580_v12  ;;  %5170 = vmatprep.mubr.msk.bf16.mxu1 %vm103_vm0, %v5581_v13  ;;  %v5607_v41 = vld [vmem:[%s7480_s0 + $0x100] sm:$0xff]   ;;  %v5610_v43 = vld [vmem:[%s7480_s0 + $0x108] sm:$0xff]   ;;  %v5612_v44 = vld [vmem:[%s7480_s0 + $0xd0] sm:$0xff]  }
  0x10   :  { %v5628_v45 = vld [vmem:[%s7479_s1 + $0x48] sm:$0xff]   ;;  %v5613_v46 = vld [vmem:[%s7480_s0 + $0x110] sm:$0xff]   ;;  %v5629_v47 = vld [vmem:[%s7479_s1 + $0x40] sm:$0xff]  }
  0x11   :  { %v5614_v48 = vld [vmem:[%s7480_s0 + $0xd8] sm:$0xff]   ;;  %v5616_v49 = vld [vmem:[%s7480_s0 + $0xe0] sm:$0xff]   ;;  %v5618_v52 = vld [vmem:[%s7480_s0 + $0xe8] sm:$0xff]  }
  0x12   :  { %v5615_v50 = vld [vmem:[%s7480_s0 + $0x118] sm:$0xff]   ;;  %v5617_v51 = vld [vmem:[%s7480_s0 + $0x120] sm:$0xff]   ;;  %v5620_v53 = vld [vmem:[%s7480_s0 + $0xf0] sm:$0xff]  }
  0x13   :  { %v5619_v54 = vld [vmem:[%s7480_s0 + $0x128] sm:$0xff]   ;;  %v5621_v55 = vld [vmem:[%s7480_s0 + $0x130] sm:$0xff]   ;;  %v5622_v56 = vld [vmem:[%s7480_s0 + $0xf8] sm:$0xff]  }
  0x14   :  { %v5624_v57 = vld [vmem:[%s7480_s0 + $0x100] sm:$0xff]   ;;  %v5623_v58 = vld [vmem:[%s7480_s0 + $0x138] sm:$0xff]   ;;  %v5626_v60 = vld [vmem:[%s7480_s0 + $0x108] sm:$0xff]  }
  0x15   :  { %v5625_v59 = vld [vmem:[%s7480_s0 + $0x140] sm:$0xff]   ;;  %v5627_v61 = vld [vmem:[%s7480_s0 + $0x148] sm:$0xff]   ;;  %v5630_v62 = vld [vmem:[%s7480_s0 + $0x110] sm:$0xff]  }
  0x16   :  { %5099 = vmatmul.mubr.msk.bf16.gmra.mrb[8].mxu0 %vm103_vm0, %v5582_v14  ;;  %5171 = vmatmul.mubr.msk.bf16.gmra.mrb[8].mxu1 %vm103_vm0, %v5583_v16  ;;  %v5645_v63 = vld [vmem:[%s7479_s1 + $0x58] sm:$0xff]   ;;  %v5631_v0 = vld [vmem:[%s7480_s0 + $0x150] sm:$0xff]   ;;  %v5634_v3 = vld [vmem:[%s7480_s0 + $0x120] sm:$0xff]  }
  0x17   :  { %5102 = vmatprep.mubr.msk.bf16.mxu0 %vm103_vm0, %v5584_v15  ;;  %5174 = vmatprep.mubr.msk.bf16.mxu1 %vm103_vm0, %v5585_v17  ;;  %v5647_v1 = vld [vmem:[%s7479_s1 + $0x50] sm:$0xff]   ;;  %v5632_v2 = vld [vmem:[%s7480_s0 + $0x118] sm:$0xff]   ;;  %v5635_v5 = vld [vmem:[%s7480_s0 + $0x160] sm:$0xff]  }
  0x18   :  { %v5633_v4 = vld [vmem:[%s7480_s0 + $0x158] sm:$0xff]   ;;  %v5636_v6 = vld [vmem:[%s7480_s0 + $0x128] sm:$0xff]   ;;  %v5638_v7 = vld [vmem:[%s7480_s0 + $0x130] sm:$0xff]  }
  0x19   :  { %v5637_v8 = vld [vmem:[%s7480_s0 + $0x168] sm:$0xff]   ;;  %v5639_v9 = vld [vmem:[%s7480_s0 + $0x170] sm:$0xff]   ;;  %v5640_v10 = vld [vmem:[%s7480_s0 + $0x138] sm:$0xff]  }
  0x1a   :  { %v5642_v11 = vld [vmem:[%s7480_s0 + $0x100] sm:$0xff]   ;;  %v5641_v12 = vld [vmem:[%s7480_s0 + $0x178] sm:$0xff]   ;;  %v5644_v14 = vld [vmem:[%s7480_s0 + $0x108] sm:$0xff]  }
  0x1b   :  { %v5643_v13 = vld [vmem:[%s7480_s0 + $0x140] sm:$0xff]   ;;  %v5646_v15 = vld [vmem:[%s7480_s0 + $0x148] sm:$0xff]   ;;  %v5648_v16 = vld [vmem:[%s7480_s0 + $0x110] sm:$0xff]  }
  0x1c   :  { %v5663_v17 = vld [vmem:[%s7479_s1 + $0x18] sm:$0xff]  }
  0x1e   :  { %5103 = vmatmul.mubr.msk.bf16.gmra.mrb[12].mxu0 %vm103_vm0, %v5586_v20  ;;  %5175 = vmatmul.mubr.msk.bf16.gmra.mrb[12].mxu1 %vm103_vm0, %v5587_v22  ;;  %v5650_v20 = vld [vmem:[%s7480_s0 + $0x118] sm:$0xff]  }
  0x1f   :  { %5108 = vmatprep.mubr.msk.bf16.mxu0 %vm103_vm0, %v5588_v21  ;;  %5180 = vmatprep.mubr.msk.bf16.mxu1 %vm103_vm0, %v5589_v23  ;;  %v5652_v21 = vld [vmem:[%s7480_s0 + $0x120] sm:$0xff]   ;;  %v5651_v22 = vld [vmem:[%s7480_s0 + $0x158] sm:$0xff]  }
  0x20   :  { %v5653_v23 = vld [vmem:[%s7480_s0 + $0x160] sm:$0xff]  }
  0x26   :  { %5109 = vmatmul.mubr.msk.bf16.vlgmr.msra.gmra.mrb[0].mxu0 %vm103_vm0, %v5590_v24  ;;  %5181 = vmatmul.mubr.msk.bf16.vlgmr.msra.gmra.mrb[0].mxu1 %vm103_vm0, %v5592_v26  ;;  %v5654_v24 = vld [vmem:[%s7480_s0 + $0x128] sm:$0xff]  }
  0x27   :  { %5125 = vmatpush3.bf16.msra.mxu0 %v5591_v18  ;;  %5112 = vmatprep.mubr.msk.bf16.mxu0 %vm103_vm0, %v5594_v25  ;;  %v5649_v18 = vld [vmem:[%s7480_s0 + $0x150] sm:$0xff]   ;;  %v5655_v26 = vld [vmem:[%s7480_s0 + $0x168] sm:$0xff]  }
  0x28   :  { %5197 = vmatpush3.bf16.msra.mxu1 %v5593_v19  ;;  %5184 = vmatprep.mubr.msk.bf16.mxu1 %vm103_vm0, %v5595_v27  ;;  %v5665_v19 = vld [vmem:[%s7479_s1 + $0x10] sm:$0xff]  }
  0x29   :  { %5142 = vmatprep.subr.bf16.mxu0 %v5609_v29  ;;  %5214 = vmatprep.subr.bf16.mxu1 %v5611_v31  ;;  %v5656_v25 = vld [vmem:[%s7480_s0 + $0x130] sm:$0xff]  }
  0x2a   :  { %v5657_v27 = vld [vmem:[%s7480_s0 + $0x170] sm:$0xff]  }
  0x2e   :  { %5113 = vmatmul.mubr.msk.bf16.gmra.mrb[4].mxu0 %vm103_vm0, %v5596_v28  ;;  %5185 = vmatmul.mubr.msk.bf16.gmra.mrb[4].mxu1 %vm103_vm0, %v5597_v32  ;;  %v5658_v28 = vld [vmem:[%s7480_s0 + $0x138] sm:$0xff]   ;;  %v5662_v32 = vld [vmem:[%s7480_s0 + $0xc8] sm:$0xff]  }
  0x2f   :  { %5116 = vmatprep.mubr.msk.bf16.mxu0 %vm103_vm0, %v5598_v30  ;;  %5188 = vmatprep.mubr.msk.bf16.mxu1 %vm103_vm0, %v5599_v33  ;;  %v5659_v30 = vld [vmem:[%s7480_s0 + $0x178] sm:$0xff]   ;;  %v5666_v33 = vld [vmem:[%s7480_s0 + $0xd0] sm:$0xff]  }
  0x36   :  { %5117 = vmatmul.mubr.msk.bf16.gmra.mrb[8].mxu0 %vm103_vm0, %v5600_v34  ;;  %5189 = vmatmul.mubr.msk.bf16.gmra.mrb[8].mxu1 %vm103_vm0, %v5601_v36  ;;  %v5664_v34 = vld [vmem:[%s7480_s0 + $0x108] sm:$0xff]   ;;  %v5667_v36 = vld [vmem:[%s7480_s0 + $0x110] sm:$0xff]  }
  0x37   :  { %5120 = vmatprep.mubr.msk.bf16.mxu0 %vm103_vm0, %v5602_v35  ;;  %5192 = vmatprep.mubr.msk.bf16.mxu1 %vm103_vm0, %v5603_v37  ;;  %v5681_v35 = vld [vmem:[%s7479_s1 + $0x8] sm:$0xff]   ;;  %v5683_v37 = vld [vmem:[%s7479_s1] sm:$0xff]  }
  0x3e   :  { %5121 = vmatmul.mubr.msk.bf16.gmra.mrb[12].mxu0 %vm103_vm0, %v5604_v38  ;;  %5193 = vmatmul.mubr.msk.bf16.gmra.mrb[12].mxu1 %vm103_vm0, %v5605_v40  ;;  %v5668_v38 = vld [vmem:[%s7480_s0 + $0xd8] sm:$0xff]  }
  0x3f   :  { %5126 = vmatprep.mubr.msk.bf16.mxu0 %vm103_vm0, %v5606_v39  ;;  %5198 = vmatprep.mubr.msk.bf16.mxu1 %vm103_vm0, %v5607_v41  ;;  %v5670_v39 = vld [vmem:[%s7480_s0 + $0xe0] sm:$0xff]   ;;  %v5669_v40 = vld [vmem:[%s7480_s0 + $0x118] sm:$0xff]  }
  0x40   :  { %v5671_v41 = vld [vmem:[%s7480_s0 + $0x120] sm:$0xff]  }
  0x46   :  { %5127 = vmatmul.mubr.msk.bf16.vlgmr.msra.gmra.mrb[0].mxu0 %vm103_vm0, %v5608_v42  ;;  %5199 = vmatmul.mubr.msk.bf16.vlgmr.msra.gmra.mrb[0].mxu1 %vm103_vm0, %v5610_v43  ;;  %v5672_v42 = vld [vmem:[%s7480_s0 + $0xe8] sm:$0xff]   ;;  %v5674_v43 = vld [vmem:[%s7480_s0 + $0xf0] sm:$0xff]  }
  0x47   :  { %5143 = vmatpush3.bf16.msra.mxu0 %v5609_v29  ;;  %5130 = vmatprep.mubr.msk.bf16.mxu0 %vm103_vm0, %v5612_v44  ;;  %v5660_v29 = vld [vmem:[%s7480_s0 + $0xc0] sm:$0xff]   ;;  %v5673_v44 = vld [vmem:[%s7480_s0 + $0x128] sm:$0xff]  }
  0x48   :  { %5232 = vmatprep.subr.bf16.mxu0 %v5628_v45  ;;  %5215 = vmatpush3.bf16.msra.mxu1 %v5611_v31  ;;  %v5661_v31 = vld [vmem:[%s7480_s0 + $0x100] sm:$0xff]  }
  0x49   :  { %5202 = vmatprep.mubr.msk.bf16.mxu1 %vm103_vm0, %v5613_v46  ;;  %5304 = vmatprep.subr.bf16.mxu1 %v5629_v47  ;;  %v5676_v46 = vld [vmem:[%s7480_s0 + $0xf8] sm:$0xff]  }
  0x4e   :  { %5131 = vmatmul.mubr.msk.bf16.gmra.mrb[4].mxu0 %vm103_vm0, %v5614_v48  ;;  %5203 = vmatmul.mubr.msk.bf16.gmra.mrb[4].mxu1 %vm103_vm0, %v5615_v50  ;;  %v5677_v48 = vld [vmem:[%s7480_s0 + $0x138] sm:$0xff]   ;;  %v5680_v50 = vld [vmem:[%s7480_s0 + $0x188] sm:$0xff]  }
  0x4f   :  { %5134 = vmatprep.mubr.msk.bf16.mxu0 %vm103_vm0, %v5616_v49  ;;  %5206 = vmatprep.mubr.msk.bf16.mxu1 %vm103_vm0, %v5617_v51  ;;  %v5679_v49 = vld [vmem:[%s7480_s0 + $0x1c0] sm:$0xff]   ;;  %v5684_v51 = vld [vmem:[%s7480_s0 + $0x190] sm:$0xff]  }
  0x56   :  { %5135 = vmatmul.mubr.msk.bf16.gmra.mrb[8].mxu0 %vm103_vm0, %v5618_v52  ;;  %5207 = vmatmul.mubr.msk.bf16.gmra.mrb[8].mxu1 %vm103_vm0, %v5619_v54  ;;  %v5682_v52 = vld [vmem:[%s7480_s0 + $0x1c8] sm:$0xff]   ;;  %v5686_v54 = vld [vmem:[%s7480_s0 + $0x198] sm:$0xff]  }
  0x57   :  { %5138 = vmatprep.mubr.msk.bf16.mxu0 %vm103_vm0, %v5620_v53  ;;  %5210 = vmatprep.mubr.msk.bf16.mxu1 %vm103_vm0, %v5621_v55  ;;  %v5685_v53 = vld [vmem:[%s7480_s0 + $0x1d0] sm:$0xff]   ;;  %v5688_v55 = vld [vmem:[%s7480_s0 + $0x1a0] sm:$0xff]  }
  0x5e   :  { %5139 = vmatmul.mubr.msk.bf16.gmra.mrb[12].mxu0 %vm103_vm0, %v5622_v56  ;;  %5211 = vmatmul.mubr.msk.bf16.gmra.mrb[12].mxu1 %vm103_vm0, %v5623_v58  ;;  %v5687_v56 = vld [vmem:[%s7480_s0 + $0x1d8] sm:$0xff]   ;;  %v5690_v58 = vld [vmem:[%s7480_s0 + $0x1a8] sm:$0xff]  }
  0x5f   :  { %5144 = vmatprep.mubr.msk.bf16.mxu0 %vm103_vm0, %v5624_v57  ;;  %5216 = vmatprep.mubr.msk.bf16.mxu1 %vm103_vm0, %v5625_v59  ;;  %v5689_v57 = vld [vmem:[%s7480_s0 + $0x1e0] sm:$0xff]   ;;  %v5692_v59 = vld [vmem:[%s7480_s0 + $0x1b0] sm:$0xff]  }
  0x66   :  { %5145 = vmatmul.mubr.msk.bf16.vlgmr.msra.gmra.mrb[0].mxu0 %vm103_vm0, %v5626_v60  ;;  %5217 = vmatmul.mubr.msk.bf16.vlgmr.msra.gmra.mrb[0].mxu1 %vm103_vm0, %v5627_v61  ;;  %v5691_v60 = vld [vmem:[%s7480_s0 + $0x1e8] sm:$0xff]   ;;  %v5693_v61 = vld [vmem:[%s7480_s0 + $0x1f0] sm:$0xff]  }
  0x67   :  { %5233 = vmatpush3.bf16.msra.mxu0 %v5628_v45  ;;  %5148 = vmatprep.mubr.msk.bf16.mxu0 %vm103_vm0, %v5630_v62  ;;  %v5675_v45 = vld [vmem:[%s7480_s0 + $0x130] sm:$0xff]   ;;  %v5694_v62 = vld [vmem:[%s7480_s0 + $0x1b8] sm:$0xff]  }
  0x68   :  { %5250 = vmatprep.subr.bf16.mxu0 %v5645_v63  ;;  %5305 = vmatpush3.bf16.msra.mxu1 %v5629_v47  ;;  %v5678_v47 = vld [vmem:[%s7480_s0 + $0x180] sm:$0xff]  }
  0x69   :  { %5220 = vmatprep.mubr.msk.bf16.mxu1 %vm103_vm0, %v5631_v0  ;;  %5322 = vmatprep.subr.bf16.mxu1 %v5647_v1  ;;  %v5695_v0 = vld [vmem:[%s7480_s0 + $0x1f8] sm:$0xff]  }
  0x6e   :  { %5149 = vmatmul.mubr.msk.bf16.gmra.mrb[4].mxu0 %vm103_vm0, %v5632_v2  ;;  %5221 = vmatmul.mubr.msk.bf16.gmra.mrb[4].mxu1 %vm103_vm0, %v5633_v4  ;;  %v5698_v2 = vld [vmem:[%s7480_s0 + $0x1c8] sm:$0xff]  }
  0x6f   :  { %5152 = vmatprep.mubr.msk.bf16.mxu0 %vm103_vm0, %v5634_v3  ;;  %5224 = vmatprep.mubr.msk.bf16.mxu1 %vm103_vm0, %v5635_v5  ;;  %v5700_v3 = vld [vmem:[%s7480_s0 + $0x1d0] sm:$0xff]   ;;  %v5699_v4 = vld [vmem:[%s7480_s0 + $0x208] sm:$0xff]  }
  0x70   :  { %v5701_v5 = vld [vmem:[%s7480_s0 + $0x210] sm:$0xff]  }
  0x76   :  { %5153 = vmatmul.mubr.msk.bf16.gmra.mrb[8].mxu0 %vm103_vm0, %v5636_v6  ;;  %5225 = vmatmul.mubr.msk.bf16.gmra.mrb[8].mxu1 %vm103_vm0, %v5637_v8  ;;  %v5702_v6 = vld [vmem:[%s7480_s0 + $0x1d8] sm:$0xff]  }
  0x77   :  { %5156 = vmatprep.mubr.msk.bf16.mxu0 %vm103_vm0, %v5638_v7  ;;  %5228 = vmatprep.mubr.msk.bf16.mxu1 %vm103_vm0, %v5639_v9  ;;  %v5704_v7 = vld [vmem:[%s7480_s0 + $0x1e0] sm:$0xff]   ;;  %v5703_v8 = vld [vmem:[%s7480_s0 + $0x218] sm:$0xff]  }
  0x78   :  { %v5705_v9 = vld [vmem:[%s7480_s0 + $0x220] sm:$0xff]  }
  0x7e   :  { %5157 = vmatmul.mubr.msk.bf16.gmra.mrb[12].mxu0 %vm103_vm0, %v5640_v10  ;;  %5229 = vmatmul.mubr.msk.bf16.gmra.mrb[12].mxu1 %vm103_vm0, %v5641_v12  ;;  %v5706_v10 = vld [vmem:[%s7480_s0 + $0x1e8] sm:$0xff]  }
  0x7f   :  { %5234 = vmatprep.mubr.msk.bf16.mxu0 %vm103_vm0, %v5642_v11  ;;  %5306 = vmatprep.mubr.msk.bf16.mxu1 %vm103_vm0, %v5643_v13  ;;  %v5708_v11 = vld [vmem:[%s7480_s0 + $0x1f0] sm:$0xff]   ;;  %v5707_v12 = vld [vmem:[%s7480_s0 + $0x228] sm:$0xff]  }
  0x80   :  { %v5709_v13 = vld [vmem:[%s7480_s0 + $0x230] sm:$0xff]  }
  0x86   :  { %5235 = vmatmul.mubr.msk.bf16.vlgmr.msra.gmra.mrb[16].mxu0 %vm103_vm0, %v5644_v14  ;;  %5307 = vmatmul.mubr.msk.bf16.vlgmr.msra.gmra.mrb[16].mxu1 %vm103_vm0, %v5646_v15  ;;  %v5710_v14 = vld [vmem:[%s7480_s0 + $0x1f8] sm:$0xff]  }
  0x87   :  { %5251 = vmatpush3.bf16.msra.mxu0 %v5645_v63  ;;  %5238 = vmatprep.mubr.msk.bf16.mxu0 %vm103_vm0, %v5648_v16  ;;  %v5696_v63 = vld [vmem:[%s7480_s0 + $0x1c0] sm:$0xff]   ;;  %v5711_v15 = vld [vmem:[%s7480_s0 + $0x238] sm:$0xff]  }
  0x88   :  { %5268 = vmatprep.subr.bf16.mxu0 %v5663_v17  ;;  %5323 = vmatpush3.bf16.msra.mxu1 %v5647_v1  ;;  %v5697_v1 = vld [vmem:[%s7480_s0 + $0x200] sm:$0xff]  }
  0x89   :  { %5310 = vmatprep.mubr.msk.bf16.mxu1 %vm103_vm0, %v5649_v18  ;;  %5340 = vmatprep.subr.bf16.mxu1 %v5665_v19  ;;  %v6558_v16 = vld [vmem:[%s7481_s2] ss:$0 sm:$0xff] }
  0x8a   :  { %v6563_v18 = vld [vmem:[%s7482_s3] ss:$0 sm:$0xff] }
  0x8e   :  { %5239 = vmatmul.mubr.msk.bf16.gmra.mrb[20].mxu0 %vm103_vm0, %v5650_v20  ;;  %5311 = vmatmul.mubr.msk.bf16.gmra.mrb[20].mxu1 %vm103_vm0, %v5651_v22 }
  0x8f   :  { %5242 = vmatprep.mubr.msk.bf16.mxu0 %vm103_vm0, %v5652_v21  ;;  %5314 = vmatprep.mubr.msk.bf16.mxu1 %vm103_vm0, %v5653_v23 }
  0x96   :  { %5243 = vmatmul.mubr.msk.bf16.gmra.mrb[24].mxu0 %vm103_vm0, %v5654_v24  ;;  %5315 = vmatmul.mubr.msk.bf16.gmra.mrb[24].mxu1 %vm103_vm0, %v5655_v26 }
  0x97   :  { %5246 = vmatprep.mubr.msk.bf16.mxu0 %vm103_vm0, %v5656_v25  ;;  %5318 = vmatprep.mubr.msk.bf16.mxu1 %vm103_vm0, %v5657_v27 }
  0x9e   :  { %5247 = vmatmul.mubr.msk.bf16.gmra.mrb[28].mxu0 %vm103_vm0, %v5658_v28  ;;  %5319 = vmatmul.mubr.msk.bf16.gmra.mrb[28].mxu1 %vm103_vm0, %v5659_v30 }
  0x9f   :  { %5252 = vmatprep.mubr.msk.bf16.mxu0 %vm103_vm0, %v5660_v29  ;;  %5324 = vmatprep.mubr.msk.bf16.mxu1 %vm103_vm0, %v5661_v31 }
  0xa6   :  { %5253 = vmatmul.mubr.msk.bf16.vlgmr.msra.gmra.mrb[16].mxu0 %vm103_vm0, %v5662_v32  ;;  %5325 = vmatmul.mubr.msk.bf16.vlgmr.msra.gmra.mrb[16].mxu1 %vm103_vm0, %v5664_v34 }
  0xa7   :  { %5269 = vmatpush3.bf16.msra.mxu0 %v5663_v17  ;;  %5256 = vmatprep.mubr.msk.bf16.mxu0 %vm103_vm0, %v5666_v33 }
  0xa8   :  { %5286 = vmatprep.subr.bf16.mxu0 %v5681_v35  ;;  %5341 = vmatpush3.bf16.msra.mxu1 %v5665_v19 }
  0xa9   :  { %5328 = vmatprep.mubr.msk.bf16.mxu1 %vm103_vm0, %v5667_v36  ;;  %5358 = vmatprep.subr.bf16.mxu1 %v5683_v37 }
  0xae   :  { %5257 = vmatmul.mubr.msk.bf16.gmra.mrb[20].mxu0 %vm103_vm0, %v5668_v38  ;;  %5329 = vmatmul.mubr.msk.bf16.gmra.mrb[20].mxu1 %vm103_vm0, %v5669_v40 }
  0xaf   :  { %5260 = vmatprep.mubr.msk.bf16.mxu0 %vm103_vm0, %v5670_v39  ;;  %5332 = vmatprep.mubr.msk.bf16.mxu1 %vm103_vm0, %v5671_v41 }
  0xb6   :  { %5261 = vmatmul.mubr.msk.bf16.gmra.mrb[24].mxu0 %vm103_vm0, %v5672_v42  ;;  %5333 = vmatmul.mubr.msk.bf16.gmra.mrb[24].mxu1 %vm103_vm0, %v5673_v44 }
  0xb7   :  { %5264 = vmatprep.mubr.msk.bf16.mxu0 %vm103_vm0, %v5674_v43  ;;  %5336 = vmatprep.mubr.msk.bf16.mxu1 %vm103_vm0, %v5675_v45 }
  0xbe   :  { %5265 = vmatmul.mubr.msk.bf16.gmra.mrb[28].mxu0 %vm103_vm0, %v5676_v46  ;;  %5337 = vmatmul.mubr.msk.bf16.gmra.mrb[28].mxu1 %vm103_vm0, %v5677_v48 }
  0xbf   :  { %5270 = vmatprep.mubr.msk.bf16.mxu0 %vm103_vm0, %v5678_v47  ;;  %5342 = vmatprep.mubr.msk.bf16.mxu1 %vm103_vm0, %v5679_v49 }
  0xc6   :  { %5271 = vmatmul.mubr.msk.bf16.vlgmr.msra.gmra.mrb[16].mxu0 %vm103_vm0, %v5680_v50  ;;  %5343 = vmatmul.mubr.msk.bf16.vlgmr.msra.gmra.mrb[16].mxu1 %vm103_vm0, %v5682_v52 }
  0xc7   :  { %5287 = vmatpush3.bf16.msra.mxu0 %v5681_v35  ;;  %5274 = vmatprep.mubr.msk.bf16.mxu0 %vm103_vm0, %v5684_v51 }
  0xc8   :  { %5359 = vmatpush3.bf16.msra.mxu1 %v5683_v37  ;;  %5346 = vmatprep.mubr.msk.bf16.mxu1 %vm103_vm0, %v5685_v53 }
  0xce   :  { %5275 = vmatmul.mubr.msk.bf16.gmra.mrb[20].mxu0 %vm103_vm0, %v5686_v54  ;;  %5347 = vmatmul.mubr.msk.bf16.gmra.mrb[20].mxu1 %vm103_vm0, %v5687_v56 }
  0xcf   :  { %5278 = vmatprep.mubr.msk.bf16.mxu0 %vm103_vm0, %v5688_v55  ;;  %5350 = vmatprep.mubr.msk.bf16.mxu1 %vm103_vm0, %v5689_v57 }
  0xd6   :  { %5279 = vmatmul.mubr.msk.bf16.gmra.mrb[24].mxu0 %vm103_vm0, %v5690_v58  ;;  %5351 = vmatmul.mubr.msk.bf16.gmra.mrb[24].mxu1 %vm103_vm0, %v5691_v60 }
  0xd7   :  { %5282 = vmatprep.mubr.msk.bf16.mxu0 %vm103_vm0, %v5692_v59  ;;  %5354 = vmatprep.mubr.msk.bf16.mxu1 %vm103_vm0, %v5693_v61 }
  0xde   :  { %5283 = vmatmul.mubr.msk.bf16.gmra.mrb[28].mxu0 %vm103_vm0, %v5694_v62  ;;  %5355 = vmatmul.mubr.msk.bf16.gmra.mrb[28].mxu1 %vm103_vm0, %v5695_v0 }
  0xdf   :  { %5288 = vmatprep.mubr.msk.bf16.mxu0 %vm103_vm0, %v5696_v63  ;;  %5360 = vmatprep.mubr.msk.bf16.mxu1 %vm103_vm0, %v5697_v1 }
  0xe6   :  { %5289 = vmatmul.mubr.msk.bf16.vlgmr.msra.gmra.mrb[16].mxu0 %vm103_vm0, %v5698_v2  ;;  %5361 = vmatmul.mubr.msk.bf16.vlgmr.msra.gmra.mrb[16].mxu1 %vm103_vm0, %v5699_v4 }
  0xe7   :  { %5292 = vmatprep.mubr.msk.bf16.mxu0 %vm103_vm0, %v5700_v3  ;;  %5364 = vmatprep.mubr.msk.bf16.mxu1 %vm103_vm0, %v5701_v5 }
  0xee   :  { %5293 = vmatmul.mubr.msk.bf16.gmra.mrb[20].mxu0 %vm103_vm0, %v5702_v6  ;;  %5365 = vmatmul.mubr.msk.bf16.gmra.mrb[20].mxu1 %vm103_vm0, %v5703_v8 }
  0xef   :  { %5296 = vmatprep.mubr.msk.bf16.mxu0 %vm103_vm0, %v5704_v7  ;;  %5368 = vmatprep.mubr.msk.bf16.mxu1 %vm103_vm0, %v5705_v9 }
  0xf6   :  { %5297 = vmatmul.mubr.msk.bf16.gmra.mrb[24].mxu0 %vm103_vm0, %v5706_v10  ;;  %5369 = vmatmul.mubr.msk.bf16.gmra.mrb[24].mxu1 %vm103_vm0, %v5707_v12 }
  0xf7   :  { %5300 = vmatprep.mubr.msk.bf16.mxu0 %vm103_vm0, %v5708_v11  ;;  %5372 = vmatprep.mubr.msk.bf16.mxu1 %vm103_vm0, %v5709_v13 }
  0xfe   :  { %5301 = vmatmul.mubr.msk.bf16.gmra.mrb[28].mxu0 %vm103_vm0, %v5710_v14  ;;  %5373 = vmatmul.mubr.msk.bf16.gmra.mrb[28].mxu1 %vm103_vm0, %v5711_v15 }
 0x139   :  { %v5146_v17 = vpop.f32.mrb[0].mxu0  ;;  %v5218_v21 = vpop.f32.mrb[0].mxu1 }
 0x13a   :  { %v807_v19 = vmul.f32 %v5146_v17, %v6558_v16  ;;  %v719_v20 = vpop.f32.mrb[1].mxu0  ;;  %v1856_v25 = vmul.f32 %v5218_v21, %v6558_v16  ;;  %v1768_v26 = vpop.f32.mrb[1].mxu1 }
 0x13b   :  { %v805_v22 = vmul.f32 %v6558_v16, %v719_v20  ;;  %v5147_v23 = vpop.f32.mrb[2].mxu0  ;;  %v1854_v30 = vmul.f32 %v6558_v16, %v1768_v26  ;;  %v5219_v31 = vpop.f32.mrb[2].mxu1 }
 0x13c   :  { %v6568_v24 = vadd.f32 %v6563_v18, %v807_v19  ;;  %v808_v27 = vmul.f32 %v5147_v23, %v6558_v16  ;;  %v722_v28 = vpop.f32.mrb[3].mxu0  ;;  %v6578_v33 = vadd.f32 %v6563_v18, %v1856_v25  ;;  %v1771_v35 = vpop.f32.mrb[3].mxu1  ;;  %v1857_v41 = vmul.f32 %v5219_v31, %v6558_v16 }
 0x13d   :  { %v6573_v29 = vadd.f32 %v6563_v18, %v805_v22  ;;  %v6585_v37 = vadd.f32 %v6563_v18, %v1854_v30  ;;  %v806_v44 = vmul.f32 %v6558_v16, %v722_v28  ;;  %v1855_v59 = vmul.f32 %v6558_v16, %v1771_v35 }
 0x13e   :  { %v846_v32 = vmin.f32 %v6568_v24, 0.0  ;;  %v6581_v34 = vadd.f32 %v6563_v18, %v808_v27  ;;  %v1895_v40 = vmin.f32 %v6578_v33, 0.0  ;;  %v6595_v55 = vadd.f32 %v6563_v18, %v1857_v41 }
 0x13f   :  { %v844_v36 = vmin.f32 %v6573_v29, 0.0  ;;  %v1893_v43 = vmin.f32 %v6585_v37, 0.0  ;;  %v6600_v58 = vadd.f32 %v6563_v18, %v806_v44  ;;  %v6611_v3 = vadd.f32 %v6563_v18, %v1855_v59 }
 0x140   :  { %v878_v38 = vmul.f32 0.5, %v846_v32  ;;  %v912_v39 = vmul.f32 1.442695, %v846_v32  ;;  %v1927_v46 = vmul.f32 0.5, %v1895_v40  ;;  %v1961_v47 = vmul.f32 1.442695, %v1895_v40 }
 0x141   :  { %v876_v42 = vmul.f32 0.5, %v844_v36  ;;  %v5150_v45 = vpop.f32.mrb[4].mxu0  ;;  %v847_v48 = vmin.f32 %v6581_v34, 0.0  ;;  %v908_v50 = vmul.f32 1.442695, %v844_v36  ;;  %v5222_v51 = vpop.f32.mrb[4].mxu1 }
 0x142   :  { %5712 = vtanh.f32 %v878_v38  ;;  %v735_v49 = vpop.f32.mrb[5].mxu0  ;;  %v1925_v53 = vmul.f32 0.5, %v1893_v43  ;;  %v1957_v54 = vmul.f32 1.442695, %v1893_v43  ;;  %v1784_v56 = vpop.f32.mrb[5].mxu1  ;;  %v811_v60 = vmul.f32 %v5150_v45, %v6558_v16 }
 0x143   :  { %5714 = vpow2.f32 %v912_v39  ;;  %v6592_v52 = vpop.f32.mrb[6].mxu0  ;;  %v6604_v61 = vpop.f32.mrb[6].mxu1  ;;  %v879_v62 = vmul.f32 0.5, %v847_v48  ;;  %v914_v63 = vmul.f32 1.442695, %v847_v48  ;;  %v1896_v0 = vmin.f32 %v6595_v55, 0.0 }
 0x144   :  { %5716 = vtanh.f32 %v1927_v46  ;;  %v6597_v57 = vpop.f32.mrb[7].mxu0  ;;  %v6607_v1 = vpop.f32.mrb[7].mxu1  ;;  %v845_v2 = vmin.f32 %v6600_v58, 0.0  ;;  %v1860_v4 = vmul.f32 %v5222_v51, %v6558_v16  ;;  %v6615_v6 = vadd.f32 %v6563_v18, %v811_v60 }
 0x145   :  { %5718 = vpow2.f32 %v1961_v47  ;;  %v1928_v5 = vmul.f32 0.5, %v1896_v0  ;;  %v1963_v7 = vmul.f32 1.442695, %v1896_v0  ;;  %v1894_v8 = vmin.f32 %v6611_v3, 0.0 }
 0x146   :  { %5720 = vtanh.f32 %v876_v42  ;;  %v877_v10 = vmul.f32 0.5, %v845_v2  ;;  %v850_v11 = vmin.f32 %v6615_v6, 0.0  ;;  %vm862_vm2 = vcmp.gt.f32.partialorder %v6568_v24, 0.0 }
 0x147   :  { %5722 = vpow2.f32 %v908_v50  ;;  %v910_v13 = vmul.f32 1.442695, %v845_v2  ;;  %v6625_v14 = vadd.f32 %v6563_v18, %v1860_v4  ;;  %vm1911_vm3 = vcmp.gt.f32.partialorder %v6578_v33, 0.0 }
 0x148   :  { %5724 = vtanh.f32 %v1925_v53  ;;  %v1926_v20 = vmul.f32 0.5, %v1894_v8  ;;  %v809_v21 = vmul.f32 %v6558_v16, %v735_v49  ;;  %vm860_vm4 = vcmp.gt.f32.partialorder %v6573_v29, 0.0 }
 0x149   :  { %5726 = vpow2.f32 %v1957_v54  ;;  %v6618_v9 = vpop.f32.mrb[8].mxu0  ;;  %v6627_v15 = vpop.f32.mrb[8].mxu1  ;;  %v1959_v26 = vmul.f32 1.442695, %v1894_v8  ;;  %v1899_v27 = vmin.f32 %v6625_v14, 0.0  ;;  %v1858_v28 = vmul.f32 %v6558_v16, %v1784_v56 }
 0x14a   :  { %5728 = vtanh.f32 %v879_v62  ;;  %v6621_v12 = vpop.f32.mrb[9].mxu0  ;;  %v6633_v22 = vpop.f32.mrb[9].mxu1  ;;  %v882_v35 = vmul.f32 0.5, %v850_v11  ;;  %v6643_v36 = vadd.f32 %v6563_v18, %v809_v21  ;;  %vm1909_vm5 = vcmp.gt.f32.partialorder %v6585_v37, 0.0 }
 0x14b   :  { %5730 = vpow2.f32 %v914_v63  ;;  %v6629_v17 = vpop.f32.mrb[10].mxu0  ;;  %v6640_v30 = vpop.f32.mrb[10].mxu1  ;;  %v920_v40 = vmul.f32 1.442695, %v850_v11  ;;  %v1931_v41 = vmul.f32 0.5, %v1899_v27  ;;  %v6649_v42 = vadd.f32 %v6563_v18, %v1858_v28 }
 0x14c   :  { %v5713_v19 = vpop.eup %5712  ;;  %5732 = vtanh.f32 %v1928_v5  ;;  %v6635_v23 = vpop.f32.mrb[11].mxu0  ;;  %v848_v46 = vmin.f32 %v6643_v36, 0.0  ;;  %vm863_vm6 = vcmp.gt.f32.partialorder %v6581_v34, 0.0  ;;  %v1969_v48 = vmul.f32 1.442695, %v1899_v27 }
 0x14d   :  { %v5715_v25 = vpop.eup %5714  ;;  %5734 = vpow2.f32 %v1963_v7  ;;  %v6645_v38 = vpop.f32.mrb[11].mxu1  ;;  %v1897_v49 = vmin.f32 %v6649_v42, 0.0  ;;  %v812_v50 = vmul.f32 %v6592_v52, %v6558_v16  ;;  %vm1912_vm7 = vcmp.gt.f32.partialorder %v6595_v55, 0.0 }
 0x14e   :  { %v5717_v31 = vpop.eup %5716  ;;  %v942_v32 = vadd.f32 1.0, %v5715_v25  ;;  %5736 = vtanh.f32 %v877_v10  ;;  %v880_v0 = vmul.f32 0.5, %v848_v46  ;;  %v916_v2 = vmul.f32 1.442695, %v848_v46 }
 0x14f   :  { %v5719_v39 = vpop.eup %5718  ;;  %5738 = vpow2.f32 %v910_v13  ;;  %vm861_vm8 = vcmp.gt.f32.partialorder %v6600_v58, 0.0  ;;  %v1965_v21 = vmul.f32 1.442695, %v1897_v49  ;;  %vm1910_vm9 = vcmp.gt.f32.partialorder %v6611_v3, 0.0 }
 0x150   :  { %v5721_v43 = vpop.eup %5720  ;;  %v958_v44 = vmul.f32 %v5713_v19, %v942_v32  ;;  %v1991_v45 = vadd.f32 1.0, %v5719_v39  ;;  %5740 = vtanh.f32 %v1926_v20  ;;  %v1929_v20 = vmul.f32 0.5, %v1897_v49 }
 0x151   :  { %v5723_v47 = vpop.eup %5722  ;;  %5742 = vpow2.f32 %v1959_v26  ;;  %v6656_v51 = vpop.f32.mrb[12].mxu0  ;;  %v6692_v39 = vadd.f32 %v6563_v18, %v812_v50  ;;  %vm866_vm10 = vcmp.gt.f32.partialorder %v6615_v6, 0.0  ;;  %vm1915_vm11 = vcmp.gt.f32.partialorder %v6625_v14, 0.0 }
 0x152   :  { %v5725_v53 = vpop.eup %5724  ;;  %v974_v54 = vsel %vm862_vm2, %v6568_v24, %v958_v44  ;;  %v2007_v56 = vmul.f32 %v5717_v31, %v1991_v45  ;;  %v940_v59 = vadd.f32 1.0, %v5723_v47  ;;  %5744 = vtanh.f32 %v882_v35  ;;  %v6661_v60 = vpop.f32.mrb[13].mxu0 }
 0x153   :  { %v5727_v62 = vpop.eup %5726  ;;  %v4882_v63 = vpack.c.bf16 %v974_v54, %v974_v54  ;;  %5746 = vpow2.f32 %v920_v40  ;;  %v6664_v52 = vpop.f32.mrb[12].mxu1  ;;  %v1861_v40 = vmul.f32 %v6604_v61, %v6558_v16  ;;  %v851_v61 = vmin.f32 %v6692_v39, 0.0 }
 0x154   :  { %v6666_v4 = vpop.f32.mrb[14].mxu0  ;;  %v5729_v5 = vpop.eup %5728  ;;  %v2023_v24 = vsel %vm1911_vm3, %v6578_v33, %v2007_v56  ;;  %v956_v7 = vmul.f32 %v5721_v43, %v940_v59  ;;  %v1989_v8 = vadd.f32 1.0, %v5727_v62  ;;  %5748 = vtanh.f32 %v1931_v41 }
 0x155   :  { %v6671_v10 = vpop.f32.mrb[13].mxu1  ;;  %v6673_v11 = vpop.f32.mrb[15].mxu0  ;;  %1055 = vst.msk [vmem:[%s7483_s4 + $0x8] sm:$0xf] %vm1052_vm1, %v4882_v63  ;;  %v4898_v19 = vpack.c.bf16 %v2023_v24, %v2023_v24  ;;  %5750 = vpow2.f32 %v1969_v48  ;;  %v6709_v50 = vadd.f32 %v6563_v18, %v1861_v40  ;;  %v883_v56 = vmul.f32 0.5, %v851_v61 }
 0x156   :  { %v5731_v13 = vpop.eup %5730  ;;  %v6680_v33 = vpop.f32.mrb[14].mxu1  ;;  %v972_v26 = vsel %vm860_vm4, %v6573_v29, %v956_v7  ;;  %v2005_v27 = vmul.f32 %v5725_v53, %v1989_v8  ;;  %5752 = vtanh.f32 %v880_v0  ;;  %v922_v59 = vmul.f32 1.442695, %v851_v61 }
 0x157   :  { %v5733_v25 = vpop.eup %5732  ;;  %v943_v28 = vadd.f32 1.0, %v5731_v13  ;;  %v6685_v31 = vpop.f32.mrb[15].mxu1  ;;  %4520 = vst.msk [vmem:[%s7483_s4 + $0x48] sm:$0xf] %vm1052_vm1, %v4898_v19  ;;  %v4880_v35 = vpack.c.bf16 %v972_v26, %v972_v26  ;;  %5754 = vpow2.f32 %v916_v2  ;;  %v810_v62 = vmul.f32 %v6558_v16, %v6597_v57 }
 0x158   :  { %v5735_v32 = vpop.eup %5734  ;;  %v2021_v41 = vsel %vm1909_vm5, %v6585_v37, %v2005_v27  ;;  %5756 = vtanh.f32 %v1929_v20  ;;  %vm864_vm12 = vcmp.gt.f32.partialorder %v6643_v36, 0.0  ;;  %vm1913_vm13 = vcmp.gt.f32.partialorder %v6649_v42, 0.0 }
 0x159   :  { %v5737_v29 = vpop.eup %5736  ;;  %v959_v43 = vmul.f32 %v5729_v5, %v943_v28  ;;  %v1992_v44 = vadd.f32 1.0, %v5735_v32  ;;  %1053 = vst.msk [vmem:[%s7483_s4] sm:$0xf] %vm1052_vm1, %v4880_v35  ;;  %v4896_v46 = vpack.c.bf16 %v2021_v41, %v2021_v41  ;;  %5758 = vpow2.f32 %v1965_v21 }
 0x15a   :  { %v5739_v45 = vpop.eup %5738  ;;  %v1900_v5 = vmin.f32 %v6709_v50, 0.0  ;;  %v6728_v57 = vadd.f32 %v6563_v18, %v810_v62  ;;  %5760 = vpow2.f32 %v922_v59  ;;  %v813_v62 = vmul.f32 %v6558_v16, %v6621_v12 }
 0x15b   :  { %v5741_v47 = vpop.eup %5740  ;;  %v975_v37 = vsel %vm863_vm6, %v6581_v34, %v959_v43  ;;  %v2008_v48 = vmul.f32 %v5733_v25, %v1992_v44  ;;  %v941_v49 = vadd.f32 1.0, %v5739_v45  ;;  %4518 = vst.msk [vmem:[%s7483_s4 + $0x40] sm:$0xf] %vm1052_vm1, %v4896_v46  ;;  %5762 = vtanh.f32 %v883_v56 }
 0x15c   :  { %v5743_v53 = vpop.eup %5742  ;;  %v4883_v54 = vpack.c.bf16 %v975_v37, %v975_v37  ;;  %v1932_v25 = vmul.f32 0.5, %v1900_v5  ;;  %v1971_v26 = vmul.f32 1.442695, %v1900_v5  ;;  %v849_v27 = vmin.f32 %v6728_v57, 0.0 }
 0x15d   :  { %v5745_v63 = vpop.eup %5744  ;;  %v2024_v34 = vsel %vm1912_vm7, %v6595_v55, %v2008_v48  ;;  %v957_v0 = vmul.f32 %v5737_v29, %v941_v49  ;;  %v1990_v2 = vadd.f32 1.0, %v5743_v53  ;;  %v1859_v37 = vmul.f32 %v6558_v16, %v6607_v1 }
 0x15e   :  { %v5747_v24 = vpop.eup %5746  ;;  %1056 = vst.msk [vmem:[%s7483_s4 + $0xc] sm:$0xf] %vm1052_vm1, %v4883_v54  ;;  %v4899_v7 = vpack.c.bf16 %v2024_v34, %v2024_v34  ;;  %v881_v41 = vmul.f32 0.5, %v849_v27  ;;  %v918_v43 = vmul.f32 1.442695, %v849_v27  ;;  %5764 = vpow2.f32 %v1971_v26 }
 0x15f   :  { %v5749_v8 = vpop.eup %5748  ;;  %v973_v55 = vsel %vm861_vm8, %v6600_v58, %v957_v0  ;;  %v2006_v13 = vmul.f32 %v5741_v47, %v1990_v2  ;;  %v946_v19 = vadd.f32 1.0, %v5747_v24  ;;  %5766 = vtanh.f32 %v1932_v25 }
 0x160   :  { %v5751_v20 = vpop.eup %5750  ;;  %4521 = vst.msk [vmem:[%s7483_s4 + $0x4c] sm:$0xf] %vm1052_vm1, %v4899_v7  ;;  %v4881_v21 = vpack.c.bf16 %v973_v55, %v973_v55  ;;  %v815_v48 = vmul.f32 %v6618_v9, %v6558_v16  ;;  %5768 = vpow2.f32 %v918_v43  ;;  %v6765_v56 = vadd.f32 %v6563_v18, %v1859_v37 }
 0x161   :  { %v5753_v28 = vpop.eup %5752  ;;  %v2022_v32 = vsel %vm1910_vm9, %v6611_v3, %v2006_v13  ;;  %v962_v58 = vmul.f32 %v5745_v63, %v946_v19  ;;  %v1995_v35 = vadd.f32 1.0, %v5751_v20  ;;  %v1864_v9 = vmul.f32 %v6627_v15, %v6558_v16 }
 0x162   :  { %v5755_v40 = vpop.eup %5754  ;;  %1054 = vst.msk [vmem:[%s7483_s4 + $0x4] sm:$0xf] %vm1052_vm1, %v4881_v21  ;;  %v4897_v29 = vpack.c.bf16 %v2022_v32, %v2022_v32  ;;  %v6768_v1 = vadd.f32 %v6563_v18, %v815_v48  ;;  %5770 = vtanh.f32 %v881_v41  ;;  %v1898_v34 = vmin.f32 %v6765_v56, 0.0 }
 0x163   :  { %v5757_v44 = vpop.eup %5756  ;;  %v978_v45 = vsel %vm866_vm10, %v6615_v6, %v962_v58  ;;  %v2011_v3 = vmul.f32 %v5749_v8, %v1995_v35  ;;  %v944_v46 = vadd.f32 1.0, %v5755_v40  ;;  %v6786_v2 = vadd.f32 %v6563_v18, %v1864_v9 }
 0x164   :  { %v5759_v61 = vpop.eup %5758  ;;  %4519 = vst.msk [vmem:[%s7483_s4 + $0x44] sm:$0xf] %vm1052_vm1, %v4897_v29  ;;  %v4886_v47 = vpack.c.bf16 %v978_v45, %v978_v45  ;;  %v854_v15 = vmin.f32 %v6768_v1, 0.0  ;;  %v6789_v12 = vadd.f32 %v6563_v18, %v813_v62  ;;  %v1862_v5 = vmul.f32 %v6558_v16, %v6633_v22 }
 0x165   :  { %v2027_v6 = vsel %vm1915_vm11, %v6625_v14, %v2011_v3  ;;  %v960_v49 = vmul.f32 %v5753_v28, %v944_v46  ;;  %v1993_v53 = vadd.f32 1.0, %v5759_v61  ;;  %v5761_v0 = vpop.eup %5760  ;;  %v1930_v8 = vmul.f32 0.5, %v1898_v34 }
 0x166   :  { %1059 = vst.msk [vmem:[%s7483_s4 + $0x18] sm:$0xf] %vm1052_vm1, %v4886_v47  ;;  %v4902_v54 = vpack.c.bf16 %v2027_v6, %v2027_v6  ;;  %v947_v7 = vadd.f32 1.0, %v5761_v0  ;;  %v1967_v55 = vmul.f32 1.442695, %v1898_v34  ;;  %v5763_v13 = vpop.eup %5762  ;;  %v1903_v20 = vmin.f32 %v6786_v2, 0.0 }
 0x167   :  { %v976_v14 = vsel %vm864_vm12, %v6643_v36, %v960_v49  ;;  %v2009_v59 = vmul.f32 %v5757_v44, %v1993_v53  ;;  %v928_v19 = vmul.f32 1.442695, %v854_v15  ;;  %vm867_vm14 = vcmp.gt.f32.partialorder %v6692_v39, 0.0 }
 0x168   :  { %4524 = vst.msk [vmem:[%s7483_s4 + $0x58] sm:$0xf] %vm1052_vm1, %v4902_v54  ;;  %v4884_v63 = vpack.c.bf16 %v976_v14, %v976_v14  ;;  %v963_v22 = vmul.f32 %v5763_v13, %v947_v7  ;;  %5772 = vtanh.f32 %v1930_v8  ;;  %v852_v21 = vmin.f32 %v6789_v12, 0.0  ;;  %v5765_v25 = vpop.eup %5764 }
 0x169   :  { %v2025_v36 = vsel %vm1913_vm13, %v6649_v42, %v2009_v59  ;;  %v886_v42 = vmul.f32 0.5, %v854_v15  ;;  %5774 = vpow2.f32 %v1967_v55  ;;  %v1935_v26 = vmul.f32 0.5, %v1903_v20  ;;  %v5767_v32 = vpop.eup %5766 }
 0x16a   :  { %1057 = vst.msk [vmem:[%s7483_s4 + $0x10] sm:$0xf] %vm1052_vm1, %v4884_v63  ;;  %v4900_v24 = vpack.c.bf16 %v2025_v36, %v2025_v36  ;;  %v1977_v27 = vmul.f32 1.442695, %v1903_v20  ;;  %v6805_v28 = vadd.f32 %v6563_v18, %v1862_v5  ;;  %v979_v58 = vsel %vm867_vm14, %v6692_v39, %v963_v22  ;;  %v5769_v40 = vpop.eup %5768 }
 0x16b   :  { %vm1916_vm15 = vcmp.gt.f32.partialorder %v6709_v50, 0.0  ;;  %v1996_v35 = vadd.f32 1.0, %v5765_v25  ;;  %5776 = vtanh.f32 %v886_v42  ;;  %v4887_v29 = vpack.c.bf16 %v979_v58, %v979_v58 }
 0x16c   :  { %4522 = vst.msk [vmem:[%s7483_s4 + $0x50] sm:$0xf] %vm1052_vm1, %v4900_v24  ;;  %5778 = vpow2.f32 %v928_v19  ;;  %v924_v41 = vmul.f32 1.442695, %v852_v21  ;;  %v1901_v43 = vmin.f32 %v6805_v28, 0.0  ;;  %v945_v45 = vadd.f32 1.0, %v5769_v40  ;;  %v5771_v46 = vpop.eup %5770 }
 0x16d   :  { %v2012_v44 = vmul.f32 %v5767_v32, %v1996_v35  ;;  %5780 = vtanh.f32 %v1935_v26  ;;  %v884_v3 = vmul.f32 0.5, %v852_v21  ;;  %1060 = vst.msk [vmem:[%s7483_s4 + $0x1c] sm:$0xf] %vm1052_vm1, %v4887_v29  ;;  %vm865_vm0 = vcmp.gt.f32.partialorder %v6728_v57, 0.0 }
 0x16e   :  { %5782 = vpow2.f32 %v1977_v27  ;;  %v1973_v39 = vmul.f32 1.442695, %v1901_v43  ;;  %v816_v61 = vmul.f32 %v6629_v17, %v6558_v16  ;;  %v961_v37 = vmul.f32 %v5771_v46, %v945_v45 }
 0x16f   :  { %v2028_v47 = vsel %vm1916_vm15, %v6709_v50, %v2012_v44  ;;  %v1933_v48 = vmul.f32 0.5, %v1901_v43  ;;  %v1865_v6 = vmul.f32 %v6640_v30, %v6558_v16  ;;  %5784 = vpow2.f32 %v924_v41 }
 0x170   :  { %v4903_v49 = vpack.c.bf16 %v2028_v47, %v2028_v47  ;;  %v6823_v53 = vadd.f32 %v6563_v18, %v816_v61  ;;  %v814_v54 = vmul.f32 %v6558_v16, %v6635_v23  ;;  %v977_v9 = vsel %vm865_vm0, %v6728_v57, %v961_v37 }
 0x171   :  { %5786 = vtanh.f32 %v884_v3  ;;  %v6829_v17 = vadd.f32 %v6563_v18, %v1865_v6  ;;  %v1863_v50 = vmul.f32 %v6558_v16, %v6645_v38  ;;  %v4885_v30 = vpack.c.bf16 %v977_v9, %v977_v9 }
 0x172   :  { %4525 = vst.msk [vmem:[%s7483_s4 + $0x5c] sm:$0xf] %vm1052_vm1, %v4903_v49  ;;  %vm1914_vm2 = vcmp.gt.f32.partialorder %v6765_v56, 0.0  ;;  %5788 = vpow2.f32 %v1973_v39  ;;  %v855_v23 = vmin.f32 %v6823_v53, 0.0  ;;  %v5773_v14 = vpop.eup %5772  ;;  %vm870_vm3 = vcmp.gt.f32.partialorder %v6768_v1, 0.0 }
 0x173   :  { %v1904_v57 = vmin.f32 %v6829_v17, 0.0  ;;  %v6842_v59 = vadd.f32 %v6563_v18, %v814_v54  ;;  %v6845_v38 = vadd.f32 %v6563_v18, %v1863_v50  ;;  %v5775_v62 = vpop.eup %5774  ;;  %1058 = vst.msk [vmem:[%s7483_s4 + $0x14] sm:$0xf] %vm1052_vm1, %v4885_v30  ;;  %vm1919_vm4 = vcmp.gt.f32.partialorder %v6786_v2, 0.0 }
 0x174   :  { %5790 = vtanh.f32 %v1933_v48  ;;  %v887_v63 = vmul.f32 0.5, %v855_v23  ;;  %v930_v34 = vmul.f32 1.442695, %v855_v23  ;;  %v1994_v0 = vadd.f32 1.0, %v5775_v62 }
 0x175   :  { %v5777_v15 = vpop.eup %5776  ;;  %v1936_v36 = vmul.f32 0.5, %v1904_v57  ;;  %v1979_v5 = vmul.f32 1.442695, %v1904_v57  ;;  %v853_v24 = vmin.f32 %v6842_v59, 0.0  ;;  %v1902_v8 = vmin.f32 %v6845_v38, 0.0 }
 0x176   :  { %v5779_v7 = vpop.eup %5778  ;;  %5792 = vtanh.f32 %v887_v63  ;;  %v819_v55 = vmul.f32 %v6656_v51, %v6558_v16  ;;  %v1868_v13 = vmul.f32 %v6664_v52, %v6558_v16  ;;  %v2010_v19 = vmul.f32 %v5773_v14, %v1994_v0 }
 0x177   :  { %v5781_v42 = vpop.eup %5780  ;;  %v950_v20 = vadd.f32 1.0, %v5779_v7  ;;  %vm868_vm5 = vcmp.gt.f32.partialorder %v6789_v12, 0.0  ;;  %5794 = vpow2.f32 %v930_v34  ;;  %v885_v21 = vmul.f32 0.5, %v853_v24 }
 0x178   :  { %v5783_v22 = vpop.eup %5782  ;;  %5796 = vtanh.f32 %v1936_v36  ;;  %v926_v25 = vmul.f32 1.442695, %v853_v24  ;;  %v1975_v26 = vmul.f32 1.442695, %v1902_v8  ;;  %v2026_v27 = vsel %vm1914_vm2, %v6765_v56, %v2010_v19 }
 0x179   :  { %v966_v32 = vmul.f32 %v5777_v15, %v950_v20  ;;  %v1999_v51 = vadd.f32 1.0, %v5783_v22  ;;  %5798 = vpow2.f32 %v1979_v5  ;;  %v5785_v58 = vpop.eup %5784  ;;  %v4901_v52 = vpack.c.bf16 %v2026_v27, %v2026_v27 }
 0x17a   :  { %v1934_v35 = vmul.f32 0.5, %v1902_v8  ;;  %v6863_v40 = vadd.f32 %v6563_v18, %v819_v55  ;;  %v6866_v29 = vadd.f32 %v6563_v18, %v1868_v13  ;;  %v948_v45 = vadd.f32 1.0, %v5785_v58 }
 0x17b   :  { %v5787_v41 = vpop.eup %5786  ;;  %v982_v43 = vsel %vm870_vm3, %v6768_v1, %v966_v32  ;;  %v2015_v44 = vmul.f32 %v5781_v42, %v1999_v51  ;;  %5800 = vpow2.f32 %v926_v25  ;;  %4523 = vst.msk [vmem:[%s7483_s4 + $0x54] sm:$0xf] %vm1052_vm1, %v4901_v52  ;;  %vm1917_vm6 = vcmp.gt.f32.partialorder %v6805_v28, 0.0 }
 0x17c   :  { %v5789_v56 = vpop.eup %5788  ;;  %v4890_v3 = vpack.c.bf16 %v982_v43, %v982_v43  ;;  %5802 = vtanh.f32 %v885_v21  ;;  %v858_v46 = vmin.f32 %v6863_v40, 0.0  ;;  %v964_v1 = vmul.f32 %v5787_v41, %v948_v45 }
 0x17d   :  { %v2031_v39 = vsel %vm1919_vm4, %v6786_v2, %v2015_v44  ;;  %v1997_v61 = vadd.f32 1.0, %v5789_v56  ;;  %5804 = vpow2.f32 %v1975_v26  ;;  %v1907_v49 = vmin.f32 %v6866_v29, 0.0 }
 0x17e   :  { %v5791_v47 = vpop.eup %5790  ;;  %1063 = vst.msk [vmem:[%s7483_s4 + $0x28] sm:$0xf] %vm1052_vm1, %v4890_v3  ;;  %v4906_v37 = vpack.c.bf16 %v2031_v39, %v2031_v39  ;;  %v890_v48 = vmul.f32 0.5, %v858_v46  ;;  %v936_v6 = vmul.f32 1.442695, %v858_v46  ;;  %v980_v54 = vsel %vm868_vm5, %v6789_v12, %v964_v1 }
 0x17f   :  { %v2013_v9 = vmul.f32 %v5791_v47, %v1997_v61  ;;  %5806 = vtanh.f32 %v1934_v35  ;;  %v817_v2 = vmul.f32 %v6558_v16, %v6661_v60  ;;  %v4888_v30 = vpack.c.bf16 %v980_v54, %v980_v54 }
 0x180   :  { %v5793_v50 = vpop.eup %5792  ;;  %4528 = vst.msk [vmem:[%s7483_s4 + $0x68] sm:$0xf] %vm1052_vm1, %v4906_v37  ;;  %vm871_vm7 = vcmp.gt.f32.partialorder %v6823_v53, 0.0  ;;  %v1939_v23 = vmul.f32 0.5, %v1907_v49  ;;  %v1985_v14 = vmul.f32 1.442695, %v1907_v49  ;;  %5808 = vpow2.f32 %v936_v6 }
 0x181   :  { %v5795_v57 = vpop.eup %5794  ;;  %v2029_v12 = vsel %vm1917_vm6, %v6805_v28, %v2013_v9  ;;  %v6899_v62 = vadd.f32 %v6563_v18, %v817_v2  ;;  %v1866_v60 = vmul.f32 %v6558_v16, %v6671_v10  ;;  %1061 = vst.msk [vmem:[%s7483_s4 + $0x20] sm:$0xf] %vm1052_vm1, %v4888_v30  ;;  %5810 = vtanh.f32 %v890_v48 }
 0x182   :  { %v5797_v63 = vpop.eup %5796  ;;  %v4904_v34 = vpack.c.bf16 %v2029_v12, %v2029_v12  ;;  %v951_v15 = vadd.f32 1.0, %v5795_v57  ;;  %v820_v0 = vmul.f32 %v6666_v4, %v6558_v16  ;;  %vm1920_vm8 = vcmp.gt.f32.partialorder %v6829_v17, 0.0 }
 0x183   :  { %v5799_v28 = vpop.eup %5798  ;;  %5812 = vpow2.f32 %v1985_v14  ;;  %v856_v36 = vmin.f32 %v6899_v62, 0.0  ;;  %v6912_v10 = vadd.f32 %v6563_v18, %v1866_v60  ;;  %vm869_vm9 = vcmp.gt.f32.partialorder %v6842_v59, 0.0 }
 0x184   :  { %4526 = vst.msk [vmem:[%s7483_s4 + $0x60] sm:$0xf] %vm1052_vm1, %v4904_v34  ;;  %v967_v5 = vmul.f32 %v5793_v50, %v951_v15  ;;  %v2000_v24 = vadd.f32 1.0, %v5799_v28  ;;  %v6920_v4 = vadd.f32 %v6563_v18, %v820_v0  ;;  %5814 = vtanh.f32 %v1939_v23 }
 0x185   :  { %v5801_v7 = vpop.eup %5800  ;;  %v888_v8 = vmul.f32 0.5, %v856_v36  ;;  %v932_v55 = vmul.f32 1.442695, %v856_v36  ;;  %v1905_v13 = vmin.f32 %v6912_v10, 0.0  ;;  %v1869_v51 = vmul.f32 %v6680_v33, %v6558_v16 }
 0x186   :  { %v5803_v42 = vpop.eup %5802  ;;  %v983_v19 = vsel %vm871_vm7, %v6823_v53, %v967_v5  ;;  %v2016_v20 = vmul.f32 %v5797_v63, %v2000_v24  ;;  %v949_v22 = vadd.f32 1.0, %v5801_v7  ;;  %v859_v21 = vmin.f32 %v6920_v4, 0.0 }
 0x187   :  { %v5805_v25 = vpop.eup %5804  ;;  %v4891_v26 = vpack.c.bf16 %v983_v19, %v983_v19  ;;  %v1937_v27 = vmul.f32 0.5, %v1905_v13  ;;  %v1981_v32 = vmul.f32 1.442695, %v1905_v13  ;;  %5816 = vpow2.f32 %v932_v55 }
 0x188   :  { %v2032_v58 = vsel %vm1920_vm8, %v6829_v17, %v2016_v20  ;;  %v965_v52 = vmul.f32 %v5803_v42, %v949_v22  ;;  %v1998_v35 = vadd.f32 1.0, %v5805_v25  ;;  %vm1918_vm10 = vcmp.gt.f32.partialorder %v6845_v38, 0.0 }
 0x189   :  { %v5807_v41 = vpop.eup %5806  ;;  %1064 = vst.msk [vmem:[%s7483_s4 + $0x2c] sm:$0xf] %vm1052_vm1, %v4891_v26  ;;  %v4907_v53 = vpack.c.bf16 %v2032_v58, %v2032_v58  ;;  %5818 = vtanh.f32 %v888_v8  ;;  %v891_v43 = vmul.f32 0.5, %v859_v21  ;;  %v938_v17 = vmul.f32 1.442695, %v859_v21 }
 0x18a   :  { %v981_v33 = vsel %vm869_vm9, %v6842_v59, %v965_v52  ;;  %v2014_v44 = vmul.f32 %v5807_v41, %v1998_v35  ;;  %5820 = vpow2.f32 %v1981_v32  ;;  %v5809_v45 = vpop.eup %5808  ;;  %v6945_v3 = vadd.f32 %v6563_v18, %v1869_v51 }
 0x18b   :  { %4529 = vst.msk [vmem:[%s7483_s4 + $0x6c] sm:$0xf] %vm1052_vm1, %v4907_v53  ;;  %v4889_v56 = vpack.c.bf16 %v981_v33, %v981_v33  ;;  %5822 = vtanh.f32 %v1937_v27  ;;  %v818_v46 = vmul.f32 %v6558_v16, %v6673_v11  ;;  %v5811_v39 = vpop.eup %5810  ;;  %v954_v1 = vadd.f32 1.0, %v5809_v45 }
 0x18c   :  { %v2030_v59 = vsel %vm1918_vm10, %v6845_v38, %v2014_v44  ;;  %5824 = vpow2.f32 %v938_v17  ;;  %v1867_v61 = vmul.f32 %v6558_v16, %v6685_v31  ;;  %v1908_v48 = vmin.f32 %v6945_v3, 0.0 }
 0x18d   :  { %v5813_v47 = vpop.eup %5812  ;;  %1062 = vst.msk [vmem:[%s7483_s4 + $0x24] sm:$0xf] %vm1052_vm1, %v4889_v56  ;;  %v4905_v37 = vpack.c.bf16 %v2030_v59, %v2030_v59  ;;  %v6958_v6 = vadd.f32 %v6563_v18, %v818_v46  ;;  %v970_v11 = vmul.f32 %v5811_v39, %v954_v1  ;;  %5826 = vtanh.f32 %v891_v43 }
 0x18e   :  { %v2003_v49 = vadd.f32 1.0, %v5813_v47  ;;  %v6961_v38 = vadd.f32 %v6563_v18, %v1867_v61  ;;  %v5815_v54 = vpop.eup %5814  ;;  %vm874_vm11 = vcmp.gt.f32.partialorder %v6863_v40, 0.0  ;;  %v1940_v16 = vmul.f32 0.5, %v1908_v48  ;;  %v7027_v47 = vld [vmem:[%s7482_s3] ss:$0 sm:$0xff] }
 0x18f   :  { %4527 = vst.msk [vmem:[%s7483_s4 + $0x64] sm:$0xf] %vm1052_vm1, %v4905_v37  ;;  %v1987_v31 = vmul.f32 1.442695, %v1908_v48  ;;  %v857_v9 = vmin.f32 %v6958_v6, 0.0  ;;  %v986_v2 = vsel %vm874_vm11, %v6863_v40, %v970_v11  ;;  %vm1923_vm12 = vcmp.gt.f32.partialorder %v6866_v29, 0.0 }
 0x190   :  { %v2019_v50 = vmul.f32 %v5815_v54, %v2003_v49  ;;  %v1906_v30 = vmin.f32 %v6961_v38, 0.0  ;;  %v4894_v23 = vpack.c.bf16 %v986_v2, %v986_v2  ;;  %vm872_vm13 = vcmp.gt.f32.partialorder %v6899_v62, 0.0 }
 0x191   :  { %v889_v18 = vmul.f32 0.5, %v857_v9  ;;  %v934_v14 = vmul.f32 1.442695, %v857_v9  ;;  %v5817_v57 = vpop.eup %5816  ;;  %5828 = vpow2.f32 %v1987_v31  ;;  %vm1921_vm14 = vcmp.gt.f32.partialorder %v6912_v10, 0.0 }
 0x192   :  { %v2035_v12 = vsel %vm1923_vm12, %v6866_v29, %v2019_v50  ;;  %v1983_v60 = vmul.f32 1.442695, %v1906_v30  ;;  %1067 = vst.msk [vmem:[%s7483_s4 + $0x38] sm:$0xf] %vm1052_vm1, %v4894_v23  ;;  %v952_v34 = vadd.f32 1.0, %v5817_v57  ;;  %5830 = vtanh.f32 %v1940_v16 }
 0x193   :  { %v5819_v63 = vpop.eup %5818  ;;  %v4910_v40 = vpack.c.bf16 %v2035_v12, %v2035_v12  ;;  %5832 = vpow2.f32 %v934_v14  ;;  %v1938_v0 = vmul.f32 0.5, %v1906_v30  ;;  %vm875_vm15 = vcmp.gt.f32.partialorder %v6920_v4, 0.0 }
 0x194   :  { %v5821_v15 = vpop.eup %5820  ;;  %v968_v29 = vmul.f32 %v5819_v63, %v952_v34  ;;  %5834 = vtanh.f32 %v889_v18  ;;  %vm1924_vm0 = vcmp.gt.f32.partialorder %v6945_v3, 0.0  ;;  %vm873_vm2 = vcmp.gt.f32.partialorder %v6958_v6, 0.0 }
 0x195   :  { %v5823_v28 = vpop.eup %5822  ;;  %4532 = vst.msk [vmem:[%s7483_s4 + $0x78] sm:$0xf] %vm1052_vm1, %v4910_v40  ;;  %v2001_v36 = vadd.f32 1.0, %v5821_v15  ;;  %5836 = vpow2.f32 %v1983_v60  ;;  %vm1922_vm3 = vcmp.gt.f32.partialorder %v6961_v38, 0.0 }
 0x196   :  { %v5825_v5 = vpop.eup %5824  ;;  %v984_v24 = vsel %vm872_vm13, %v6899_v62, %v968_v29  ;;  %5838 = vtanh.f32 %v1938_v0 }
 0x197   :  { %v2017_v7 = vmul.f32 %v5823_v28, %v2001_v36  ;;  %v955_v8 = vadd.f32 1.0, %v5825_v5  ;;  %v5827_v55 = vpop.eup %5826  ;;  %v4892_v13 = vpack.c.bf16 %v984_v24, %v984_v24 }
 0x199   :  { %v2033_v42 = vsel %vm1921_vm14, %v6912_v10, %v2017_v7  ;;  %v971_v19 = vmul.f32 %v5827_v55, %v955_v8  ;;  %1065 = vst.msk [vmem:[%s7483_s4 + $0x30] sm:$0xf] %vm1052_vm1, %v4892_v13 }
 0x19a   :  { %v4908_v20 = vpack.c.bf16 %v2033_v42, %v2033_v42 }
 0x19b   :  { %v987_v62 = vsel %vm875_vm15, %v6920_v4, %v971_v19  ;;  %v5829_v22 = vpop.eup %5828 }
 0x19c   :  { %4530 = vst.msk [vmem:[%s7483_s4 + $0x70] sm:$0xf] %vm1052_vm1, %v4908_v20  ;;  %v4895_v21 = vpack.c.bf16 %v987_v62, %v987_v62  ;;  %v5831_v25 = vpop.eup %5830  ;;  %v2004_v10 = vadd.f32 1.0, %v5829_v22 }
 0x19d   :  { %v5833_v26 = vpop.eup %5832 }
 0x19e   :  { %1068 = vst.msk [vmem:[%s7483_s4 + $0x3c] sm:$0xf] %vm1052_vm1, %v4895_v21  ;;  %v5835_v27 = vpop.eup %5834  ;;  %v2020_v32 = vmul.f32 %v5831_v25, %v2004_v10  ;;  %v953_v51 = vadd.f32 1.0, %v5833_v26 }
 0x19f   :  { %v5837_v58 = vpop.eup %5836 }
 0x1a0   :  { %v2036_v4 = vsel %vm1924_vm0, %v6945_v3, %v2020_v32  ;;  %v969_v52 = vmul.f32 %v5835_v27, %v953_v51  ;;  %v2002_v35 = vadd.f32 1.0, %v5837_v58  ;;  %v5839_v41 = vpop.eup %5838  ;;  %v7020_v3 = vld [vmem:[%s7481_s2] ss:$0 sm:$0xff] }
 0x1a1   :  { %v4911_v53 = vpack.c.bf16 %v2036_v4, %v2036_v4 }
 0x1a2   :  { %v985_v43 = vsel %vm873_vm2, %v6958_v6, %v969_v52  ;;  %v2018_v33 = vmul.f32 %v5839_v41, %v2002_v35 }
 0x1a3   :  { %4533 = vst.msk [vmem:[%s7483_s4 + $0x7c] sm:$0xf] %vm1052_vm1, %v4911_v53  ;;  %v4893_v44 = vpack.c.bf16 %v985_v43, %v985_v43 }
 0x1a4   :  { %v2034_v17 = vsel %vm1922_vm3, %v6961_v38, %v2018_v33 }
 0x1a5   :  { %1066 = vst.msk [vmem:[%s7483_s4 + $0x34] sm:$0xf] %vm1052_vm1, %v4893_v44  ;;  %v4909_v45 = vpack.c.bf16 %v2034_v17, %v2034_v17 }
 0x1a7   :  { %4531 = vst.msk [vmem:[%s7483_s4 + $0x74] sm:$0xf] %vm1052_vm1, %v4909_v45 }
 0x1b9   :  { %v5290_v56 = vpop.f32.mrb[16].mxu0  ;;  %v5362_v59 = vpop.f32.mrb[16].mxu1 }
 0x1ba   :  { %v2905_v46 = vmul.f32 %v7020_v3, %v5290_v56  ;;  %v2817_v39 = vpop.f32.mrb[17].mxu0  ;;  %v3952_v48 = vmul.f32 %v7020_v3, %v5362_v59  ;;  %v3864_v6 = vpop.f32.mrb[17].mxu1 }
 0x1bb   :  { %v2903_v1 = vmul.f32 %v7020_v3, %v2817_v39  ;;  %v5291_v61 = vpop.f32.mrb[18].mxu0  ;;  %v3950_v54 = vmul.f32 %v7020_v3, %v3864_v6  ;;  %v5363_v16 = vpop.f32.mrb[18].mxu1 }
 0x1bc   :  { %v7030_v37 = vadd.f32 %v7027_v47, %v2905_v46  ;;  %v2906_v11 = vmul.f32 %v7020_v3, %v5291_v61  ;;  %v2820_v49 = vpop.f32.mrb[19].mxu0  ;;  %v7040_v9 = vadd.f32 %v7027_v47, %v3952_v48  ;;  %v3867_v50 = vpop.f32.mrb[19].mxu1  ;;  %v3953_v12 = vmul.f32 %v7020_v3, %v5363_v16 }
 0x1bd   :  { %v7035_v38 = vadd.f32 %v7027_v47, %v2903_v1  ;;  %v7047_v23 = vadd.f32 %v7027_v47, %v3950_v54  ;;  %v2904_v40 = vmul.f32 %v7020_v3, %v2820_v49  ;;  %v3951_v20 = vmul.f32 %v7020_v3, %v3867_v50 }
 0x1be   :  { %v2944_v31 = vmin.f32 %v7030_v37, 0.0  ;;  %v7043_v2 = vadd.f32 %v7027_v47, %v2906_v11  ;;  %v3991_v57 = vmin.f32 %v7040_v9, 0.0  ;;  %v7057_v55 = vadd.f32 %v7027_v47, %v3953_v12 }
 0x1bf   :  { %v2942_v30 = vmin.f32 %v7035_v38, 0.0  ;;  %v3989_v63 = vmin.f32 %v7047_v23, 0.0  ;;  %v7062_v19 = vadd.f32 %v7027_v47, %v2904_v40  ;;  %v7073_v32 = vadd.f32 %v7027_v47, %v3951_v20 }
 0x1c0   :  { %v2976_v18 = vmul.f32 0.5, %v2944_v31  ;;  %v3010_v14 = vmul.f32 1.442695, %v2944_v31  ;;  %v4023_v15 = vmul.f32 0.5, %v3991_v57  ;;  %v4057_v0 = vmul.f32 1.442695, %v3991_v57 }
 0x1c1   :  { %v2974_v60 = vmul.f32 0.5, %v2942_v30  ;;  %v5294_v34 = vpop.f32.mrb[20].mxu0  ;;  %v2945_v28 = vmin.f32 %v7043_v2, 0.0  ;;  %v3006_v36 = vmul.f32 1.442695, %v2942_v30  ;;  %v5366_v5 = vpop.f32.mrb[20].mxu1 }
 0x1c2   :  { %5840 = vtanh.f32 %v2976_v18  ;;  %v2833_v29 = vpop.f32.mrb[21].mxu0  ;;  %v4021_v7 = vmul.f32 0.5, %v3989_v63  ;;  %v4053_v8 = vmul.f32 1.442695, %v3989_v63  ;;  %v3880_v13 = vpop.f32.mrb[21].mxu1  ;;  %v2909_v62 = vmul.f32 %v7020_v3, %v5294_v34 }
 0x1c3   :  { %5842 = vpow2.f32 %v3010_v14  ;;  %v7054_v24 = vpop.f32.mrb[22].mxu0  ;;  %v7066_v22 = vpop.f32.mrb[22].mxu1  ;;  %v2977_v21 = vmul.f32 0.5, %v2945_v28  ;;  %v3012_v25 = vmul.f32 1.442695, %v2945_v28  ;;  %v3992_v10 = vmin.f32 %v7057_v55, 0.0 }
 0x1c4   :  { %5844 = vtanh.f32 %v4023_v15  ;;  %v7059_v42 = vpop.f32.mrb[23].mxu0  ;;  %v7069_v26 = vpop.f32.mrb[23].mxu1  ;;  %v2943_v27 = vmin.f32 %v7062_v19, 0.0  ;;  %v3956_v51 = vmul.f32 %v7020_v3, %v5366_v5  ;;  %v7077_v4 = vadd.f32 %v7027_v47, %v2909_v62 }
 0x1c5   :  { %5846 = vpow2.f32 %v4057_v0  ;;  %v4024_v58 = vmul.f32 0.5, %v3992_v10  ;;  %v4059_v52 = vmul.f32 1.442695, %v3992_v10  ;;  %v3990_v35 = vmin.f32 %v7073_v32, 0.0 }
 0x1c6   :  { %5848 = vtanh.f32 %v2974_v60  ;;  %v2975_v53 = vmul.f32 0.5, %v2943_v27  ;;  %v2948_v43 = vmin.f32 %v7077_v4, 0.0  ;;  %vm2960_vm4 = vcmp.gt.f32.partialorder %v7030_v37, 0.0 }
 0x1c7   :  { %5850 = vpow2.f32 %v3006_v36  ;;  %v3008_v44 = vmul.f32 1.442695, %v2943_v27  ;;  %v7087_v17 = vadd.f32 %v7027_v47, %v3956_v51  ;;  %vm4007_vm5 = vcmp.gt.f32.partialorder %v7040_v9, 0.0 }
 0x1c8   :  { %5852 = vtanh.f32 %v4021_v7  ;;  %v4022_v39 = vmul.f32 0.5, %v3990_v35  ;;  %v2907_v59 = vmul.f32 %v7020_v3, %v2833_v29  ;;  %vm2958_vm6 = vcmp.gt.f32.partialorder %v7035_v38, 0.0 }
 0x1c9   :  { %5854 = vpow2.f32 %v4053_v8  ;;  %v7080_v41 = vpop.f32.mrb[24].mxu0  ;;  %v7089_v45 = vpop.f32.mrb[24].mxu1  ;;  %v4055_v6 = vmul.f32 1.442695, %v3990_v35  ;;  %v3995_v11 = vmin.f32 %v7087_v17, 0.0  ;;  %v3954_v49 = vmul.f32 %v7020_v3, %v3880_v13 }
 0x1ca   :  { %5856 = vtanh.f32 %v2977_v21  ;;  %v7083_v33 = vpop.f32.mrb[25].mxu0  ;;  %v7095_v1 = vpop.f32.mrb[25].mxu1  ;;  %v2980_v50 = vmul.f32 0.5, %v2948_v43  ;;  %v7105_v30 = vadd.f32 %v7027_v47, %v2907_v59  ;;  %vm4005_vm7 = vcmp.gt.f32.partialorder %v7047_v23, 0.0 }
 0x1cb   :  { %5858 = vpow2.f32 %v3012_v25  ;;  %v7091_v56 = vpop.f32.mrb[26].mxu0  ;;  %v7102_v54 = vpop.f32.mrb[26].mxu1  ;;  %v3018_v57 = vmul.f32 1.442695, %v2948_v43  ;;  %v4027_v12 = vmul.f32 0.5, %v3995_v11  ;;  %v7111_v60 = vadd.f32 %v7027_v47, %v3954_v49 }
 0x1cc   :  { %v5841_v46 = vpop.eup %5840  ;;  %5860 = vtanh.f32 %v4024_v58  ;;  %v7097_v61 = vpop.f32.mrb[27].mxu0  ;;  %v2946_v15 = vmin.f32 %v7105_v30, 0.0  ;;  %vm2961_vm8 = vcmp.gt.f32.partialorder %v7043_v2, 0.0  ;;  %v4065_v28 = vmul.f32 1.442695, %v3995_v11 }
 0x1cd   :  { %v5843_v48 = vpop.eup %5842  ;;  %5862 = vpow2.f32 %v4059_v52  ;;  %v7107_v18 = vpop.f32.mrb[27].mxu1  ;;  %v3993_v29 = vmin.f32 %v7111_v60, 0.0  ;;  %v2910_v36 = vmul.f32 %v7020_v3, %v7054_v24  ;;  %vm4008_vm9 = vcmp.gt.f32.partialorder %v7057_v55, 0.0 }
 0x1ce   :  { %v5845_v16 = vpop.eup %5844  ;;  %v3040_v31 = vadd.f32 1.0, %v5843_v48  ;;  %5864 = vtanh.f32 %v2975_v53  ;;  %v2978_v10 = vmul.f32 0.5, %v2946_v15  ;;  %v3014_v27 = vmul.f32 1.442695, %v2946_v15 }
 0x1cf   :  { %v5847_v14 = vpop.eup %5846  ;;  %5866 = vpow2.f32 %v3008_v44  ;;  %vm2959_vm10 = vcmp.gt.f32.partialorder %v7062_v19, 0.0  ;;  %v4061_v59 = vmul.f32 1.442695, %v3993_v29  ;;  %vm4006_vm11 = vcmp.gt.f32.partialorder %v7073_v32, 0.0 }
 0x1d0   :  { %v5849_v63 = vpop.eup %5848  ;;  %v3056_v40 = vmul.f32 %v5841_v46, %v3040_v31  ;;  %v4087_v34 = vadd.f32 1.0, %v5847_v14  ;;  %5868 = vtanh.f32 %v4022_v39  ;;  %v4025_v39 = vmul.f32 0.5, %v3993_v29 }
 0x1d1   :  { %v5851_v0 = vpop.eup %5850  ;;  %5870 = vpow2.f32 %v4055_v6  ;;  %v7118_v5 = vpop.f32.mrb[28].mxu0  ;;  %v7154_v14 = vadd.f32 %v7027_v47, %v2910_v36  ;;  %vm2964_vm12 = vcmp.gt.f32.partialorder %v7077_v4, 0.0  ;;  %vm4011_vm13 = vcmp.gt.f32.partialorder %v7087_v17, 0.0 }
 0x1d2   :  { %v5853_v7 = vpop.eup %5852  ;;  %v3072_v8 = vsel %vm2960_vm4, %v7030_v37, %v3056_v40  ;;  %v4103_v13 = vmul.f32 %v5845_v16, %v4087_v34  ;;  %v3038_v20 = vadd.f32 1.0, %v5851_v0  ;;  %5872 = vtanh.f32 %v2980_v50  ;;  %v7123_v62 = vpop.f32.mrb[29].mxu0 }
 0x1d3   :  { %v5855_v21 = vpop.eup %5854  ;;  %v4914_v25 = vpack.c.bf16 %v3072_v8, %v3072_v8  ;;  %5874 = vpow2.f32 %v3018_v57  ;;  %v7126_v24 = vpop.f32.mrb[28].mxu1  ;;  %v3957_v57 = vmul.f32 %v7020_v3, %v7066_v22  ;;  %v2949_v22 = vmin.f32 %v7154_v14, 0.0 }
 0x1d4   :  { %v7128_v51 = vpop.f32.mrb[30].mxu0  ;;  %v5857_v58 = vpop.eup %5856  ;;  %v4119_v37 = vsel %vm4007_vm5, %v7040_v9, %v4103_v13  ;;  %v3054_v52 = vmul.f32 %v5849_v63, %v3038_v20  ;;  %v4085_v35 = vadd.f32 1.0, %v5855_v21  ;;  %5876 = vtanh.f32 %v4027_v12 }
 0x1d5   :  { %v7133_v53 = vpop.f32.mrb[29].mxu1  ;;  %v7135_v43 = vpop.f32.mrb[31].mxu0  ;;  %4694 = vst.msk [vmem:[%s7483_s4 + $0x88] sm:$0xf] %vm1052_vm1, %v4914_v25  ;;  %v4930_v46 = vpack.c.bf16 %v4119_v37, %v4119_v37  ;;  %5878 = vpow2.f32 %v4065_v28  ;;  %v7171_v36 = vadd.f32 %v7027_v47, %v3957_v57  ;;  %v2981_v13 = vmul.f32 0.5, %v2949_v22 }
 0x1d6   :  { %v5859_v44 = vpop.eup %5858  ;;  %v7142_v9 = vpop.f32.mrb[30].mxu1  ;;  %v3070_v6 = vsel %vm2958_vm6, %v7035_v38, %v3054_v52  ;;  %v4101_v11 = vmul.f32 %v5853_v7, %v4085_v35  ;;  %5880 = vtanh.f32 %v2978_v10  ;;  %v3020_v20 = vmul.f32 1.442695, %v2949_v22 }
 0x1d7   :  { %v5861_v48 = vpop.eup %5860  ;;  %v3041_v49 = vadd.f32 1.0, %v5859_v44  ;;  %v7147_v16 = vpop.f32.mrb[31].mxu1  ;;  %4866 = vst.msk [vmem:[%s7483_s4 + $0xc8] sm:$0xf] %vm1052_vm1, %v4930_v46  ;;  %v4912_v50 = vpack.c.bf16 %v3070_v6, %v3070_v6  ;;  %5882 = vpow2.f32 %v3014_v27  ;;  %v2908_v21 = vmul.f32 %v7020_v3, %v7059_v42 }
 0x1d8   :  { %v5863_v31 = vpop.eup %5862  ;;  %v4117_v12 = vsel %vm4005_vm7, %v7047_v23, %v4101_v11  ;;  %5884 = vtanh.f32 %v4025_v39  ;;  %vm2962_vm14 = vcmp.gt.f32.partialorder %v7105_v30, 0.0  ;;  %vm4009_vm15 = vcmp.gt.f32.partialorder %v7111_v60, 0.0 }
 0x1d9   :  { %v5865_v38 = vpop.eup %5864  ;;  %v3057_v63 = vmul.f32 %v5857_v58, %v3041_v49  ;;  %v4088_v40 = vadd.f32 1.0, %v5863_v31  ;;  %4692 = vst.msk [vmem:[%s7483_s4 + $0x80] sm:$0xf] %vm1052_vm1, %v4912_v50  ;;  %v4928_v15 = vpack.c.bf16 %v4117_v12, %v4117_v12  ;;  %5886 = vpow2.f32 %v4061_v59 }
 0x1da   :  { %v5867_v34 = vpop.eup %5866  ;;  %v3996_v58 = vmin.f32 %v7171_v36, 0.0  ;;  %v7190_v42 = vadd.f32 %v7027_v47, %v2908_v21  ;;  %5888 = vpow2.f32 %v3020_v20  ;;  %v2911_v21 = vmul.f32 %v7020_v3, %v7083_v33 }
 0x1db   :  { %v5869_v0 = vpop.eup %5868  ;;  %v3073_v23 = vsel %vm2961_vm8, %v7043_v2, %v3057_v63  ;;  %v4104_v28 = vmul.f32 %v5861_v48, %v4088_v40  ;;  %v3039_v29 = vadd.f32 1.0, %v5867_v34  ;;  %4864 = vst.msk [vmem:[%s7483_s4 + $0xc0] sm:$0xf] %vm1052_vm1, %v4928_v15  ;;  %5890 = vtanh.f32 %v2981_v13 }
 0x1dc   :  { %v5871_v7 = vpop.eup %5870  ;;  %v4915_v8 = vpack.c.bf16 %v3073_v23, %v3073_v23  ;;  %v4028_v48 = vmul.f32 0.5, %v3996_v58  ;;  %v4067_v6 = vmul.f32 1.442695, %v3996_v58  ;;  %v2947_v11 = vmin.f32 %v7190_v42, 0.0 }
 0x1dd   :  { %v5873_v25 = vpop.eup %5872  ;;  %v4120_v2 = vsel %vm4008_vm9, %v7057_v55, %v4104_v28  ;;  %v3055_v10 = vmul.f32 %v5865_v38, %v3039_v29  ;;  %v4086_v27 = vadd.f32 1.0, %v5871_v7  ;;  %v3955_v23 = vmul.f32 %v7020_v3, %v7069_v26 }
 0x1de   :  { %v5875_v37 = vpop.eup %5874  ;;  %4695 = vst.msk [vmem:[%s7483_s4 + $0x8c] sm:$0xf] %vm1052_vm1, %v4915_v8  ;;  %v4931_v52 = vpack.c.bf16 %v4120_v2, %v4120_v2  ;;  %v2979_v12 = vmul.f32 0.5, %v2947_v11  ;;  %v3016_v63 = vmul.f32 1.442695, %v2947_v11  ;;  %5892 = vpow2.f32 %v4067_v6 }
 0x1df   :  { %v5877_v35 = vpop.eup %5876  ;;  %v3071_v55 = vsel %vm2959_vm10, %v7062_v19, %v3055_v10  ;;  %v4102_v44 = vmul.f32 %v5869_v0, %v4086_v27  ;;  %v3044_v46 = vadd.f32 1.0, %v5875_v37  ;;  %5894 = vtanh.f32 %v4028_v48 }
 0x1e0   :  { %v5879_v39 = vpop.eup %5878  ;;  %4867 = vst.msk [vmem:[%s7483_s4 + $0xcc] sm:$0xf] %vm1052_vm1, %v4931_v52  ;;  %v4913_v59 = vpack.c.bf16 %v3071_v55, %v3071_v55  ;;  %v2913_v28 = vmul.f32 %v7020_v3, %v7080_v41  ;;  %5896 = vpow2.f32 %v3016_v63  ;;  %v7227_v13 = vadd.f32 %v7027_v47, %v3955_v23 }
 0x1e1   :  { %v5881_v49 = vpop.eup %5880  ;;  %v4118_v31 = vsel %vm4006_vm11, %v7073_v32, %v4102_v44  ;;  %v3060_v19 = vmul.f32 %v5873_v25, %v3044_v46  ;;  %v4091_v50 = vadd.f32 1.0, %v5879_v39  ;;  %v3960_v41 = vmul.f32 %v7020_v3, %v7089_v45 }
 0x1e2   :  { %v5883_v57 = vpop.eup %5882  ;;  %4693 = vst.msk [vmem:[%s7483_s4 + $0x84] sm:$0xf] %vm1052_vm1, %v4913_v59  ;;  %v4929_v38 = vpack.c.bf16 %v4118_v31, %v4118_v31  ;;  %v7230_v26 = vadd.f32 %v7027_v47, %v2913_v28  ;;  %5898 = vtanh.f32 %v2979_v12  ;;  %v3994_v2 = vmin.f32 %v7227_v13, 0.0 }
 0x1e3   :  { %v5885_v40 = vpop.eup %5884  ;;  %v3076_v34 = vsel %vm2964_vm12, %v7077_v4, %v3060_v19  ;;  %v4107_v32 = vmul.f32 %v5877_v35, %v4091_v50  ;;  %v3042_v15 = vadd.f32 1.0, %v5883_v57  ;;  %v7248_v27 = vadd.f32 %v7027_v47, %v3960_v41 }
 0x1e4   :  { %v5887_v22 = vpop.eup %5886  ;;  %4865 = vst.msk [vmem:[%s7483_s4 + $0xc4] sm:$0xf] %vm1052_vm1, %v4929_v38  ;;  %v4918_v0 = vpack.c.bf16 %v3076_v34, %v3076_v34  ;;  %v2952_v45 = vmin.f32 %v7230_v26, 0.0  ;;  %v7251_v33 = vadd.f32 %v7027_v47, %v2911_v21  ;;  %v3958_v58 = vmul.f32 %v7020_v3, %v7095_v1 }
 0x1e5   :  { %v4123_v4 = vsel %vm4011_vm13, %v7087_v17, %v4107_v32  ;;  %v3058_v29 = vmul.f32 %v5881_v49, %v3042_v15  ;;  %v4089_v7 = vadd.f32 1.0, %v5887_v22  ;;  %v5889_v10 = vpop.eup %5888  ;;  %v4026_v35 = vmul.f32 0.5, %v3994_v2 }
 0x1e6   :  { %4698 = vst.msk [vmem:[%s7483_s4 + $0x98] sm:$0xf] %vm1052_vm1, %v4918_v0  ;;  %v4934_v8 = vpack.c.bf16 %v4123_v4, %v4123_v4  ;;  %v3045_v52 = vadd.f32 1.0, %v5889_v10  ;;  %v4063_v55 = vmul.f32 1.442695, %v3994_v2  ;;  %v5891_v44 = vpop.eup %5890  ;;  %v3999_v39 = vmin.f32 %v7248_v27, 0.0 }
 0x1e7   :  { %v3074_v17 = vsel %vm2962_vm14, %v7105_v30, %v3058_v29  ;;  %v4105_v20 = vmul.f32 %v5885_v40, %v4089_v7  ;;  %v3026_v46 = vmul.f32 1.442695, %v2952_v45  ;;  %vm2965_vm0 = vcmp.gt.f32.partialorder %v7154_v14, 0.0 }
 0x1e8   :  { %4870 = vst.msk [vmem:[%s7483_s4 + $0xd8] sm:$0xf] %vm1052_vm1, %v4934_v8  ;;  %v4916_v25 = vpack.c.bf16 %v3074_v17, %v3074_v17  ;;  %v3061_v1 = vmul.f32 %v5891_v44, %v3045_v52  ;;  %5900 = vtanh.f32 %v4026_v35  ;;  %v2950_v59 = vmin.f32 %v7251_v33, 0.0  ;;  %v5893_v48 = vpop.eup %5892 }
 0x1e9   :  { %v4121_v30 = vsel %vm4009_vm15, %v7111_v60, %v4105_v20  ;;  %v2984_v60 = vmul.f32 0.5, %v2952_v45  ;;  %5902 = vpow2.f32 %v4063_v55  ;;  %v4031_v6 = vmul.f32 0.5, %v3999_v39  ;;  %v5895_v31 = vpop.eup %5894 }
 0x1ea   :  { %4696 = vst.msk [vmem:[%s7483_s4 + $0x90] sm:$0xf] %vm1052_vm1, %v4916_v25  ;;  %v4932_v37 = vpack.c.bf16 %v4121_v30, %v4121_v30  ;;  %v4073_v11 = vmul.f32 1.442695, %v3999_v39  ;;  %v7267_v49 = vadd.f32 %v7027_v47, %v3958_v58  ;;  %v3077_v19 = vsel %vm2965_vm0, %v7154_v14, %v3061_v1  ;;  %v5897_v57 = vpop.eup %5896 }
 0x1eb   :  { %vm4012_vm2 = vcmp.gt.f32.partialorder %v7171_v36, 0.0  ;;  %v4092_v50 = vadd.f32 1.0, %v5893_v48  ;;  %5904 = vtanh.f32 %v2984_v60  ;;  %v4919_v38 = vpack.c.bf16 %v3077_v19, %v3077_v19 }
 0x1ec   :  { %4868 = vst.msk [vmem:[%s7483_s4 + $0xd0] sm:$0xf] %vm1052_vm1, %v4932_v37  ;;  %5906 = vpow2.f32 %v3026_v46  ;;  %v3022_v12 = vmul.f32 1.442695, %v2950_v59  ;;  %v3997_v63 = vmin.f32 %v7267_v49, 0.0  ;;  %v3043_v34 = vadd.f32 1.0, %v5897_v57  ;;  %v5899_v15 = vpop.eup %5898 }
 0x1ed   :  { %v4108_v40 = vmul.f32 %v5895_v31, %v4092_v50  ;;  %5908 = vtanh.f32 %v4031_v6  ;;  %v2982_v32 = vmul.f32 0.5, %v2950_v59  ;;  %4699 = vst.msk [vmem:[%s7483_s4 + $0x9c] sm:$0xf] %vm1052_vm1, %v4919_v38  ;;  %vm2963_vm3 = vcmp.gt.f32.partialorder %v7190_v42, 0.0 }
 0x1ee   :  { %5910 = vpow2.f32 %v4073_v11  ;;  %v4069_v14 = vmul.f32 1.442695, %v3997_v63  ;;  %v2914_v22 = vmul.f32 %v7020_v3, %v7091_v56  ;;  %v3059_v23 = vmul.f32 %v5899_v15, %v3043_v34 }
 0x1ef   :  { %v4124_v0 = vsel %vm4012_vm2, %v7171_v36, %v4108_v40  ;;  %v4029_v28 = vmul.f32 0.5, %v3997_v63  ;;  %v3961_v4 = vmul.f32 %v7020_v3, %v7102_v54  ;;  %5912 = vpow2.f32 %v3022_v12 }
 0x1f0   :  { %v4935_v29 = vpack.c.bf16 %v4124_v0, %v4124_v0  ;;  %v7285_v7 = vadd.f32 %v7027_v47, %v2914_v22  ;;  %v2912_v8 = vmul.f32 %v7020_v3, %v7097_v61  ;;  %v3075_v41 = vsel %vm2963_vm3, %v7190_v42, %v3059_v23 }
 0x1f1   :  { %5914 = vtanh.f32 %v2982_v32  ;;  %v7291_v56 = vadd.f32 %v7027_v47, %v3961_v4  ;;  %v3959_v36 = vmul.f32 %v7020_v3, %v7107_v18  ;;  %v4917_v54 = vpack.c.bf16 %v3075_v41, %v3075_v41 }
 0x1f2   :  { %4871 = vst.msk [vmem:[%s7483_s4 + $0xdc] sm:$0xf] %vm1052_vm1, %v4935_v29  ;;  %vm4010_vm4 = vcmp.gt.f32.partialorder %v7227_v13, 0.0  ;;  %5916 = vpow2.f32 %v4069_v14  ;;  %v2953_v61 = vmin.f32 %v7285_v7, 0.0  ;;  %v5901_v17 = vpop.eup %5900  ;;  %vm2968_vm5 = vcmp.gt.f32.partialorder %v7230_v26, 0.0 }
 0x1f3   :  { %v4000_v42 = vmin.f32 %v7291_v56, 0.0  ;;  %v7304_v20 = vadd.f32 %v7027_v47, %v2912_v8  ;;  %v7307_v18 = vadd.f32 %v7027_v47, %v3959_v36  ;;  %v5903_v21 = vpop.eup %5902  ;;  %4697 = vst.msk [vmem:[%s7483_s4 + $0x94] sm:$0xf] %vm1052_vm1, %v4917_v54  ;;  %vm4015_vm6 = vcmp.gt.f32.partialorder %v7248_v27, 0.0 }
 0x1f4   :  { %5918 = vtanh.f32 %v4029_v28  ;;  %v2985_v25 = vmul.f32 0.5, %v2953_v61  ;;  %v3028_v2 = vmul.f32 1.442695, %v2953_v61  ;;  %v4090_v10 = vadd.f32 1.0, %v5903_v21 }
 0x1f5   :  { %v5905_v45 = vpop.eup %5904  ;;  %v4032_v30 = vmul.f32 0.5, %v4000_v42  ;;  %v4075_v58 = vmul.f32 1.442695, %v4000_v42  ;;  %v2951_v37 = vmin.f32 %v7304_v20, 0.0  ;;  %v3998_v35 = vmin.f32 %v7307_v18, 0.0 }
 0x1f6   :  { %v5907_v52 = vpop.eup %5906  ;;  %5920 = vtanh.f32 %v2985_v25  ;;  %v2917_v55 = vmul.f32 %v7020_v3, %v7118_v5  ;;  %v3964_v44 = vmul.f32 %v7020_v3, %v7126_v24  ;;  %v4106_v46 = vmul.f32 %v5901_v17, %v4090_v10 }
 0x1f7   :  { %v5909_v60 = vpop.eup %5908  ;;  %v3048_v39 = vadd.f32 1.0, %v5907_v52  ;;  %vm2966_vm7 = vcmp.gt.f32.partialorder %v7251_v33, 0.0  ;;  %5922 = vpow2.f32 %v3028_v2  ;;  %v2983_v59 = vmul.f32 0.5, %v2951_v37 }
 0x1f8   :  { %v5911_v1 = vpop.eup %5910  ;;  %5924 = vtanh.f32 %v4032_v30  ;;  %v3024_v48 = vmul.f32 1.442695, %v2951_v37  ;;  %v4071_v6 = vmul.f32 1.442695, %v3998_v35  ;;  %v4122_v11 = vsel %vm4010_vm4, %v7227_v13, %v4106_v46 }
 0x1f9   :  { %v3064_v31 = vmul.f32 %v5905_v45, %v3048_v39  ;;  %v4095_v5 = vadd.f32 1.0, %v5911_v1  ;;  %5926 = vpow2.f32 %v4075_v58  ;;  %v5913_v19 = vpop.eup %5912  ;;  %v4933_v24 = vpack.c.bf16 %v4122_v11, %v4122_v11 }
 0x1fa   :  { %v4030_v50 = vmul.f32 0.5, %v3998_v35  ;;  %v7325_v57 = vadd.f32 %v7027_v47, %v2917_v55  ;;  %v7328_v38 = vadd.f32 %v7027_v47, %v3964_v44  ;;  %v3046_v34 = vadd.f32 1.0, %v5913_v19 }
 0x1fb   :  { %v5915_v12 = vpop.eup %5914  ;;  %v3080_v63 = vsel %vm2968_vm5, %v7230_v26, %v3064_v31  ;;  %v4111_v40 = vmul.f32 %v5909_v60, %v4095_v5  ;;  %5928 = vpow2.f32 %v3024_v48  ;;  %4869 = vst.msk [vmem:[%s7483_s4 + $0xd4] sm:$0xf] %vm1052_vm1, %v4933_v24  ;;  %vm4013_vm8 = vcmp.gt.f32.partialorder %v7267_v49, 0.0 }
 0x1fc   :  { %v5917_v13 = vpop.eup %5916  ;;  %v4922_v32 = vpack.c.bf16 %v3080_v63, %v3080_v63  ;;  %5930 = vtanh.f32 %v2983_v59  ;;  %v2956_v15 = vmin.f32 %v7325_v57, 0.0  ;;  %v3062_v26 = vmul.f32 %v5915_v12, %v3046_v34 }
 0x1fd   :  { %v4127_v14 = vsel %vm4015_vm6, %v7248_v27, %v4111_v40  ;;  %v4093_v22 = vadd.f32 1.0, %v5917_v13  ;;  %5932 = vpow2.f32 %v4071_v6  ;;  %v4003_v29 = vmin.f32 %v7328_v38, 0.0 }
 0x1fe   :  { %v5919_v0 = vpop.eup %5918  ;;  %4702 = vst.msk [vmem:[%s7483_s4 + $0xa8] sm:$0xf] %vm1052_vm1, %v4922_v32  ;;  %v4938_v23 = vpack.c.bf16 %v4127_v14, %v4127_v14  ;;  %v2988_v28 = vmul.f32 0.5, %v2956_v15  ;;  %v3034_v4 = vmul.f32 1.442695, %v2956_v15  ;;  %v3078_v8 = vsel %vm2966_vm7, %v7251_v33, %v3062_v26 }
 0x1ff   :  { %v4109_v41 = vmul.f32 %v5919_v0, %v4093_v22  ;;  %5934 = vtanh.f32 %v4030_v50  ;;  %v2915_v27 = vmul.f32 %v7020_v3, %v7123_v62  ;;  %v4920_v54 = vpack.c.bf16 %v3078_v8, %v3078_v8 }
 0x200   :  { %v5921_v36 = vpop.eup %5920  ;;  %4874 = vst.msk [vmem:[%s7483_s4 + $0xe8] sm:$0xf] %vm1052_vm1, %v4938_v23  ;;  %vm2969_vm9 = vcmp.gt.f32.partialorder %v7285_v7, 0.0  ;;  %v4035_v61 = vmul.f32 0.5, %v4003_v29  ;;  %v4081_v17 = vmul.f32 1.442695, %v4003_v29  ;;  %5936 = vpow2.f32 %v3034_v4 }
 0x201   :  { %v5923_v42 = vpop.eup %5922  ;;  %v4125_v33 = vsel %vm4013_vm8, %v7267_v49, %v4109_v41  ;;  %v7361_v21 = vadd.f32 %v7027_v47, %v2915_v27  ;;  %v3962_v62 = vmul.f32 %v7020_v3, %v7133_v53  ;;  %4700 = vst.msk [vmem:[%s7483_s4 + $0xa0] sm:$0xf] %vm1052_vm1, %v4920_v54  ;;  %5938 = vtanh.f32 %v2988_v28 }
 0x202   :  { %v5925_v25 = vpop.eup %5924  ;;  %v4936_v2 = vpack.c.bf16 %v4125_v33, %v4125_v33  ;;  %v3049_v45 = vadd.f32 1.0, %v5923_v42  ;;  %v2918_v10 = vmul.f32 %v7020_v3, %v7128_v51  ;;  %vm4016_vm10 = vcmp.gt.f32.partialorder %v7291_v56, 0.0 }
 0x203   :  { %v5927_v49 = vpop.eup %5926  ;;  %5940 = vpow2.f32 %v4081_v17  ;;  %v2954_v30 = vmin.f32 %v7361_v21, 0.0  ;;  %v7374_v53 = vadd.f32 %v7027_v47, %v3962_v62  ;;  %vm2967_vm11 = vcmp.gt.f32.partialorder %v7304_v20, 0.0 }
 0x204   :  { %4872 = vst.msk [vmem:[%s7483_s4 + $0xe0] sm:$0xf] %vm1052_vm1, %v4936_v2  ;;  %v3065_v58 = vmul.f32 %v5921_v36, %v3049_v45  ;;  %v4096_v37 = vadd.f32 1.0, %v5927_v49  ;;  %v7382_v51 = vadd.f32 %v7027_v47, %v2918_v10  ;;  %5942 = vtanh.f32 %v4035_v61 }
 0x205   :  { %v5929_v52 = vpop.eup %5928  ;;  %v2986_v35 = vmul.f32 0.5, %v2954_v30  ;;  %v3030_v55 = vmul.f32 1.442695, %v2954_v30  ;;  %v4001_v44 = vmin.f32 %v7374_v53, 0.0  ;;  %v3965_v5 = vmul.f32 %v7020_v3, %v7142_v9 }
 0x206   :  { %v5931_v60 = vpop.eup %5930  ;;  %v3081_v46 = vsel %vm2969_vm9, %v7285_v7, %v3065_v58  ;;  %v4112_v39 = vmul.f32 %v5925_v25, %v4096_v37  ;;  %v3047_v1 = vadd.f32 1.0, %v5929_v52  ;;  %v2957_v59 = vmin.f32 %v7382_v51, 0.0 }
 0x207   :  { %v5933_v48 = vpop.eup %5932  ;;  %v4923_v6 = vpack.c.bf16 %v3081_v46, %v3081_v46  ;;  %v4033_v11 = vmul.f32 0.5, %v4001_v44  ;;  %v4077_v31 = vmul.f32 1.442695, %v4001_v44  ;;  %5944 = vpow2.f32 %v3030_v55 }
 0x208   :  { %v4128_v19 = vsel %vm4016_vm10, %v7291_v56, %v4112_v39  ;;  %v3063_v24 = vmul.f32 %v5931_v60, %v3047_v1  ;;  %v4094_v50 = vadd.f32 1.0, %v5933_v48  ;;  %vm4014_vm12 = vcmp.gt.f32.partialorder %v7307_v18, 0.0 }
 0x209   :  { %v5935_v12 = vpop.eup %5934  ;;  %4703 = vst.msk [vmem:[%s7483_s4 + $0xac] sm:$0xf] %vm1052_vm1, %v4923_v6  ;;  %v4939_v7 = vpack.c.bf16 %v4128_v19, %v4128_v19  ;;  %5946 = vtanh.f32 %v2986_v35  ;;  %v2989_v63 = vmul.f32 0.5, %v2957_v59  ;;  %v3036_v56 = vmul.f32 1.442695, %v2957_v59 }
 0x20a   :  { %v3079_v9 = vsel %vm2967_vm11, %v7304_v20, %v3063_v24  ;;  %v4110_v40 = vmul.f32 %v5935_v12, %v4094_v50  ;;  %5948 = vpow2.f32 %v4077_v31  ;;  %v5937_v34 = vpop.eup %5936  ;;  %v7407_v32 = vadd.f32 %v7027_v47, %v3965_v5 }
 0x20b   :  { %4875 = vst.msk [vmem:[%s7483_s4 + $0xec] sm:$0xf] %vm1052_vm1, %v4939_v7  ;;  %v4921_v13 = vpack.c.bf16 %v3079_v9, %v3079_v9  ;;  %5950 = vtanh.f32 %v4033_v11  ;;  %v2916_v15 = vmul.f32 %v7020_v3, %v7135_v43  ;;  %v5939_v14 = vpop.eup %5938  ;;  %v3052_v26 = vadd.f32 1.0, %v5937_v34 }
 0x20c   :  { %v4126_v20 = vsel %vm4014_vm12, %v7307_v18, %v4110_v40  ;;  %5952 = vpow2.f32 %v3036_v56  ;;  %v3963_v22 = vmul.f32 %v7020_v3, %v7147_v16  ;;  %v4004_v28 = vmin.f32 %v7407_v32, 0.0 }
 0x20d   :  { %v5941_v0 = vpop.eup %5940  ;;  %4701 = vst.msk [vmem:[%s7483_s4 + $0xa4] sm:$0xf] %vm1052_vm1, %v4921_v13  ;;  %v4937_v23 = vpack.c.bf16 %v4126_v20, %v4126_v20  ;;  %v7420_v4 = vadd.f32 %v7027_v47, %v2916_v15  ;;  %v3068_v43 = vmul.f32 %v5939_v14, %v3052_v26  ;;  %5954 = vtanh.f32 %v2989_v63 }
 0x20e   :  { %v4099_v29 = vadd.f32 1.0, %v5941_v0  ;;  %v7423_v18 = vadd.f32 %v7027_v47, %v3963_v22  ;;  %v5943_v8 = vpop.eup %5942  ;;  %vm2972_vm13 = vcmp.gt.f32.partialorder %v7325_v57, 0.0  ;;  %v4036_v3 = vmul.f32 0.5, %v4004_v28 }
 0x20f   :  { %4873 = vst.msk [vmem:[%s7483_s4 + $0xe4] sm:$0xf] %vm1052_vm1, %v4937_v23  ;;  %v4083_v16 = vmul.f32 1.442695, %v4004_v28  ;;  %v2955_v41 = vmin.f32 %v7420_v4, 0.0  ;;  %v3084_v27 = vsel %vm2972_vm13, %v7325_v57, %v3068_v43  ;;  %vm4019_vm14 = vcmp.gt.f32.partialorder %v7328_v38, 0.0 }
 0x210   :  { %v4115_v36 = vmul.f32 %v5943_v8, %v4099_v29  ;;  %v4002_v54 = vmin.f32 %v7423_v18, 0.0  ;;  %v4926_v61 = vpack.c.bf16 %v3084_v27, %v3084_v27  ;;  %vm2970_vm15 = vcmp.gt.f32.partialorder %v7361_v21, 0.0 }
 0x211   :  { %v2987_v47 = vmul.f32 0.5, %v2955_v41  ;;  %v3032_v17 = vmul.f32 1.442695, %v2955_v41  ;;  %v5945_v42 = vpop.eup %5944  ;;  %5956 = vpow2.f32 %v4083_v16  ;;  %vm4017_vm0 = vcmp.gt.f32.partialorder %v7374_v53, 0.0 }
 0x212   :  { %v4131_v33 = vsel %vm4019_vm14, %v7328_v38, %v4115_v36  ;;  %v4079_v62 = vmul.f32 1.442695, %v4002_v54  ;;  %4706 = vst.msk [vmem:[%s7483_s4 + $0xb8] sm:$0xf] %vm1052_vm1, %v4926_v61  ;;  %v3050_v2 = vadd.f32 1.0, %v5945_v42  ;;  %5958 = vtanh.f32 %v4036_v3 }
 0x213   :  { %v5947_v25 = vpop.eup %5946  ;;  %v4942_v57 = vpack.c.bf16 %v4131_v33, %v4131_v33  ;;  %5960 = vpow2.f32 %v3032_v17  ;;  %v4034_v10 = vmul.f32 0.5, %v4002_v54  ;;  %vm2973_vm2 = vcmp.gt.f32.partialorder %v7382_v51, 0.0 }
 0x214   :  { %v5949_v45 = vpop.eup %5948  ;;  %v3066_v38 = vmul.f32 %v5947_v25, %v3050_v2  ;;  %5962 = vtanh.f32 %v2987_v47  ;;  %vm4020_vm3 = vcmp.gt.f32.partialorder %v7407_v32, 0.0  ;;  %vm2971_vm4 = vcmp.gt.f32.partialorder %v7420_v4, 0.0 }
 0x215   :  { %v5951_v49 = vpop.eup %5950  ;;  %4878 = vst.msk [vmem:[%s7483_s4 + $0xf8] sm:$0xf] %vm1052_vm1, %v4942_v57  ;;  %v4097_v30 = vadd.f32 1.0, %v5949_v45  ;;  %5964 = vpow2.f32 %v4079_v62  ;;  %vm4018_vm5 = vcmp.gt.f32.partialorder %v7423_v18, 0.0 }
 0x216   :  { %v5953_v58 = vpop.eup %5952  ;;  %v3082_v37 = vsel %vm2970_vm15, %v7361_v21, %v3066_v38  ;;  %5966 = vtanh.f32 %v4034_v10 }
 0x217   :  { %v4113_v52 = vmul.f32 %v5951_v49, %v4097_v30  ;;  %v3053_v35 = vadd.f32 1.0, %v5953_v58  ;;  %v5955_v55 = vpop.eup %5954  ;;  %v4924_v44 = vpack.c.bf16 %v3082_v37, %v3082_v37 }
 0x219   :  { %v4129_v60 = vsel %vm4017_vm0, %v7374_v53, %v4113_v52  ;;  %v3069_v46 = vmul.f32 %v5955_v55, %v3053_v35  ;;  %4704 = vst.msk [vmem:[%s7483_s4 + $0xb0] sm:$0xf] %vm1052_vm1, %v4924_v44 }
 0x21a   :  { %v4940_v39 = vpack.c.bf16 %v4129_v60, %v4129_v60 }
 0x21b   :  { %v3085_v21 = vsel %vm2973_vm2, %v7382_v51, %v3069_v46  ;;  %v5957_v1 = vpop.eup %5956 }
 0x21c   :  { %4876 = vst.msk [vmem:[%s7483_s4 + $0xf0] sm:$0xf] %vm1052_vm1, %v4940_v39  ;;  %v4927_v59 = vpack.c.bf16 %v3085_v21, %v3085_v21  ;;  %v5959_v48 = vpop.eup %5958  ;;  %v4100_v53 = vadd.f32 1.0, %v5957_v1 }
 0x21d   :  { %v5961_v6 = vpop.eup %5960 }
 0x21e   :  { %4707 = vst.msk [vmem:[%s7483_s4 + $0xbc] sm:$0xf] %vm1052_vm1, %v4927_v59  ;;  %v5963_v11 = vpop.eup %5962  ;;  %v4116_v31 = vmul.f32 %v5959_v48, %v4100_v53  ;;  %v3051_v5 = vadd.f32 1.0, %v5961_v6 }
 0x21f   :  { %v5965_v19 = vpop.eup %5964 }
 0x220   :  { %v4132_v51 = vsel %vm4020_vm3, %v7407_v32, %v4116_v31  ;;  %v3067_v24 = vmul.f32 %v5963_v11, %v3051_v5  ;;  %v4098_v50 = vadd.f32 1.0, %v5965_v19  ;;  %v5967_v12 = vpop.eup %5966 }
 0x221   :  { %v4943_v7 = vpack.c.bf16 %v4132_v51, %v4132_v51 }
 0x222   :  { %v3083_v63 = vsel %vm2971_vm4, %v7420_v4, %v3067_v24  ;;  %v4114_v9 = vmul.f32 %v5967_v12, %v4098_v50 }
 0x223   :  { %4879 = vst.msk [vmem:[%s7483_s4 + $0xfc] sm:$0xf] %vm1052_vm1, %v4943_v7  ;;  %v4925_v40 = vpack.c.bf16 %v3083_v63, %v3083_v63 }
 0x224   :  { %v4130_v56 = vsel %vm4018_vm5, %v7423_v18, %v4114_v9 }
 0x225   :  { %4705 = vst.msk [vmem:[%s7483_s4 + $0xb4] sm:$0xf] %vm1052_vm1, %v4925_v40  ;;  %v4941_v34 = vpack.c.bf16 %v4130_v56, %v4130_v56 }
 0x227   :  { %4877 = vst.msk [vmem:[%s7483_s4 + $0xf4] sm:$0xf] %vm1052_vm1, %v4941_v34 }

// kernel: decoder_forward.7
= control target key start
LH: loop header
LB: loop body
LE: loop exit
PB: predicated region body
PF: predicated region fallthrough
CT: control target
= control target key end

     0   :  { %vm319_vm0 = vcmask 130048   ;;  %vm2828_vm1 = vcmask 23552   ;;  %s20885_s1 = inlined_call_operand.vmem [shape: bf16[16,16,3], index: 1, kind: input, shape index: {}]   ;;  %s20886_s0 = inlined_call_operand.vmem [shape: bf16[9,512,16], index: 0, kind: input, shape index: {}]   ;;  %s20887_s2 = inlined_call_operand.vmem [shape: f32[1,3], index: 2, kind: input, shape index: {}]   ;;  %s20888_s3 = inlined_call_operand.vmem [shape: f32[1,3], index: 3, kind: input, shape index: {}]   ;;  %s20889_s4 = inlined_call_operand.vmem [shape: f32[4,512,3], index: 4, kind: output, shape index: {}]  }
   0x1   :  { %v16096_v0 = vld [vmem:[%s20885_s1 + $0x68] sm:$0xff]   ;;  %v16097_v1 = vld [vmem:[%s20885_s1 + $0x60] sm:$0xff]   ;;  %v16101_v5 = vld [vmem:[%s20885_s1 + $0x78] sm:$0xff]  }
   0x2   :  { %14272 = vmatprep.subr.bf16.mxu0 %v16096_v0  ;;  %v16098_v2 = vld [vmem:[%s20886_s0 + $0x100] sm:$0xff]   ;;  %14536 = vmatprep.subr.bf16.mxu1 %v16097_v1  ;;  %v16100_v4 = vld [vmem:[%s20886_s0 + $0x108] sm:$0xff]   ;;  %v16103_v7 = vld [vmem:[%s20885_s1 + $0x70] sm:$0xff]  }
   0x3   :  { %14273 = vmatpush3.bf16.msra.mxu0 %v16096_v0  ;;  %v16099_v3 = vld [vmem:[%s20886_s0 + $0x200] sm:$0xff]   ;;  %14537 = vmatpush3.bf16.msra.mxu1 %v16097_v1  ;;  %v16102_v6 = vld [vmem:[%s20886_s0 + $0x208] sm:$0xff]   ;;  %v16104_v8 = vld [vmem:[%s20886_s0 + $0x110] sm:$0xff]  }
   0x4   :  { %14274 = vmatprep.mubr.msk.bf16.mxu0 %vm319_vm0, %v16098_v2  ;;  %14538 = vmatprep.mubr.msk.bf16.mxu1 %vm319_vm0, %v16099_v3  ;;  %v16105_v9 = vld [vmem:[%s20886_s0 + $0x210] sm:$0xff]   ;;  %v16106_v10 = vld [vmem:[%s20886_s0 + $0x118] sm:$0xff]   ;;  %v16108_v12 = vld [vmem:[%s20886_s0 + $0x120] sm:$0xff]  }
   0x5   :  { %14338 = vmatprep.subr.bf16.mxu0 %v16101_v5  ;;  %14602 = vmatprep.subr.bf16.mxu1 %v16103_v7  ;;  %v16107_v11 = vld [vmem:[%s20886_s0 + $0x218] sm:$0xff]   ;;  %v16109_v13 = vld [vmem:[%s20886_s0 + $0x220] sm:$0xff]   ;;  %v16110_v14 = vld [vmem:[%s20886_s0 + $0x128] sm:$0xff]  }
   0x6   :  { %14275 = vmatmul.mubr.msk.bf16.vlgmr.msra.gmra.mrb[0].mxu0 %vm319_vm0, %v16100_v4  ;;  %14539 = vmatmul.mubr.msk.bf16.vlgmr.msra.gmra.mrb[0].mxu1 %vm319_vm0, %v16102_v6  ;;  %v16112_v15 = vld [vmem:[%s20886_s0 + $0x130] sm:$0xff]   ;;  %v16111_v16 = vld [vmem:[%s20886_s0 + $0x228] sm:$0xff]   ;;  %v16114_v18 = vld [vmem:[%s20886_s0 + $0x138] sm:$0xff]  }
   0x7   :  { %14339 = vmatpush3.bf16.msra.mxu0 %v16101_v5  ;;  %14603 = vmatpush3.bf16.msra.mxu1 %v16103_v7  ;;  %v16113_v17 = vld [vmem:[%s20886_s0 + $0x230] sm:$0xff]   ;;  %v16116_v19 = vld [vmem:[%s20886_s0 + $0x140] sm:$0xff]   ;;  %v16115_v20 = vld [vmem:[%s20886_s0 + $0x238] sm:$0xff]  }
   0x8   :  { %14278 = vmatprep.mubr.msk.bf16.mxu0 %vm319_vm0, %v16104_v8  ;;  %14542 = vmatprep.mubr.msk.bf16.mxu1 %vm319_vm0, %v16105_v9  ;;  %v16117_v21 = vld [vmem:[%s20886_s0 + $0x240] sm:$0xff]   ;;  %v16118_v22 = vld [vmem:[%s20886_s0 + $0x148] sm:$0xff]   ;;  %v16120_v23 = vld [vmem:[%s20886_s0 + $0x150] sm:$0xff]  }
   0x9   :  { %v16119_v24 = vld [vmem:[%s20886_s0 + $0x248] sm:$0xff]   ;;  %v16121_v25 = vld [vmem:[%s20886_s0 + $0x250] sm:$0xff]   ;;  %v16122_v26 = vld [vmem:[%s20886_s0 + $0x158] sm:$0xff]  }
   0xa   :  { %v16124_v27 = vld [vmem:[%s20886_s0 + $0x160] sm:$0xff]   ;;  %v16123_v28 = vld [vmem:[%s20886_s0 + $0x258] sm:$0xff]   ;;  %v16126_v30 = vld [vmem:[%s20886_s0 + $0x168] sm:$0xff]  }
   0xb   :  { %v16125_v29 = vld [vmem:[%s20886_s0 + $0x260] sm:$0xff]   ;;  %v16128_v31 = vld [vmem:[%s20886_s0 + $0x170] sm:$0xff]   ;;  %v16127_v32 = vld [vmem:[%s20886_s0 + $0x268] sm:$0xff]  }
   0xc   :  { %v16129_v33 = vld [vmem:[%s20886_s0 + $0x270] sm:$0xff]   ;;  %v16130_v34 = vld [vmem:[%s20886_s0 + $0x178] sm:$0xff]   ;;  %v16132_v35 = vld [vmem:[%s20886_s0 + $0x180] sm:$0xff]  }
   0xd   :  { %v16131_v36 = vld [vmem:[%s20886_s0 + $0x278] sm:$0xff]   ;;  %v16133_v37 = vld [vmem:[%s20886_s0 + $0x280] sm:$0xff]   ;;  %v16134_v38 = vld [vmem:[%s20886_s0 + $0x188] sm:$0xff]  }
   0xe   :  { %14279 = vmatmul.mubr.msk.bf16.gmra.mrb[4].mxu0 %vm319_vm0, %v16106_v10  ;;  %14543 = vmatmul.mubr.msk.bf16.gmra.mrb[4].mxu1 %vm319_vm0, %v16107_v11  ;;  %v16136_v39 = vld [vmem:[%s20886_s0 + $0x190] sm:$0xff]   ;;  %v16135_v40 = vld [vmem:[%s20886_s0 + $0x288] sm:$0xff]   ;;  %v17332_v42 = vld [vmem:[%s20885_s1 + $0x38] sm:$0xff]  }
   0xf   :  { %14282 = vmatprep.mubr.msk.bf16.mxu0 %vm319_vm0, %v16108_v12  ;;  %14546 = vmatprep.mubr.msk.bf16.mxu1 %vm319_vm0, %v16109_v13  ;;  %v16137_v41 = vld [vmem:[%s20886_s0 + $0x290] sm:$0xff]   ;;  %v16138_v44 = vld [vmem:[%s20886_s0 + $0x198] sm:$0xff]   ;;  %v16140_v45 = vld [vmem:[%s20886_s0 + $0x1a0] sm:$0xff]  }
  0x10   :  { %14404 = vmatprep.subr.bf16.mxu0 %v17332_v42  ;;  %v17340_v43 = vld [vmem:[%s20885_s1 + $0x30] sm:$0xff]   ;;  %v16139_v46 = vld [vmem:[%s20886_s0 + $0x298] sm:$0xff]   ;;  %v16141_v47 = vld [vmem:[%s20886_s0 + $0x2a0] sm:$0xff]  }
  0x11   :  { %14668 = vmatprep.subr.bf16.mxu1 %v17340_v43  ;;  %v16142_v48 = vld [vmem:[%s20886_s0 + $0x1a8] sm:$0xff]   ;;  %v16144_v49 = vld [vmem:[%s20886_s0 + $0x1b0] sm:$0xff]   ;;  %v16146_v52 = vld [vmem:[%s20886_s0 + $0x1b8] sm:$0xff]  }
  0x12   :  { %v16143_v50 = vld [vmem:[%s20886_s0 + $0x2a8] sm:$0xff]   ;;  %v16145_v51 = vld [vmem:[%s20886_s0 + $0x2b0] sm:$0xff]   ;;  %v16148_v53 = vld [vmem:[%s20886_s0 + $0x1c0] sm:$0xff]  }
  0x13   :  { %v16147_v54 = vld [vmem:[%s20886_s0 + $0x2b8] sm:$0xff]   ;;  %v16149_v55 = vld [vmem:[%s20886_s0 + $0x2c0] sm:$0xff]   ;;  %v16150_v56 = vld [vmem:[%s20886_s0 + $0x1c8] sm:$0xff]  }
  0x14   :  { %v16152_v57 = vld [vmem:[%s20886_s0 + $0x1d0] sm:$0xff]   ;;  %v16151_v58 = vld [vmem:[%s20886_s0 + $0x2c8] sm:$0xff]   ;;  %v16154_v60 = vld [vmem:[%s20886_s0 + $0x1d8] sm:$0xff]  }
  0x15   :  { %v16153_v59 = vld [vmem:[%s20886_s0 + $0x2d0] sm:$0xff]   ;;  %v16156_v61 = vld [vmem:[%s20886_s0 + $0x1e0] sm:$0xff]   ;;  %v16155_v62 = vld [vmem:[%s20886_s0 + $0x2d8] sm:$0xff]  }
  0x16   :  { %14283 = vmatmul.mubr.msk.bf16.gmra.mrb[8].mxu0 %vm319_vm0, %v16110_v14  ;;  %14547 = vmatmul.mubr.msk.bf16.gmra.mrb[8].mxu1 %vm319_vm0, %v16111_v16  ;;  %v16157_v63 = vld [vmem:[%s20886_s0 + $0x2e0] sm:$0xff]   ;;  %v16158_v0 = vld [vmem:[%s20886_s0 + $0x1e8] sm:$0xff]   ;;  %v16160_v1 = vld [vmem:[%s20886_s0 + $0x1f0] sm:$0xff]  }
  0x17   :  { %14286 = vmatprep.mubr.msk.bf16.mxu0 %vm319_vm0, %v16112_v15  ;;  %14550 = vmatprep.mubr.msk.bf16.mxu1 %vm319_vm0, %v16113_v17  ;;  %v16159_v2 = vld [vmem:[%s20886_s0 + $0x2e8] sm:$0xff]   ;;  %v16161_v3 = vld [vmem:[%s20886_s0 + $0x2f0] sm:$0xff]   ;;  %v16162_v4 = vld [vmem:[%s20886_s0 + $0x1f8] sm:$0xff]  }
  0x18   :  { %v16164_v5 = vld [vmem:[%s20886_s0] sm:$0xff]   ;;  %v16163_v6 = vld [vmem:[%s20886_s0 + $0x2f8] sm:$0xff]   ;;  %v16166_v8 = vld [vmem:[%s20886_s0 + $0x8] sm:$0xff]  }
  0x19   :  { %v16165_v7 = vld [vmem:[%s20886_s0 + $0x100] sm:$0xff]   ;;  %v16170_v9 = vld [vmem:[%s20886_s0 + $0x10] sm:$0xff]   ;;  %v16168_v10 = vld [vmem:[%s20886_s0 + $0x108] sm:$0xff]  }
  0x1a   :  { %v16171_v11 = vld [vmem:[%s20886_s0 + $0x110] sm:$0xff]   ;;  %v16172_v12 = vld [vmem:[%s20886_s0 + $0x18] sm:$0xff]   ;;  %v17479_v13 = vld [vmem:[%s20885_s1 + $0x28] sm:$0xff]  }
  0x1b   :  { %v16174_v14 = vld [vmem:[%s20886_s0 + $0x20] sm:$0xff]   ;;  %v16173_v16 = vld [vmem:[%s20886_s0 + $0x118] sm:$0xff]  }
  0x1c   :  { %v17488_v15 = vld [vmem:[%s20885_s1 + $0x20] sm:$0xff]  }
  0x1d   :  { %v16175_v17 = vld [vmem:[%s20886_s0 + $0x120] sm:$0xff]  }
  0x1e   :  { %14287 = vmatmul.mubr.msk.bf16.gmra.mrb[12].mxu0 %vm319_vm0, %v16114_v18  ;;  %14551 = vmatmul.mubr.msk.bf16.gmra.mrb[12].mxu1 %vm319_vm0, %v16115_v20  ;;  %v16176_v18 = vld [vmem:[%s20886_s0 + $0x28] sm:$0xff]   ;;  %v16178_v20 = vld [vmem:[%s20886_s0 + $0x30] sm:$0xff]  }
  0x1f   :  { %14290 = vmatprep.mubr.msk.bf16.mxu0 %vm319_vm0, %v16116_v19  ;;  %14554 = vmatprep.mubr.msk.bf16.mxu1 %vm319_vm0, %v16117_v21  ;;  %v16177_v19 = vld [vmem:[%s20886_s0 + $0x128] sm:$0xff]   ;;  %v16179_v21 = vld [vmem:[%s20886_s0 + $0x130] sm:$0xff]  }
  0x26   :  { %14291 = vmatmul.mubr.msk.bf16.gmra.mrb[16].mxu0 %vm319_vm0, %v16118_v22  ;;  %14555 = vmatmul.mubr.msk.bf16.gmra.mrb[16].mxu1 %vm319_vm0, %v16119_v24  ;;  %v16180_v22 = vld [vmem:[%s20886_s0 + $0x38] sm:$0xff]  }
  0x27   :  { %14294 = vmatprep.mubr.msk.bf16.mxu0 %vm319_vm0, %v16120_v23  ;;  %14558 = vmatprep.mubr.msk.bf16.mxu1 %vm319_vm0, %v16121_v25  ;;  %v16182_v23 = vld [vmem:[%s20886_s0 + $0x40] sm:$0xff]   ;;  %v16181_v24 = vld [vmem:[%s20886_s0 + $0x138] sm:$0xff]  }
  0x28   :  { %v16183_v25 = vld [vmem:[%s20886_s0 + $0x140] sm:$0xff]  }
  0x2e   :  { %14295 = vmatmul.mubr.msk.bf16.gmra.mrb[20].mxu0 %vm319_vm0, %v16122_v26  ;;  %14559 = vmatmul.mubr.msk.bf16.gmra.mrb[20].mxu1 %vm319_vm0, %v16123_v28  ;;  %v16184_v26 = vld [vmem:[%s20886_s0 + $0x48] sm:$0xff]  }
  0x2f   :  { %14298 = vmatprep.mubr.msk.bf16.mxu0 %vm319_vm0, %v16124_v27  ;;  %14562 = vmatprep.mubr.msk.bf16.mxu1 %vm319_vm0, %v16125_v29  ;;  %v16186_v27 = vld [vmem:[%s20886_s0 + $0x50] sm:$0xff]   ;;  %v16185_v28 = vld [vmem:[%s20886_s0 + $0x148] sm:$0xff]  }
  0x30   :  { %v16187_v29 = vld [vmem:[%s20886_s0 + $0x150] sm:$0xff]  }
  0x36   :  { %14299 = vmatmul.mubr.msk.bf16.gmra.mrb[24].mxu0 %vm319_vm0, %v16126_v30  ;;  %14563 = vmatmul.mubr.msk.bf16.gmra.mrb[24].mxu1 %vm319_vm0, %v16127_v32  ;;  %v16188_v30 = vld [vmem:[%s20886_s0 + $0x58] sm:$0xff]  }
  0x37   :  { %14302 = vmatprep.mubr.msk.bf16.mxu0 %vm319_vm0, %v16128_v31  ;;  %14566 = vmatprep.mubr.msk.bf16.mxu1 %vm319_vm0, %v16129_v33  ;;  %v16190_v31 = vld [vmem:[%s20886_s0 + $0x60] sm:$0xff]   ;;  %v16189_v32 = vld [vmem:[%s20886_s0 + $0x158] sm:$0xff]  }
  0x38   :  { %v16191_v33 = vld [vmem:[%s20886_s0 + $0x160] sm:$0xff]  }
  0x3e   :  { %14303 = vmatmul.mubr.msk.bf16.gmra.mrb[28].mxu0 %vm319_vm0, %v16130_v34  ;;  %14567 = vmatmul.mubr.msk.bf16.gmra.mrb[28].mxu1 %vm319_vm0, %v16131_v36  ;;  %v16192_v34 = vld [vmem:[%s20886_s0 + $0x68] sm:$0xff]  }
  0x3f   :  { %14306 = vmatprep.mubr.msk.bf16.mxu0 %vm319_vm0, %v16132_v35  ;;  %14570 = vmatprep.mubr.msk.bf16.mxu1 %vm319_vm0, %v16133_v37  ;;  %v16194_v35 = vld [vmem:[%s20886_s0 + $0x70] sm:$0xff]   ;;  %v16193_v36 = vld [vmem:[%s20886_s0 + $0x168] sm:$0xff]  }
  0x40   :  { %v16195_v37 = vld [vmem:[%s20886_s0 + $0x170] sm:$0xff]  }
  0x46   :  { %14307 = vmatmul.mubr.msk.bf16.gmra.mrb[32].mxu0 %vm319_vm0, %v16134_v38  ;;  %14571 = vmatmul.mubr.msk.bf16.gmra.mrb[32].mxu1 %vm319_vm0, %v16135_v40  ;;  %v16196_v38 = vld [vmem:[%s20886_s0 + $0x78] sm:$0xff]  }
  0x47   :  { %14310 = vmatprep.mubr.msk.bf16.mxu0 %vm319_vm0, %v16136_v39  ;;  %14574 = vmatprep.mubr.msk.bf16.mxu1 %vm319_vm0, %v16137_v41  ;;  %v16198_v39 = vld [vmem:[%s20886_s0 + $0x80] sm:$0xff]   ;;  %v16197_v40 = vld [vmem:[%s20886_s0 + $0x178] sm:$0xff]  }
  0x48   :  { %v16199_v41 = vld [vmem:[%s20886_s0 + $0x180] sm:$0xff]  }
  0x4e   :  { %14311 = vmatmul.mubr.msk.bf16.gmra.mrb[36].mxu0 %vm319_vm0, %v16138_v44  ;;  %14575 = vmatmul.mubr.msk.bf16.gmra.mrb[36].mxu1 %vm319_vm0, %v16139_v46  ;;  %v16201_v44 = vld [vmem:[%s20886_s0 + $0x188] sm:$0xff]   ;;  %v16204_v46 = vld [vmem:[%s20886_s0 + $0x98] sm:$0xff]  }
  0x4f   :  { %14314 = vmatprep.mubr.msk.bf16.mxu0 %vm319_vm0, %v16140_v45  ;;  %14578 = vmatprep.mubr.msk.bf16.mxu1 %vm319_vm0, %v16141_v47  ;;  %v16203_v45 = vld [vmem:[%s20886_s0 + $0x190] sm:$0xff]   ;;  %v16206_v47 = vld [vmem:[%s20886_s0 + $0xa0] sm:$0xff]  }
  0x56   :  { %14315 = vmatmul.mubr.msk.bf16.gmra.mrb[40].mxu0 %vm319_vm0, %v16142_v48  ;;  %14579 = vmatmul.mubr.msk.bf16.gmra.mrb[40].mxu1 %vm319_vm0, %v16143_v50  ;;  %v16205_v48 = vld [vmem:[%s20886_s0 + $0x198] sm:$0xff]   ;;  %v16208_v50 = vld [vmem:[%s20886_s0 + $0xa8] sm:$0xff]  }
  0x57   :  { %14318 = vmatprep.mubr.msk.bf16.mxu0 %vm319_vm0, %v16144_v49  ;;  %14582 = vmatprep.mubr.msk.bf16.mxu1 %vm319_vm0, %v16145_v51  ;;  %v16207_v49 = vld [vmem:[%s20886_s0 + $0x1a0] sm:$0xff]   ;;  %v16210_v51 = vld [vmem:[%s20886_s0 + $0xb0] sm:$0xff]  }
  0x5e   :  { %14319 = vmatmul.mubr.msk.bf16.gmra.mrb[44].mxu0 %vm319_vm0, %v16146_v52  ;;  %14583 = vmatmul.mubr.msk.bf16.gmra.mrb[44].mxu1 %vm319_vm0, %v16147_v54  ;;  %v16209_v52 = vld [vmem:[%s20886_s0 + $0x1a8] sm:$0xff]   ;;  %v16212_v54 = vld [vmem:[%s20886_s0 + $0xb8] sm:$0xff]  }
  0x5f   :  { %14322 = vmatprep.mubr.msk.bf16.mxu0 %vm319_vm0, %v16148_v53  ;;  %14586 = vmatprep.mubr.msk.bf16.mxu1 %vm319_vm0, %v16149_v55  ;;  %v16211_v53 = vld [vmem:[%s20886_s0 + $0x1b0] sm:$0xff]   ;;  %v16214_v55 = vld [vmem:[%s20886_s0 + $0xc0] sm:$0xff]  }
  0x66   :  { %14323 = vmatmul.mubr.msk.bf16.gmra.mrb[48].mxu0 %vm319_vm0, %v16150_v56  ;;  %14587 = vmatmul.mubr.msk.bf16.gmra.mrb[48].mxu1 %vm319_vm0, %v16151_v58  ;;  %v16213_v56 = vld [vmem:[%s20886_s0 + $0x1b8] sm:$0xff]   ;;  %v16216_v58 = vld [vmem:[%s20886_s0 + $0xc8] sm:$0xff]  }
  0x67   :  { %14326 = vmatprep.mubr.msk.bf16.mxu0 %vm319_vm0, %v16152_v57  ;;  %14590 = vmatprep.mubr.msk.bf16.mxu1 %vm319_vm0, %v16153_v59  ;;  %v16215_v57 = vld [vmem:[%s20886_s0 + $0x1c0] sm:$0xff]   ;;  %v16218_v59 = vld [vmem:[%s20886_s0 + $0xd0] sm:$0xff]  }
  0x6e   :  { %14327 = vmatmul.mubr.msk.bf16.gmra.mrb[52].mxu0 %vm319_vm0, %v16154_v60  ;;  %14591 = vmatmul.mubr.msk.bf16.gmra.mrb[52].mxu1 %vm319_vm0, %v16155_v62  ;;  %v16217_v60 = vld [vmem:[%s20886_s0 + $0x1c8] sm:$0xff]   ;;  %v16220_v62 = vld [vmem:[%s20886_s0 + $0xd8] sm:$0xff]  }
  0x6f   :  { %14330 = vmatprep.mubr.msk.bf16.mxu0 %vm319_vm0, %v16156_v61  ;;  %14594 = vmatprep.mubr.msk.bf16.mxu1 %vm319_vm0, %v16157_v63  ;;  %v16219_v61 = vld [vmem:[%s20886_s0 + $0x1d0] sm:$0xff]   ;;  %v16222_v63 = vld [vmem:[%s20886_s0 + $0xe0] sm:$0xff]  }
  0x76   :  { %14331 = vmatmul.mubr.msk.bf16.gmra.mrb[56].mxu0 %vm319_vm0, %v16158_v0  ;;  %14595 = vmatmul.mubr.msk.bf16.gmra.mrb[56].mxu1 %vm319_vm0, %v16159_v2  ;;  %v16221_v0 = vld [vmem:[%s20886_s0 + $0x1d8] sm:$0xff]   ;;  %v16224_v2 = vld [vmem:[%s20886_s0 + $0xe8] sm:$0xff]  }
  0x77   :  { %14334 = vmatprep.mubr.msk.bf16.mxu0 %vm319_vm0, %v16160_v1  ;;  %14598 = vmatprep.mubr.msk.bf16.mxu1 %vm319_vm0, %v16161_v3  ;;  %v16223_v1 = vld [vmem:[%s20886_s0 + $0x1e0] sm:$0xff]   ;;  %v16226_v3 = vld [vmem:[%s20886_s0 + $0xf0] sm:$0xff]  }
  0x7e   :  { %14335 = vmatmul.mubr.msk.bf16.gmra.mrb[60].mxu0 %vm319_vm0, %v16162_v4  ;;  %14599 = vmatmul.mubr.msk.bf16.gmra.mrb[60].mxu1 %vm319_vm0, %v16163_v6  ;;  %v16225_v4 = vld [vmem:[%s20886_s0 + $0x1e8] sm:$0xff]   ;;  %v16228_v6 = vld [vmem:[%s20886_s0 + $0xf8] sm:$0xff]  }
  0x7f   :  { %14340 = vmatprep.mubr.msk.bf16.mxu0 %vm319_vm0, %v16164_v5  ;;  %14604 = vmatprep.mubr.msk.bf16.mxu1 %vm319_vm0, %v16165_v7  ;;  %v16227_v5 = vld [vmem:[%s20886_s0 + $0x1f0] sm:$0xff]   ;;  %v16230_v7 = vld [vmem:[%s20886_s0 + $0x300] sm:$0xff]  }
  0x86   :  { %14341 = vmatmul.mubr.msk.bf16.vlgmr.msra.gmra.mrb[0].mxu0 %vm319_vm0, %v16166_v8  ;;  %14605 = vmatmul.mubr.msk.bf16.vlgmr.msra.gmra.mrb[0].mxu1 %vm319_vm0, %v16168_v10  ;;  %v16229_v8 = vld [vmem:[%s20886_s0 + $0x1f8] sm:$0xff]   ;;  %v16232_v10 = vld [vmem:[%s20886_s0 + $0x308] sm:$0xff]  }
  0x87   :  { %14405 = vmatpush3.bf16.msra.mxu0 %v17332_v42  ;;  %14344 = vmatprep.mubr.msk.bf16.mxu0 %vm319_vm0, %v16170_v9  ;;  %v16200_v42 = vld [vmem:[%s20886_s0 + $0x88] sm:$0xff]   ;;  %v16231_v9 = vld [vmem:[%s20886_s0 + $0x400] sm:$0xff]  }
  0x88   :  { %14669 = vmatpush3.bf16.msra.mxu1 %v17340_v43  ;;  %14608 = vmatprep.mubr.msk.bf16.mxu1 %vm319_vm0, %v16171_v11  ;;  %v16202_v43 = vld [vmem:[%s20886_s0 + $0x90] sm:$0xff]  }
  0x89   :  { %14470 = vmatprep.subr.bf16.mxu0 %v17479_v13  ;;  %14734 = vmatprep.subr.bf16.mxu1 %v17488_v15  ;;  %v16236_v11 = vld [vmem:[%s20886_s0 + $0x310] sm:$0xff]  }
  0x8e   :  { %14345 = vmatmul.mubr.msk.bf16.gmra.mrb[4].mxu0 %vm319_vm0, %v16172_v12  ;;  %14609 = vmatmul.mubr.msk.bf16.gmra.mrb[4].mxu1 %vm319_vm0, %v16173_v16  ;;  %v16234_v12 = vld [vmem:[%s20886_s0 + $0x408] sm:$0xff]  }
  0x8f   :  { %14348 = vmatprep.mubr.msk.bf16.mxu0 %vm319_vm0, %v16174_v14  ;;  %14612 = vmatprep.mubr.msk.bf16.mxu1 %vm319_vm0, %v16175_v17  ;;  %v16237_v14 = vld [vmem:[%s20886_s0 + $0x410] sm:$0xff]   ;;  %v17744_v16 = vld [vmem:[%s20885_s1 + $0x48] sm:$0xff]   ;;  %v17749_v17 = vld [vmem:[%s20885_s1 + $0x40] sm:$0xff]  }
  0x96   :  { %14349 = vmatmul.mubr.msk.bf16.gmra.mrb[8].mxu0 %vm319_vm0, %v16176_v18  ;;  %14613 = vmatmul.mubr.msk.bf16.gmra.mrb[8].mxu1 %vm319_vm0, %v16177_v19  ;;  %v16240_v18 = vld [vmem:[%s20886_s0 + $0x320] sm:$0xff]   ;;  %v16239_v19 = vld [vmem:[%s20886_s0 + $0x418] sm:$0xff]  }
  0x97   :  { %14352 = vmatprep.mubr.msk.bf16.mxu0 %vm319_vm0, %v16178_v20  ;;  %14616 = vmatprep.mubr.msk.bf16.mxu1 %vm319_vm0, %v16179_v21  ;;  %v16242_v20 = vld [vmem:[%s20886_s0 + $0x328] sm:$0xff]   ;;  %v16244_v21 = vld [vmem:[%s20886_s0 + $0x330] sm:$0xff]  }
  0x9e   :  { %14353 = vmatmul.mubr.msk.bf16.gmra.mrb[12].mxu0 %vm319_vm0, %v16180_v22  ;;  %14617 = vmatmul.mubr.msk.bf16.gmra.mrb[12].mxu1 %vm319_vm0, %v16181_v24  ;;  %v16243_v22 = vld [vmem:[%s20886_s0 + $0x428] sm:$0xff]   ;;  %v16246_v24 = vld [vmem:[%s20886_s0 + $0x338] sm:$0xff]  }
  0x9f   :  { %14356 = vmatprep.mubr.msk.bf16.mxu0 %vm319_vm0, %v16182_v23  ;;  %14620 = vmatprep.mubr.msk.bf16.mxu1 %vm319_vm0, %v16183_v25  ;;  %v16245_v23 = vld [vmem:[%s20886_s0 + $0x430] sm:$0xff]   ;;  %v16248_v25 = vld [vmem:[%s20886_s0 + $0x340] sm:$0xff]  }
  0xa6   :  { %14357 = vmatmul.mubr.msk.bf16.gmra.mrb[16].mxu0 %vm319_vm0, %v16184_v26  ;;  %14621 = vmatmul.mubr.msk.bf16.gmra.mrb[16].mxu1 %vm319_vm0, %v16185_v28  ;;  %v16247_v26 = vld [vmem:[%s20886_s0 + $0x438] sm:$0xff]   ;;  %v16250_v28 = vld [vmem:[%s20886_s0 + $0x348] sm:$0xff]  }
  0xa7   :  { %14360 = vmatprep.mubr.msk.bf16.mxu0 %vm319_vm0, %v16186_v27  ;;  %14624 = vmatprep.mubr.msk.bf16.mxu1 %vm319_vm0, %v16187_v29  ;;  %v16249_v27 = vld [vmem:[%s20886_s0 + $0x440] sm:$0xff]   ;;  %v16252_v29 = vld [vmem:[%s20886_s0 + $0x350] sm:$0xff]  }
  0xae   :  { %14361 = vmatmul.mubr.msk.bf16.gmra.mrb[20].mxu0 %vm319_vm0, %v16188_v30  ;;  %14625 = vmatmul.mubr.msk.bf16.gmra.mrb[20].mxu1 %vm319_vm0, %v16189_v32  ;;  %v16251_v30 = vld [vmem:[%s20886_s0 + $0x448] sm:$0xff]   ;;  %v16254_v32 = vld [vmem:[%s20886_s0 + $0x358] sm:$0xff]  }
  0xaf   :  { %14364 = vmatprep.mubr.msk.bf16.mxu0 %vm319_vm0, %v16190_v31  ;;  %14628 = vmatprep.mubr.msk.bf16.mxu1 %vm319_vm0, %v16191_v33  ;;  %v16253_v31 = vld [vmem:[%s20886_s0 + $0x450] sm:$0xff]   ;;  %v16256_v33 = vld [vmem:[%s20886_s0 + $0x360] sm:$0xff]  }
  0xb6   :  { %14365 = vmatmul.mubr.msk.bf16.gmra.mrb[24].mxu0 %vm319_vm0, %v16192_v34  ;;  %14629 = vmatmul.mubr.msk.bf16.gmra.mrb[24].mxu1 %vm319_vm0, %v16193_v36  ;;  %v16255_v34 = vld [vmem:[%s20886_s0 + $0x458] sm:$0xff]   ;;  %v16258_v36 = vld [vmem:[%s20886_s0 + $0x368] sm:$0xff]  }
  0xb7   :  { %14368 = vmatprep.mubr.msk.bf16.mxu0 %vm319_vm0, %v16194_v35  ;;  %14632 = vmatprep.mubr.msk.bf16.mxu1 %vm319_vm0, %v16195_v37  ;;  %v16257_v35 = vld [vmem:[%s20886_s0 + $0x460] sm:$0xff]   ;;  %v16260_v37 = vld [vmem:[%s20886_s0 + $0x370] sm:$0xff]  }
  0xbe   :  { %14369 = vmatmul.mubr.msk.bf16.gmra.mrb[28].mxu0 %vm319_vm0, %v16196_v38  ;;  %14633 = vmatmul.mubr.msk.bf16.gmra.mrb[28].mxu1 %vm319_vm0, %v16197_v40  ;;  %v16259_v38 = vld [vmem:[%s20886_s0 + $0x468] sm:$0xff]   ;;  %v16262_v40 = vld [vmem:[%s20886_s0 + $0x378] sm:$0xff]  }
  0xbf   :  { %14372 = vmatprep.mubr.msk.bf16.mxu0 %vm319_vm0, %v16198_v39  ;;  %14636 = vmatprep.mubr.msk.bf16.mxu1 %vm319_vm0, %v16199_v41  ;;  %v16261_v39 = vld [vmem:[%s20886_s0 + $0x470] sm:$0xff]   ;;  %v16264_v41 = vld [vmem:[%s20886_s0 + $0x380] sm:$0xff]  }
  0xc6   :  { %14373 = vmatmul.mubr.msk.bf16.gmra.mrb[32].mxu0 %vm319_vm0, %v16200_v42  ;;  %14637 = vmatmul.mubr.msk.bf16.gmra.mrb[32].mxu1 %vm319_vm0, %v16201_v44  ;;  %v16263_v42 = vld [vmem:[%s20886_s0 + $0x478] sm:$0xff]   ;;  %v16266_v44 = vld [vmem:[%s20886_s0 + $0x388] sm:$0xff]  }
  0xc7   :  { %14376 = vmatprep.mubr.msk.bf16.mxu0 %vm319_vm0, %v16202_v43  ;;  %14640 = vmatprep.mubr.msk.bf16.mxu1 %vm319_vm0, %v16203_v45  ;;  %v16265_v43 = vld [vmem:[%s20886_s0 + $0x480] sm:$0xff]   ;;  %v16268_v45 = vld [vmem:[%s20886_s0 + $0x390] sm:$0xff]  }
  0xce   :  { %14377 = vmatmul.mubr.msk.bf16.gmra.mrb[36].mxu0 %vm319_vm0, %v16204_v46  ;;  %14641 = vmatmul.mubr.msk.bf16.gmra.mrb[36].mxu1 %vm319_vm0, %v16205_v48  ;;  %v16267_v46 = vld [vmem:[%s20886_s0 + $0x488] sm:$0xff]   ;;  %v16270_v48 = vld [vmem:[%s20886_s0 + $0x398] sm:$0xff]  }
  0xcf   :  { %14380 = vmatprep.mubr.msk.bf16.mxu0 %vm319_vm0, %v16206_v47  ;;  %14644 = vmatprep.mubr.msk.bf16.mxu1 %vm319_vm0, %v16207_v49  ;;  %v16269_v47 = vld [vmem:[%s20886_s0 + $0x490] sm:$0xff]   ;;  %v16272_v49 = vld [vmem:[%s20886_s0 + $0x3a0] sm:$0xff]  }
  0xd6   :  { %14381 = vmatmul.mubr.msk.bf16.gmra.mrb[40].mxu0 %vm319_vm0, %v16208_v50  ;;  %14645 = vmatmul.mubr.msk.bf16.gmra.mrb[40].mxu1 %vm319_vm0, %v16209_v52  ;;  %v16271_v50 = vld [vmem:[%s20886_s0 + $0x498] sm:$0xff]   ;;  %v16274_v52 = vld [vmem:[%s20886_s0 + $0x3a8] sm:$0xff]  }
  0xd7   :  { %14384 = vmatprep.mubr.msk.bf16.mxu0 %vm319_vm0, %v16210_v51  ;;  %14648 = vmatprep.mubr.msk.bf16.mxu1 %vm319_vm0, %v16211_v53  ;;  %v16273_v51 = vld [vmem:[%s20886_s0 + $0x4a0] sm:$0xff]   ;;  %v16276_v53 = vld [vmem:[%s20886_s0 + $0x3b0] sm:$0xff]  }
  0xde   :  { %14385 = vmatmul.mubr.msk.bf16.gmra.mrb[44].mxu0 %vm319_vm0, %v16212_v54  ;;  %14649 = vmatmul.mubr.msk.bf16.gmra.mrb[44].mxu1 %vm319_vm0, %v16213_v56  ;;  %v16275_v54 = vld [vmem:[%s20886_s0 + $0x4a8] sm:$0xff]   ;;  %v16278_v56 = vld [vmem:[%s20886_s0 + $0x3b8] sm:$0xff]  }
  0xdf   :  { %14388 = vmatprep.mubr.msk.bf16.mxu0 %vm319_vm0, %v16214_v55  ;;  %14652 = vmatprep.mubr.msk.bf16.mxu1 %vm319_vm0, %v16215_v57  ;;  %v16277_v55 = vld [vmem:[%s20886_s0 + $0x4b0] sm:$0xff]   ;;  %v16280_v57 = vld [vmem:[%s20886_s0 + $0x3c0] sm:$0xff]  }
  0xe6   :  { %14389 = vmatmul.mubr.msk.bf16.gmra.mrb[48].mxu0 %vm319_vm0, %v16216_v58  ;;  %14653 = vmatmul.mubr.msk.bf16.gmra.mrb[48].mxu1 %vm319_vm0, %v16217_v60  ;;  %v16279_v58 = vld [vmem:[%s20886_s0 + $0x4b8] sm:$0xff]   ;;  %v16282_v60 = vld [vmem:[%s20886_s0 + $0x3c8] sm:$0xff]  }
  0xe7   :  { %14392 = vmatprep.mubr.msk.bf16.mxu0 %vm319_vm0, %v16218_v59  ;;  %14656 = vmatprep.mubr.msk.bf16.mxu1 %vm319_vm0, %v16219_v61  ;;  %v16281_v59 = vld [vmem:[%s20886_s0 + $0x4c0] sm:$0xff]   ;;  %v16284_v61 = vld [vmem:[%s20886_s0 + $0x3d0] sm:$0xff]  }
  0xee   :  { %14393 = vmatmul.mubr.msk.bf16.gmra.mrb[52].mxu0 %vm319_vm0, %v16220_v62  ;;  %14657 = vmatmul.mubr.msk.bf16.gmra.mrb[52].mxu1 %vm319_vm0, %v16221_v0  ;;  %v16283_v62 = vld [vmem:[%s20886_s0 + $0x4c8] sm:$0xff]   ;;  %v16286_v0 = vld [vmem:[%s20886_s0 + $0x3d8] sm:$0xff]  }
  0xef   :  { %14396 = vmatprep.mubr.msk.bf16.mxu0 %vm319_vm0, %v16222_v63  ;;  %14660 = vmatprep.mubr.msk.bf16.mxu1 %vm319_vm0, %v16223_v1  ;;  %v16285_v63 = vld [vmem:[%s20886_s0 + $0x4d0] sm:$0xff]   ;;  %v16288_v1 = vld [vmem:[%s20886_s0 + $0x3e0] sm:$0xff]  }
  0xf6   :  { %14397 = vmatmul.mubr.msk.bf16.gmra.mrb[56].mxu0 %vm319_vm0, %v16224_v2  ;;  %14661 = vmatmul.mubr.msk.bf16.gmra.mrb[56].mxu1 %vm319_vm0, %v16225_v4  ;;  %v16287_v2 = vld [vmem:[%s20886_s0 + $0x4d8] sm:$0xff]   ;;  %v16290_v4 = vld [vmem:[%s20886_s0 + $0x3e8] sm:$0xff]  }
  0xf7   :  { %14400 = vmatprep.mubr.msk.bf16.mxu0 %vm319_vm0, %v16226_v3  ;;  %14664 = vmatprep.mubr.msk.bf16.mxu1 %vm319_vm0, %v16227_v5  ;;  %v16289_v3 = vld [vmem:[%s20886_s0 + $0x4e0] sm:$0xff]   ;;  %v16292_v5 = vld [vmem:[%s20886_s0 + $0x3f0] sm:$0xff]  }
  0xfe   :  { %14401 = vmatmul.mubr.msk.bf16.gmra.mrb[60].mxu0 %vm319_vm0, %v16228_v6  ;;  %14665 = vmatmul.mubr.msk.bf16.gmra.mrb[60].mxu1 %vm319_vm0, %v16229_v8  ;;  %v16291_v6 = vld [vmem:[%s20886_s0 + $0x4e8] sm:$0xff]   ;;  %v16294_v8 = vld [vmem:[%s20886_s0 + $0x3f8] sm:$0xff]  }
  0xff   :  { %14406 = vmatprep.mubr.msk.bf16.mxu0 %vm319_vm0, %v16230_v7  ;;  %14670 = vmatprep.mubr.msk.bf16.mxu1 %vm319_vm0, %v16231_v9  ;;  %v16293_v7 = vld [vmem:[%s20886_s0 + $0x4f0] sm:$0xff]   ;;  %v16296_v9 = vld [vmem:[%s20886_s0 + $0x400] sm:$0xff]  }
 0x106   :  { %14407 = vmatmul.mubr.msk.bf16.vlgmr.msra.gmra.mrb[0].mxu0 %vm319_vm0, %v16232_v10  ;;  %14671 = vmatmul.mubr.msk.bf16.vlgmr.msra.gmra.mrb[0].mxu1 %vm319_vm0, %v16234_v12  ;;  %v16295_v10 = vld [vmem:[%s20886_s0 + $0x4f8] sm:$0xff]   ;;  %v16298_v12 = vld [vmem:[%s20886_s0 + $0x408] sm:$0xff]  }
 0x107   :  { %14471 = vmatpush3.bf16.msra.mxu0 %v17479_v13  ;;  %14410 = vmatprep.mubr.msk.bf16.mxu0 %vm319_vm0, %v16236_v11  ;;  %v16238_v13 = vld [vmem:[%s20886_s0 + $0x318] sm:$0xff]   ;;  %v16297_v11 = vld [vmem:[%s20886_s0 + $0x500] sm:$0xff]  }
 0x108   :  { %14735 = vmatpush3.bf16.msra.mxu1 %v17488_v15  ;;  %14674 = vmatprep.mubr.msk.bf16.mxu1 %vm319_vm0, %v16237_v14  ;;  %v16241_v15 = vld [vmem:[%s20886_s0 + $0x420] sm:$0xff]   ;;  %v16302_v14 = vld [vmem:[%s20886_s0 + $0x410] sm:$0xff]  }
 0x109   :  { %14800 = vmatprep.subr.bf16.mxu0 %v17744_v16  ;;  %15064 = vmatprep.subr.bf16.mxu1 %v17749_v17 }
 0x10e   :  { %14411 = vmatmul.mubr.msk.bf16.gmra.mrb[4].mxu0 %vm319_vm0, %v16238_v13  ;;  %14675 = vmatmul.mubr.msk.bf16.gmra.mrb[4].mxu1 %vm319_vm0, %v16239_v19  ;;  %v16299_v13 = vld [vmem:[%s20886_s0 + $0x508] sm:$0xff]   ;;  %v18011_v19 = vld [vmem:[%s20885_s1 + $0x58] sm:$0xff]  }
 0x10f   :  { %14414 = vmatprep.mubr.msk.bf16.mxu0 %vm319_vm0, %v16240_v18  ;;  %14678 = vmatprep.mubr.msk.bf16.mxu1 %vm319_vm0, %v16241_v15  ;;  %v16303_v18 = vld [vmem:[%s20886_s0 + $0x510] sm:$0xff]  }
 0x110   :  { %v18020_v15 = vld [vmem:[%s20885_s1 + $0x50] sm:$0xff]  }
 0x116   :  { %14415 = vmatmul.mubr.msk.bf16.gmra.mrb[8].mxu0 %vm319_vm0, %v16242_v20  ;;  %14679 = vmatmul.mubr.msk.bf16.gmra.mrb[8].mxu1 %vm319_vm0, %v16243_v22  ;;  %v16304_v20 = vld [vmem:[%s20886_s0 + $0x418] sm:$0xff]   ;;  %v16308_v22 = vld [vmem:[%s20886_s0 + $0x428] sm:$0xff]  }
 0x117   :  { %14418 = vmatprep.mubr.msk.bf16.mxu0 %vm319_vm0, %v16244_v21  ;;  %14682 = vmatprep.mubr.msk.bf16.mxu1 %vm319_vm0, %v16245_v23  ;;  %v16305_v21 = vld [vmem:[%s20886_s0 + $0x518] sm:$0xff]   ;;  %v16310_v23 = vld [vmem:[%s20886_s0 + $0x430] sm:$0xff]  }
 0x11e   :  { %14419 = vmatmul.mubr.msk.bf16.gmra.mrb[12].mxu0 %vm319_vm0, %v16246_v24  ;;  %14683 = vmatmul.mubr.msk.bf16.gmra.mrb[12].mxu1 %vm319_vm0, %v16247_v26  ;;  %v16309_v24 = vld [vmem:[%s20886_s0 + $0x528] sm:$0xff]   ;;  %v16312_v26 = vld [vmem:[%s20886_s0 + $0x438] sm:$0xff]  }
 0x11f   :  { %14422 = vmatprep.mubr.msk.bf16.mxu0 %vm319_vm0, %v16248_v25  ;;  %14686 = vmatprep.mubr.msk.bf16.mxu1 %vm319_vm0, %v16249_v27  ;;  %v16311_v25 = vld [vmem:[%s20886_s0 + $0x530] sm:$0xff]   ;;  %v16314_v27 = vld [vmem:[%s20886_s0 + $0x440] sm:$0xff]  }
 0x126   :  { %14423 = vmatmul.mubr.msk.bf16.gmra.mrb[16].mxu0 %vm319_vm0, %v16250_v28  ;;  %14687 = vmatmul.mubr.msk.bf16.gmra.mrb[16].mxu1 %vm319_vm0, %v16251_v30  ;;  %v16313_v28 = vld [vmem:[%s20886_s0 + $0x538] sm:$0xff]   ;;  %v16316_v30 = vld [vmem:[%s20886_s0 + $0x448] sm:$0xff]  }
 0x127   :  { %14426 = vmatprep.mubr.msk.bf16.mxu0 %vm319_vm0, %v16252_v29  ;;  %14690 = vmatprep.mubr.msk.bf16.mxu1 %vm319_vm0, %v16253_v31  ;;  %v16315_v29 = vld [vmem:[%s20886_s0 + $0x540] sm:$0xff]   ;;  %v16318_v31 = vld [vmem:[%s20886_s0 + $0x450] sm:$0xff]  }
 0x12e   :  { %14427 = vmatmul.mubr.msk.bf16.gmra.mrb[20].mxu0 %vm319_vm0, %v16254_v32  ;;  %14691 = vmatmul.mubr.msk.bf16.gmra.mrb[20].mxu1 %vm319_vm0, %v16255_v34  ;;  %v16317_v32 = vld [vmem:[%s20886_s0 + $0x548] sm:$0xff]   ;;  %v16320_v34 = vld [vmem:[%s20886_s0 + $0x458] sm:$0xff]  }
 0x12f   :  { %14430 = vmatprep.mubr.msk.bf16.mxu0 %vm319_vm0, %v16256_v33  ;;  %14694 = vmatprep.mubr.msk.bf16.mxu1 %vm319_vm0, %v16257_v35  ;;  %v16319_v33 = vld [vmem:[%s20886_s0 + $0x550] sm:$0xff]   ;;  %v16322_v35 = vld [vmem:[%s20886_s0 + $0x460] sm:$0xff]  }
 0x136   :  { %14431 = vmatmul.mubr.msk.bf16.gmra.mrb[24].mxu0 %vm319_vm0, %v16258_v36  ;;  %14695 = vmatmul.mubr.msk.bf16.gmra.mrb[24].mxu1 %vm319_vm0, %v16259_v38  ;;  %v16321_v36 = vld [vmem:[%s20886_s0 + $0x558] sm:$0xff]   ;;  %v16324_v38 = vld [vmem:[%s20886_s0 + $0x468] sm:$0xff]  }
 0x137   :  { %14434 = vmatprep.mubr.msk.bf16.mxu0 %vm319_vm0, %v16260_v37  ;;  %14698 = vmatprep.mubr.msk.bf16.mxu1 %vm319_vm0, %v16261_v39  ;;  %v16323_v37 = vld [vmem:[%s20886_s0 + $0x560] sm:$0xff]   ;;  %v16326_v39 = vld [vmem:[%s20886_s0 + $0x470] sm:$0xff]  }
 0x13e   :  { %14435 = vmatmul.mubr.msk.bf16.gmra.mrb[28].mxu0 %vm319_vm0, %v16262_v40  ;;  %14699 = vmatmul.mubr.msk.bf16.gmra.mrb[28].mxu1 %vm319_vm0, %v16263_v42  ;;  %v16325_v40 = vld [vmem:[%s20886_s0 + $0x568] sm:$0xff]   ;;  %v16328_v42 = vld [vmem:[%s20886_s0 + $0x478] sm:$0xff]  }
 0x13f   :  { %14438 = vmatprep.mubr.msk.bf16.mxu0 %vm319_vm0, %v16264_v41  ;;  %14702 = vmatprep.mubr.msk.bf16.mxu1 %vm319_vm0, %v16265_v43  ;;  %v16327_v41 = vld [vmem:[%s20886_s0 + $0x570] sm:$0xff]   ;;  %v16330_v43 = vld [vmem:[%s20886_s0 + $0x480] sm:$0xff]  }
 0x146   :  { %14439 = vmatmul.mubr.msk.bf16.gmra.mrb[32].mxu0 %vm319_vm0, %v16266_v44  ;;  %14703 = vmatmul.mubr.msk.bf16.gmra.mrb[32].mxu1 %vm319_vm0, %v16267_v46  ;;  %v16329_v44 = vld [vmem:[%s20886_s0 + $0x578] sm:$0xff]   ;;  %v16332_v46 = vld [vmem:[%s20886_s0 + $0x488] sm:$0xff]  }
 0x147   :  { %14442 = vmatprep.mubr.msk.bf16.mxu0 %vm319_vm0, %v16268_v45  ;;  %14706 = vmatprep.mubr.msk.bf16.mxu1 %vm319_vm0, %v16269_v47  ;;  %v16331_v45 = vld [vmem:[%s20886_s0 + $0x580] sm:$0xff]   ;;  %v16334_v47 = vld [vmem:[%s20886_s0 + $0x490] sm:$0xff]  }
 0x14e   :  { %14443 = vmatmul.mubr.msk.bf16.gmra.mrb[36].mxu0 %vm319_vm0, %v16270_v48  ;;  %14707 = vmatmul.mubr.msk.bf16.gmra.mrb[36].mxu1 %vm319_vm0, %v16271_v50  ;;  %v16333_v48 = vld [vmem:[%s20886_s0 + $0x588] sm:$0xff]   ;;  %v16336_v50 = vld [vmem:[%s20886_s0 + $0x498] sm:$0xff]  }
 0x14f   :  { %14446 = vmatprep.mubr.msk.bf16.mxu0 %vm319_vm0, %v16272_v49  ;;  %14710 = vmatprep.mubr.msk.bf16.mxu1 %vm319_vm0, %v16273_v51  ;;  %v16335_v49 = vld [vmem:[%s20886_s0 + $0x590] sm:$0xff]   ;;  %v16338_v51 = vld [vmem:[%s20886_s0 + $0x4a0] sm:$0xff]  }
 0x156   :  { %14447 = vmatmul.mubr.msk.bf16.gmra.mrb[40].mxu0 %vm319_vm0, %v16274_v52  ;;  %14711 = vmatmul.mubr.msk.bf16.gmra.mrb[40].mxu1 %vm319_vm0, %v16275_v54  ;;  %v16337_v52 = vld [vmem:[%s20886_s0 + $0x598] sm:$0xff]   ;;  %v16340_v54 = vld [vmem:[%s20886_s0 + $0x4a8] sm:$0xff]  }
 0x157   :  { %14450 = vmatprep.mubr.msk.bf16.mxu0 %vm319_vm0, %v16276_v53  ;;  %14714 = vmatprep.mubr.msk.bf16.mxu1 %vm319_vm0, %v16277_v55  ;;  %v16339_v53 = vld [vmem:[%s20886_s0 + $0x5a0] sm:$0xff]   ;;  %v16342_v55 = vld [vmem:[%s20886_s0 + $0x4b0] sm:$0xff]  }
 0x15e   :  { %14451 = vmatmul.mubr.msk.bf16.gmra.mrb[44].mxu0 %vm319_vm0, %v16278_v56  ;;  %14715 = vmatmul.mubr.msk.bf16.gmra.mrb[44].mxu1 %vm319_vm0, %v16279_v58  ;;  %v16341_v56 = vld [vmem:[%s20886_s0 + $0x5a8] sm:$0xff]   ;;  %v16344_v58 = vld [vmem:[%s20886_s0 + $0x4b8] sm:$0xff]  }
 0x15f   :  { %14454 = vmatprep.mubr.msk.bf16.mxu0 %vm319_vm0, %v16280_v57  ;;  %14718 = vmatprep.mubr.msk.bf16.mxu1 %vm319_vm0, %v16281_v59  ;;  %v16343_v57 = vld [vmem:[%s20886_s0 + $0x5b0] sm:$0xff]   ;;  %v16346_v59 = vld [vmem:[%s20886_s0 + $0x4c0] sm:$0xff]  }
 0x166   :  { %14455 = vmatmul.mubr.msk.bf16.gmra.mrb[48].mxu0 %vm319_vm0, %v16282_v60  ;;  %14719 = vmatmul.mubr.msk.bf16.gmra.mrb[48].mxu1 %vm319_vm0, %v16283_v62  ;;  %v16345_v60 = vld [vmem:[%s20886_s0 + $0x5b8] sm:$0xff]   ;;  %v16348_v62 = vld [vmem:[%s20886_s0 + $0x4c8] sm:$0xff]  }
 0x167   :  { %14458 = vmatprep.mubr.msk.bf16.mxu0 %vm319_vm0, %v16284_v61  ;;  %14722 = vmatprep.mubr.msk.bf16.mxu1 %vm319_vm0, %v16285_v63  ;;  %v16347_v61 = vld [vmem:[%s20886_s0 + $0x5c0] sm:$0xff]   ;;  %v16350_v63 = vld [vmem:[%s20886_s0 + $0x4d0] sm:$0xff]  }
 0x16e   :  { %14459 = vmatmul.mubr.msk.bf16.gmra.mrb[52].mxu0 %vm319_vm0, %v16286_v0  ;;  %14723 = vmatmul.mubr.msk.bf16.gmra.mrb[52].mxu1 %vm319_vm0, %v16287_v2  ;;  %v16349_v0 = vld [vmem:[%s20886_s0 + $0x5c8] sm:$0xff]   ;;  %v16352_v2 = vld [vmem:[%s20886_s0 + $0x4d8] sm:$0xff]  }
 0x16f   :  { %14462 = vmatprep.mubr.msk.bf16.mxu0 %vm319_vm0, %v16288_v1  ;;  %14726 = vmatprep.mubr.msk.bf16.mxu1 %vm319_vm0, %v16289_v3  ;;  %v16351_v1 = vld [vmem:[%s20886_s0 + $0x5d0] sm:$0xff]   ;;  %v16354_v3 = vld [vmem:[%s20886_s0 + $0x4e0] sm:$0xff]  }
 0x176   :  { %14463 = vmatmul.mubr.msk.bf16.gmra.mrb[56].mxu0 %vm319_vm0, %v16290_v4  ;;  %14727 = vmatmul.mubr.msk.bf16.gmra.mrb[56].mxu1 %vm319_vm0, %v16291_v6  ;;  %v16353_v4 = vld [vmem:[%s20886_s0 + $0x5d8] sm:$0xff]   ;;  %v16356_v6 = vld [vmem:[%s20886_s0 + $0x4e8] sm:$0xff]  }
 0x177   :  { %14466 = vmatprep.mubr.msk.bf16.mxu0 %vm319_vm0, %v16292_v5  ;;  %14730 = vmatprep.mubr.msk.bf16.mxu1 %vm319_vm0, %v16293_v7  ;;  %v16355_v5 = vld [vmem:[%s20886_s0 + $0x5e0] sm:$0xff]   ;;  %v16358_v7 = vld [vmem:[%s20886_s0 + $0x4f0] sm:$0xff]  }
 0x17e   :  { %14467 = vmatmul.mubr.msk.bf16.gmra.mrb[60].mxu0 %vm319_vm0, %v16294_v8  ;;  %14731 = vmatmul.mubr.msk.bf16.gmra.mrb[60].mxu1 %vm319_vm0, %v16295_v10  ;;  %v16357_v8 = vld [vmem:[%s20886_s0 + $0x5e8] sm:$0xff]   ;;  %v16360_v10 = vld [vmem:[%s20886_s0 + $0x4f8] sm:$0xff]  }
 0x17f   :  { %14472 = vmatprep.mubr.msk.bf16.mxu0 %vm319_vm0, %v16296_v9  ;;  %14736 = vmatprep.mubr.msk.bf16.mxu1 %vm319_vm0, %v16297_v11  ;;  %v16359_v9 = vld [vmem:[%s20886_s0 + $0x5f0] sm:$0xff]   ;;  %v16362_v11 = vld [vmem:[%s20886_s0 + $0x400] sm:$0xff]  }
 0x186   :  { %14473 = vmatmul.mubr.msk.bf16.vlgmr.msra.gmra.mrb[0].mxu0 %vm319_vm0, %v16298_v12  ;;  %14737 = vmatmul.mubr.msk.bf16.vlgmr.msra.gmra.mrb[0].mxu1 %vm319_vm0, %v16299_v13  ;;  %v16361_v12 = vld [vmem:[%s20886_s0 + $0x5f8] sm:$0xff]   ;;  %v16364_v13 = vld [vmem:[%s20886_s0 + $0x408] sm:$0xff]  }
 0x187   :  { %14801 = vmatpush3.bf16.msra.mxu0 %v17744_v16  ;;  %14476 = vmatprep.mubr.msk.bf16.mxu0 %vm319_vm0, %v16302_v14  ;;  %v16306_v16 = vld [vmem:[%s20886_s0 + $0x420] sm:$0xff]  }
 0x188   :  { %14866 = vmatprep.subr.bf16.mxu0 %v18011_v19  ;;  %15065 = vmatpush3.bf16.msra.mxu1 %v17749_v17  ;;  %v16307_v17 = vld [vmem:[%s20886_s0 + $0x520] sm:$0xff]  }
 0x189   :  { %14740 = vmatprep.mubr.msk.bf16.mxu1 %vm319_vm0, %v16303_v18  ;;  %15130 = vmatprep.subr.bf16.mxu1 %v18020_v15  ;;  %v16363_v14 = vld [vmem:[%s20886_s0 + $0x500] sm:$0xff]   ;;  %v16368_v18 = vld [vmem:[%s20886_s0 + $0x410] sm:$0xff]  }
 0x18e   :  { %14477 = vmatmul.mubr.msk.bf16.gmra.mrb[4].mxu0 %vm319_vm0, %v16304_v20  ;;  %14741 = vmatmul.mubr.msk.bf16.gmra.mrb[4].mxu1 %vm319_vm0, %v16305_v21  ;;  %v16366_v20 = vld [vmem:[%s20886_s0 + $0x508] sm:$0xff]   ;;  %v16370_v21 = vld [vmem:[%s20886_s0 + $0x418] sm:$0xff]  }
 0x18f   :  { %14480 = vmatprep.mubr.msk.bf16.mxu0 %vm319_vm0, %v16306_v16  ;;  %14744 = vmatprep.mubr.msk.bf16.mxu1 %vm319_vm0, %v16307_v17  ;;  %v16369_v16 = vld [vmem:[%s20886_s0 + $0x510] sm:$0xff]   ;;  %v16372_v17 = vld [vmem:[%s20886_s0 + $0x420] sm:$0xff]  }
 0x196   :  { %14481 = vmatmul.mubr.msk.bf16.gmra.mrb[8].mxu0 %vm319_vm0, %v16308_v22  ;;  %14745 = vmatmul.mubr.msk.bf16.gmra.mrb[8].mxu1 %vm319_vm0, %v16309_v24  ;;  %v16373_v22 = vld [vmem:[%s20886_s0 + $0x520] sm:$0xff]   ;;  %v16375_v24 = vld [vmem:[%s20886_s0 + $0x528] sm:$0xff]  }
 0x197   :  { %14484 = vmatprep.mubr.msk.bf16.mxu0 %vm319_vm0, %v16310_v23  ;;  %14748 = vmatprep.mubr.msk.bf16.mxu1 %vm319_vm0, %v16311_v25  ;;  %v16376_v23 = vld [vmem:[%s20886_s0 + $0x430] sm:$0xff]  }
 0x198   :  { %v16377_v25 = vld [vmem:[%s20886_s0 + $0x530] sm:$0xff]  }
 0x19e   :  { %14485 = vmatmul.mubr.msk.bf16.gmra.mrb[12].mxu0 %vm319_vm0, %v16312_v26  ;;  %14749 = vmatmul.mubr.msk.bf16.gmra.mrb[12].mxu1 %vm319_vm0, %v16313_v28  ;;  %v18317_v26 = vld [vmem:[%s20885_s1 + $0x18] sm:$0xff]  }
 0x19f   :  { %14488 = vmatprep.mubr.msk.bf16.mxu0 %vm319_vm0, %v16314_v27  ;;  %14752 = vmatprep.mubr.msk.bf16.mxu1 %vm319_vm0, %v16315_v29  ;;  %v18322_v27 = vld [vmem:[%s20885_s1 + $0x10] sm:$0xff]   ;;  %v16378_v28 = vld [vmem:[%s20886_s0 + $0x438] sm:$0xff]   ;;  %v16380_v29 = vld [vmem:[%s20886_s0 + $0x440] sm:$0xff]  }
 0x1a6   :  { %14489 = vmatmul.mubr.msk.bf16.gmra.mrb[16].mxu0 %vm319_vm0, %v16316_v30  ;;  %14753 = vmatmul.mubr.msk.bf16.gmra.mrb[16].mxu1 %vm319_vm0, %v16317_v32  ;;  %v16379_v30 = vld [vmem:[%s20886_s0 + $0x538] sm:$0xff]   ;;  %v16382_v32 = vld [vmem:[%s20886_s0 + $0x448] sm:$0xff]  }
 0x1a7   :  { %14492 = vmatprep.mubr.msk.bf16.mxu0 %vm319_vm0, %v16318_v31  ;;  %14756 = vmatprep.mubr.msk.bf16.mxu1 %vm319_vm0, %v16319_v33  ;;  %v16381_v31 = vld [vmem:[%s20886_s0 + $0x540] sm:$0xff]   ;;  %v16384_v33 = vld [vmem:[%s20886_s0 + $0x450] sm:$0xff]  }
 0x1ae   :  { %14493 = vmatmul.mubr.msk.bf16.gmra.mrb[20].mxu0 %vm319_vm0, %v16320_v34  ;;  %14757 = vmatmul.mubr.msk.bf16.gmra.mrb[20].mxu1 %vm319_vm0, %v16321_v36  ;;  %v16383_v34 = vld [vmem:[%s20886_s0 + $0x548] sm:$0xff]   ;;  %v16386_v36 = vld [vmem:[%s20886_s0 + $0x458] sm:$0xff]  }
 0x1af   :  { %14496 = vmatprep.mubr.msk.bf16.mxu0 %vm319_vm0, %v16322_v35  ;;  %14760 = vmatprep.mubr.msk.bf16.mxu1 %vm319_vm0, %v16323_v37  ;;  %v16385_v35 = vld [vmem:[%s20886_s0 + $0x550] sm:$0xff]   ;;  %v16388_v37 = vld [vmem:[%s20886_s0 + $0x460] sm:$0xff]  }
 0x1b6   :  { %14497 = vmatmul.mubr.msk.bf16.gmra.mrb[24].mxu0 %vm319_vm0, %v16324_v38  ;;  %14761 = vmatmul.mubr.msk.bf16.gmra.mrb[24].mxu1 %vm319_vm0, %v16325_v40  ;;  %v16387_v38 = vld [vmem:[%s20886_s0 + $0x558] sm:$0xff]   ;;  %v16390_v40 = vld [vmem:[%s20886_s0 + $0x468] sm:$0xff]  }
 0x1b7   :  { %14500 = vmatprep.mubr.msk.bf16.mxu0 %vm319_vm0, %v16326_v39  ;;  %14764 = vmatprep.mubr.msk.bf16.mxu1 %vm319_vm0, %v16327_v41  ;;  %v16389_v39 = vld [vmem:[%s20886_s0 + $0x560] sm:$0xff]   ;;  %v16392_v41 = vld [vmem:[%s20886_s0 + $0x470] sm:$0xff]  }
 0x1be   :  { %14501 = vmatmul.mubr.msk.bf16.gmra.mrb[28].mxu0 %vm319_vm0, %v16328_v42  ;;  %14765 = vmatmul.mubr.msk.bf16.gmra.mrb[28].mxu1 %vm319_vm0, %v16329_v44  ;;  %v16391_v42 = vld [vmem:[%s20886_s0 + $0x568] sm:$0xff]   ;;  %v16394_v44 = vld [vmem:[%s20886_s0 + $0x478] sm:$0xff]  }
 0x1bf   :  { %14504 = vmatprep.mubr.msk.bf16.mxu0 %vm319_vm0, %v16330_v43  ;;  %14768 = vmatprep.mubr.msk.bf16.mxu1 %vm319_vm0, %v16331_v45  ;;  %v16393_v43 = vld [vmem:[%s20886_s0 + $0x570] sm:$0xff]   ;;  %v16396_v45 = vld [vmem:[%s20886_s0 + $0x480] sm:$0xff]  }
 0x1c6   :  { %14505 = vmatmul.mubr.msk.bf16.gmra.mrb[32].mxu0 %vm319_vm0, %v16332_v46  ;;  %14769 = vmatmul.mubr.msk.bf16.gmra.mrb[32].mxu1 %vm319_vm0, %v16333_v48  ;;  %v16395_v46 = vld [vmem:[%s20886_s0 + $0x578] sm:$0xff]   ;;  %v16398_v48 = vld [vmem:[%s20886_s0 + $0x488] sm:$0xff]  }
 0x1c7   :  { %14508 = vmatprep.mubr.msk.bf16.mxu0 %vm319_vm0, %v16334_v47  ;;  %14772 = vmatprep.mubr.msk.bf16.mxu1 %vm319_vm0, %v16335_v49  ;;  %v16397_v47 = vld [vmem:[%s20886_s0 + $0x580] sm:$0xff]   ;;  %v16400_v49 = vld [vmem:[%s20886_s0 + $0x490] sm:$0xff]  }
 0x1ce   :  { %14509 = vmatmul.mubr.msk.bf16.gmra.mrb[36].mxu0 %vm319_vm0, %v16336_v50  ;;  %14773 = vmatmul.mubr.msk.bf16.gmra.mrb[36].mxu1 %vm319_vm0, %v16337_v52  ;;  %v16399_v50 = vld [vmem:[%s20886_s0 + $0x588] sm:$0xff]   ;;  %v16402_v52 = vld [vmem:[%s20886_s0 + $0x498] sm:$0xff]  }
 0x1cf   :  { %14512 = vmatprep.mubr.msk.bf16.mxu0 %vm319_vm0, %v16338_v51  ;;  %14776 = vmatprep.mubr.msk.bf16.mxu1 %vm319_vm0, %v16339_v53  ;;  %v16401_v51 = vld [vmem:[%s20886_s0 + $0x590] sm:$0xff]   ;;  %v16404_v53 = vld [vmem:[%s20886_s0 + $0x4a0] sm:$0xff]  }
 0x1d6   :  { %14513 = vmatmul.mubr.msk.bf16.gmra.mrb[40].mxu0 %vm319_vm0, %v16340_v54  ;;  %14777 = vmatmul.mubr.msk.bf16.gmra.mrb[40].mxu1 %vm319_vm0, %v16341_v56  ;;  %v16403_v54 = vld [vmem:[%s20886_s0 + $0x598] sm:$0xff]   ;;  %v16406_v56 = vld [vmem:[%s20886_s0 + $0x4a8] sm:$0xff]  }
 0x1d7   :  { %14516 = vmatprep.mubr.msk.bf16.mxu0 %vm319_vm0, %v16342_v55  ;;  %14780 = vmatprep.mubr.msk.bf16.mxu1 %vm319_vm0, %v16343_v57  ;;  %v16405_v55 = vld [vmem:[%s20886_s0 + $0x5a0] sm:$0xff]   ;;  %v16408_v57 = vld [vmem:[%s20886_s0 + $0x4b0] sm:$0xff]  }
 0x1de   :  { %14517 = vmatmul.mubr.msk.bf16.gmra.mrb[44].mxu0 %vm319_vm0, %v16344_v58  ;;  %14781 = vmatmul.mubr.msk.bf16.gmra.mrb[44].mxu1 %vm319_vm0, %v16345_v60  ;;  %v16407_v58 = vld [vmem:[%s20886_s0 + $0x5a8] sm:$0xff]   ;;  %v18455_v60 = vld [vmem:[%s20887_s2] ss:$0 sm:$0xff] }
 0x1df   :  { %14520 = vmatprep.mubr.msk.bf16.mxu0 %vm319_vm0, %v16346_v59  ;;  %14784 = vmatprep.mubr.msk.bf16.mxu1 %vm319_vm0, %v16347_v61  ;;  %v16409_v59 = vld [vmem:[%s20886_s0 + $0x5b0] sm:$0xff]  }
 0x1e6   :  { %14521 = vmatmul.mubr.msk.bf16.gmra.mrb[48].mxu0 %vm319_vm0, %v16348_v62  ;;  %14785 = vmatmul.mubr.msk.bf16.gmra.mrb[48].mxu1 %vm319_vm0, %v16349_v0  ;;  %v18462_v62 = vld [vmem:[%s20888_s3] ss:$0 sm:$0xff] }
 0x1e7   :  { %14524 = vmatprep.mubr.msk.bf16.mxu0 %vm319_vm0, %v16350_v63  ;;  %14788 = vmatprep.mubr.msk.bf16.mxu1 %vm319_vm0, %v16351_v1  ;;  %v16410_v1 = vld [vmem:[%s20886_s0 + $0x4b8] sm:$0xff]  }
 0x1ee   :  { %14525 = vmatmul.mubr.msk.bf16.gmra.mrb[52].mxu0 %vm319_vm0, %v16352_v2  ;;  %14789 = vmatmul.mubr.msk.bf16.gmra.mrb[52].mxu1 %vm319_vm0, %v16353_v4 }
 0x1ef   :  { %14528 = vmatprep.mubr.msk.bf16.mxu0 %vm319_vm0, %v16354_v3  ;;  %14792 = vmatprep.mubr.msk.bf16.mxu1 %vm319_vm0, %v16355_v5  ;;  %v16412_v5 = vld [vmem:[%s20886_s0 + $0x4c0] sm:$0xff]  }
 0x1f6   :  { %14529 = vmatmul.mubr.msk.bf16.gmra.mrb[56].mxu0 %vm319_vm0, %v16356_v6  ;;  %14793 = vmatmul.mubr.msk.bf16.gmra.mrb[56].mxu1 %vm319_vm0, %v16357_v8 }
 0x1f7   :  { %14532 = vmatprep.mubr.msk.bf16.mxu0 %vm319_vm0, %v16358_v7  ;;  %14796 = vmatprep.mubr.msk.bf16.mxu1 %vm319_vm0, %v16359_v9 }
 0x1fe   :  { %14533 = vmatmul.mubr.msk.bf16.gmra.mrb[60].mxu0 %vm319_vm0, %v16360_v10  ;;  %14797 = vmatmul.mubr.msk.bf16.gmra.mrb[60].mxu1 %vm319_vm0, %v16361_v12 }
 0x1ff   :  { %14802 = vmatprep.mubr.msk.bf16.mxu0 %vm319_vm0, %v16362_v11  ;;  %15066 = vmatprep.mubr.msk.bf16.mxu1 %vm319_vm0, %v16363_v14  ;;  %v16411_v11 = vld [vmem:[%s20886_s0 + $0x5b8] sm:$0xff]  }
 0x206   :  { %14803 = vmatmul.mubr.msk.bf16.vlgmr.msra.gmra.mrb[64].mxu0 %vm319_vm0, %v16364_v13  ;;  %15067 = vmatmul.mubr.msk.bf16.vlgmr.msra.gmra.mrb[64].mxu1 %vm319_vm0, %v16366_v20  ;;  %v16413_v20 = vld [vmem:[%s20886_s0 + $0x5c0] sm:$0xff]  }
 0x207   :  { %14867 = vmatpush3.bf16.msra.mxu0 %v18011_v19  ;;  %14806 = vmatprep.mubr.msk.bf16.mxu0 %vm319_vm0, %v16368_v18  ;;  %v16371_v19 = vld [vmem:[%s20886_s0 + $0x518] sm:$0xff]  }
 0x208   :  { %15131 = vmatpush3.bf16.msra.mxu1 %v18020_v15  ;;  %15070 = vmatprep.mubr.msk.bf16.mxu1 %vm319_vm0, %v16369_v16  ;;  %v16374_v15 = vld [vmem:[%s20886_s0 + $0x428] sm:$0xff]  }
 0x209   :  { %14932 = vmatprep.subr.bf16.mxu0 %v18317_v26  ;;  %15196 = vmatprep.subr.bf16.mxu1 %v18322_v27 }
 0x20e   :  { %14807 = vmatmul.mubr.msk.bf16.gmra.mrb[68].mxu0 %vm319_vm0, %v16370_v21  ;;  %15071 = vmatmul.mubr.msk.bf16.gmra.mrb[68].mxu1 %vm319_vm0, %v16371_v19 }
 0x20f   :  { %14810 = vmatprep.mubr.msk.bf16.mxu0 %vm319_vm0, %v16372_v17  ;;  %15074 = vmatprep.mubr.msk.bf16.mxu1 %vm319_vm0, %v16373_v22 }
 0x216   :  { %14811 = vmatmul.mubr.msk.bf16.gmra.mrb[72].mxu0 %vm319_vm0, %v16374_v15  ;;  %15075 = vmatmul.mubr.msk.bf16.gmra.mrb[72].mxu1 %vm319_vm0, %v16375_v24 }
 0x217   :  { %14814 = vmatprep.mubr.msk.bf16.mxu0 %vm319_vm0, %v16376_v23  ;;  %15078 = vmatprep.mubr.msk.bf16.mxu1 %vm319_vm0, %v16377_v25 }
 0x21e   :  { %14815 = vmatmul.mubr.msk.bf16.gmra.mrb[76].mxu0 %vm319_vm0, %v16378_v28  ;;  %15079 = vmatmul.mubr.msk.bf16.gmra.mrb[76].mxu1 %vm319_vm0, %v16379_v30 }
 0x21f   :  { %14818 = vmatprep.mubr.msk.bf16.mxu0 %vm319_vm0, %v16380_v29  ;;  %15082 = vmatprep.mubr.msk.bf16.mxu1 %vm319_vm0, %v16381_v31  ;;  %v16414_v31 = vld [vmem:[%s20886_s0 + $0x4c8] sm:$0xff]  }
 0x226   :  { %14819 = vmatmul.mubr.msk.bf16.gmra.mrb[80].mxu0 %vm319_vm0, %v16382_v32  ;;  %15083 = vmatmul.mubr.msk.bf16.gmra.mrb[80].mxu1 %vm319_vm0, %v16383_v34 }
 0x227   :  { %14822 = vmatprep.mubr.msk.bf16.mxu0 %vm319_vm0, %v16384_v33  ;;  %15086 = vmatprep.mubr.msk.bf16.mxu1 %vm319_vm0, %v16385_v35  ;;  %v16416_v35 = vld [vmem:[%s20886_s0 + $0x4d0] sm:$0xff]  }
 0x22e   :  { %14823 = vmatmul.mubr.msk.bf16.gmra.mrb[84].mxu0 %vm319_vm0, %v16386_v36  ;;  %15087 = vmatmul.mubr.msk.bf16.gmra.mrb[84].mxu1 %vm319_vm0, %v16387_v38 }
 0x22f   :  { %14826 = vmatprep.mubr.msk.bf16.mxu0 %vm319_vm0, %v16388_v37  ;;  %15090 = vmatprep.mubr.msk.bf16.mxu1 %vm319_vm0, %v16389_v39 }
 0x236   :  { %14827 = vmatmul.mubr.msk.bf16.gmra.mrb[88].mxu0 %vm319_vm0, %v16390_v40  ;;  %15091 = vmatmul.mubr.msk.bf16.gmra.mrb[88].mxu1 %vm319_vm0, %v16391_v42 }
 0x237   :  { %14830 = vmatprep.mubr.msk.bf16.mxu0 %vm319_vm0, %v16392_v41  ;;  %15094 = vmatprep.mubr.msk.bf16.mxu1 %vm319_vm0, %v16393_v43  ;;  %v16415_v41 = vld [vmem:[%s20886_s0 + $0x5c8] sm:$0xff]  }
 0x23e   :  { %14831 = vmatmul.mubr.msk.bf16.gmra.mrb[92].mxu0 %vm319_vm0, %v16394_v44  ;;  %15095 = vmatmul.mubr.msk.bf16.gmra.mrb[92].mxu1 %vm319_vm0, %v16395_v46  ;;  %v16417_v46 = vld [vmem:[%s20886_s0 + $0x5d0] sm:$0xff]  }
 0x23f   :  { %14834 = vmatprep.mubr.msk.bf16.mxu0 %vm319_vm0, %v16396_v45  ;;  %15098 = vmatprep.mubr.msk.bf16.mxu1 %vm319_vm0, %v16397_v47 }
 0x246   :  { %14835 = vmatmul.mubr.msk.bf16.gmra.mrb[96].mxu0 %vm319_vm0, %v16398_v48  ;;  %15099 = vmatmul.mubr.msk.bf16.gmra.mrb[96].mxu1 %vm319_vm0, %v16399_v50 }
 0x247   :  { %14838 = vmatprep.mubr.msk.bf16.mxu0 %vm319_vm0, %v16400_v49  ;;  %15102 = vmatprep.mubr.msk.bf16.mxu1 %vm319_vm0, %v16401_v51 }
 0x24e   :  { %14839 = vmatmul.mubr.msk.bf16.gmra.mrb[100].mxu0 %vm319_vm0, %v16402_v52  ;;  %15103 = vmatmul.mubr.msk.bf16.gmra.mrb[100].mxu1 %vm319_vm0, %v16403_v54 }
 0x24f   :  { %14842 = vmatprep.mubr.msk.bf16.mxu0 %vm319_vm0, %v16404_v53  ;;  %15106 = vmatprep.mubr.msk.bf16.mxu1 %vm319_vm0, %v16405_v55 }
 0x256   :  { %14843 = vmatmul.mubr.msk.bf16.gmra.mrb[104].mxu0 %vm319_vm0, %v16406_v56  ;;  %15107 = vmatmul.mubr.msk.bf16.gmra.mrb[104].mxu1 %vm319_vm0, %v16407_v58 }
 0x257   :  { %14846 = vmatprep.mubr.msk.bf16.mxu0 %vm319_vm0, %v16408_v57  ;;  %15110 = vmatprep.mubr.msk.bf16.mxu1 %vm319_vm0, %v16409_v59 }
 0x259   :  { %v14474_v61 = vpop.f32.mrb[0].mxu0  ;;  %v14738_v2 = vpop.f32.mrb[0].mxu1 }
 0x25a   :  { %v2631_v63 = vmul.f32 %v14474_v61, %v18455_v60  ;;  %v2303_v0 = vpop.f32.mrb[1].mxu0  ;;  %v5504_v7 = vmul.f32 %v14738_v2, %v18455_v60  ;;  %v5176_v8 = vpop.f32.mrb[1].mxu1 }
 0x25b   :  { %v2629_v3 = vmul.f32 %v18455_v60, %v2303_v0  ;;  %v14475_v4 = vpop.f32.mrb[2].mxu0  ;;  %v5502_v14 = vmul.f32 %v18455_v60, %v5176_v8  ;;  %v14739_v13 = vpop.f32.mrb[2].mxu1  ;;  %v16418_v0 = vld [vmem:[%s20886_s0 + $0x4d8] sm:$0xff]  }
 0x25c   :  { %v2702_v6 = vadd.f32 %v18462_v62, %v2631_v63  ;;  %v2632_v9 = vmul.f32 %v14475_v4, %v18455_v60  ;;  %v2306_v10 = vpop.f32.mrb[3].mxu0  ;;  %v5575_v16 = vadd.f32 %v18462_v62, %v5504_v7  ;;  %v5505_v17 = vmul.f32 %v14739_v13, %v18455_v60  ;;  %v5179_v19 = vpop.f32.mrb[3].mxu1 }
 0x25d   :  { %v2700_v12 = vadd.f32 %v18462_v62, %v2629_v3  ;;  %v2630_v18 = vmul.f32 %v18455_v60, %v2306_v10  ;;  %v5573_v22 = vadd.f32 %v18462_v62, %v5502_v14  ;;  %v5503_v15 = vmul.f32 %v18455_v60, %v5179_v19 }
 0x25e   :  { %16624 = vtanh.f32 %v2702_v6  ;;  %v2703_v21 = vadd.f32 %v18462_v62, %v2632_v9  ;;  %14847 = vmatmul.mubr.msk.bf16.gmra.mrb[108].mxu0 %vm319_vm0, %v16410_v1  ;;  %v5576_v23 = vadd.f32 %v18462_v62, %v5505_v17  ;;  %15111 = vmatmul.mubr.msk.bf16.gmra.mrb[108].mxu1 %vm319_vm0, %v16411_v11 }
 0x25f   :  { %16626 = vtanh.f32 %v2700_v12  ;;  %14850 = vmatprep.mubr.msk.bf16.mxu0 %vm319_vm0, %v16412_v5  ;;  %v2701_v24 = vadd.f32 %v18462_v62, %v2630_v18  ;;  %v5574_v25 = vadd.f32 %v18462_v62, %v5503_v15  ;;  %15114 = vmatprep.mubr.msk.bf16.mxu1 %vm319_vm0, %v16413_v20  ;;  %v16420_v5 = vld [vmem:[%s20886_s0 + $0x4e0] sm:$0xff]   ;;  %v16419_v12 = vld [vmem:[%s20886_s0 + $0x5d8] sm:$0xff]  }
 0x260   :  { %16628 = vtanh.f32 %v5575_v16 }
 0x261   :  { %16630 = vtanh.f32 %v5573_v22  ;;  %v14478_v28 = vpop.f32.mrb[4].mxu0  ;;  %v14742_v32 = vpop.f32.mrb[4].mxu1 }
 0x262   :  { %16632 = vtanh.f32 %v2703_v21  ;;  %v2635_v29 = vmul.f32 %v14478_v28, %v18455_v60  ;;  %v2319_v30 = vpop.f32.mrb[5].mxu0  ;;  %v5508_v37 = vmul.f32 %v14742_v32, %v18455_v60  ;;  %v5192_v38 = vpop.f32.mrb[5].mxu1  ;;  %v16421_v21 = vld [vmem:[%s20886_s0 + $0x5e0] sm:$0xff]  }
 0x263   :  { %16634 = vtanh.f32 %v5576_v23  ;;  %v2633_v33 = vmul.f32 %v18455_v60, %v2319_v30  ;;  %v14479_v34 = vpop.f32.mrb[6].mxu0  ;;  %v5506_v43 = vmul.f32 %v18455_v60, %v5192_v38  ;;  %v14743_v44 = vpop.f32.mrb[6].mxu1  ;;  %v16422_v38 = vld [vmem:[%s20886_s0 + $0x4e8] sm:$0xff]  }
 0x264   :  { %16636 = vtanh.f32 %v2701_v24  ;;  %v2706_v36 = vadd.f32 %v18462_v62, %v2635_v29  ;;  %v2636_v39 = vmul.f32 %v14479_v34, %v18455_v60  ;;  %v2322_v40 = vpop.f32.mrb[7].mxu0  ;;  %v5579_v47 = vadd.f32 %v18462_v62, %v5508_v37  ;;  %v5195_v50 = vpop.f32.mrb[7].mxu1 }
 0x265   :  { %16638 = vtanh.f32 %v5574_v25  ;;  %v2704_v42 = vadd.f32 %v18462_v62, %v2633_v33  ;;  %v2634_v45 = vmul.f32 %v18455_v60, %v2322_v40  ;;  %v5509_v49 = vmul.f32 %v14743_v44, %v18455_v60 }
 0x266   :  { %16640 = vtanh.f32 %v2706_v36  ;;  %v2707_v48 = vadd.f32 %v18462_v62, %v2636_v39  ;;  %14851 = vmatmul.mubr.msk.bf16.gmra.mrb[112].mxu0 %vm319_vm0, %v16414_v31  ;;  %v5577_v51 = vadd.f32 %v18462_v62, %v5506_v43  ;;  %v5507_v52 = vmul.f32 %v18455_v60, %v5195_v50  ;;  %15115 = vmatmul.mubr.msk.bf16.gmra.mrb[112].mxu1 %vm319_vm0, %v16415_v41  ;;  %v16424_v43 = vld [vmem:[%s20886_s0 + $0x4f0] sm:$0xff]   ;;  %v16423_v50 = vld [vmem:[%s20886_s0 + $0x5e8] sm:$0xff]  }
 0x267   :  { %16642 = vtanh.f32 %v2704_v42  ;;  %14854 = vmatprep.mubr.msk.bf16.mxu0 %vm319_vm0, %v16416_v35  ;;  %v5580_v54 = vadd.f32 %v18462_v62, %v5509_v49  ;;  %v2705_v55 = vadd.f32 %v18462_v62, %v2634_v45  ;;  %15118 = vmatprep.mubr.msk.bf16.mxu1 %vm319_vm0, %v16417_v46 }
 0x268   :  { %v16625_v53 = vpop.eup %16624  ;;  %16644 = vtanh.f32 %v5579_v47  ;;  %v5578_v57 = vadd.f32 %v18462_v62, %v5507_v52 }
 0x269   :  { %v16627_v56 = vpop.eup %16626  ;;  %2831 = vst.msk [vmem:[%s20889_s4 + $0x10] sm:$0xff] %vm2828_vm1, %v16625_v53  ;;  %16646 = vtanh.f32 %v5577_v51  ;;  %v14482_v58 = vpop.f32.mrb[8].mxu0 }
 0x26a   :  { %v16629_v59 = vpop.eup %16628  ;;  %2829 = vst.msk [vmem:[%s20889_s4] sm:$0xff] %vm2828_vm1, %v16627_v56  ;;  %16648 = vtanh.f32 %v2707_v48  ;;  %v2639_v61 = vmul.f32 %v14482_v58, %v18455_v60  ;;  %v2335_v63 = vpop.f32.mrb[9].mxu0  ;;  %v16425_v56 = vld [vmem:[%s20886_s0 + $0x5f0] sm:$0xff]  }
 0x26b   :  { %v16631_v1 = vpop.eup %16630  ;;  %12504 = vst.msk [vmem:[%s20889_s4 + $0x210] sm:$0xff] %vm2828_vm1, %v16629_v59  ;;  %16650 = vtanh.f32 %v5580_v54  ;;  %v14746_v2 = vpop.f32.mrb[8].mxu1  ;;  %v2637_v3 = vmul.f32 %v18455_v60, %v2335_v63 }
 0x26c   :  { %v14483_v4 = vpop.f32.mrb[10].mxu0  ;;  %v16633_v6 = vpop.eup %16632  ;;  %12502 = vst.msk [vmem:[%s20889_s4 + $0x200] sm:$0xff] %vm2828_vm1, %v16631_v1  ;;  %16652 = vtanh.f32 %v2705_v55  ;;  %v2710_v7 = vadd.f32 %v18462_v62, %v2639_v61  ;;  %v5512_v8 = vmul.f32 %v14746_v2, %v18455_v60 }
 0x26d   :  { %v5208_v9 = vpop.f32.mrb[9].mxu1  ;;  %v2640_v10 = vmul.f32 %v14483_v4, %v18455_v60  ;;  %v2338_v11 = vpop.f32.mrb[11].mxu0  ;;  %2832 = vst.msk [vmem:[%s20889_s4 + $0x18] sm:$0xff] %vm2828_vm1, %v16633_v6  ;;  %16654 = vtanh.f32 %v5578_v57  ;;  %v2708_v13 = vadd.f32 %v18462_v62, %v2637_v3 }
 0x26e   :  { %v16635_v14 = vpop.eup %16634  ;;  %v5510_v18 = vmul.f32 %v18455_v60, %v5208_v9  ;;  %v14747_v20 = vpop.f32.mrb[10].mxu1  ;;  %v2638_v16 = vmul.f32 %v18455_v60, %v2338_v11  ;;  %16656 = vtanh.f32 %v2710_v7  ;;  %v5583_v19 = vadd.f32 %v18462_v62, %v5512_v8  ;;  %14855 = vmatmul.mubr.msk.bf16.gmra.mrb[116].mxu0 %vm319_vm0, %v16418_v0  ;;  %15119 = vmatmul.mubr.msk.bf16.gmra.mrb[116].mxu1 %vm319_vm0, %v16419_v12  ;;  %v16426_v12 = vld [vmem:[%s20886_s0 + $0x4f8] sm:$0xff]  }
 0x26f   :  { %v16637_v17 = vpop.eup %16636  ;;  %12505 = vst.msk [vmem:[%s20889_s4 + $0x218] sm:$0xff] %vm2828_vm1, %v16635_v14  ;;  %v2711_v22 = vadd.f32 %v18462_v62, %v2640_v10  ;;  %v5513_v15 = vmul.f32 %v14747_v20, %v18455_v60  ;;  %v5211_v23 = vpop.f32.mrb[11].mxu1  ;;  %16658 = vtanh.f32 %v2708_v13  ;;  %14858 = vmatprep.mubr.msk.bf16.mxu0 %vm319_vm0, %v16420_v5  ;;  %15122 = vmatprep.mubr.msk.bf16.mxu1 %vm319_vm0, %v16421_v21 }
 0x270   :  { %v16639_v24 = vpop.eup %16638  ;;  %2830 = vst.msk [vmem:[%s20889_s4 + $0x8] sm:$0xff] %vm2828_vm1, %v16637_v17  ;;  %v5581_v25 = vadd.f32 %v18462_v62, %v5510_v18  ;;  %v5511_v28 = vmul.f32 %v18455_v60, %v5211_v23  ;;  %16660 = vtanh.f32 %v5583_v19  ;;  %v2709_v31 = vadd.f32 %v18462_v62, %v2638_v16  ;;  %v16428_v16 = vld [vmem:[%s20886_s0 + $0x300] sm:$0xff]  }
 0x271   :  { %v16641_v29 = vpop.eup %16640  ;;  %12503 = vst.msk [vmem:[%s20889_s4 + $0x208] sm:$0xff] %vm2828_vm1, %v16639_v24  ;;  %v5584_v30 = vadd.f32 %v18462_v62, %v5513_v15  ;;  %v14486_v34 = vpop.f32.mrb[12].mxu0  ;;  %v16427_v24 = vld [vmem:[%s20886_s0 + $0x5f8] sm:$0xff]  }
 0x272   :  { %v16643_v32 = vpop.eup %16642  ;;  %2835 = vst.msk [vmem:[%s20889_s4 + $0x30] sm:$0xff] %vm2828_vm1, %v16641_v29  ;;  %16662 = vtanh.f32 %v5581_v25  ;;  %v5582_v33 = vadd.f32 %v18462_v62, %v5511_v28  ;;  %v2643_v36 = vmul.f32 %v14486_v34, %v18455_v60  ;;  %v2351_v37 = vpop.f32.mrb[13].mxu0 }
 0x273   :  { %v16645_v35 = vpop.eup %16644  ;;  %2833 = vst.msk [vmem:[%s20889_s4 + $0x20] sm:$0xff] %vm2828_vm1, %v16643_v32  ;;  %16664 = vtanh.f32 %v2711_v22  ;;  %v14750_v40 = vpop.f32.mrb[12].mxu1  ;;  %v2641_v41 = vmul.f32 %v18455_v60, %v2351_v37  ;;  %v16429_v32 = vld [vmem:[%s20886_s0 + $0x400] sm:$0xff]  }
 0x274   :  { %v16647_v39 = vpop.eup %16646  ;;  %12508 = vst.msk [vmem:[%s20889_s4 + $0x230] sm:$0xff] %vm2828_vm1, %v16645_v35  ;;  %16666 = vtanh.f32 %v5584_v30  ;;  %v14487_v42 = vpop.f32.mrb[14].mxu0  ;;  %v2714_v45 = vadd.f32 %v18462_v62, %v2643_v36  ;;  %v5516_v46 = vmul.f32 %v14750_v40, %v18455_v60 }
 0x275   :  { %v16649_v44 = vpop.eup %16648  ;;  %12506 = vst.msk [vmem:[%s20889_s4 + $0x220] sm:$0xff] %vm2828_vm1, %v16647_v39  ;;  %16668 = vtanh.f32 %v2709_v31  ;;  %v5224_v47 = vpop.f32.mrb[13].mxu1  ;;  %v2644_v48 = vmul.f32 %v14487_v42, %v18455_v60  ;;  %v2712_v52 = vadd.f32 %v18462_v62, %v2641_v41 }
 0x276   :  { %v2354_v49 = vpop.f32.mrb[15].mxu0  ;;  %v16651_v51 = vpop.eup %16650  ;;  %2836 = vst.msk [vmem:[%s20889_s4 + $0x38] sm:$0xff] %vm2828_vm1, %v16649_v44  ;;  %16670 = vtanh.f32 %v5582_v33  ;;  %v5514_v53 = vmul.f32 %v18455_v60, %v5224_v47  ;;  %v5587_v58 = vadd.f32 %v18462_v62, %v5516_v46  ;;  %14859 = vmatmul.mubr.msk.bf16.gmra.mrb[120].mxu0 %vm319_vm0, %v16422_v38  ;;  %15123 = vmatmul.mubr.msk.bf16.gmra.mrb[120].mxu1 %vm319_vm0, %v16423_v50  ;;  %v16430_v50 = vld [vmem:[%s20886_s0 + $0x308] sm:$0xff]  }
 0x277   :  { %v14751_v54 = vpop.f32.mrb[14].mxu1  ;;  %v2642_v55 = vmul.f32 %v18455_v60, %v2354_v49  ;;  %v16653_v57 = vpop.eup %16652  ;;  %12509 = vst.msk [vmem:[%s20889_s4 + $0x238] sm:$0xff] %vm2828_vm1, %v16651_v51  ;;  %16672 = vtanh.f32 %v2714_v45  ;;  %v2715_v59 = vadd.f32 %v18462_v62, %v2644_v48  ;;  %14862 = vmatprep.mubr.msk.bf16.mxu0 %vm319_vm0, %v16424_v43  ;;  %15126 = vmatprep.mubr.msk.bf16.mxu1 %vm319_vm0, %v16425_v56 }
 0x278   :  { %v5517_v61 = vmul.f32 %v14751_v54, %v18455_v60  ;;  %v5227_v63 = vpop.f32.mrb[15].mxu1  ;;  %v16655_v0 = vpop.eup %16654  ;;  %2834 = vst.msk [vmem:[%s20889_s4 + $0x28] sm:$0xff] %vm2828_vm1, %v16653_v57  ;;  %16674 = vtanh.f32 %v2712_v52  ;;  %v5585_v1 = vadd.f32 %v18462_v62, %v5514_v53 }
 0x279   :  { %v5515_v2 = vmul.f32 %v18455_v60, %v5227_v63  ;;  %v16657_v3 = vpop.eup %16656  ;;  %12507 = vst.msk [vmem:[%s20889_s4 + $0x228] sm:$0xff] %vm2828_vm1, %v16655_v0  ;;  %16676 = vtanh.f32 %v5587_v58  ;;  %v2713_v5 = vadd.f32 %v18462_v62, %v2642_v55  ;;  %v14490_v8 = vpop.f32.mrb[16].mxu0  ;;  %v16434_v55 = vld [vmem:[%s20886_s0 + $0x310] sm:$0xff]   ;;  %v16432_v0 = vld [vmem:[%s20886_s0 + $0x408] sm:$0xff]  }
 0x27a   :  { %v5588_v4 = vadd.f32 %v18462_v62, %v5517_v61  ;;  %v16659_v6 = vpop.eup %16658  ;;  %2839 = vst.msk [vmem:[%s20889_s4 + $0x50] sm:$0xff] %vm2828_vm1, %v16657_v3  ;;  %16678 = vtanh.f32 %v5585_v1  ;;  %v2647_v10 = vmul.f32 %v14490_v8, %v18455_v60  ;;  %v2367_v11 = vpop.f32.mrb[17].mxu0 }
 0x27b   :  { %v5586_v7 = vadd.f32 %v18462_v62, %v5515_v2  ;;  %v16661_v9 = vpop.eup %16660  ;;  %2837 = vst.msk [vmem:[%s20889_s4 + $0x40] sm:$0xff] %vm2828_vm1, %v16659_v6  ;;  %16680 = vtanh.f32 %v2715_v59  ;;  %v14754_v13 = vpop.f32.mrb[16].mxu1  ;;  %v2645_v18 = vmul.f32 %v18455_v60, %v2367_v11  ;;  %v16435_v6 = vld [vmem:[%s20886_s0 + $0x410] sm:$0xff]  }
 0x27c   :  { %v16663_v14 = vpop.eup %16662  ;;  %12512 = vst.msk [vmem:[%s20889_s4 + $0x250] sm:$0xff] %vm2828_vm1, %v16661_v9  ;;  %16682 = vtanh.f32 %v5588_v4  ;;  %v14491_v20 = vpop.f32.mrb[18].mxu0  ;;  %v2718_v17 = vadd.f32 %v18462_v62, %v2647_v10  ;;  %v5520_v19 = vmul.f32 %v14754_v13, %v18455_v60 }
 0x27d   :  { %v16665_v21 = vpop.eup %16664  ;;  %12510 = vst.msk [vmem:[%s20889_s4 + $0x240] sm:$0xff] %vm2828_vm1, %v16663_v14  ;;  %16684 = vtanh.f32 %v2713_v5  ;;  %v5240_v22 = vpop.f32.mrb[17].mxu1  ;;  %v2648_v15 = vmul.f32 %v14491_v20, %v18455_v60  ;;  %v2716_v28 = vadd.f32 %v18462_v62, %v2645_v18 }
 0x27e   :  { %v2370_v23 = vpop.f32.mrb[19].mxu0  ;;  %v16667_v25 = vpop.eup %16666  ;;  %2840 = vst.msk [vmem:[%s20889_s4 + $0x58] sm:$0xff] %vm2828_vm1, %v16665_v21  ;;  %16686 = vtanh.f32 %v5586_v7  ;;  %v5518_v29 = vmul.f32 %v18455_v60, %v5240_v22  ;;  %v5591_v34 = vadd.f32 %v18462_v62, %v5520_v19  ;;  %14863 = vmatmul.mubr.msk.bf16.gmra.mrb[124].mxu0 %vm319_vm0, %v16426_v12  ;;  %15127 = vmatmul.mubr.msk.bf16.gmra.mrb[124].mxu1 %vm319_vm0, %v16427_v24  ;;  %v16497_v12 = vld [vmem:[%s20885_s1 + $0x8] sm:$0xff]  }
 0x27f   :  { %v14755_v30 = vpop.f32.mrb[18].mxu1  ;;  %v2646_v31 = vmul.f32 %v18455_v60, %v2370_v23  ;;  %v16669_v33 = vpop.eup %16668  ;;  %12513 = vst.msk [vmem:[%s20889_s4 + $0x258] sm:$0xff] %vm2828_vm1, %v16667_v25  ;;  %16688 = vtanh.f32 %v2718_v17  ;;  %v2719_v35 = vadd.f32 %v18462_v62, %v2648_v15  ;;  %14868 = vmatprep.mubr.msk.bf16.mxu0 %vm319_vm0, %v16428_v16  ;;  %15132 = vmatprep.mubr.msk.bf16.mxu1 %vm319_vm0, %v16429_v32  ;;  %v16436_v25 = vld [vmem:[%s20886_s0 + $0x318] sm:$0xff]  }
 0x280   :  { %v5521_v36 = vmul.f32 %v14755_v30, %v18455_v60  ;;  %v5243_v37 = vpop.f32.mrb[19].mxu1  ;;  %v16671_v38 = vpop.eup %16670  ;;  %2838 = vst.msk [vmem:[%s20889_s4 + $0x48] sm:$0xff] %vm2828_vm1, %v16669_v33  ;;  %16690 = vtanh.f32 %v2716_v28  ;;  %v5589_v39 = vadd.f32 %v18462_v62, %v5518_v29 }
 0x281   :  { %v5519_v40 = vmul.f32 %v18455_v60, %v5243_v37  ;;  %v16673_v41 = vpop.eup %16672  ;;  %12511 = vst.msk [vmem:[%s20889_s4 + $0x248] sm:$0xff] %vm2828_vm1, %v16671_v38  ;;  %16692 = vtanh.f32 %v5591_v34  ;;  %v2717_v43 = vadd.f32 %v18462_v62, %v2646_v31  ;;  %v14494_v46 = vpop.f32.mrb[20].mxu0  ;;  %v16438_v31 = vld [vmem:[%s20886_s0 + $0x320] sm:$0xff]   ;;  %v16437_v38 = vld [vmem:[%s20886_s0 + $0x418] sm:$0xff]  }
 0x282   :  { %v5592_v42 = vadd.f32 %v18462_v62, %v5521_v36  ;;  %v16675_v44 = vpop.eup %16674  ;;  %2843 = vst.msk [vmem:[%s20889_s4 + $0x70] sm:$0xff] %vm2828_vm1, %v16673_v41  ;;  %16694 = vtanh.f32 %v5589_v39  ;;  %v2651_v48 = vmul.f32 %v14494_v46, %v18455_v60  ;;  %v2383_v49 = vpop.f32.mrb[21].mxu0 }
 0x283   :  { %v5590_v45 = vadd.f32 %v18462_v62, %v5519_v40  ;;  %v16677_v47 = vpop.eup %16676  ;;  %2841 = vst.msk [vmem:[%s20889_s4 + $0x60] sm:$0xff] %vm2828_vm1, %v16675_v44  ;;  %16696 = vtanh.f32 %v2719_v35  ;;  %v14758_v52 = vpop.f32.mrb[20].mxu1  ;;  %v2649_v53 = vmul.f32 %v18455_v60, %v2383_v49  ;;  %v16439_v44 = vld [vmem:[%s20886_s0 + $0x420] sm:$0xff]  }
 0x284   :  { %v16679_v51 = vpop.eup %16678  ;;  %12516 = vst.msk [vmem:[%s20889_s4 + $0x270] sm:$0xff] %vm2828_vm1, %v16677_v47  ;;  %16698 = vtanh.f32 %v5592_v42  ;;  %v14495_v54 = vpop.f32.mrb[22].mxu0  ;;  %v2722_v57 = vadd.f32 %v18462_v62, %v2651_v48  ;;  %v5524_v58 = vmul.f32 %v14758_v52, %v18455_v60 }
 0x285   :  { %v16681_v56 = vpop.eup %16680  ;;  %12514 = vst.msk [vmem:[%s20889_s4 + $0x260] sm:$0xff] %vm2828_vm1, %v16679_v51  ;;  %16700 = vtanh.f32 %v2717_v43  ;;  %v5256_v59 = vpop.f32.mrb[21].mxu1  ;;  %v2652_v61 = vmul.f32 %v14495_v54, %v18455_v60  ;;  %v2720_v2 = vadd.f32 %v18462_v62, %v2649_v53 }
 0x286   :  { %v2386_v63 = vpop.f32.mrb[23].mxu0  ;;  %v16683_v1 = vpop.eup %16682  ;;  %2844 = vst.msk [vmem:[%s20889_s4 + $0x78] sm:$0xff] %vm2828_vm1, %v16681_v56  ;;  %16702 = vtanh.f32 %v5590_v45  ;;  %v5522_v3 = vmul.f32 %v18455_v60, %v5256_v59  ;;  %v5595_v8 = vadd.f32 %v18462_v62, %v5524_v58  ;;  %14869 = vmatmul.mubr.msk.bf16.vlgmr.msra.gmra.mrb[64].mxu0 %vm319_vm0, %v16430_v50  ;;  %15133 = vmatmul.mubr.msk.bf16.vlgmr.msra.gmra.mrb[64].mxu1 %vm319_vm0, %v16432_v0  ;;  %v16440_v0 = vld [vmem:[%s20886_s0 + $0x328] sm:$0xff]  }
 0x287   :  { %v14759_v4 = vpop.f32.mrb[22].mxu1  ;;  %v2650_v5 = vmul.f32 %v18455_v60, %v2386_v63  ;;  %v16685_v7 = vpop.eup %16684  ;;  %12517 = vst.msk [vmem:[%s20889_s4 + $0x278] sm:$0xff] %vm2828_vm1, %v16683_v1  ;;  %16704 = vtanh.f32 %v2722_v57  ;;  %v2723_v9 = vadd.f32 %v18462_v62, %v2652_v61  ;;  %14933 = vmatpush3.bf16.msra.mxu0 %v18317_v26  ;;  %14872 = vmatprep.mubr.msk.bf16.mxu0 %vm319_vm0, %v16434_v55  ;;  %v16499_v26 = vld [vmem:[%s20885_s1] sm:$0xff]  }
 0x288   :  { %v5525_v10 = vmul.f32 %v14759_v4, %v18455_v60  ;;  %v5259_v11 = vpop.f32.mrb[23].mxu1  ;;  %v16687_v14 = vpop.eup %16686  ;;  %2842 = vst.msk [vmem:[%s20889_s4 + $0x68] sm:$0xff] %vm2828_vm1, %v16685_v7  ;;  %16706 = vtanh.f32 %v2720_v2  ;;  %v5593_v13 = vadd.f32 %v18462_v62, %v5522_v3  ;;  %14998 = vmatprep.subr.bf16.mxu0 %v16497_v12  ;;  %15197 = vmatpush3.bf16.msra.mxu1 %v18322_v27  ;;  %v16441_v12 = vld [vmem:[%s20886_s0 + $0x428] sm:$0xff]  }
 0x289   :  { %v5523_v18 = vmul.f32 %v18455_v60, %v5259_v11  ;;  %v16689_v20 = vpop.eup %16688  ;;  %12515 = vst.msk [vmem:[%s20889_s4 + $0x268] sm:$0xff] %vm2828_vm1, %v16687_v14  ;;  %16708 = vtanh.f32 %v5595_v8  ;;  %v2721_v21 = vadd.f32 %v18462_v62, %v2650_v5  ;;  %v14498_v22 = vpop.f32.mrb[24].mxu0  ;;  %15136 = vmatprep.mubr.msk.bf16.mxu1 %vm319_vm0, %v16435_v6  ;;  %15262 = vmatprep.subr.bf16.mxu1 %v16499_v26  ;;  %v16442_v5 = vld [vmem:[%s20886_s0 + $0x330] sm:$0xff]  }
 0x28a   :  { %v5596_v16 = vadd.f32 %v18462_v62, %v5525_v10  ;;  %v16691_v17 = vpop.eup %16690  ;;  %2847 = vst.msk [vmem:[%s20889_s4 + $0x90] sm:$0xff] %vm2828_vm1, %v16689_v20  ;;  %16710 = vtanh.f32 %v5593_v13  ;;  %v2655_v23 = vmul.f32 %v14498_v22, %v18455_v60  ;;  %v2399_v24 = vpop.f32.mrb[25].mxu0 }
 0x28b   :  { %v5594_v19 = vadd.f32 %v18462_v62, %v5523_v18  ;;  %v16693_v15 = vpop.eup %16692  ;;  %2845 = vst.msk [vmem:[%s20889_s4 + $0x80] sm:$0xff] %vm2828_vm1, %v16691_v17  ;;  %16712 = vtanh.f32 %v2723_v9  ;;  %v14762_v27 = vpop.f32.mrb[24].mxu1  ;;  %v2653_v29 = vmul.f32 %v18455_v60, %v2399_v24 }
 0x28c   :  { %v16695_v28 = vpop.eup %16694  ;;  %12520 = vst.msk [vmem:[%s20889_s4 + $0x290] sm:$0xff] %vm2828_vm1, %v16693_v15  ;;  %16714 = vtanh.f32 %v5596_v16  ;;  %v14499_v30 = vpop.f32.mrb[26].mxu0  ;;  %v2726_v33 = vadd.f32 %v18462_v62, %v2655_v23  ;;  %v5528_v34 = vmul.f32 %v14762_v27, %v18455_v60 }
 0x28d   :  { %v16697_v32 = vpop.eup %16696  ;;  %12518 = vst.msk [vmem:[%s20889_s4 + $0x280] sm:$0xff] %vm2828_vm1, %v16695_v28  ;;  %16716 = vtanh.f32 %v2721_v21  ;;  %v5272_v35 = vpop.f32.mrb[25].mxu1  ;;  %v2656_v36 = vmul.f32 %v14499_v30, %v18455_v60  ;;  %v2724_v40 = vadd.f32 %v18462_v62, %v2653_v29  ;;  %v16443_v21 = vld [vmem:[%s20886_s0 + $0x430] sm:$0xff]  }
 0x28e   :  { %v2402_v37 = vpop.f32.mrb[27].mxu0  ;;  %v16699_v39 = vpop.eup %16698  ;;  %2848 = vst.msk [vmem:[%s20889_s4 + $0x98] sm:$0xff] %vm2828_vm1, %v16697_v32  ;;  %16718 = vtanh.f32 %v5594_v19  ;;  %v5526_v41 = vmul.f32 %v18455_v60, %v5272_v35  ;;  %v5599_v46 = vadd.f32 %v18462_v62, %v5528_v34  ;;  %14873 = vmatmul.mubr.msk.bf16.gmra.mrb[68].mxu0 %vm319_vm0, %v16436_v25  ;;  %15137 = vmatmul.mubr.msk.bf16.gmra.mrb[68].mxu1 %vm319_vm0, %v16437_v38 }
 0x28f   :  { %v14763_v42 = vpop.f32.mrb[26].mxu1  ;;  %v2654_v43 = vmul.f32 %v18455_v60, %v2402_v37  ;;  %v16701_v45 = vpop.eup %16700  ;;  %12521 = vst.msk [vmem:[%s20889_s4 + $0x298] sm:$0xff] %vm2828_vm1, %v16699_v39  ;;  %16720 = vtanh.f32 %v2726_v33  ;;  %v2727_v47 = vadd.f32 %v18462_v62, %v2656_v36  ;;  %14876 = vmatprep.mubr.msk.bf16.mxu0 %vm319_vm0, %v16438_v31  ;;  %15140 = vmatprep.mubr.msk.bf16.mxu1 %vm319_vm0, %v16439_v44  ;;  %v16444_v36 = vld [vmem:[%s20886_s0 + $0x338] sm:$0xff]  }
 0x290   :  { %v5529_v48 = vmul.f32 %v14763_v42, %v18455_v60  ;;  %v5275_v49 = vpop.f32.mrb[27].mxu1  ;;  %v16703_v50 = vpop.eup %16702  ;;  %2846 = vst.msk [vmem:[%s20889_s4 + $0x88] sm:$0xff] %vm2828_vm1, %v16701_v45  ;;  %16722 = vtanh.f32 %v2724_v40  ;;  %v5597_v51 = vadd.f32 %v18462_v62, %v5526_v41  ;;  %v16446_v41 = vld [vmem:[%s20886_s0 + $0x340] sm:$0xff]  }
 0x291   :  { %v5527_v52 = vmul.f32 %v18455_v60, %v5275_v49  ;;  %v16705_v53 = vpop.eup %16704  ;;  %12519 = vst.msk [vmem:[%s20889_s4 + $0x288] sm:$0xff] %vm2828_vm1, %v16703_v50  ;;  %16724 = vtanh.f32 %v5599_v46  ;;  %v2725_v55 = vadd.f32 %v18462_v62, %v2654_v43  ;;  %v14502_v58 = vpop.f32.mrb[28].mxu0 }
 0x292   :  { %v5600_v54 = vadd.f32 %v18462_v62, %v5529_v48  ;;  %v16707_v56 = vpop.eup %16706  ;;  %2851 = vst.msk [vmem:[%s20889_s4 + $0xb0] sm:$0xff] %vm2828_vm1, %v16705_v53  ;;  %16726 = vtanh.f32 %v5597_v51  ;;  %v2659_v61 = vmul.f32 %v14502_v58, %v18455_v60  ;;  %v2415_v63 = vpop.f32.mrb[29].mxu0  ;;  %v16445_v48 = vld [vmem:[%s20886_s0 + $0x438] sm:$0xff]  }
 0x293   :  { %v5598_v57 = vadd.f32 %v18462_v62, %v5527_v52  ;;  %v16709_v59 = vpop.eup %16708  ;;  %2849 = vst.msk [vmem:[%s20889_s4 + $0xa0] sm:$0xff] %vm2828_vm1, %v16707_v56  ;;  %16728 = vtanh.f32 %v2727_v47  ;;  %v14766_v2 = vpop.f32.mrb[28].mxu1  ;;  %v2657_v3 = vmul.f32 %v18455_v60, %v2415_v63 }
 0x294   :  { %v16711_v1 = vpop.eup %16710  ;;  %12524 = vst.msk [vmem:[%s20889_s4 + $0x2b0] sm:$0xff] %vm2828_vm1, %v16709_v59  ;;  %16730 = vtanh.f32 %v5600_v54  ;;  %v14503_v4 = vpop.f32.mrb[30].mxu0  ;;  %v2730_v7 = vadd.f32 %v18462_v62, %v2659_v61  ;;  %v5532_v8 = vmul.f32 %v14766_v2, %v18455_v60  ;;  %v16447_v54 = vld [vmem:[%s20886_s0 + $0x440] sm:$0xff]  }
 0x295   :  { %v16713_v6 = vpop.eup %16712  ;;  %12522 = vst.msk [vmem:[%s20889_s4 + $0x2a0] sm:$0xff] %vm2828_vm1, %v16711_v1  ;;  %16732 = vtanh.f32 %v2725_v55  ;;  %v5288_v9 = vpop.f32.mrb[29].mxu1  ;;  %v2660_v10 = vmul.f32 %v14503_v4, %v18455_v60  ;;  %v2728_v13 = vadd.f32 %v18462_v62, %v2657_v3 }
 0x296   :  { %v2418_v11 = vpop.f32.mrb[31].mxu0  ;;  %v16715_v14 = vpop.eup %16714  ;;  %2852 = vst.msk [vmem:[%s20889_s4 + $0xb8] sm:$0xff] %vm2828_vm1, %v16713_v6  ;;  %16734 = vtanh.f32 %v5598_v57  ;;  %v5530_v18 = vmul.f32 %v18455_v60, %v5288_v9  ;;  %v5603_v17 = vadd.f32 %v18462_v62, %v5532_v8  ;;  %14877 = vmatmul.mubr.msk.bf16.gmra.mrb[72].mxu0 %vm319_vm0, %v16440_v0  ;;  %15141 = vmatmul.mubr.msk.bf16.gmra.mrb[72].mxu1 %vm319_vm0, %v16441_v12 }
 0x297   :  { %v14767_v20 = vpop.f32.mrb[30].mxu1  ;;  %v2658_v16 = vmul.f32 %v18455_v60, %v2418_v11  ;;  %v16717_v26 = vpop.eup %16716  ;;  %12525 = vst.msk [vmem:[%s20889_s4 + $0x2b8] sm:$0xff] %vm2828_vm1, %v16715_v14  ;;  %16736 = vtanh.f32 %v2730_v7  ;;  %v2731_v19 = vadd.f32 %v18462_v62, %v2660_v10  ;;  %14880 = vmatprep.mubr.msk.bf16.mxu0 %vm319_vm0, %v16442_v5  ;;  %15144 = vmatprep.mubr.msk.bf16.mxu1 %vm319_vm0, %v16443_v21  ;;  %v16448_v10 = vld [vmem:[%s20886_s0 + $0x348] sm:$0xff]  }
 0x298   :  { %v5533_v22 = vmul.f32 %v14767_v20, %v18455_v60  ;;  %v5291_v15 = vpop.f32.mrb[31].mxu1  ;;  %v16719_v23 = vpop.eup %16718  ;;  %2850 = vst.msk [vmem:[%s20889_s4 + $0xa8] sm:$0xff] %vm2828_vm1, %v16717_v26  ;;  %16738 = vtanh.f32 %v2728_v13  ;;  %v5601_v24 = vadd.f32 %v18462_v62, %v5530_v18  ;;  %v16450_v18 = vld [vmem:[%s20886_s0 + $0x350] sm:$0xff]  }
 0x299   :  { %v5531_v25 = vmul.f32 %v18455_v60, %v5291_v15  ;;  %v16721_v28 = vpop.eup %16720  ;;  %12523 = vst.msk [vmem:[%s20889_s4 + $0x2a8] sm:$0xff] %vm2828_vm1, %v16719_v23  ;;  %16740 = vtanh.f32 %v5603_v17  ;;  %v2729_v29 = vadd.f32 %v18462_v62, %v2658_v16  ;;  %v14506_v32 = vpop.f32.mrb[32].mxu0 }
 0x29a   :  { %v5604_v27 = vadd.f32 %v18462_v62, %v5533_v22  ;;  %v16723_v30 = vpop.eup %16722  ;;  %2855 = vst.msk [vmem:[%s20889_s4 + $0xd0] sm:$0xff] %vm2828_vm1, %v16721_v28  ;;  %16742 = vtanh.f32 %v5601_v24  ;;  %v2663_v34 = vmul.f32 %v14506_v32, %v18455_v60  ;;  %v2431_v35 = vpop.f32.mrb[33].mxu0  ;;  %v16449_v22 = vld [vmem:[%s20886_s0 + $0x448] sm:$0xff]   ;;  %v19024_v28 = vld [vmem:[%s20887_s2] ss:$0 sm:$0xff] }
 0x29b   :  { %v5602_v31 = vadd.f32 %v18462_v62, %v5531_v25  ;;  %v16725_v33 = vpop.eup %16724  ;;  %2853 = vst.msk [vmem:[%s20889_s4 + $0xc0] sm:$0xff] %vm2828_vm1, %v16723_v30  ;;  %16744 = vtanh.f32 %v2731_v19  ;;  %v14770_v38 = vpop.f32.mrb[32].mxu1  ;;  %v2661_v39 = vmul.f32 %v18455_v60, %v2431_v35 }
 0x29c   :  { %v16727_v37 = vpop.eup %16726  ;;  %12528 = vst.msk [vmem:[%s20889_s4 + $0x2d0] sm:$0xff] %vm2828_vm1, %v16725_v33  ;;  %16746 = vtanh.f32 %v5604_v27  ;;  %v14507_v40 = vpop.f32.mrb[34].mxu0  ;;  %v2734_v43 = vadd.f32 %v18462_v62, %v2663_v34  ;;  %v5536_v44 = vmul.f32 %v14770_v38, %v18455_v60 }
 0x29d   :  { %v16729_v42 = vpop.eup %16728  ;;  %12526 = vst.msk [vmem:[%s20889_s4 + $0x2c0] sm:$0xff] %vm2828_vm1, %v16727_v37  ;;  %16748 = vtanh.f32 %v2729_v29  ;;  %v5304_v45 = vpop.f32.mrb[33].mxu1  ;;  %v2664_v46 = vmul.f32 %v14507_v40, %v18455_v60  ;;  %v2732_v50 = vadd.f32 %v18462_v62, %v2661_v39  ;;  %v16451_v29 = vld [vmem:[%s20886_s0 + $0x450] sm:$0xff]  }
 0x29e   :  { %v2434_v47 = vpop.f32.mrb[35].mxu0  ;;  %v16731_v49 = vpop.eup %16730  ;;  %2856 = vst.msk [vmem:[%s20889_s4 + $0xd8] sm:$0xff] %vm2828_vm1, %v16729_v42  ;;  %16750 = vtanh.f32 %v5602_v31  ;;  %v5534_v51 = vmul.f32 %v18455_v60, %v5304_v45  ;;  %v5607_v56 = vadd.f32 %v18462_v62, %v5536_v44  ;;  %14881 = vmatmul.mubr.msk.bf16.gmra.mrb[76].mxu0 %vm319_vm0, %v16444_v36  ;;  %15145 = vmatmul.mubr.msk.bf16.gmra.mrb[76].mxu1 %vm319_vm0, %v16445_v48 }
 0x29f   :  { %v14771_v52 = vpop.f32.mrb[34].mxu1  ;;  %v2662_v53 = vmul.f32 %v18455_v60, %v2434_v47  ;;  %v16733_v55 = vpop.eup %16732  ;;  %12529 = vst.msk [vmem:[%s20889_s4 + $0x2d8] sm:$0xff] %vm2828_vm1, %v16731_v49  ;;  %16752 = vtanh.f32 %v2734_v43  ;;  %v2735_v57 = vadd.f32 %v18462_v62, %v2664_v46  ;;  %14884 = vmatprep.mubr.msk.bf16.mxu0 %vm319_vm0, %v16446_v41  ;;  %15148 = vmatprep.mubr.msk.bf16.mxu1 %vm319_vm0, %v16447_v54  ;;  %v16452_v46 = vld [vmem:[%s20886_s0 + $0x358] sm:$0xff]  }
 0x2a0   :  { %v5537_v58 = vmul.f32 %v14771_v52, %v18455_v60  ;;  %v5307_v59 = vpop.f32.mrb[35].mxu1  ;;  %v16735_v61 = vpop.eup %16734  ;;  %2854 = vst.msk [vmem:[%s20889_s4 + $0xc8] sm:$0xff] %vm2828_vm1, %v16733_v55  ;;  %16754 = vtanh.f32 %v2732_v50  ;;  %v5605_v63 = vadd.f32 %v18462_v62, %v5534_v51  ;;  %v16454_v51 = vld [vmem:[%s20886_s0 + $0x360] sm:$0xff]  }
 0x2a1   :  { %v5535_v0 = vmul.f32 %v18455_v60, %v5307_v59  ;;  %v16737_v1 = vpop.eup %16736  ;;  %12527 = vst.msk [vmem:[%s20889_s4 + $0x2c8] sm:$0xff] %vm2828_vm1, %v16735_v61  ;;  %16756 = vtanh.f32 %v5607_v56  ;;  %v2733_v3 = vadd.f32 %v18462_v62, %v2662_v53  ;;  %v14510_v6 = vpop.f32.mrb[36].mxu0 }
 0x2a2   :  { %v5608_v2 = vadd.f32 %v18462_v62, %v5537_v58  ;;  %v16739_v4 = vpop.eup %16738  ;;  %2859 = vst.msk [vmem:[%s20889_s4 + $0xf0] sm:$0xff] %vm2828_vm1, %v16737_v1  ;;  %16758 = vtanh.f32 %v5605_v63  ;;  %v2667_v8 = vmul.f32 %v14510_v6, %v18455_v60  ;;  %v2447_v9 = vpop.f32.mrb[37].mxu0  ;;  %v16453_v58 = vld [vmem:[%s20886_s0 + $0x458] sm:$0xff]  }
 0x2a3   :  { %v5606_v5 = vadd.f32 %v18462_v62, %v5535_v0  ;;  %v16741_v7 = vpop.eup %16740  ;;  %2857 = vst.msk [vmem:[%s20889_s4 + $0xe0] sm:$0xff] %vm2828_vm1, %v16739_v4  ;;  %16760 = vtanh.f32 %v2735_v57  ;;  %v14774_v12 = vpop.f32.mrb[36].mxu1  ;;  %v2665_v14 = vmul.f32 %v18455_v60, %v2447_v9 }
 0x2a4   :  { %v16743_v11 = vpop.eup %16742  ;;  %12532 = vst.msk [vmem:[%s20889_s4 + $0x2f0] sm:$0xff] %vm2828_vm1, %v16741_v7  ;;  %16762 = vtanh.f32 %v5608_v2  ;;  %v14511_v13 = vpop.f32.mrb[38].mxu0  ;;  %v2738_v16 = vadd.f32 %v18462_v62, %v2667_v8  ;;  %v5540_v21 = vmul.f32 %v14774_v12, %v18455_v60  ;;  %v16455_v2 = vld [vmem:[%s20886_s0 + $0x460] sm:$0xff]  }
 0x2a5   :  { %v16745_v20 = vpop.eup %16744  ;;  %12530 = vst.msk [vmem:[%s20889_s4 + $0x2e0] sm:$0xff] %vm2828_vm1, %v16743_v11  ;;  %16764 = vtanh.f32 %v2733_v3  ;;  %v5320_v26 = vpop.f32.mrb[37].mxu1  ;;  %v2668_v17 = vmul.f32 %v14511_v13, %v18455_v60  ;;  %v2736_v23 = vadd.f32 %v18462_v62, %v2665_v14 }
 0x2a6   :  { %v2450_v19 = vpop.f32.mrb[39].mxu0  ;;  %v16747_v15 = vpop.eup %16746  ;;  %2860 = vst.msk [vmem:[%s20889_s4 + $0xf8] sm:$0xff] %vm2828_vm1, %v16745_v20  ;;  %16766 = vtanh.f32 %v5606_v5  ;;  %v5538_v24 = vmul.f32 %v18455_v60, %v5320_v26  ;;  %v19037_v60 = vld [vmem:[%s20888_s3] ss:$0 sm:$0xff]  ;;  %14885 = vmatmul.mubr.msk.bf16.gmra.mrb[80].mxu0 %vm319_vm0, %v16448_v10  ;;  %15149 = vmatmul.mubr.msk.bf16.gmra.mrb[80].mxu1 %vm319_vm0, %v16449_v22 }
 0x2a7   :  { %v14775_v25 = vpop.f32.mrb[38].mxu1  ;;  %v2666_v27 = vmul.f32 %v19024_v28, %v2450_v19  ;;  %v16749_v30 = vpop.eup %16748  ;;  %12533 = vst.msk [vmem:[%s20889_s4 + $0x2f8] sm:$0xff] %vm2828_vm1, %v16747_v15  ;;  %16768 = vtanh.f32 %v2738_v16  ;;  %v5611_v62 = vadd.f32 %v19037_v60, %v5540_v21  ;;  %v2739_v31 = vadd.f32 %v19037_v60, %v2668_v17  ;;  %14888 = vmatprep.mubr.msk.bf16.mxu0 %vm319_vm0, %v16450_v18  ;;  %v16456_v17 = vld [vmem:[%s20886_s0 + $0x368] sm:$0xff]  }
 0x2a8   :  { %v5541_v32 = vmul.f32 %v19024_v28, %v14775_v25  ;;  %v5323_v33 = vpop.f32.mrb[39].mxu1  ;;  %v16751_v34 = vpop.eup %16750  ;;  %2858 = vst.msk [vmem:[%s20889_s4 + $0xe8] sm:$0xff] %vm2828_vm1, %v16749_v30  ;;  %16770 = vtanh.f32 %v2736_v23  ;;  %v5609_v35 = vadd.f32 %v19037_v60, %v5538_v24  ;;  %15152 = vmatprep.mubr.msk.bf16.mxu1 %vm319_vm0, %v16451_v29  ;;  %v16458_v24 = vld [vmem:[%s20886_s0 + $0x370] sm:$0xff]  }
 0x2a9   :  { %v5539_v36 = vmul.f32 %v19024_v28, %v5323_v33  ;;  %v16753_v37 = vpop.eup %16752  ;;  %12531 = vst.msk [vmem:[%s20889_s4 + $0x2e8] sm:$0xff] %vm2828_vm1, %v16751_v34  ;;  %16772 = vtanh.f32 %v5611_v62  ;;  %v2737_v39 = vadd.f32 %v19037_v60, %v2666_v27  ;;  %v14514_v42 = vpop.f32.mrb[40].mxu0 }
 0x2aa   :  { %v5612_v38 = vadd.f32 %v19037_v60, %v5541_v32  ;;  %v16755_v40 = vpop.eup %16754  ;;  %2863 = vst.msk [vmem:[%s20889_s4 + $0x110] sm:$0xff] %vm2828_vm1, %v16753_v37  ;;  %16774 = vtanh.f32 %v5609_v35  ;;  %v2671_v44 = vmul.f32 %v19024_v28, %v14514_v42  ;;  %v2463_v45 = vpop.f32.mrb[41].mxu0  ;;  %v16457_v32 = vld [vmem:[%s20886_s0 + $0x468] sm:$0xff]  }
 0x2ab   :  { %v5610_v41 = vadd.f32 %v19037_v60, %v5539_v36  ;;  %v16757_v43 = vpop.eup %16756  ;;  %2861 = vst.msk [vmem:[%s20889_s4 + $0x100] sm:$0xff] %vm2828_vm1, %v16755_v40  ;;  %16776 = vtanh.f32 %v2739_v31  ;;  %v14778_v48 = vpop.f32.mrb[40].mxu1  ;;  %v2669_v49 = vmul.f32 %v19024_v28, %v2463_v45 }
 0x2ac   :  { %v16759_v47 = vpop.eup %16758  ;;  %12536 = vst.msk [vmem:[%s20889_s4 + $0x310] sm:$0xff] %vm2828_vm1, %v16757_v43  ;;  %16778 = vtanh.f32 %v5612_v38  ;;  %v14515_v50 = vpop.f32.mrb[42].mxu0  ;;  %v2742_v53 = vadd.f32 %v19037_v60, %v2671_v44  ;;  %v5544_v54 = vmul.f32 %v19024_v28, %v14778_v48  ;;  %v16459_v38 = vld [vmem:[%s20886_s0 + $0x470] sm:$0xff]  }
 0x2ad   :  { %v16761_v52 = vpop.eup %16760  ;;  %12534 = vst.msk [vmem:[%s20889_s4 + $0x300] sm:$0xff] %vm2828_vm1, %v16759_v47  ;;  %16780 = vtanh.f32 %v2737_v39  ;;  %v5336_v55 = vpop.f32.mrb[41].mxu1  ;;  %v2672_v56 = vmul.f32 %v19024_v28, %v14515_v50  ;;  %v2740_v61 = vadd.f32 %v19037_v60, %v2669_v49 }
 0x2ae   :  { %v2466_v57 = vpop.f32.mrb[43].mxu0  ;;  %v16763_v59 = vpop.eup %16762  ;;  %2864 = vst.msk [vmem:[%s20889_s4 + $0x118] sm:$0xff] %vm2828_vm1, %v16761_v52  ;;  %16782 = vtanh.f32 %v5610_v41  ;;  %v5542_v63 = vmul.f32 %v19024_v28, %v5336_v55  ;;  %v5615_v4 = vadd.f32 %v19037_v60, %v5544_v54  ;;  %14889 = vmatmul.mubr.msk.bf16.gmra.mrb[84].mxu0 %vm319_vm0, %v16452_v46  ;;  %15153 = vmatmul.mubr.msk.bf16.gmra.mrb[84].mxu1 %vm319_vm0, %v16453_v58 }
 0x2af   :  { %v14779_v0 = vpop.f32.mrb[42].mxu1  ;;  %v2670_v1 = vmul.f32 %v19024_v28, %v2466_v57  ;;  %v16765_v3 = vpop.eup %16764  ;;  %12537 = vst.msk [vmem:[%s20889_s4 + $0x318] sm:$0xff] %vm2828_vm1, %v16763_v59  ;;  %16784 = vtanh.f32 %v2742_v53  ;;  %v2743_v5 = vadd.f32 %v19037_v60, %v2672_v56  ;;  %14892 = vmatprep.mubr.msk.bf16.mxu0 %vm319_vm0, %v16454_v51  ;;  %15156 = vmatprep.mubr.msk.bf16.mxu1 %vm319_vm0, %v16455_v2  ;;  %v16460_v56 = vld [vmem:[%s20886_s0 + $0x378] sm:$0xff]  }
 0x2b0   :  { %v5545_v6 = vmul.f32 %v19024_v28, %v14779_v0  ;;  %v5339_v7 = vpop.f32.mrb[43].mxu1  ;;  %v16767_v8 = vpop.eup %16766  ;;  %2862 = vst.msk [vmem:[%s20889_s4 + $0x108] sm:$0xff] %vm2828_vm1, %v16765_v3  ;;  %16786 = vtanh.f32 %v2740_v61  ;;  %v5613_v9 = vadd.f32 %v19037_v60, %v5542_v63  ;;  %v16462_v63 = vld [vmem:[%s20886_s0 + $0x380] sm:$0xff]  }
 0x2b1   :  { %v5543_v10 = vmul.f32 %v19024_v28, %v5339_v7  ;;  %v16769_v11 = vpop.eup %16768  ;;  %12535 = vst.msk [vmem:[%s20889_s4 + $0x308] sm:$0xff] %vm2828_vm1, %v16767_v8  ;;  %16788 = vtanh.f32 %v5615_v4  ;;  %v2741_v14 = vadd.f32 %v19037_v60, %v2670_v1  ;;  %v14518_v20 = vpop.f32.mrb[44].mxu0 }
 0x2b2   :  { %v5616_v12 = vadd.f32 %v19037_v60, %v5545_v6  ;;  %v16771_v13 = vpop.eup %16770  ;;  %2867 = vst.msk [vmem:[%s20889_s4 + $0x130] sm:$0xff] %vm2828_vm1, %v16769_v11  ;;  %16790 = vtanh.f32 %v5613_v9  ;;  %v2675_v21 = vmul.f32 %v19024_v28, %v14518_v20  ;;  %v2479_v26 = vpop.f32.mrb[45].mxu0  ;;  %v16461_v6 = vld [vmem:[%s20886_s0 + $0x478] sm:$0xff]  }
 0x2b3   :  { %v5614_v18 = vadd.f32 %v19037_v60, %v5543_v10  ;;  %v16773_v16 = vpop.eup %16772  ;;  %2865 = vst.msk [vmem:[%s20889_s4 + $0x120] sm:$0xff] %vm2828_vm1, %v16771_v13  ;;  %16792 = vtanh.f32 %v2743_v5  ;;  %v14782_v22 = vpop.f32.mrb[44].mxu1  ;;  %v2673_v15 = vmul.f32 %v19024_v28, %v2479_v26 }
 0x2b4   :  { %v16775_v19 = vpop.eup %16774  ;;  %12540 = vst.msk [vmem:[%s20889_s4 + $0x330] sm:$0xff] %vm2828_vm1, %v16773_v16  ;;  %16794 = vtanh.f32 %v5616_v12  ;;  %v14519_v23 = vpop.f32.mrb[46].mxu0  ;;  %v2746_v27 = vadd.f32 %v19037_v60, %v2675_v21  ;;  %v5548_v29 = vmul.f32 %v19024_v28, %v14782_v22  ;;  %v16463_v12 = vld [vmem:[%s20886_s0 + $0x480] sm:$0xff]  }
 0x2b5   :  { %v16777_v25 = vpop.eup %16776  ;;  %12538 = vst.msk [vmem:[%s20889_s4 + $0x320] sm:$0xff] %vm2828_vm1, %v16775_v19  ;;  %16796 = vtanh.f32 %v2741_v14  ;;  %v5352_v30 = vpop.f32.mrb[45].mxu1  ;;  %v2676_v62 = vmul.f32 %v19024_v28, %v14519_v23  ;;  %v2744_v34 = vadd.f32 %v19037_v60, %v2673_v15 }
 0x2b6   :  { %v2482_v31 = vpop.f32.mrb[47].mxu0  ;;  %v16779_v33 = vpop.eup %16778  ;;  %2868 = vst.msk [vmem:[%s20889_s4 + $0x138] sm:$0xff] %vm2828_vm1, %v16777_v25  ;;  %16798 = vtanh.f32 %v5614_v18  ;;  %v5546_v35 = vmul.f32 %v19024_v28, %v5352_v30  ;;  %v5619_v40 = vadd.f32 %v19037_v60, %v5548_v29  ;;  %14893 = vmatmul.mubr.msk.bf16.gmra.mrb[88].mxu0 %vm319_vm0, %v16456_v17  ;;  %15157 = vmatmul.mubr.msk.bf16.gmra.mrb[88].mxu1 %vm319_vm0, %v16457_v32 }
 0x2b7   :  { %v14783_v36 = vpop.f32.mrb[46].mxu1  ;;  %v2674_v37 = vmul.f32 %v19024_v28, %v2482_v31  ;;  %v16781_v39 = vpop.eup %16780  ;;  %12541 = vst.msk [vmem:[%s20889_s4 + $0x338] sm:$0xff] %vm2828_vm1, %v16779_v33  ;;  %16800 = vtanh.f32 %v2746_v27  ;;  %v2747_v41 = vadd.f32 %v19037_v60, %v2676_v62  ;;  %14896 = vmatprep.mubr.msk.bf16.mxu0 %vm319_vm0, %v16458_v24  ;;  %15160 = vmatprep.mubr.msk.bf16.mxu1 %vm319_vm0, %v16459_v38  ;;  %v16464_v62 = vld [vmem:[%s20886_s0 + $0x388] sm:$0xff]  }
 0x2b8   :  { %v5549_v42 = vmul.f32 %v19024_v28, %v14783_v36  ;;  %v5355_v43 = vpop.f32.mrb[47].mxu1  ;;  %v16783_v44 = vpop.eup %16782  ;;  %2866 = vst.msk [vmem:[%s20889_s4 + $0x128] sm:$0xff] %vm2828_vm1, %v16781_v39  ;;  %16802 = vtanh.f32 %v2744_v34  ;;  %v5617_v45 = vadd.f32 %v19037_v60, %v5546_v35  ;;  %v16466_v35 = vld [vmem:[%s20886_s0 + $0x390] sm:$0xff]  }
 0x2b9   :  { %v5547_v46 = vmul.f32 %v19024_v28, %v5355_v43  ;;  %v16785_v47 = vpop.eup %16784  ;;  %12539 = vst.msk [vmem:[%s20889_s4 + $0x328] sm:$0xff] %vm2828_vm1, %v16783_v44  ;;  %16804 = vtanh.f32 %v5619_v40  ;;  %v2745_v49 = vadd.f32 %v19037_v60, %v2674_v37  ;;  %v14522_v52 = vpop.f32.mrb[48].mxu0 }
 0x2ba   :  { %v5620_v48 = vadd.f32 %v19037_v60, %v5549_v42  ;;  %v16787_v50 = vpop.eup %16786  ;;  %2871 = vst.msk [vmem:[%s20889_s4 + $0x150] sm:$0xff] %vm2828_vm1, %v16785_v47  ;;  %16806 = vtanh.f32 %v5617_v45  ;;  %v2679_v54 = vmul.f32 %v19024_v28, %v14522_v52  ;;  %v2495_v55 = vpop.f32.mrb[49].mxu0  ;;  %v16465_v42 = vld [vmem:[%s20886_s0 + $0x488] sm:$0xff]  }
 0x2bb   :  { %v5618_v51 = vadd.f32 %v19037_v60, %v5547_v46  ;;  %v16789_v53 = vpop.eup %16788  ;;  %2869 = vst.msk [vmem:[%s20889_s4 + $0x140] sm:$0xff] %vm2828_vm1, %v16787_v50  ;;  %16808 = vtanh.f32 %v2747_v41  ;;  %v14786_v58 = vpop.f32.mrb[48].mxu1  ;;  %v2677_v59 = vmul.f32 %v19024_v28, %v2495_v55 }
 0x2bc   :  { %v16791_v57 = vpop.eup %16790  ;;  %12544 = vst.msk [vmem:[%s20889_s4 + $0x350] sm:$0xff] %vm2828_vm1, %v16789_v53  ;;  %16810 = vtanh.f32 %v5620_v48  ;;  %v14523_v61 = vpop.f32.mrb[50].mxu0  ;;  %v2750_v1 = vadd.f32 %v19037_v60, %v2679_v54  ;;  %v5552_v2 = vmul.f32 %v19024_v28, %v14786_v58  ;;  %v16467_v48 = vld [vmem:[%s20886_s0 + $0x490] sm:$0xff]  }
 0x2bd   :  { %v16793_v0 = vpop.eup %16792  ;;  %12542 = vst.msk [vmem:[%s20889_s4 + $0x340] sm:$0xff] %vm2828_vm1, %v16791_v57  ;;  %16812 = vtanh.f32 %v2745_v49  ;;  %v5368_v3 = vpop.f32.mrb[49].mxu1  ;;  %v2680_v4 = vmul.f32 %v19024_v28, %v14523_v61  ;;  %v2748_v8 = vadd.f32 %v19037_v60, %v2677_v59 }
 0x2be   :  { %v2498_v5 = vpop.f32.mrb[51].mxu0  ;;  %v16795_v7 = vpop.eup %16794  ;;  %2872 = vst.msk [vmem:[%s20889_s4 + $0x158] sm:$0xff] %vm2828_vm1, %v16793_v0  ;;  %16814 = vtanh.f32 %v5618_v51  ;;  %v5550_v9 = vmul.f32 %v19024_v28, %v5368_v3  ;;  %v5623_v13 = vadd.f32 %v19037_v60, %v5552_v2  ;;  %14897 = vmatmul.mubr.msk.bf16.gmra.mrb[92].mxu0 %vm319_vm0, %v16460_v56  ;;  %15161 = vmatmul.mubr.msk.bf16.gmra.mrb[92].mxu1 %vm319_vm0, %v16461_v6 }
 0x2bf   :  { %v14787_v10 = vpop.f32.mrb[50].mxu1  ;;  %v2678_v11 = vmul.f32 %v19024_v28, %v2498_v5  ;;  %v16797_v14 = vpop.eup %16796  ;;  %12545 = vst.msk [vmem:[%s20889_s4 + $0x358] sm:$0xff] %vm2828_vm1, %v16795_v7  ;;  %16816 = vtanh.f32 %v2750_v1  ;;  %v2751_v18 = vadd.f32 %v19037_v60, %v2680_v4  ;;  %14900 = vmatprep.mubr.msk.bf16.mxu0 %vm319_vm0, %v16462_v63  ;;  %15164 = vmatprep.mubr.msk.bf16.mxu1 %vm319_vm0, %v16463_v12  ;;  %v16468_v4 = vld [vmem:[%s20886_s0 + $0x398] sm:$0xff]  }
 0x2c0   :  { %v5553_v20 = vmul.f32 %v19024_v28, %v14787_v10  ;;  %v5371_v16 = vpop.f32.mrb[51].mxu1  ;;  %v16799_v21 = vpop.eup %16798  ;;  %2870 = vst.msk [vmem:[%s20889_s4 + $0x148] sm:$0xff] %vm2828_vm1, %v16797_v14  ;;  %16818 = vtanh.f32 %v2748_v8  ;;  %v5621_v26 = vadd.f32 %v19037_v60, %v5550_v9  ;;  %v16470_v9 = vld [vmem:[%s20886_s0 + $0x3a0] sm:$0xff]  }
 0x2c1   :  { %v5551_v17 = vmul.f32 %v19024_v28, %v5371_v16  ;;  %v16801_v19 = vpop.eup %16800  ;;  %12543 = vst.msk [vmem:[%s20889_s4 + $0x348] sm:$0xff] %vm2828_vm1, %v16799_v21  ;;  %16820 = vtanh.f32 %v5623_v13  ;;  %v2749_v15 = vadd.f32 %v19037_v60, %v2678_v11  ;;  %v14526_v25 = vpop.f32.mrb[52].mxu0 }
 0x2c2   :  { %v5624_v22 = vadd.f32 %v19037_v60, %v5553_v20  ;;  %v16803_v23 = vpop.eup %16802  ;;  %2875 = vst.msk [vmem:[%s20889_s4 + $0x170] sm:$0xff] %vm2828_vm1, %v16801_v19  ;;  %16822 = vtanh.f32 %v5621_v26  ;;  %v2683_v29 = vmul.f32 %v19024_v28, %v14526_v25  ;;  %v2511_v30 = vpop.f32.mrb[53].mxu0  ;;  %v16469_v20 = vld [vmem:[%s20886_s0 + $0x498] sm:$0xff]  }
 0x2c3   :  { %v5622_v24 = vadd.f32 %v19037_v60, %v5551_v17  ;;  %v16805_v27 = vpop.eup %16804  ;;  %2873 = vst.msk [vmem:[%s20889_s4 + $0x160] sm:$0xff] %vm2828_vm1, %v16803_v23  ;;  %16824 = vtanh.f32 %v2751_v18  ;;  %v14790_v32 = vpop.f32.mrb[52].mxu1  ;;  %v2681_v33 = vmul.f32 %v19024_v28, %v2511_v30 }
 0x2c4   :  { %v16807_v31 = vpop.eup %16806  ;;  %12548 = vst.msk [vmem:[%s20889_s4 + $0x370] sm:$0xff] %vm2828_vm1, %v16805_v27  ;;  %16826 = vtanh.f32 %v5624_v22  ;;  %v14527_v34 = vpop.f32.mrb[54].mxu0  ;;  %v2754_v37 = vadd.f32 %v19037_v60, %v2683_v29  ;;  %v5556_v38 = vmul.f32 %v19024_v28, %v14790_v32  ;;  %v16471_v22 = vld [vmem:[%s20886_s0 + $0x4a0] sm:$0xff]  }
 0x2c5   :  { %v16809_v36 = vpop.eup %16808  ;;  %12546 = vst.msk [vmem:[%s20889_s4 + $0x360] sm:$0xff] %vm2828_vm1, %v16807_v31  ;;  %16828 = vtanh.f32 %v2749_v15  ;;  %v5384_v39 = vpop.f32.mrb[53].mxu1  ;;  %v2684_v40 = vmul.f32 %v19024_v28, %v14527_v34  ;;  %v2752_v44 = vadd.f32 %v19037_v60, %v2681_v33 }
 0x2c6   :  { %v2514_v41 = vpop.f32.mrb[55].mxu0  ;;  %v16811_v43 = vpop.eup %16810  ;;  %2876 = vst.msk [vmem:[%s20889_s4 + $0x178] sm:$0xff] %vm2828_vm1, %v16809_v36  ;;  %16830 = vtanh.f32 %v5622_v24  ;;  %v5554_v45 = vmul.f32 %v19024_v28, %v5384_v39  ;;  %v5627_v50 = vadd.f32 %v19037_v60, %v5556_v38  ;;  %14901 = vmatmul.mubr.msk.bf16.gmra.mrb[96].mxu0 %vm319_vm0, %v16464_v62  ;;  %15165 = vmatmul.mubr.msk.bf16.gmra.mrb[96].mxu1 %vm319_vm0, %v16465_v42 }
 0x2c7   :  { %v14791_v46 = vpop.f32.mrb[54].mxu1  ;;  %v2682_v47 = vmul.f32 %v19024_v28, %v2514_v41  ;;  %v16813_v49 = vpop.eup %16812  ;;  %12549 = vst.msk [vmem:[%s20889_s4 + $0x378] sm:$0xff] %vm2828_vm1, %v16811_v43  ;;  %16832 = vtanh.f32 %v2754_v37  ;;  %v2755_v51 = vadd.f32 %v19037_v60, %v2684_v40  ;;  %14904 = vmatprep.mubr.msk.bf16.mxu0 %vm319_vm0, %v16466_v35  ;;  %15168 = vmatprep.mubr.msk.bf16.mxu1 %vm319_vm0, %v16467_v48  ;;  %v16472_v40 = vld [vmem:[%s20886_s0 + $0x3a8] sm:$0xff]  }
 0x2c8   :  { %v5557_v52 = vmul.f32 %v19024_v28, %v14791_v46  ;;  %v5387_v53 = vpop.f32.mrb[55].mxu1  ;;  %v16815_v54 = vpop.eup %16814  ;;  %2874 = vst.msk [vmem:[%s20889_s4 + $0x168] sm:$0xff] %vm2828_vm1, %v16813_v49  ;;  %16834 = vtanh.f32 %v2752_v44  ;;  %v5625_v55 = vadd.f32 %v19037_v60, %v5554_v45  ;;  %v16474_v45 = vld [vmem:[%s20886_s0 + $0x3b0] sm:$0xff]  }
 0x2c9   :  { %v5555_v56 = vmul.f32 %v19024_v28, %v5387_v53  ;;  %v16817_v57 = vpop.eup %16816  ;;  %12547 = vst.msk [vmem:[%s20889_s4 + $0x368] sm:$0xff] %vm2828_vm1, %v16815_v54  ;;  %16836 = vtanh.f32 %v5627_v50  ;;  %v2753_v59 = vadd.f32 %v19037_v60, %v2682_v47  ;;  %v14530_v0 = vpop.f32.mrb[56].mxu0 }
 0x2ca   :  { %v5628_v58 = vadd.f32 %v19037_v60, %v5557_v52  ;;  %v16819_v61 = vpop.eup %16818  ;;  %2879 = vst.msk [vmem:[%s20889_s4 + $0x190] sm:$0xff] %vm2828_vm1, %v16817_v57  ;;  %16838 = vtanh.f32 %v5625_v55  ;;  %v2687_v2 = vmul.f32 %v19024_v28, %v14530_v0  ;;  %v2527_v3 = vpop.f32.mrb[57].mxu0  ;;  %v16473_v52 = vld [vmem:[%s20886_s0 + $0x4a8] sm:$0xff]  }
 0x2cb   :  { %v5626_v63 = vadd.f32 %v19037_v60, %v5555_v56  ;;  %v16821_v1 = vpop.eup %16820  ;;  %2877 = vst.msk [vmem:[%s20889_s4 + $0x180] sm:$0xff] %vm2828_vm1, %v16819_v61  ;;  %16840 = vtanh.f32 %v2755_v51  ;;  %v14794_v6 = vpop.f32.mrb[56].mxu1  ;;  %v2685_v7 = vmul.f32 %v19024_v28, %v2527_v3 }
 0x2cc   :  { %v16823_v5 = vpop.eup %16822  ;;  %12552 = vst.msk [vmem:[%s20889_s4 + $0x390] sm:$0xff] %vm2828_vm1, %v16821_v1  ;;  %16842 = vtanh.f32 %v5628_v58  ;;  %v14531_v8 = vpop.f32.mrb[58].mxu0  ;;  %v2758_v11 = vadd.f32 %v19037_v60, %v2687_v2  ;;  %v5560_v12 = vmul.f32 %v19024_v28, %v14794_v6  ;;  %v16475_v58 = vld [vmem:[%s20886_s0 + $0x4b0] sm:$0xff]  }
 0x2cd   :  { %v16825_v10 = vpop.eup %16824  ;;  %12550 = vst.msk [vmem:[%s20889_s4 + $0x380] sm:$0xff] %vm2828_vm1, %v16823_v5  ;;  %16844 = vtanh.f32 %v2753_v59  ;;  %v5400_v14 = vpop.f32.mrb[57].mxu1  ;;  %v2688_v13 = vmul.f32 %v19024_v28, %v14531_v8  ;;  %v2756_v21 = vadd.f32 %v19037_v60, %v2685_v7 }
 0x2ce   :  { %v2530_v18 = vpop.f32.mrb[59].mxu0  ;;  %v16827_v16 = vpop.eup %16826  ;;  %2880 = vst.msk [vmem:[%s20889_s4 + $0x198] sm:$0xff] %vm2828_vm1, %v16825_v10  ;;  %16846 = vtanh.f32 %v5626_v63  ;;  %v5558_v26 = vmul.f32 %v19024_v28, %v5400_v14  ;;  %v5631_v23 = vadd.f32 %v19037_v60, %v5560_v12  ;;  %14905 = vmatmul.mubr.msk.bf16.gmra.mrb[100].mxu0 %vm319_vm0, %v16468_v4  ;;  %15169 = vmatmul.mubr.msk.bf16.gmra.mrb[100].mxu1 %vm319_vm0, %v16469_v20  ;;  %v16476_v10 = vld [vmem:[%s20886_s0 + $0x3b8] sm:$0xff]  }
 0x2cf   :  { %v14795_v17 = vpop.f32.mrb[58].mxu1  ;;  %v2686_v19 = vmul.f32 %v19024_v28, %v2530_v18  ;;  %v16829_v15 = vpop.eup %16828  ;;  %12553 = vst.msk [vmem:[%s20889_s4 + $0x398] sm:$0xff] %vm2828_vm1, %v16827_v16  ;;  %16848 = vtanh.f32 %v2758_v11  ;;  %v2759_v24 = vadd.f32 %v19037_v60, %v2688_v13  ;;  %14908 = vmatprep.mubr.msk.bf16.mxu0 %vm319_vm0, %v16470_v9  ;;  %15172 = vmatprep.mubr.msk.bf16.mxu1 %vm319_vm0, %v16471_v22  ;;  %v16477_v14 = vld [vmem:[%s20886_s0 + $0x4b8] sm:$0xff]   ;;  %v16479_v18 = vld [vmem:[%s20886_s0 + $0x4c0] sm:$0xff]  }
 0x2d0   :  { %v5561_v25 = vmul.f32 %v19024_v28, %v14795_v17  ;;  %v5403_v27 = vpop.f32.mrb[59].mxu1  ;;  %v16831_v29 = vpop.eup %16830  ;;  %2878 = vst.msk [vmem:[%s20889_s4 + $0x188] sm:$0xff] %vm2828_vm1, %v16829_v15  ;;  %16850 = vtanh.f32 %v2756_v21  ;;  %v5629_v30 = vadd.f32 %v19037_v60, %v5558_v26  ;;  %v16482_v15 = vld [vmem:[%s20886_s0 + $0x3d0] sm:$0xff]  }
 0x2d1   :  { %v5559_v62 = vmul.f32 %v19024_v28, %v5403_v27  ;;  %v16833_v31 = vpop.eup %16832  ;;  %12551 = vst.msk [vmem:[%s20889_s4 + $0x388] sm:$0xff] %vm2828_vm1, %v16831_v29  ;;  %16852 = vtanh.f32 %v5631_v23  ;;  %v2757_v33 = vadd.f32 %v19037_v60, %v2686_v19  ;;  %v14534_v36 = vpop.f32.mrb[60].mxu0  ;;  %v16480_v19 = vld [vmem:[%s20886_s0 + $0x3c8] sm:$0xff]   ;;  %v16483_v27 = vld [vmem:[%s20886_s0 + $0x4d0] sm:$0xff]  }
 0x2d2   :  { %v5632_v32 = vadd.f32 %v19037_v60, %v5561_v25  ;;  %v16835_v34 = vpop.eup %16834  ;;  %2883 = vst.msk [vmem:[%s20889_s4 + $0x1b0] sm:$0xff] %vm2828_vm1, %v16833_v31  ;;  %16854 = vtanh.f32 %v5629_v30  ;;  %v2691_v38 = vmul.f32 %v19024_v28, %v14534_v36  ;;  %v2543_v39 = vpop.f32.mrb[61].mxu0  ;;  %v16486_v31 = vld [vmem:[%s20886_s0 + $0x3e0] sm:$0xff]   ;;  %v16489_v36 = vld [vmem:[%s20886_s0 + $0x4e8] sm:$0xff]  }
 0x2d3   :  { %v5630_v35 = vadd.f32 %v19037_v60, %v5559_v62  ;;  %v16837_v37 = vpop.eup %16836  ;;  %2881 = vst.msk [vmem:[%s20889_s4 + $0x1a0] sm:$0xff] %vm2828_vm1, %v16835_v34  ;;  %16856 = vtanh.f32 %v2759_v24  ;;  %v14798_v42 = vpop.f32.mrb[60].mxu1  ;;  %v2689_v43 = vmul.f32 %v19024_v28, %v2543_v39  ;;  %v16481_v24 = vld [vmem:[%s20886_s0 + $0x4c8] sm:$0xff]   ;;  %v16484_v62 = vld [vmem:[%s20886_s0 + $0x3d8] sm:$0xff]   ;;  %v16494_v39 = vld [vmem:[%s20886_s0 + $0x600] sm:$0xff]  }
 0x2d4   :  { %v16839_v41 = vpop.eup %16838  ;;  %12556 = vst.msk [vmem:[%s20889_s4 + $0x3b0] sm:$0xff] %vm2828_vm1, %v16837_v37  ;;  %16858 = vtanh.f32 %v5632_v32  ;;  %v14535_v44 = vpop.f32.mrb[62].mxu0  ;;  %v2762_v47 = vadd.f32 %v19037_v60, %v2691_v38  ;;  %v5564_v48 = vmul.f32 %v19024_v28, %v14798_v42  ;;  %v16485_v32 = vld [vmem:[%s20886_s0 + $0x4d8] sm:$0xff]   ;;  %v16488_v34 = vld [vmem:[%s20886_s0 + $0x3e8] sm:$0xff]   ;;  %v16491_v37 = vld [vmem:[%s20886_s0 + $0x4f0] sm:$0xff]  }
 0x2d5   :  { %v16841_v46 = vpop.eup %16840  ;;  %12554 = vst.msk [vmem:[%s20889_s4 + $0x3a0] sm:$0xff] %vm2828_vm1, %v16839_v41  ;;  %16860 = vtanh.f32 %v2757_v33  ;;  %v5416_v49 = vpop.f32.mrb[61].mxu1  ;;  %v2692_v50 = vmul.f32 %v19024_v28, %v14535_v44  ;;  %v2760_v54 = vadd.f32 %v19037_v60, %v2689_v43  ;;  %v16487_v33 = vld [vmem:[%s20886_s0 + $0x4e0] sm:$0xff]   ;;  %v16492_v38 = vld [vmem:[%s20886_s0 + $0x3f8] sm:$0xff]   ;;  %v16496_v42 = vld [vmem:[%s20886_s0 + $0x608] sm:$0xff]  }
 0x2d6   :  { %v2546_v51 = vpop.f32.mrb[63].mxu0  ;;  %v16843_v53 = vpop.eup %16842  ;;  %2884 = vst.msk [vmem:[%s20889_s4 + $0x1b8] sm:$0xff] %vm2828_vm1, %v16841_v46  ;;  %16862 = vtanh.f32 %v5630_v35  ;;  %v5562_v55 = vmul.f32 %v19024_v28, %v5416_v49  ;;  %v5635_v61 = vadd.f32 %v19037_v60, %v5564_v48  ;;  %14909 = vmatmul.mubr.msk.bf16.gmra.mrb[104].mxu0 %vm319_vm0, %v16472_v40  ;;  %15173 = vmatmul.mubr.msk.bf16.gmra.mrb[104].mxu1 %vm319_vm0, %v16473_v52  ;;  %v16490_v35 = vld [vmem:[%s20886_s0 + $0x3f0] sm:$0xff]   ;;  %v16493_v40 = vld [vmem:[%s20886_s0 + $0x4f8] sm:$0xff]   ;;  %v16495_v41 = vld [vmem:[%s20886_s0 + $0x700] sm:$0xff]  }
 0x2d7   :  { %v14799_v56 = vpop.f32.mrb[62].mxu1  ;;  %v2690_v57 = vmul.f32 %v19024_v28, %v2546_v51  ;;  %v16845_v59 = vpop.eup %16844  ;;  %12557 = vst.msk [vmem:[%s20889_s4 + $0x3b8] sm:$0xff] %vm2828_vm1, %v16843_v53  ;;  %16864 = vtanh.f32 %v2762_v47  ;;  %v2763_v63 = vadd.f32 %v19037_v60, %v2692_v50  ;;  %14912 = vmatprep.mubr.msk.bf16.mxu0 %vm319_vm0, %v16474_v45  ;;  %15176 = vmatprep.mubr.msk.bf16.mxu1 %vm319_vm0, %v16475_v58  ;;  %v16500_v43 = vld [vmem:[%s20886_s0 + $0x610] sm:$0xff]   ;;  %v16498_v44 = vld [vmem:[%s20886_s0 + $0x708] sm:$0xff]   ;;  %v17139_v47 = vld [vmem:[%s20885_s1] sm:$0xff]  }
 0x2d8   :  { %v5565_v0 = vmul.f32 %v19024_v28, %v14799_v56  ;;  %v5419_v1 = vpop.f32.mrb[63].mxu1  ;;  %v16847_v2 = vpop.eup %16846  ;;  %2882 = vst.msk [vmem:[%s20889_s4 + $0x1a8] sm:$0xff] %vm2828_vm1, %v16845_v59  ;;  %16866 = vtanh.f32 %v2760_v54  ;;  %v5633_v3 = vadd.f32 %v19037_v60, %v5562_v55  ;;  %v16501_v45 = vld [vmem:[%s20886_s0 + $0x710] sm:$0xff]   ;;  %v17138_v46 = vld [vmem:[%s20885_s1 + $0x8] sm:$0xff]   ;;  %v16502_v48 = vld [vmem:[%s20886_s0 + $0x618] sm:$0xff]  }
 0x2d9   :  { %v5563_v4 = vmul.f32 %v19024_v28, %v5419_v1  ;;  %v16849_v5 = vpop.eup %16848  ;;  %12555 = vst.msk [vmem:[%s20889_s4 + $0x3a8] sm:$0xff] %vm2828_vm1, %v16847_v2  ;;  %16868 = vtanh.f32 %v5635_v61  ;;  %v2761_v7 = vadd.f32 %v19037_v60, %v2690_v57  ;;  %v16504_v49 = vld [vmem:[%s20886_s0 + $0x620] sm:$0xff]   ;;  %v16503_v50 = vld [vmem:[%s20886_s0 + $0x718] sm:$0xff]   ;;  %v16506_v52 = vld [vmem:[%s20886_s0 + $0x628] sm:$0xff]  }
 0x2da   :  { %v5636_v6 = vadd.f32 %v19037_v60, %v5565_v0  ;;  %v16851_v8 = vpop.eup %16850  ;;  %2887 = vst.msk [vmem:[%s20889_s4 + $0x1d0] sm:$0xff] %vm2828_vm1, %v16849_v5  ;;  %16870 = vtanh.f32 %v5633_v3  ;;  %v16505_v51 = vld [vmem:[%s20886_s0 + $0x720] sm:$0xff]   ;;  %v16508_v53 = vld [vmem:[%s20886_s0 + $0x630] sm:$0xff]   ;;  %v16507_v54 = vld [vmem:[%s20886_s0 + $0x728] sm:$0xff]  }
 0x2db   :  { %v5634_v28 = vadd.f32 %v19037_v60, %v5563_v4  ;;  %v16853_v9 = vpop.eup %16852  ;;  %2885 = vst.msk [vmem:[%s20889_s4 + $0x1c0] sm:$0xff] %vm2828_vm1, %v16851_v8  ;;  %16872 = vtanh.f32 %v2763_v63  ;;  %v16478_v60 = vld [vmem:[%s20886_s0 + $0x3c0] sm:$0xff]   ;;  %v16509_v55 = vld [vmem:[%s20886_s0 + $0x730] sm:$0xff]   ;;  %v16510_v56 = vld [vmem:[%s20886_s0 + $0x638] sm:$0xff]  }
 0x2dc   :  { %v16855_v11 = vpop.eup %16854  ;;  %12560 = vst.msk [vmem:[%s20889_s4 + $0x3d0] sm:$0xff] %vm2828_vm1, %v16853_v9  ;;  %16874 = vtanh.f32 %v5636_v6  ;;  %v16512_v57 = vld [vmem:[%s20886_s0 + $0x640] sm:$0xff]   ;;  %v16511_v58 = vld [vmem:[%s20886_s0 + $0x738] sm:$0xff]   ;;  %v16514_v61 = vld [vmem:[%s20886_s0 + $0x648] sm:$0xff]  }
 0x2dd   :  { %v16857_v12 = vpop.eup %16856  ;;  %12558 = vst.msk [vmem:[%s20889_s4 + $0x3c0] sm:$0xff] %vm2828_vm1, %v16855_v11  ;;  %16876 = vtanh.f32 %v2761_v7  ;;  %v16513_v59 = vld [vmem:[%s20886_s0 + $0x740] sm:$0xff]   ;;  %v16516_v63 = vld [vmem:[%s20886_s0 + $0x650] sm:$0xff]   ;;  %v16515_v0 = vld [vmem:[%s20886_s0 + $0x748] sm:$0xff]  }
 0x2de   :  { %v16859_v13 = vpop.eup %16858  ;;  %2888 = vst.msk [vmem:[%s20889_s4 + $0x1d8] sm:$0xff] %vm2828_vm1, %v16857_v12  ;;  %16878 = vtanh.f32 %v5634_v28  ;;  %14913 = vmatmul.mubr.msk.bf16.gmra.mrb[108].mxu0 %vm319_vm0, %v16476_v10  ;;  %15177 = vmatmul.mubr.msk.bf16.gmra.mrb[108].mxu1 %vm319_vm0, %v16477_v14  ;;  %v16517_v1 = vld [vmem:[%s20886_s0 + $0x750] sm:$0xff]   ;;  %v16518_v2 = vld [vmem:[%s20886_s0 + $0x658] sm:$0xff]   ;;  %v16520_v3 = vld [vmem:[%s20886_s0 + $0x660] sm:$0xff]  }
 0x2df   :  { %v16861_v20 = vpop.eup %16860  ;;  %12561 = vst.msk [vmem:[%s20889_s4 + $0x3d8] sm:$0xff] %vm2828_vm1, %v16859_v13  ;;  %14916 = vmatprep.mubr.msk.bf16.mxu0 %vm319_vm0, %v16478_v60  ;;  %15180 = vmatprep.mubr.msk.bf16.mxu1 %vm319_vm0, %v16479_v18  ;;  %v16519_v4 = vld [vmem:[%s20886_s0 + $0x758] sm:$0xff]   ;;  %v16521_v5 = vld [vmem:[%s20886_s0 + $0x760] sm:$0xff]   ;;  %v16522_v6 = vld [vmem:[%s20886_s0 + $0x668] sm:$0xff]  }
 0x2e0   :  { %v16863_v16 = vpop.eup %16862  ;;  %2886 = vst.msk [vmem:[%s20889_s4 + $0x1c8] sm:$0xff] %vm2828_vm1, %v16861_v20  ;;  %v16524_v7 = vld [vmem:[%s20886_s0 + $0x670] sm:$0xff]   ;;  %v16523_v8 = vld [vmem:[%s20886_s0 + $0x768] sm:$0xff]   ;;  %v16526_v9 = vld [vmem:[%s20886_s0 + $0x678] sm:$0xff]  }
 0x2e1   :  { %v16865_v21 = vpop.eup %16864  ;;  %12559 = vst.msk [vmem:[%s20889_s4 + $0x3c8] sm:$0xff] %vm2828_vm1, %v16863_v16  ;;  %v16525_v28 = vld [vmem:[%s20886_s0 + $0x770] sm:$0xff]   ;;  %v16528_v10 = vld [vmem:[%s20886_s0 + $0x680] sm:$0xff]   ;;  %v16527_v11 = vld [vmem:[%s20886_s0 + $0x778] sm:$0xff]  }
 0x2e2   :  { %v16867_v26 = vpop.eup %16866  ;;  %2891 = vst.msk [vmem:[%s20889_s4 + $0x1f0] sm:$0xff] %vm2828_vm1, %v16865_v21  ;;  %v16529_v60 = vld [vmem:[%s20886_s0 + $0x780] sm:$0xff]   ;;  %v16530_v12 = vld [vmem:[%s20886_s0 + $0x688] sm:$0xff]   ;;  %v16532_v14 = vld [vmem:[%s20886_s0 + $0x690] sm:$0xff]  }
 0x2e3   :  { %v16869_v17 = vpop.eup %16868  ;;  %2889 = vst.msk [vmem:[%s20889_s4 + $0x1e0] sm:$0xff] %vm2828_vm1, %v16867_v26  ;;  %v16531_v13 = vld [vmem:[%s20886_s0 + $0x788] sm:$0xff]   ;;  %v16533_v18 = vld [vmem:[%s20886_s0 + $0x790] sm:$0xff]   ;;  %v16534_v20 = vld [vmem:[%s20886_s0 + $0x698] sm:$0xff]  }
 0x2e4   :  { %v16871_v22 = vpop.eup %16870  ;;  %12564 = vst.msk [vmem:[%s20889_s4 + $0x3f0] sm:$0xff] %vm2828_vm1, %v16869_v17  ;;  %v16536_v16 = vld [vmem:[%s20886_s0 + $0x6a0] sm:$0xff]   ;;  %v16535_v21 = vld [vmem:[%s20886_s0 + $0x798] sm:$0xff]   ;;  %v16538_v17 = vld [vmem:[%s20886_s0 + $0x6a8] sm:$0xff]  }
 0x2e5   :  { %v16873_v23 = vpop.eup %16872  ;;  %12562 = vst.msk [vmem:[%s20889_s4 + $0x3e0] sm:$0xff] %vm2828_vm1, %v16871_v22  ;;  %v16537_v26 = vld [vmem:[%s20886_s0 + $0x7a0] sm:$0xff]   ;;  %v16539_v22 = vld [vmem:[%s20886_s0 + $0x7a8] sm:$0xff]  }
 0x2e6   :  { %v16875_v25 = vpop.eup %16874  ;;  %2892 = vst.msk [vmem:[%s20889_s4 + $0x1f8] sm:$0xff] %vm2828_vm1, %v16873_v23  ;;  %14917 = vmatmul.mubr.msk.bf16.gmra.mrb[112].mxu0 %vm319_vm0, %v16480_v19  ;;  %15181 = vmatmul.mubr.msk.bf16.gmra.mrb[112].mxu1 %vm319_vm0, %v16481_v24  ;;  %v16540_v19 = vld [vmem:[%s20886_s0 + $0x6b0] sm:$0xff]   ;;  %v16542_v23 = vld [vmem:[%s20886_s0 + $0x6b8] sm:$0xff]   ;;  %v16544_v24 = vld [vmem:[%s20886_s0 + $0x6c0] sm:$0xff]  }
 0x2e7   :  { %v16877_v29 = vpop.eup %16876  ;;  %12565 = vst.msk [vmem:[%s20889_s4 + $0x3f8] sm:$0xff] %vm2828_vm1, %v16875_v25  ;;  %14920 = vmatprep.mubr.msk.bf16.mxu0 %vm319_vm0, %v16482_v15  ;;  %15184 = vmatprep.mubr.msk.bf16.mxu1 %vm319_vm0, %v16483_v27  ;;  %v16541_v15 = vld [vmem:[%s20886_s0 + $0x7b0] sm:$0xff]   ;;  %v16543_v25 = vld [vmem:[%s20886_s0 + $0x7b8] sm:$0xff]   ;;  %v16545_v27 = vld [vmem:[%s20886_s0 + $0x7c0] sm:$0xff]  }
 0x2e8   :  { %v16879_v30 = vpop.eup %16878  ;;  %2890 = vst.msk [vmem:[%s20889_s4 + $0x1e8] sm:$0xff] %vm2828_vm1, %v16877_v29  ;;  %v16546_v29 = vld [vmem:[%s20886_s0 + $0x6c8] sm:$0xff]  }
 0x2e9   :  { %12563 = vst.msk [vmem:[%s20889_s4 + $0x3e8] sm:$0xff] %vm2828_vm1, %v16879_v30  ;;  %v16548_v30 = vld [vmem:[%s20886_s0 + $0x6d0] sm:$0xff]  }
 0x2ee   :  { %14921 = vmatmul.mubr.msk.bf16.gmra.mrb[116].mxu0 %vm319_vm0, %v16484_v62  ;;  %15185 = vmatmul.mubr.msk.bf16.gmra.mrb[116].mxu1 %vm319_vm0, %v16485_v32  ;;  %v16547_v62 = vld [vmem:[%s20886_s0 + $0x7c8] sm:$0xff]   ;;  %v16550_v32 = vld [vmem:[%s20886_s0 + $0x6d8] sm:$0xff]  }
 0x2ef   :  { %14924 = vmatprep.mubr.msk.bf16.mxu0 %vm319_vm0, %v16486_v31  ;;  %15188 = vmatprep.mubr.msk.bf16.mxu1 %vm319_vm0, %v16487_v33  ;;  %v16549_v31 = vld [vmem:[%s20886_s0 + $0x7d0] sm:$0xff]   ;;  %v16552_v33 = vld [vmem:[%s20886_s0 + $0x6e0] sm:$0xff]  }
 0x2f6   :  { %14925 = vmatmul.mubr.msk.bf16.gmra.mrb[120].mxu0 %vm319_vm0, %v16488_v34  ;;  %15189 = vmatmul.mubr.msk.bf16.gmra.mrb[120].mxu1 %vm319_vm0, %v16489_v36  ;;  %v16551_v34 = vld [vmem:[%s20886_s0 + $0x7d8] sm:$0xff]   ;;  %v16554_v36 = vld [vmem:[%s20886_s0 + $0x6e8] sm:$0xff]  }
 0x2f7   :  { %14928 = vmatprep.mubr.msk.bf16.mxu0 %vm319_vm0, %v16490_v35  ;;  %15192 = vmatprep.mubr.msk.bf16.mxu1 %vm319_vm0, %v16491_v37  ;;  %v16553_v35 = vld [vmem:[%s20886_s0 + $0x7e0] sm:$0xff]   ;;  %v16556_v37 = vld [vmem:[%s20886_s0 + $0x6f0] sm:$0xff]  }
 0x2fe   :  { %14929 = vmatmul.mubr.msk.bf16.gmra.mrb[124].mxu0 %vm319_vm0, %v16492_v38  ;;  %15193 = vmatmul.mubr.msk.bf16.gmra.mrb[124].mxu1 %vm319_vm0, %v16493_v40  ;;  %v16555_v38 = vld [vmem:[%s20886_s0 + $0x7e8] sm:$0xff]   ;;  %v16558_v40 = vld [vmem:[%s20886_s0 + $0x6f8] sm:$0xff]  }
 0x2ff   :  { %14934 = vmatprep.mubr.msk.bf16.mxu0 %vm319_vm0, %v16494_v39  ;;  %15198 = vmatprep.mubr.msk.bf16.mxu1 %vm319_vm0, %v16495_v41  ;;  %v16557_v39 = vld [vmem:[%s20886_s0 + $0x7f0] sm:$0xff]   ;;  %v16560_v41 = vld [vmem:[%s20886_s0 + $0x700] sm:$0xff]  }
 0x306   :  { %14935 = vmatmul.mubr.msk.bf16.vlgmr.msra.gmra.mrb[64].mxu0 %vm319_vm0, %v16496_v42  ;;  %15199 = vmatmul.mubr.msk.bf16.vlgmr.msra.gmra.mrb[64].mxu1 %vm319_vm0, %v16498_v44  ;;  %v16559_v42 = vld [vmem:[%s20886_s0 + $0x7f8] sm:$0xff]   ;;  %v16562_v44 = vld [vmem:[%s20886_s0 + $0x708] sm:$0xff]  }
 0x307   :  { %14999 = vmatpush3.bf16.msra.mxu0 %v17138_v46  ;;  %14938 = vmatprep.mubr.msk.bf16.mxu0 %vm319_vm0, %v16500_v43  ;;  %v16561_v43 = vld [vmem:[%s20886_s0 + $0x800] sm:$0xff]   ;;  %v16563_v46 = vld [vmem:[%s20886_s0 + $0x808] sm:$0xff]  }
 0x308   :  { %15263 = vmatpush3.bf16.msra.mxu1 %v17139_v47  ;;  %15202 = vmatprep.mubr.msk.bf16.mxu1 %vm319_vm0, %v16501_v45  ;;  %v16564_v45 = vld [vmem:[%s20886_s0 + $0x710] sm:$0xff]  }
 0x309   :  { %v16565_v47 = vld [vmem:[%s20886_s0 + $0x810] sm:$0xff]  }
 0x30e   :  { %14939 = vmatmul.mubr.msk.bf16.gmra.mrb[68].mxu0 %vm319_vm0, %v16502_v48  ;;  %15203 = vmatmul.mubr.msk.bf16.gmra.mrb[68].mxu1 %vm319_vm0, %v16503_v50  ;;  %v16566_v48 = vld [vmem:[%s20886_s0 + $0x718] sm:$0xff]  }
 0x30f   :  { %14942 = vmatprep.mubr.msk.bf16.mxu0 %vm319_vm0, %v16504_v49  ;;  %15206 = vmatprep.mubr.msk.bf16.mxu1 %vm319_vm0, %v16505_v51  ;;  %v16568_v49 = vld [vmem:[%s20886_s0 + $0x720] sm:$0xff]   ;;  %v16567_v50 = vld [vmem:[%s20886_s0 + $0x818] sm:$0xff]  }
 0x310   :  { %v16569_v51 = vld [vmem:[%s20886_s0 + $0x820] sm:$0xff]  }
 0x316   :  { %14943 = vmatmul.mubr.msk.bf16.gmra.mrb[72].mxu0 %vm319_vm0, %v16506_v52  ;;  %15207 = vmatmul.mubr.msk.bf16.gmra.mrb[72].mxu1 %vm319_vm0, %v16507_v54  ;;  %v16570_v52 = vld [vmem:[%s20886_s0 + $0x728] sm:$0xff]  }
 0x317   :  { %14946 = vmatprep.mubr.msk.bf16.mxu0 %vm319_vm0, %v16508_v53  ;;  %15210 = vmatprep.mubr.msk.bf16.mxu1 %vm319_vm0, %v16509_v55  ;;  %v16572_v53 = vld [vmem:[%s20886_s0 + $0x730] sm:$0xff]   ;;  %v16571_v54 = vld [vmem:[%s20886_s0 + $0x828] sm:$0xff]  }
 0x318   :  { %v16573_v55 = vld [vmem:[%s20886_s0 + $0x830] sm:$0xff]  }
 0x31e   :  { %14947 = vmatmul.mubr.msk.bf16.gmra.mrb[76].mxu0 %vm319_vm0, %v16510_v56  ;;  %15211 = vmatmul.mubr.msk.bf16.gmra.mrb[76].mxu1 %vm319_vm0, %v16511_v58  ;;  %v16574_v56 = vld [vmem:[%s20886_s0 + $0x738] sm:$0xff]  }
 0x31f   :  { %14950 = vmatprep.mubr.msk.bf16.mxu0 %vm319_vm0, %v16512_v57  ;;  %15214 = vmatprep.mubr.msk.bf16.mxu1 %vm319_vm0, %v16513_v59  ;;  %v16576_v57 = vld [vmem:[%s20886_s0 + $0x740] sm:$0xff]   ;;  %v16575_v58 = vld [vmem:[%s20886_s0 + $0x838] sm:$0xff]  }
 0x320   :  { %v16577_v59 = vld [vmem:[%s20886_s0 + $0x840] sm:$0xff]  }
 0x326   :  { %14951 = vmatmul.mubr.msk.bf16.gmra.mrb[80].mxu0 %vm319_vm0, %v16514_v61  ;;  %15215 = vmatmul.mubr.msk.bf16.gmra.mrb[80].mxu1 %vm319_vm0, %v16515_v0  ;;  %v16578_v61 = vld [vmem:[%s20886_s0 + $0x748] sm:$0xff]  }
 0x327   :  { %14954 = vmatprep.mubr.msk.bf16.mxu0 %vm319_vm0, %v16516_v63  ;;  %15218 = vmatprep.mubr.msk.bf16.mxu1 %vm319_vm0, %v16517_v1  ;;  %v16580_v63 = vld [vmem:[%s20886_s0 + $0x750] sm:$0xff]   ;;  %v16579_v0 = vld [vmem:[%s20886_s0 + $0x848] sm:$0xff]  }
 0x328   :  { %v16581_v1 = vld [vmem:[%s20886_s0 + $0x850] sm:$0xff]  }
 0x32e   :  { %14955 = vmatmul.mubr.msk.bf16.gmra.mrb[84].mxu0 %vm319_vm0, %v16518_v2  ;;  %15219 = vmatmul.mubr.msk.bf16.gmra.mrb[84].mxu1 %vm319_vm0, %v16519_v4  ;;  %v16582_v2 = vld [vmem:[%s20886_s0 + $0x758] sm:$0xff]  }
 0x32f   :  { %14958 = vmatprep.mubr.msk.bf16.mxu0 %vm319_vm0, %v16520_v3  ;;  %15222 = vmatprep.mubr.msk.bf16.mxu1 %vm319_vm0, %v16521_v5  ;;  %v16584_v3 = vld [vmem:[%s20886_s0 + $0x760] sm:$0xff]   ;;  %v16583_v4 = vld [vmem:[%s20886_s0 + $0x858] sm:$0xff]  }
 0x330   :  { %v16585_v5 = vld [vmem:[%s20886_s0 + $0x860] sm:$0xff]  }
 0x336   :  { %14959 = vmatmul.mubr.msk.bf16.gmra.mrb[88].mxu0 %vm319_vm0, %v16522_v6  ;;  %15223 = vmatmul.mubr.msk.bf16.gmra.mrb[88].mxu1 %vm319_vm0, %v16523_v8  ;;  %v16586_v6 = vld [vmem:[%s20886_s0 + $0x768] sm:$0xff]  }
 0x337   :  { %14962 = vmatprep.mubr.msk.bf16.mxu0 %vm319_vm0, %v16524_v7  ;;  %15226 = vmatprep.mubr.msk.bf16.mxu1 %vm319_vm0, %v16525_v28  ;;  %v16588_v7 = vld [vmem:[%s20886_s0 + $0x770] sm:$0xff]   ;;  %v16587_v8 = vld [vmem:[%s20886_s0 + $0x868] sm:$0xff]  }
 0x338   :  { %v16589_v28 = vld [vmem:[%s20886_s0 + $0x870] sm:$0xff]  }
 0x33e   :  { %14963 = vmatmul.mubr.msk.bf16.gmra.mrb[92].mxu0 %vm319_vm0, %v16526_v9  ;;  %15227 = vmatmul.mubr.msk.bf16.gmra.mrb[92].mxu1 %vm319_vm0, %v16527_v11  ;;  %v16590_v9 = vld [vmem:[%s20886_s0 + $0x778] sm:$0xff]  }
 0x33f   :  { %14966 = vmatprep.mubr.msk.bf16.mxu0 %vm319_vm0, %v16528_v10  ;;  %15230 = vmatprep.mubr.msk.bf16.mxu1 %vm319_vm0, %v16529_v60  ;;  %v16592_v10 = vld [vmem:[%s20886_s0 + $0x780] sm:$0xff]   ;;  %v16591_v11 = vld [vmem:[%s20886_s0 + $0x878] sm:$0xff]  }
 0x340   :  { %v16593_v60 = vld [vmem:[%s20886_s0 + $0x880] sm:$0xff]  }
 0x346   :  { %14967 = vmatmul.mubr.msk.bf16.gmra.mrb[96].mxu0 %vm319_vm0, %v16530_v12  ;;  %15231 = vmatmul.mubr.msk.bf16.gmra.mrb[96].mxu1 %vm319_vm0, %v16531_v13  ;;  %v16594_v12 = vld [vmem:[%s20886_s0 + $0x788] sm:$0xff]  }
 0x347   :  { %14970 = vmatprep.mubr.msk.bf16.mxu0 %vm319_vm0, %v16532_v14  ;;  %15234 = vmatprep.mubr.msk.bf16.mxu1 %vm319_vm0, %v16533_v18  ;;  %v16596_v14 = vld [vmem:[%s20886_s0 + $0x790] sm:$0xff]   ;;  %v16595_v13 = vld [vmem:[%s20886_s0 + $0x888] sm:$0xff]  }
 0x348   :  { %v16597_v18 = vld [vmem:[%s20886_s0 + $0x890] sm:$0xff]  }
 0x34e   :  { %14971 = vmatmul.mubr.msk.bf16.gmra.mrb[100].mxu0 %vm319_vm0, %v16534_v20  ;;  %15235 = vmatmul.mubr.msk.bf16.gmra.mrb[100].mxu1 %vm319_vm0, %v16535_v21  ;;  %v16598_v20 = vld [vmem:[%s20886_s0 + $0x798] sm:$0xff]  }
 0x34f   :  { %14974 = vmatprep.mubr.msk.bf16.mxu0 %vm319_vm0, %v16536_v16  ;;  %15238 = vmatprep.mubr.msk.bf16.mxu1 %vm319_vm0, %v16537_v26  ;;  %v16600_v16 = vld [vmem:[%s20886_s0 + $0x7a0] sm:$0xff]   ;;  %v16599_v21 = vld [vmem:[%s20886_s0 + $0x898] sm:$0xff]  }
 0x350   :  { %v16601_v26 = vld [vmem:[%s20886_s0 + $0x8a0] sm:$0xff]  }
 0x356   :  { %14975 = vmatmul.mubr.msk.bf16.gmra.mrb[104].mxu0 %vm319_vm0, %v16538_v17  ;;  %15239 = vmatmul.mubr.msk.bf16.gmra.mrb[104].mxu1 %vm319_vm0, %v16539_v22  ;;  %v16602_v17 = vld [vmem:[%s20886_s0 + $0x7a8] sm:$0xff]  }
 0x357   :  { %14978 = vmatprep.mubr.msk.bf16.mxu0 %vm319_vm0, %v16540_v19  ;;  %15242 = vmatprep.mubr.msk.bf16.mxu1 %vm319_vm0, %v16541_v15  ;;  %v16604_v19 = vld [vmem:[%s20886_s0 + $0x7b0] sm:$0xff]   ;;  %v16603_v22 = vld [vmem:[%s20886_s0 + $0x8a8] sm:$0xff]  }
 0x358   :  { %v16605_v15 = vld [vmem:[%s20886_s0 + $0x8b0] sm:$0xff]  }
 0x35e   :  { %14979 = vmatmul.mubr.msk.bf16.gmra.mrb[108].mxu0 %vm319_vm0, %v16542_v23  ;;  %15243 = vmatmul.mubr.msk.bf16.gmra.mrb[108].mxu1 %vm319_vm0, %v16543_v25  ;;  %v16606_v23 = vld [vmem:[%s20886_s0 + $0x7b8] sm:$0xff]  }
 0x35f   :  { %14982 = vmatprep.mubr.msk.bf16.mxu0 %vm319_vm0, %v16544_v24  ;;  %15246 = vmatprep.mubr.msk.bf16.mxu1 %vm319_vm0, %v16545_v27  ;;  %v16608_v24 = vld [vmem:[%s20886_s0 + $0x7c0] sm:$0xff]   ;;  %v16607_v25 = vld [vmem:[%s20886_s0 + $0x8b8] sm:$0xff]  }
 0x360   :  { %v16609_v27 = vld [vmem:[%s20886_s0 + $0x8c0] sm:$0xff]  }
 0x366   :  { %14983 = vmatmul.mubr.msk.bf16.gmra.mrb[112].mxu0 %vm319_vm0, %v16546_v29  ;;  %15247 = vmatmul.mubr.msk.bf16.gmra.mrb[112].mxu1 %vm319_vm0, %v16547_v62  ;;  %v16610_v29 = vld [vmem:[%s20886_s0 + $0x7c8] sm:$0xff]  }
 0x367   :  { %14986 = vmatprep.mubr.msk.bf16.mxu0 %vm319_vm0, %v16548_v30  ;;  %15250 = vmatprep.mubr.msk.bf16.mxu1 %vm319_vm0, %v16549_v31  ;;  %v16612_v30 = vld [vmem:[%s20886_s0 + $0x7d0] sm:$0xff]   ;;  %v16611_v62 = vld [vmem:[%s20886_s0 + $0x8c8] sm:$0xff]  }
 0x368   :  { %v16613_v31 = vld [vmem:[%s20886_s0 + $0x8d0] sm:$0xff]  }
 0x36e   :  { %14987 = vmatmul.mubr.msk.bf16.gmra.mrb[116].mxu0 %vm319_vm0, %v16550_v32  ;;  %15251 = vmatmul.mubr.msk.bf16.gmra.mrb[116].mxu1 %vm319_vm0, %v16551_v34  ;;  %v16614_v32 = vld [vmem:[%s20886_s0 + $0x7d8] sm:$0xff]  }
 0x36f   :  { %14990 = vmatprep.mubr.msk.bf16.mxu0 %vm319_vm0, %v16552_v33  ;;  %15254 = vmatprep.mubr.msk.bf16.mxu1 %vm319_vm0, %v16553_v35  ;;  %v16616_v33 = vld [vmem:[%s20886_s0 + $0x7e0] sm:$0xff]   ;;  %v16615_v34 = vld [vmem:[%s20886_s0 + $0x8d8] sm:$0xff]  }
 0x370   :  { %v16617_v35 = vld [vmem:[%s20886_s0 + $0x8e0] sm:$0xff]  }
 0x376   :  { %14991 = vmatmul.mubr.msk.bf16.gmra.mrb[120].mxu0 %vm319_vm0, %v16554_v36  ;;  %15255 = vmatmul.mubr.msk.bf16.gmra.mrb[120].mxu1 %vm319_vm0, %v16555_v38  ;;  %v16618_v36 = vld [vmem:[%s20886_s0 + $0x7e8] sm:$0xff]  }
 0x377   :  { %14994 = vmatprep.mubr.msk.bf16.mxu0 %vm319_vm0, %v16556_v37  ;;  %15258 = vmatprep.mubr.msk.bf16.mxu1 %vm319_vm0, %v16557_v39  ;;  %v16620_v37 = vld [vmem:[%s20886_s0 + $0x7f0] sm:$0xff]   ;;  %v16619_v38 = vld [vmem:[%s20886_s0 + $0x8e8] sm:$0xff]  }
 0x378   :  { %v16621_v39 = vld [vmem:[%s20886_s0 + $0x8f0] sm:$0xff]  }
 0x37e   :  { %14995 = vmatmul.mubr.msk.bf16.gmra.mrb[124].mxu0 %vm319_vm0, %v16558_v40  ;;  %15259 = vmatmul.mubr.msk.bf16.gmra.mrb[124].mxu1 %vm319_vm0, %v16559_v42  ;;  %v16622_v40 = vld [vmem:[%s20886_s0 + $0x7f8] sm:$0xff]   ;;  %v20100_v42 = vld [vmem:[%s20887_s2] ss:$0 sm:$0xff] }
 0x37f   :  { %15000 = vmatprep.mubr.msk.bf16.mxu0 %vm319_vm0, %v16560_v41  ;;  %15264 = vmatprep.mubr.msk.bf16.mxu1 %vm319_vm0, %v16561_v43  ;;  %v16623_v41 = vld [vmem:[%s20886_s0 + $0x8f8] sm:$0xff]  }
 0x386   :  { %15001 = vmatmul.mubr.msk.bf16.vlgmr.msra.gmra.mrb[64].mxu0 %vm319_vm0, %v16562_v44  ;;  %15265 = vmatmul.mubr.msk.bf16.vlgmr.msra.gmra.mrb[64].mxu1 %vm319_vm0, %v16563_v46  ;;  %v20105_v44 = vld [vmem:[%s20888_s3] ss:$0 sm:$0xff] }
 0x387   :  { %15004 = vmatprep.mubr.msk.bf16.mxu0 %vm319_vm0, %v16564_v45  ;;  %15268 = vmatprep.mubr.msk.bf16.mxu1 %vm319_vm0, %v16565_v47 }
 0x38e   :  { %15005 = vmatmul.mubr.msk.bf16.gmra.mrb[68].mxu0 %vm319_vm0, %v16566_v48  ;;  %15269 = vmatmul.mubr.msk.bf16.gmra.mrb[68].mxu1 %vm319_vm0, %v16567_v50 }
 0x38f   :  { %15008 = vmatprep.mubr.msk.bf16.mxu0 %vm319_vm0, %v16568_v49  ;;  %15272 = vmatprep.mubr.msk.bf16.mxu1 %vm319_vm0, %v16569_v51 }
 0x396   :  { %15009 = vmatmul.mubr.msk.bf16.gmra.mrb[72].mxu0 %vm319_vm0, %v16570_v52  ;;  %15273 = vmatmul.mubr.msk.bf16.gmra.mrb[72].mxu1 %vm319_vm0, %v16571_v54 }
 0x397   :  { %15012 = vmatprep.mubr.msk.bf16.mxu0 %vm319_vm0, %v16572_v53  ;;  %15276 = vmatprep.mubr.msk.bf16.mxu1 %vm319_vm0, %v16573_v55 }
 0x39e   :  { %15013 = vmatmul.mubr.msk.bf16.gmra.mrb[76].mxu0 %vm319_vm0, %v16574_v56  ;;  %15277 = vmatmul.mubr.msk.bf16.gmra.mrb[76].mxu1 %vm319_vm0, %v16575_v58 }
 0x39f   :  { %15016 = vmatprep.mubr.msk.bf16.mxu0 %vm319_vm0, %v16576_v57  ;;  %15280 = vmatprep.mubr.msk.bf16.mxu1 %vm319_vm0, %v16577_v59 }
 0x3a6   :  { %15017 = vmatmul.mubr.msk.bf16.gmra.mrb[80].mxu0 %vm319_vm0, %v16578_v61  ;;  %15281 = vmatmul.mubr.msk.bf16.gmra.mrb[80].mxu1 %vm319_vm0, %v16579_v0 }
 0x3a7   :  { %15020 = vmatprep.mubr.msk.bf16.mxu0 %vm319_vm0, %v16580_v63  ;;  %15284 = vmatprep.mubr.msk.bf16.mxu1 %vm319_vm0, %v16581_v1 }
 0x3ae   :  { %15021 = vmatmul.mubr.msk.bf16.gmra.mrb[84].mxu0 %vm319_vm0, %v16582_v2  ;;  %15285 = vmatmul.mubr.msk.bf16.gmra.mrb[84].mxu1 %vm319_vm0, %v16583_v4 }
 0x3af   :  { %15024 = vmatprep.mubr.msk.bf16.mxu0 %vm319_vm0, %v16584_v3  ;;  %15288 = vmatprep.mubr.msk.bf16.mxu1 %vm319_vm0, %v16585_v5 }
 0x3b6   :  { %15025 = vmatmul.mubr.msk.bf16.gmra.mrb[88].mxu0 %vm319_vm0, %v16586_v6  ;;  %15289 = vmatmul.mubr.msk.bf16.gmra.mrb[88].mxu1 %vm319_vm0, %v16587_v8 }
 0x3b7   :  { %15028 = vmatprep.mubr.msk.bf16.mxu0 %vm319_vm0, %v16588_v7  ;;  %15292 = vmatprep.mubr.msk.bf16.mxu1 %vm319_vm0, %v16589_v28 }
 0x3be   :  { %15029 = vmatmul.mubr.msk.bf16.gmra.mrb[92].mxu0 %vm319_vm0, %v16590_v9  ;;  %15293 = vmatmul.mubr.msk.bf16.gmra.mrb[92].mxu1 %vm319_vm0, %v16591_v11 }
 0x3bf   :  { %15032 = vmatprep.mubr.msk.bf16.mxu0 %vm319_vm0, %v16592_v10  ;;  %15296 = vmatprep.mubr.msk.bf16.mxu1 %vm319_vm0, %v16593_v60 }
 0x3c6   :  { %15033 = vmatmul.mubr.msk.bf16.gmra.mrb[96].mxu0 %vm319_vm0, %v16594_v12  ;;  %15297 = vmatmul.mubr.msk.bf16.gmra.mrb[96].mxu1 %vm319_vm0, %v16595_v13 }
 0x3c7   :  { %15036 = vmatprep.mubr.msk.bf16.mxu0 %vm319_vm0, %v16596_v14  ;;  %15300 = vmatprep.mubr.msk.bf16.mxu1 %vm319_vm0, %v16597_v18 }
 0x3ce   :  { %15037 = vmatmul.mubr.msk.bf16.gmra.mrb[100].mxu0 %vm319_vm0, %v16598_v20  ;;  %15301 = vmatmul.mubr.msk.bf16.gmra.mrb[100].mxu1 %vm319_vm0, %v16599_v21 }
 0x3cf   :  { %15040 = vmatprep.mubr.msk.bf16.mxu0 %vm319_vm0, %v16600_v16  ;;  %15304 = vmatprep.mubr.msk.bf16.mxu1 %vm319_vm0, %v16601_v26 }
 0x3d6   :  { %15041 = vmatmul.mubr.msk.bf16.gmra.mrb[104].mxu0 %vm319_vm0, %v16602_v17  ;;  %15305 = vmatmul.mubr.msk.bf16.gmra.mrb[104].mxu1 %vm319_vm0, %v16603_v22 }
 0x3d7   :  { %15044 = vmatprep.mubr.msk.bf16.mxu0 %vm319_vm0, %v16604_v19  ;;  %15308 = vmatprep.mubr.msk.bf16.mxu1 %vm319_vm0, %v16605_v15 }
 0x3de   :  { %15045 = vmatmul.mubr.msk.bf16.gmra.mrb[108].mxu0 %vm319_vm0, %v16606_v23  ;;  %15309 = vmatmul.mubr.msk.bf16.gmra.mrb[108].mxu1 %vm319_vm0, %v16607_v25 }
 0x3df   :  { %15048 = vmatprep.mubr.msk.bf16.mxu0 %vm319_vm0, %v16608_v24  ;;  %15312 = vmatprep.mubr.msk.bf16.mxu1 %vm319_vm0, %v16609_v27 }
 0x3e6   :  { %15049 = vmatmul.mubr.msk.bf16.gmra.mrb[112].mxu0 %vm319_vm0, %v16610_v29  ;;  %15313 = vmatmul.mubr.msk.bf16.gmra.mrb[112].mxu1 %vm319_vm0, %v16611_v62 }
 0x3e7   :  { %15052 = vmatprep.mubr.msk.bf16.mxu0 %vm319_vm0, %v16612_v30  ;;  %15316 = vmatprep.mubr.msk.bf16.mxu1 %vm319_vm0, %v16613_v31 }
 0x3ee   :  { %15053 = vmatmul.mubr.msk.bf16.gmra.mrb[116].mxu0 %vm319_vm0, %v16614_v32  ;;  %15317 = vmatmul.mubr.msk.bf16.gmra.mrb[116].mxu1 %vm319_vm0, %v16615_v34 }
 0x3ef   :  { %15056 = vmatprep.mubr.msk.bf16.mxu0 %vm319_vm0, %v16616_v33  ;;  %15320 = vmatprep.mubr.msk.bf16.mxu1 %vm319_vm0, %v16617_v35 }
 0x3f6   :  { %15057 = vmatmul.mubr.msk.bf16.gmra.mrb[120].mxu0 %vm319_vm0, %v16618_v36  ;;  %15321 = vmatmul.mubr.msk.bf16.gmra.mrb[120].mxu1 %vm319_vm0, %v16619_v38 }
 0x3f7   :  { %15060 = vmatprep.mubr.msk.bf16.mxu0 %vm319_vm0, %v16620_v37  ;;  %15324 = vmatprep.mubr.msk.bf16.mxu1 %vm319_vm0, %v16621_v39 }
 0x3fe   :  { %15061 = vmatmul.mubr.msk.bf16.gmra.mrb[124].mxu0 %vm319_vm0, %v16622_v40  ;;  %15325 = vmatmul.mubr.msk.bf16.gmra.mrb[124].mxu1 %vm319_vm0, %v16623_v41 }
 0x459   :  { %v15002_v43 = vpop.f32.mrb[64].mxu0  ;;  %v15266_v47 = vpop.f32.mrb[64].mxu1 }
 0x45a   :  { %v8377_v45 = vmul.f32 %v15002_v43, %v20100_v42  ;;  %v8049_v46 = vpop.f32.mrb[65].mxu0  ;;  %v11248_v51 = vmul.f32 %v15266_v47, %v20100_v42  ;;  %v10920_v52 = vpop.f32.mrb[65].mxu1 }
 0x45b   :  { %v8375_v48 = vmul.f32 %v20100_v42, %v8049_v46  ;;  %v15003_v49 = vpop.f32.mrb[66].mxu0  ;;  %v11246_v56 = vmul.f32 %v20100_v42, %v10920_v52  ;;  %v15267_v57 = vpop.f32.mrb[66].mxu1 }
 0x45c   :  { %v8448_v50 = vadd.f32 %v20105_v44, %v8377_v45  ;;  %v8378_v53 = vmul.f32 %v15003_v49, %v20100_v42  ;;  %v8052_v54 = vpop.f32.mrb[67].mxu0  ;;  %v11319_v59 = vadd.f32 %v20105_v44, %v11248_v51  ;;  %v11249_v63 = vmul.f32 %v15267_v57, %v20100_v42  ;;  %v10923_v0 = vpop.f32.mrb[67].mxu1 }
 0x45d   :  { %v8446_v55 = vadd.f32 %v20105_v44, %v8375_v48  ;;  %v8376_v58 = vmul.f32 %v20100_v42, %v8052_v54  ;;  %v11317_v1 = vadd.f32 %v20105_v44, %v11246_v56  ;;  %v11247_v2 = vmul.f32 %v20100_v42, %v10923_v0 }
 0x45e   :  { %16880 = vtanh.f32 %v8448_v50  ;;  %v8449_v61 = vadd.f32 %v20105_v44, %v8378_v53  ;;  %v11320_v3 = vadd.f32 %v20105_v44, %v11249_v63 }
 0x45f   :  { %16882 = vtanh.f32 %v8446_v55  ;;  %v8447_v4 = vadd.f32 %v20105_v44, %v8376_v58  ;;  %v11318_v5 = vadd.f32 %v20105_v44, %v11247_v2 }
 0x460   :  { %16884 = vtanh.f32 %v11319_v59 }
 0x461   :  { %16886 = vtanh.f32 %v11317_v1  ;;  %v15006_v6 = vpop.f32.mrb[68].mxu0  ;;  %v15270_v28 = vpop.f32.mrb[68].mxu1 }
 0x462   :  { %16888 = vtanh.f32 %v8449_v61  ;;  %v8381_v7 = vmul.f32 %v15006_v6, %v20100_v42  ;;  %v8065_v8 = vpop.f32.mrb[69].mxu0  ;;  %v11252_v60 = vmul.f32 %v15270_v28, %v20100_v42  ;;  %v10936_v12 = vpop.f32.mrb[69].mxu1 }
 0x463   :  { %16890 = vtanh.f32 %v11320_v3  ;;  %v8379_v9 = vmul.f32 %v20100_v42, %v8065_v8  ;;  %v15007_v10 = vpop.f32.mrb[70].mxu0  ;;  %v11250_v20 = vmul.f32 %v20100_v42, %v10936_v12  ;;  %v15271_v16 = vpop.f32.mrb[70].mxu1 }
 0x464   :  { %16892 = vtanh.f32 %v8447_v4  ;;  %v8452_v11 = vadd.f32 %v20105_v44, %v8381_v7  ;;  %v8382_v14 = vmul.f32 %v15007_v10, %v20100_v42  ;;  %v8068_v13 = vpop.f32.mrb[71].mxu0  ;;  %v11323_v26 = vadd.f32 %v20105_v44, %v11252_v60  ;;  %v10939_v22 = vpop.f32.mrb[71].mxu1 }
 0x465   :  { %16894 = vtanh.f32 %v11318_v5  ;;  %v8450_v18 = vadd.f32 %v20105_v44, %v8379_v9  ;;  %v8380_v21 = vmul.f32 %v20100_v42, %v8068_v13  ;;  %v11253_v19 = vmul.f32 %v15271_v16, %v20100_v42 }
 0x466   :  { %16896 = vtanh.f32 %v8452_v11  ;;  %v8453_v17 = vadd.f32 %v20105_v44, %v8382_v14  ;;  %v11321_v15 = vadd.f32 %v20105_v44, %v11250_v20  ;;  %v11251_v23 = vmul.f32 %v20100_v42, %v10939_v22 }
 0x467   :  { %16898 = vtanh.f32 %v8450_v18  ;;  %v11324_v25 = vadd.f32 %v20105_v44, %v11253_v19  ;;  %v8451_v27 = vadd.f32 %v20105_v44, %v8380_v21 }
 0x468   :  { %v16881_v24 = vpop.eup %16880  ;;  %16900 = vtanh.f32 %v11323_v26  ;;  %v11322_v30 = vadd.f32 %v20105_v44, %v11251_v23 }
 0x469   :  { %v16883_v29 = vpop.eup %16882  ;;  %13094 = vst.msk [vmem:[%s20889_s4 + $0x410] sm:$0xff] %vm2828_vm1, %v16881_v24  ;;  %16902 = vtanh.f32 %v11321_v15  ;;  %v15010_v62 = vpop.f32.mrb[72].mxu0 }
 0x46a   :  { %v16885_v31 = vpop.eup %16884  ;;  %13092 = vst.msk [vmem:[%s20889_s4 + $0x400] sm:$0xff] %vm2828_vm1, %v16883_v29  ;;  %16904 = vtanh.f32 %v8453_v17  ;;  %v8385_v32 = vmul.f32 %v15010_v62, %v20100_v42  ;;  %v8081_v33 = vpop.f32.mrb[73].mxu0 }
 0x46b   :  { %v16887_v34 = vpop.eup %16886  ;;  %13682 = vst.msk [vmem:[%s20889_s4 + $0x610] sm:$0xff] %vm2828_vm1, %v16885_v31  ;;  %16906 = vtanh.f32 %v11324_v25  ;;  %v15274_v35 = vpop.f32.mrb[72].mxu1  ;;  %v8383_v36 = vmul.f32 %v20100_v42, %v8081_v33 }
 0x46c   :  { %v15011_v37 = vpop.f32.mrb[74].mxu0  ;;  %v16889_v38 = vpop.eup %16888  ;;  %13680 = vst.msk [vmem:[%s20889_s4 + $0x600] sm:$0xff] %vm2828_vm1, %v16887_v34  ;;  %16908 = vtanh.f32 %v8451_v27  ;;  %v8456_v39 = vadd.f32 %v20105_v44, %v8385_v32  ;;  %v11256_v40 = vmul.f32 %v15274_v35, %v20100_v42 }
 0x46d   :  { %v10952_v41 = vpop.f32.mrb[73].mxu1  ;;  %v8386_v43 = vmul.f32 %v15011_v37, %v20100_v42  ;;  %v8084_v45 = vpop.f32.mrb[75].mxu0  ;;  %13095 = vst.msk [vmem:[%s20889_s4 + $0x418] sm:$0xff] %vm2828_vm1, %v16889_v38  ;;  %16910 = vtanh.f32 %v11322_v30  ;;  %v8454_v47 = vadd.f32 %v20105_v44, %v8383_v36 }
 0x46e   :  { %v16891_v46 = vpop.eup %16890  ;;  %v11254_v48 = vmul.f32 %v20100_v42, %v10952_v41  ;;  %v15275_v49 = vpop.f32.mrb[74].mxu1  ;;  %v8384_v50 = vmul.f32 %v20100_v42, %v8084_v45  ;;  %16912 = vtanh.f32 %v8456_v39  ;;  %v11327_v52 = vadd.f32 %v20105_v44, %v11256_v40 }
 0x46f   :  { %v16893_v51 = vpop.eup %16892  ;;  %13683 = vst.msk [vmem:[%s20889_s4 + $0x618] sm:$0xff] %vm2828_vm1, %v16891_v46  ;;  %v8457_v53 = vadd.f32 %v20105_v44, %v8386_v43  ;;  %v11257_v54 = vmul.f32 %v15275_v49, %v20100_v42  ;;  %v10955_v55 = vpop.f32.mrb[75].mxu1  ;;  %16914 = vtanh.f32 %v8454_v47 }
 0x470   :  { %v16895_v56 = vpop.eup %16894  ;;  %13093 = vst.msk [vmem:[%s20889_s4 + $0x408] sm:$0xff] %vm2828_vm1, %v16893_v51  ;;  %v11325_v57 = vadd.f32 %v20105_v44, %v11254_v48  ;;  %v11255_v58 = vmul.f32 %v20100_v42, %v10955_v55  ;;  %16916 = vtanh.f32 %v11327_v52  ;;  %v8455_v63 = vadd.f32 %v20105_v44, %v8384_v50 }
 0x471   :  { %v16897_v59 = vpop.eup %16896  ;;  %13681 = vst.msk [vmem:[%s20889_s4 + $0x608] sm:$0xff] %vm2828_vm1, %v16895_v56  ;;  %v11328_v61 = vadd.f32 %v20105_v44, %v11257_v54  ;;  %v15014_v2 = vpop.f32.mrb[76].mxu0 }
 0x472   :  { %v16899_v0 = vpop.eup %16898  ;;  %13098 = vst.msk [vmem:[%s20889_s4 + $0x430] sm:$0xff] %vm2828_vm1, %v16897_v59  ;;  %16918 = vtanh.f32 %v11325_v57  ;;  %v11326_v1 = vadd.f32 %v20105_v44, %v11255_v58  ;;  %v8389_v4 = vmul.f32 %v15014_v2, %v20100_v42  ;;  %v8097_v5 = vpop.f32.mrb[77].mxu0 }
 0x473   :  { %v16901_v3 = vpop.eup %16900  ;;  %13096 = vst.msk [vmem:[%s20889_s4 + $0x420] sm:$0xff] %vm2828_vm1, %v16899_v0  ;;  %16920 = vtanh.f32 %v8457_v53  ;;  %v15278_v7 = vpop.f32.mrb[76].mxu1  ;;  %v8387_v8 = vmul.f32 %v20100_v42, %v8097_v5 }
 0x474   :  { %v16903_v6 = vpop.eup %16902  ;;  %13686 = vst.msk [vmem:[%s20889_s4 + $0x630] sm:$0xff] %vm2828_vm1, %v16901_v3  ;;  %16922 = vtanh.f32 %v11328_v61  ;;  %v15015_v28 = vpop.f32.mrb[78].mxu0  ;;  %v8460_v10 = vadd.f32 %v20105_v44, %v8389_v4  ;;  %v11260_v11 = vmul.f32 %v15278_v7, %v20100_v42 }
 0x475   :  { %v16905_v9 = vpop.eup %16904  ;;  %13684 = vst.msk [vmem:[%s20889_s4 + $0x620] sm:$0xff] %vm2828_vm1, %v16903_v6  ;;  %16924 = vtanh.f32 %v8455_v63  ;;  %v10968_v60 = vpop.f32.mrb[77].mxu1  ;;  %v8390_v12 = vmul.f32 %v15015_v28, %v20100_v42  ;;  %v8458_v18 = vadd.f32 %v20105_v44, %v8387_v8 }
 0x476   :  { %v8100_v14 = vpop.f32.mrb[79].mxu0  ;;  %v16907_v13 = vpop.eup %16906  ;;  %13099 = vst.msk [vmem:[%s20889_s4 + $0x438] sm:$0xff] %vm2828_vm1, %v16905_v9  ;;  %16926 = vtanh.f32 %v11326_v1  ;;  %v11258_v20 = vmul.f32 %v20100_v42, %v10968_v60  ;;  %v11331_v17 = vadd.f32 %v20105_v44, %v11260_v11 }
 0x477   :  { %v15279_v16 = vpop.f32.mrb[78].mxu1  ;;  %v8388_v21 = vmul.f32 %v20100_v42, %v8100_v14  ;;  %v16909_v26 = vpop.eup %16908  ;;  %13687 = vst.msk [vmem:[%s20889_s4 + $0x638] sm:$0xff] %vm2828_vm1, %v16907_v13  ;;  %16928 = vtanh.f32 %v8460_v10  ;;  %v8461_v19 = vadd.f32 %v20105_v44, %v8390_v12 }
 0x478   :  { %v11261_v22 = vmul.f32 %v15279_v16, %v20100_v42  ;;  %v10971_v15 = vpop.f32.mrb[79].mxu1  ;;  %v16911_v23 = vpop.eup %16910  ;;  %13097 = vst.msk [vmem:[%s20889_s4 + $0x428] sm:$0xff] %vm2828_vm1, %v16909_v26  ;;  %16930 = vtanh.f32 %v8458_v18  ;;  %v11329_v24 = vadd.f32 %v20105_v44, %v11258_v20 }
 0x479   :  { %v11259_v25 = vmul.f32 %v20100_v42, %v10971_v15  ;;  %v16913_v27 = vpop.eup %16912  ;;  %13685 = vst.msk [vmem:[%s20889_s4 + $0x628] sm:$0xff] %vm2828_vm1, %v16911_v23  ;;  %16932 = vtanh.f32 %v11331_v17  ;;  %v8459_v30 = vadd.f32 %v20105_v44, %v8388_v21  ;;  %v15018_v32 = vpop.f32.mrb[80].mxu0 }
 0x47a   :  { %v11332_v29 = vadd.f32 %v20105_v44, %v11261_v22  ;;  %v16915_v62 = vpop.eup %16914  ;;  %13102 = vst.msk [vmem:[%s20889_s4 + $0x450] sm:$0xff] %vm2828_vm1, %v16913_v27  ;;  %16934 = vtanh.f32 %v11329_v24  ;;  %v8393_v34 = vmul.f32 %v15018_v32, %v20100_v42  ;;  %v8113_v35 = vpop.f32.mrb[81].mxu0 }
 0x47b   :  { %v11330_v31 = vadd.f32 %v20105_v44, %v11259_v25  ;;  %v16917_v33 = vpop.eup %16916  ;;  %13100 = vst.msk [vmem:[%s20889_s4 + $0x440] sm:$0xff] %vm2828_vm1, %v16915_v62  ;;  %16936 = vtanh.f32 %v8461_v19  ;;  %v15282_v37 = vpop.f32.mrb[80].mxu1  ;;  %v8391_v38 = vmul.f32 %v20100_v42, %v8113_v35 }
 0x47c   :  { %v16919_v36 = vpop.eup %16918  ;;  %13690 = vst.msk [vmem:[%s20889_s4 + $0x650] sm:$0xff] %vm2828_vm1, %v16917_v33  ;;  %16938 = vtanh.f32 %v11332_v29  ;;  %v15019_v39 = vpop.f32.mrb[82].mxu0  ;;  %v8464_v41 = vadd.f32 %v20105_v44, %v8393_v34  ;;  %v11264_v43 = vmul.f32 %v15282_v37, %v20100_v42 }
 0x47d   :  { %v16921_v40 = vpop.eup %16920  ;;  %13688 = vst.msk [vmem:[%s20889_s4 + $0x640] sm:$0xff] %vm2828_vm1, %v16919_v36  ;;  %16940 = vtanh.f32 %v8459_v30  ;;  %v10984_v45 = vpop.f32.mrb[81].mxu1  ;;  %v8394_v46 = vmul.f32 %v15019_v39, %v20100_v42  ;;  %v8462_v49 = vadd.f32 %v20105_v44, %v8391_v38 }
 0x47e   :  { %v8116_v47 = vpop.f32.mrb[83].mxu0  ;;  %v16923_v48 = vpop.eup %16922  ;;  %13103 = vst.msk [vmem:[%s20889_s4 + $0x458] sm:$0xff] %vm2828_vm1, %v16921_v40  ;;  %16942 = vtanh.f32 %v11330_v31  ;;  %v11262_v50 = vmul.f32 %v20100_v42, %v10984_v45  ;;  %v11335_v54 = vadd.f32 %v20105_v44, %v11264_v43 }
 0x47f   :  { %v15283_v51 = vpop.f32.mrb[82].mxu1  ;;  %v8392_v52 = vmul.f32 %v20100_v42, %v8116_v47  ;;  %v16925_v53 = vpop.eup %16924  ;;  %13691 = vst.msk [vmem:[%s20889_s4 + $0x658] sm:$0xff] %vm2828_vm1, %v16923_v48  ;;  %16944 = vtanh.f32 %v8464_v41  ;;  %v8465_v55 = vadd.f32 %v20105_v44, %v8394_v46 }
 0x480   :  { %v11265_v56 = vmul.f32 %v15283_v51, %v20100_v42  ;;  %v10987_v57 = vpop.f32.mrb[83].mxu1  ;;  %v16927_v58 = vpop.eup %16926  ;;  %13101 = vst.msk [vmem:[%s20889_s4 + $0x448] sm:$0xff] %vm2828_vm1, %v16925_v53  ;;  %16946 = vtanh.f32 %v8462_v49  ;;  %v11333_v59 = vadd.f32 %v20105_v44, %v11262_v50 }
 0x481   :  { %v11263_v61 = vmul.f32 %v20100_v42, %v10987_v57  ;;  %v16929_v63 = vpop.eup %16928  ;;  %13689 = vst.msk [vmem:[%s20889_s4 + $0x648] sm:$0xff] %vm2828_vm1, %v16927_v58  ;;  %16948 = vtanh.f32 %v11335_v54  ;;  %v8463_v1 = vadd.f32 %v20105_v44, %v8392_v52  ;;  %v15022_v4 = vpop.f32.mrb[84].mxu0 }
 0x482   :  { %v11336_v0 = vadd.f32 %v20105_v44, %v11265_v56  ;;  %v16931_v2 = vpop.eup %16930  ;;  %13106 = vst.msk [vmem:[%s20889_s4 + $0x470] sm:$0xff] %vm2828_vm1, %v16929_v63  ;;  %16950 = vtanh.f32 %v11333_v59  ;;  %v8397_v6 = vmul.f32 %v15022_v4, %v20100_v42  ;;  %v8129_v7 = vpop.f32.mrb[85].mxu0 }
 0x483   :  { %v11334_v3 = vadd.f32 %v20105_v44, %v11263_v61  ;;  %v16933_v5 = vpop.eup %16932  ;;  %13104 = vst.msk [vmem:[%s20889_s4 + $0x460] sm:$0xff] %vm2828_vm1, %v16931_v2  ;;  %16952 = vtanh.f32 %v8465_v55  ;;  %v15286_v28 = vpop.f32.mrb[84].mxu1  ;;  %v8395_v9 = vmul.f32 %v20100_v42, %v8129_v7 }
 0x484   :  { %v16935_v8 = vpop.eup %16934  ;;  %13694 = vst.msk [vmem:[%s20889_s4 + $0x670] sm:$0xff] %vm2828_vm1, %v16933_v5  ;;  %16954 = vtanh.f32 %v11336_v0  ;;  %v15023_v10 = vpop.f32.mrb[86].mxu0  ;;  %v8468_v60 = vadd.f32 %v20105_v44, %v8397_v6  ;;  %v11268_v12 = vmul.f32 %v15286_v28, %v20100_v42 }
 0x485   :  { %v16937_v11 = vpop.eup %16936  ;;  %13692 = vst.msk [vmem:[%s20889_s4 + $0x660] sm:$0xff] %vm2828_vm1, %v16935_v8  ;;  %16956 = vtanh.f32 %v8463_v1  ;;  %v11000_v14 = vpop.f32.mrb[85].mxu1  ;;  %v8398_v13 = vmul.f32 %v15023_v10, %v20100_v42  ;;  %v8466_v16 = vadd.f32 %v20105_v44, %v8395_v9 }
 0x486   :  { %v8132_v18 = vpop.f32.mrb[87].mxu0  ;;  %v16939_v20 = vpop.eup %16938  ;;  %13107 = vst.msk [vmem:[%s20889_s4 + $0x478] sm:$0xff] %vm2828_vm1, %v16937_v11  ;;  %16958 = vtanh.f32 %v11334_v3  ;;  %v11266_v21 = vmul.f32 %v20100_v42, %v11000_v14  ;;  %v11339_v22 = vadd.f32 %v20105_v44, %v11268_v12 }
 0x487   :  { %v15287_v26 = vpop.f32.mrb[86].mxu1  ;;  %v8396_v17 = vmul.f32 %v20100_v42, %v8132_v18  ;;  %v16941_v19 = vpop.eup %16940  ;;  %13695 = vst.msk [vmem:[%s20889_s4 + $0x678] sm:$0xff] %vm2828_vm1, %v16939_v20  ;;  %16960 = vtanh.f32 %v8468_v60  ;;  %v8469_v15 = vadd.f32 %v20105_v44, %v8398_v13 }
 0x488   :  { %v11269_v23 = vmul.f32 %v15287_v26, %v20100_v42  ;;  %v11003_v24 = vpop.f32.mrb[87].mxu1  ;;  %v16943_v25 = vpop.eup %16942  ;;  %13105 = vst.msk [vmem:[%s20889_s4 + $0x468] sm:$0xff] %vm2828_vm1, %v16941_v19  ;;  %16962 = vtanh.f32 %v8466_v16  ;;  %v11337_v27 = vadd.f32 %v20105_v44, %v11266_v21 }
 0x489   :  { %v11267_v29 = vmul.f32 %v20100_v42, %v11003_v24  ;;  %v16945_v30 = vpop.eup %16944  ;;  %13693 = vst.msk [vmem:[%s20889_s4 + $0x668] sm:$0xff] %vm2828_vm1, %v16943_v25  ;;  %16964 = vtanh.f32 %v11339_v22  ;;  %v8467_v31 = vadd.f32 %v20105_v44, %v8396_v17  ;;  %v15026_v34 = vpop.f32.mrb[88].mxu0 }
 0x48a   :  { %v11340_v62 = vadd.f32 %v20105_v44, %v11269_v23  ;;  %v16947_v32 = vpop.eup %16946  ;;  %13110 = vst.msk [vmem:[%s20889_s4 + $0x490] sm:$0xff] %vm2828_vm1, %v16945_v30  ;;  %16966 = vtanh.f32 %v11337_v27  ;;  %v8401_v36 = vmul.f32 %v15026_v34, %v20100_v42  ;;  %v8145_v37 = vpop.f32.mrb[89].mxu0 }
 0x48b   :  { %v11338_v33 = vadd.f32 %v20105_v44, %v11267_v29  ;;  %v16949_v35 = vpop.eup %16948  ;;  %13108 = vst.msk [vmem:[%s20889_s4 + $0x480] sm:$0xff] %vm2828_vm1, %v16947_v32  ;;  %16968 = vtanh.f32 %v8469_v15  ;;  %v15290_v39 = vpop.f32.mrb[88].mxu1  ;;  %v8399_v40 = vmul.f32 %v20100_v42, %v8145_v37 }
 0x48c   :  { %v16951_v38 = vpop.eup %16950  ;;  %13698 = vst.msk [vmem:[%s20889_s4 + $0x690] sm:$0xff] %vm2828_vm1, %v16949_v35  ;;  %16970 = vtanh.f32 %v11340_v62  ;;  %v15027_v41 = vpop.f32.mrb[90].mxu0  ;;  %v8472_v45 = vadd.f32 %v20105_v44, %v8401_v36  ;;  %v11272_v46 = vmul.f32 %v15290_v39, %v20100_v42 }
 0x48d   :  { %v16953_v43 = vpop.eup %16952  ;;  %13696 = vst.msk [vmem:[%s20889_s4 + $0x680] sm:$0xff] %vm2828_vm1, %v16951_v38  ;;  %16972 = vtanh.f32 %v8467_v31  ;;  %v11016_v47 = vpop.f32.mrb[89].mxu1  ;;  %v8402_v48 = vmul.f32 %v15027_v41, %v20100_v42  ;;  %v8470_v51 = vadd.f32 %v20105_v44, %v8399_v40 }
 0x48e   :  { %v8148_v49 = vpop.f32.mrb[91].mxu0  ;;  %v16955_v50 = vpop.eup %16954  ;;  %13111 = vst.msk [vmem:[%s20889_s4 + $0x498] sm:$0xff] %vm2828_vm1, %v16953_v43  ;;  %16974 = vtanh.f32 %v11338_v33  ;;  %v11270_v52 = vmul.f32 %v20100_v42, %v11016_v47  ;;  %v11343_v56 = vadd.f32 %v20105_v44, %v11272_v46 }
 0x48f   :  { %v15291_v53 = vpop.f32.mrb[90].mxu1  ;;  %v8400_v54 = vmul.f32 %v20100_v42, %v8148_v49  ;;  %v16957_v55 = vpop.eup %16956  ;;  %13699 = vst.msk [vmem:[%s20889_s4 + $0x698] sm:$0xff] %vm2828_vm1, %v16955_v50  ;;  %16976 = vtanh.f32 %v8472_v45  ;;  %v8473_v57 = vadd.f32 %v20105_v44, %v8402_v48 }
 0x490   :  { %v11273_v58 = vmul.f32 %v15291_v53, %v20100_v42  ;;  %v11019_v59 = vpop.f32.mrb[91].mxu1  ;;  %v16959_v61 = vpop.eup %16958  ;;  %13109 = vst.msk [vmem:[%s20889_s4 + $0x488] sm:$0xff] %vm2828_vm1, %v16957_v55  ;;  %16978 = vtanh.f32 %v8470_v51  ;;  %v11341_v63 = vadd.f32 %v20105_v44, %v11270_v52 }
 0x491   :  { %v11271_v0 = vmul.f32 %v20100_v42, %v11019_v59  ;;  %v16961_v1 = vpop.eup %16960  ;;  %13697 = vst.msk [vmem:[%s20889_s4 + $0x688] sm:$0xff] %vm2828_vm1, %v16959_v61  ;;  %16980 = vtanh.f32 %v11343_v56  ;;  %v8471_v3 = vadd.f32 %v20105_v44, %v8400_v54  ;;  %v15030_v6 = vpop.f32.mrb[92].mxu0 }
 0x492   :  { %v11344_v2 = vadd.f32 %v20105_v44, %v11273_v58  ;;  %v16963_v4 = vpop.eup %16962  ;;  %13114 = vst.msk [vmem:[%s20889_s4 + $0x4b0] sm:$0xff] %vm2828_vm1, %v16961_v1  ;;  %16982 = vtanh.f32 %v11341_v63  ;;  %v8405_v8 = vmul.f32 %v15030_v6, %v20100_v42  ;;  %v8161_v28 = vpop.f32.mrb[93].mxu0 }
 0x493   :  { %v11342_v5 = vadd.f32 %v20105_v44, %v11271_v0  ;;  %v16965_v7 = vpop.eup %16964  ;;  %13112 = vst.msk [vmem:[%s20889_s4 + $0x4a0] sm:$0xff] %vm2828_vm1, %v16963_v4  ;;  %16984 = vtanh.f32 %v8473_v57  ;;  %v15294_v10 = vpop.f32.mrb[92].mxu1  ;;  %v8403_v11 = vmul.f32 %v20100_v42, %v8161_v28 }
 0x494   :  { %v16967_v9 = vpop.eup %16966  ;;  %13702 = vst.msk [vmem:[%s20889_s4 + $0x6b0] sm:$0xff] %vm2828_vm1, %v16965_v7  ;;  %16986 = vtanh.f32 %v11344_v2  ;;  %v15031_v60 = vpop.f32.mrb[94].mxu0  ;;  %v8476_v14 = vadd.f32 %v20105_v44, %v8405_v8  ;;  %v11276_v13 = vmul.f32 %v15294_v10, %v20100_v42 }
 0x495   :  { %v16969_v12 = vpop.eup %16968  ;;  %13700 = vst.msk [vmem:[%s20889_s4 + $0x6a0] sm:$0xff] %vm2828_vm1, %v16967_v9  ;;  %16988 = vtanh.f32 %v8471_v3  ;;  %v11032_v18 = vpop.f32.mrb[93].mxu1  ;;  %v8406_v20 = vmul.f32 %v15031_v60, %v20100_v42  ;;  %v8474_v26 = vadd.f32 %v20105_v44, %v8403_v11 }
 0x496   :  { %v8164_v16 = vpop.f32.mrb[95].mxu0  ;;  %v16971_v21 = vpop.eup %16970  ;;  %13115 = vst.msk [vmem:[%s20889_s4 + $0x4b8] sm:$0xff] %vm2828_vm1, %v16969_v12  ;;  %16990 = vtanh.f32 %v11342_v5  ;;  %v11274_v17 = vmul.f32 %v20100_v42, %v11032_v18  ;;  %v11347_v23 = vadd.f32 %v20105_v44, %v11276_v13 }
 0x497   :  { %v15295_v19 = vpop.f32.mrb[94].mxu1  ;;  %v8404_v22 = vmul.f32 %v20100_v42, %v8164_v16  ;;  %v16973_v15 = vpop.eup %16972  ;;  %13703 = vst.msk [vmem:[%s20889_s4 + $0x6b8] sm:$0xff] %vm2828_vm1, %v16971_v21  ;;  %16992 = vtanh.f32 %v8476_v14  ;;  %v8477_v24 = vadd.f32 %v20105_v44, %v8406_v20 }
 0x498   :  { %v11277_v25 = vmul.f32 %v15295_v19, %v20100_v42  ;;  %v11035_v27 = vpop.f32.mrb[95].mxu1  ;;  %v16975_v29 = vpop.eup %16974  ;;  %13113 = vst.msk [vmem:[%s20889_s4 + $0x4a8] sm:$0xff] %vm2828_vm1, %v16973_v15  ;;  %16994 = vtanh.f32 %v8474_v26  ;;  %v11345_v30 = vadd.f32 %v20105_v44, %v11274_v17 }
 0x499   :  { %v11275_v62 = vmul.f32 %v20100_v42, %v11035_v27  ;;  %v16977_v31 = vpop.eup %16976  ;;  %13701 = vst.msk [vmem:[%s20889_s4 + $0x6a8] sm:$0xff] %vm2828_vm1, %v16975_v29  ;;  %16996 = vtanh.f32 %v11347_v23  ;;  %v8475_v33 = vadd.f32 %v20105_v44, %v8404_v22  ;;  %v15034_v36 = vpop.f32.mrb[96].mxu0 }
 0x49a   :  { %v11348_v32 = vadd.f32 %v20105_v44, %v11277_v25  ;;  %v16979_v34 = vpop.eup %16978  ;;  %13118 = vst.msk [vmem:[%s20889_s4 + $0x4d0] sm:$0xff] %vm2828_vm1, %v16977_v31  ;;  %16998 = vtanh.f32 %v11345_v30  ;;  %v8409_v38 = vmul.f32 %v15034_v36, %v20100_v42  ;;  %v8177_v39 = vpop.f32.mrb[97].mxu0 }
 0x49b   :  { %v11346_v35 = vadd.f32 %v20105_v44, %v11275_v62  ;;  %v16981_v37 = vpop.eup %16980  ;;  %13116 = vst.msk [vmem:[%s20889_s4 + $0x4c0] sm:$0xff] %vm2828_vm1, %v16979_v34  ;;  %17000 = vtanh.f32 %v8477_v24  ;;  %v15298_v41 = vpop.f32.mrb[96].mxu1  ;;  %v8407_v43 = vmul.f32 %v20100_v42, %v8177_v39 }
 0x49c   :  { %v16983_v40 = vpop.eup %16982  ;;  %13706 = vst.msk [vmem:[%s20889_s4 + $0x6d0] sm:$0xff] %vm2828_vm1, %v16981_v37  ;;  %17002 = vtanh.f32 %v11348_v32  ;;  %v15035_v45 = vpop.f32.mrb[98].mxu0  ;;  %v8480_v47 = vadd.f32 %v20105_v44, %v8409_v38  ;;  %v11280_v48 = vmul.f32 %v15298_v41, %v20100_v42 }
 0x49d   :  { %v16985_v46 = vpop.eup %16984  ;;  %13704 = vst.msk [vmem:[%s20889_s4 + $0x6c0] sm:$0xff] %vm2828_vm1, %v16983_v40  ;;  %17004 = vtanh.f32 %v8475_v33  ;;  %v11048_v49 = vpop.f32.mrb[97].mxu1  ;;  %v8410_v50 = vmul.f32 %v15035_v45, %v20100_v42  ;;  %v8478_v53 = vadd.f32 %v20105_v44, %v8407_v43 }
 0x49e   :  { %v8180_v51 = vpop.f32.mrb[99].mxu0  ;;  %v16987_v52 = vpop.eup %16986  ;;  %13119 = vst.msk [vmem:[%s20889_s4 + $0x4d8] sm:$0xff] %vm2828_vm1, %v16985_v46  ;;  %17006 = vtanh.f32 %v11346_v35  ;;  %v11278_v54 = vmul.f32 %v20100_v42, %v11048_v49  ;;  %v11351_v58 = vadd.f32 %v20105_v44, %v11280_v48 }
 0x49f   :  { %v15299_v55 = vpop.f32.mrb[98].mxu1  ;;  %v8408_v56 = vmul.f32 %v20100_v42, %v8180_v51  ;;  %v16989_v57 = vpop.eup %16988  ;;  %13707 = vst.msk [vmem:[%s20889_s4 + $0x6d8] sm:$0xff] %vm2828_vm1, %v16987_v52  ;;  %17008 = vtanh.f32 %v8480_v47  ;;  %v8481_v59 = vadd.f32 %v20105_v44, %v8410_v50 }
 0x4a0   :  { %v11281_v61 = vmul.f32 %v15299_v55, %v20100_v42  ;;  %v11051_v63 = vpop.f32.mrb[99].mxu1  ;;  %v16991_v0 = vpop.eup %16990  ;;  %13117 = vst.msk [vmem:[%s20889_s4 + $0x4c8] sm:$0xff] %vm2828_vm1, %v16989_v57  ;;  %17010 = vtanh.f32 %v8478_v53  ;;  %v11349_v1 = vadd.f32 %v20105_v44, %v11278_v54 }
 0x4a1   :  { %v11279_v2 = vmul.f32 %v20100_v42, %v11051_v63  ;;  %v16993_v3 = vpop.eup %16992  ;;  %13705 = vst.msk [vmem:[%s20889_s4 + $0x6c8] sm:$0xff] %vm2828_vm1, %v16991_v0  ;;  %17012 = vtanh.f32 %v11351_v58  ;;  %v8479_v5 = vadd.f32 %v20105_v44, %v8408_v56  ;;  %v15038_v8 = vpop.f32.mrb[100].mxu0 }
 0x4a2   :  { %v11352_v4 = vadd.f32 %v20105_v44, %v11281_v61  ;;  %v16995_v6 = vpop.eup %16994  ;;  %13122 = vst.msk [vmem:[%s20889_s4 + $0x4f0] sm:$0xff] %vm2828_vm1, %v16993_v3  ;;  %17014 = vtanh.f32 %v11349_v1  ;;  %v8413_v9 = vmul.f32 %v15038_v8, %v20100_v42  ;;  %v8193_v10 = vpop.f32.mrb[101].mxu0 }
 0x4a3   :  { %v11350_v7 = vadd.f32 %v20105_v44, %v11279_v2  ;;  %v16997_v28 = vpop.eup %16996  ;;  %13120 = vst.msk [vmem:[%s20889_s4 + $0x4e0] sm:$0xff] %vm2828_vm1, %v16995_v6  ;;  %17016 = vtanh.f32 %v8481_v59  ;;  %v15302_v60 = vpop.f32.mrb[100].mxu1  ;;  %v8411_v12 = vmul.f32 %v20100_v42, %v8193_v10 }
 0x4a4   :  { %v16999_v11 = vpop.eup %16998  ;;  %13710 = vst.msk [vmem:[%s20889_s4 + $0x6f0] sm:$0xff] %vm2828_vm1, %v16997_v28  ;;  %17018 = vtanh.f32 %v11352_v4  ;;  %v15039_v14 = vpop.f32.mrb[102].mxu0  ;;  %v8484_v18 = vadd.f32 %v20105_v44, %v8413_v9  ;;  %v11284_v20 = vmul.f32 %v15302_v60, %v20100_v42 }
 0x4a5   :  { %v17001_v13 = vpop.eup %17000  ;;  %13708 = vst.msk [vmem:[%s20889_s4 + $0x6e0] sm:$0xff] %vm2828_vm1, %v16999_v11  ;;  %17020 = vtanh.f32 %v8479_v5  ;;  %v11064_v16 = vpop.f32.mrb[101].mxu1  ;;  %v8414_v21 = vmul.f32 %v15039_v14, %v20100_v42  ;;  %v8482_v19 = vadd.f32 %v20105_v44, %v8411_v12 }
 0x4a6   :  { %v8196_v26 = vpop.f32.mrb[103].mxu0  ;;  %v17003_v17 = vpop.eup %17002  ;;  %13123 = vst.msk [vmem:[%s20889_s4 + $0x4f8] sm:$0xff] %vm2828_vm1, %v17001_v13  ;;  %17022 = vtanh.f32 %v11350_v7  ;;  %v11282_v22 = vmul.f32 %v20100_v42, %v11064_v16  ;;  %v11355_v25 = vadd.f32 %v20105_v44, %v11284_v20 }
 0x4a7   :  { %v15303_v15 = vpop.f32.mrb[102].mxu1  ;;  %v8412_v23 = vmul.f32 %v20100_v42, %v8196_v26  ;;  %v17005_v24 = vpop.eup %17004  ;;  %13711 = vst.msk [vmem:[%s20889_s4 + $0x6f8] sm:$0xff] %vm2828_vm1, %v17003_v17  ;;  %17024 = vtanh.f32 %v8484_v18  ;;  %v8485_v27 = vadd.f32 %v20105_v44, %v8414_v21  ;;  %v20593_v21 = vld [vmem:[%s20887_s2] ss:$0 sm:$0xff] }
 0x4a8   :  { %v11285_v29 = vmul.f32 %v15303_v15, %v20100_v42  ;;  %v11067_v30 = vpop.f32.mrb[103].mxu1  ;;  %v17007_v62 = vpop.eup %17006  ;;  %13121 = vst.msk [vmem:[%s20889_s4 + $0x4e8] sm:$0xff] %vm2828_vm1, %v17005_v24  ;;  %17026 = vtanh.f32 %v8482_v19  ;;  %v11353_v31 = vadd.f32 %v20105_v44, %v11282_v22 }
 0x4a9   :  { %v11283_v32 = vmul.f32 %v20100_v42, %v11067_v30  ;;  %v17009_v33 = vpop.eup %17008  ;;  %13709 = vst.msk [vmem:[%s20889_s4 + $0x6e8] sm:$0xff] %vm2828_vm1, %v17007_v62  ;;  %17028 = vtanh.f32 %v11355_v25  ;;  %v8483_v35 = vadd.f32 %v20105_v44, %v8412_v23  ;;  %v15042_v38 = vpop.f32.mrb[104].mxu0 }
 0x4aa   :  { %v11356_v34 = vadd.f32 %v20105_v44, %v11285_v29  ;;  %v17011_v36 = vpop.eup %17010  ;;  %13126 = vst.msk [vmem:[%s20889_s4 + $0x510] sm:$0xff] %vm2828_vm1, %v17009_v33  ;;  %17030 = vtanh.f32 %v11353_v31  ;;  %v8417_v40 = vmul.f32 %v15042_v38, %v20100_v42  ;;  %v8209_v41 = vpop.f32.mrb[105].mxu0 }
 0x4ab   :  { %v11354_v37 = vadd.f32 %v20105_v44, %v11283_v32  ;;  %v17013_v39 = vpop.eup %17012  ;;  %13124 = vst.msk [vmem:[%s20889_s4 + $0x500] sm:$0xff] %vm2828_vm1, %v17011_v36  ;;  %17032 = vtanh.f32 %v8485_v27  ;;  %v15306_v45 = vpop.f32.mrb[104].mxu1  ;;  %v8415_v46 = vmul.f32 %v20100_v42, %v8209_v41 }
 0x4ac   :  { %v17015_v43 = vpop.eup %17014  ;;  %13714 = vst.msk [vmem:[%s20889_s4 + $0x710] sm:$0xff] %vm2828_vm1, %v17013_v39  ;;  %17034 = vtanh.f32 %v11356_v34  ;;  %v15043_v47 = vpop.f32.mrb[106].mxu0  ;;  %v8488_v49 = vadd.f32 %v20105_v44, %v8417_v40  ;;  %v11288_v50 = vmul.f32 %v15306_v45, %v20100_v42 }
 0x4ad   :  { %v17017_v48 = vpop.eup %17016  ;;  %13712 = vst.msk [vmem:[%s20889_s4 + $0x700] sm:$0xff] %vm2828_vm1, %v17015_v43  ;;  %17036 = vtanh.f32 %v8483_v35  ;;  %v11080_v51 = vpop.f32.mrb[105].mxu1  ;;  %v8418_v52 = vmul.f32 %v15043_v47, %v20100_v42  ;;  %v8486_v55 = vadd.f32 %v20105_v44, %v8415_v46 }
 0x4ae   :  { %v8212_v53 = vpop.f32.mrb[107].mxu0  ;;  %v17019_v54 = vpop.eup %17018  ;;  %13127 = vst.msk [vmem:[%s20889_s4 + $0x518] sm:$0xff] %vm2828_vm1, %v17017_v48  ;;  %17038 = vtanh.f32 %v11354_v37  ;;  %v11286_v56 = vmul.f32 %v20100_v42, %v11080_v51  ;;  %v11359_v61 = vadd.f32 %v20105_v44, %v11288_v50 }
 0x4af   :  { %v15307_v57 = vpop.f32.mrb[106].mxu1  ;;  %v8416_v58 = vmul.f32 %v20100_v42, %v8212_v53  ;;  %v17021_v59 = vpop.eup %17020  ;;  %13715 = vst.msk [vmem:[%s20889_s4 + $0x718] sm:$0xff] %vm2828_vm1, %v17019_v54  ;;  %17040 = vtanh.f32 %v8488_v49  ;;  %v8489_v63 = vadd.f32 %v20105_v44, %v8418_v52 }
 0x4b0   :  { %v11289_v0 = vmul.f32 %v15307_v57, %v20100_v42  ;;  %v11083_v1 = vpop.f32.mrb[107].mxu1  ;;  %v17023_v2 = vpop.eup %17022  ;;  %13125 = vst.msk [vmem:[%s20889_s4 + $0x508] sm:$0xff] %vm2828_vm1, %v17021_v59  ;;  %17042 = vtanh.f32 %v8486_v55  ;;  %v11357_v3 = vadd.f32 %v20105_v44, %v11286_v56 }
 0x4b1   :  { %v11287_v4 = vmul.f32 %v20100_v42, %v11083_v1  ;;  %v17025_v5 = vpop.eup %17024  ;;  %13713 = vst.msk [vmem:[%s20889_s4 + $0x708] sm:$0xff] %vm2828_vm1, %v17023_v2  ;;  %17044 = vtanh.f32 %v11359_v61  ;;  %v8487_v7 = vadd.f32 %v20105_v44, %v8416_v58  ;;  %v15046_v9 = vpop.f32.mrb[108].mxu0 }
 0x4b2   :  { %v11360_v6 = vadd.f32 %v20105_v44, %v11289_v0  ;;  %v17027_v8 = vpop.eup %17026  ;;  %13130 = vst.msk [vmem:[%s20889_s4 + $0x530] sm:$0xff] %vm2828_vm1, %v17025_v5  ;;  %17046 = vtanh.f32 %v11357_v3  ;;  %v8421_v11 = vmul.f32 %v15046_v9, %v20100_v42  ;;  %v8225_v60 = vpop.f32.mrb[109].mxu0 }
 0x4b3   :  { %v11358_v28 = vadd.f32 %v20105_v44, %v11287_v4  ;;  %v17029_v10 = vpop.eup %17028  ;;  %13128 = vst.msk [vmem:[%s20889_s4 + $0x520] sm:$0xff] %vm2828_vm1, %v17027_v8  ;;  %17048 = vtanh.f32 %v8489_v63  ;;  %v15310_v14 = vpop.f32.mrb[108].mxu1  ;;  %v8419_v13 = vmul.f32 %v20100_v42, %v8225_v60 }
 0x4b4   :  { %v17031_v12 = vpop.eup %17030  ;;  %13718 = vst.msk [vmem:[%s20889_s4 + $0x730] sm:$0xff] %vm2828_vm1, %v17029_v10  ;;  %17050 = vtanh.f32 %v11360_v6  ;;  %v15047_v18 = vpop.f32.mrb[110].mxu0  ;;  %v8492_v16 = vadd.f32 %v20105_v44, %v8421_v11  ;;  %v11292_v26 = vmul.f32 %v20593_v21, %v15310_v14  ;;  %v20604_v44 = vld [vmem:[%s20888_s3] ss:$0 sm:$0xff] }
 0x4b5   :  { %v17033_v20 = vpop.eup %17032  ;;  %13716 = vst.msk [vmem:[%s20889_s4 + $0x720] sm:$0xff] %vm2828_vm1, %v17031_v12  ;;  %17052 = vtanh.f32 %v8487_v7  ;;  %v11096_v17 = vpop.f32.mrb[109].mxu1  ;;  %v8422_v42 = vmul.f32 %v20593_v21, %v15047_v18  ;;  %v8490_v15 = vadd.f32 %v20604_v44, %v8419_v13 }
 0x4b6   :  { %v8228_v19 = vpop.f32.mrb[111].mxu0  ;;  %v17035_v22 = vpop.eup %17034  ;;  %13131 = vst.msk [vmem:[%s20889_s4 + $0x538] sm:$0xff] %vm2828_vm1, %v17033_v20  ;;  %17054 = vtanh.f32 %v11358_v28  ;;  %v11290_v23 = vmul.f32 %v20593_v21, %v11096_v17  ;;  %v11363_v29 = vadd.f32 %v20604_v44, %v11292_v26 }
 0x4b7   :  { %v15311_v24 = vpop.f32.mrb[110].mxu1  ;;  %v8420_v25 = vmul.f32 %v20593_v21, %v8228_v19  ;;  %v17037_v27 = vpop.eup %17036  ;;  %13719 = vst.msk [vmem:[%s20889_s4 + $0x738] sm:$0xff] %vm2828_vm1, %v17035_v22  ;;  %17056 = vtanh.f32 %v8492_v16  ;;  %v8493_v30 = vadd.f32 %v20604_v44, %v8422_v42 }
 0x4b8   :  { %v11293_v62 = vmul.f32 %v20593_v21, %v15311_v24  ;;  %v11099_v31 = vpop.f32.mrb[111].mxu1  ;;  %v17039_v32 = vpop.eup %17038  ;;  %13129 = vst.msk [vmem:[%s20889_s4 + $0x528] sm:$0xff] %vm2828_vm1, %v17037_v27  ;;  %17058 = vtanh.f32 %v8490_v15  ;;  %v11361_v33 = vadd.f32 %v20604_v44, %v11290_v23 }
 0x4b9   :  { %v11291_v34 = vmul.f32 %v20593_v21, %v11099_v31  ;;  %v17041_v35 = vpop.eup %17040  ;;  %13717 = vst.msk [vmem:[%s20889_s4 + $0x728] sm:$0xff] %vm2828_vm1, %v17039_v32  ;;  %17060 = vtanh.f32 %v11363_v29  ;;  %v8491_v37 = vadd.f32 %v20604_v44, %v8420_v25  ;;  %v15050_v40 = vpop.f32.mrb[112].mxu0 }
 0x4ba   :  { %v11364_v36 = vadd.f32 %v20604_v44, %v11293_v62  ;;  %v17043_v38 = vpop.eup %17042  ;;  %13134 = vst.msk [vmem:[%s20889_s4 + $0x550] sm:$0xff] %vm2828_vm1, %v17041_v35  ;;  %17062 = vtanh.f32 %v11361_v33  ;;  %v8425_v43 = vmul.f32 %v20593_v21, %v15050_v40  ;;  %v8241_v45 = vpop.f32.mrb[113].mxu0 }
 0x4bb   :  { %v11362_v39 = vadd.f32 %v20604_v44, %v11291_v34  ;;  %v17045_v41 = vpop.eup %17044  ;;  %13132 = vst.msk [vmem:[%s20889_s4 + $0x540] sm:$0xff] %vm2828_vm1, %v17043_v38  ;;  %17064 = vtanh.f32 %v8493_v30  ;;  %v15314_v47 = vpop.f32.mrb[112].mxu1  ;;  %v8423_v48 = vmul.f32 %v20593_v21, %v8241_v45 }
 0x4bc   :  { %v17047_v46 = vpop.eup %17046  ;;  %13722 = vst.msk [vmem:[%s20889_s4 + $0x750] sm:$0xff] %vm2828_vm1, %v17045_v41  ;;  %17066 = vtanh.f32 %v11364_v36  ;;  %v15051_v49 = vpop.f32.mrb[114].mxu0  ;;  %v8496_v51 = vadd.f32 %v20604_v44, %v8425_v43  ;;  %v11296_v52 = vmul.f32 %v20593_v21, %v15314_v47 }
 0x4bd   :  { %v17049_v50 = vpop.eup %17048  ;;  %13720 = vst.msk [vmem:[%s20889_s4 + $0x740] sm:$0xff] %vm2828_vm1, %v17047_v46  ;;  %17068 = vtanh.f32 %v8491_v37  ;;  %v11112_v53 = vpop.f32.mrb[113].mxu1  ;;  %v8426_v54 = vmul.f32 %v20593_v21, %v15051_v49  ;;  %v8494_v57 = vadd.f32 %v20604_v44, %v8423_v48 }
 0x4be   :  { %v8244_v55 = vpop.f32.mrb[115].mxu0  ;;  %v17051_v56 = vpop.eup %17050  ;;  %13135 = vst.msk [vmem:[%s20889_s4 + $0x558] sm:$0xff] %vm2828_vm1, %v17049_v50  ;;  %17070 = vtanh.f32 %v11362_v39  ;;  %v11294_v58 = vmul.f32 %v20593_v21, %v11112_v53  ;;  %v11367_v0 = vadd.f32 %v20604_v44, %v11296_v52 }
 0x4bf   :  { %v15315_v59 = vpop.f32.mrb[114].mxu1  ;;  %v8424_v61 = vmul.f32 %v20593_v21, %v8244_v55  ;;  %v17053_v63 = vpop.eup %17052  ;;  %13723 = vst.msk [vmem:[%s20889_s4 + $0x758] sm:$0xff] %vm2828_vm1, %v17051_v56  ;;  %17072 = vtanh.f32 %v8496_v51  ;;  %v8497_v1 = vadd.f32 %v20604_v44, %v8426_v54 }
 0x4c0   :  { %v11297_v2 = vmul.f32 %v20593_v21, %v15315_v59  ;;  %v11115_v3 = vpop.f32.mrb[115].mxu1  ;;  %v17055_v4 = vpop.eup %17054  ;;  %13133 = vst.msk [vmem:[%s20889_s4 + $0x548] sm:$0xff] %vm2828_vm1, %v17053_v63  ;;  %17074 = vtanh.f32 %v8494_v57  ;;  %v11365_v5 = vadd.f32 %v20604_v44, %v11294_v58 }
 0x4c1   :  { %v11295_v6 = vmul.f32 %v20593_v21, %v11115_v3  ;;  %v17057_v7 = vpop.eup %17056  ;;  %13721 = vst.msk [vmem:[%s20889_s4 + $0x748] sm:$0xff] %vm2828_vm1, %v17055_v4  ;;  %17076 = vtanh.f32 %v11367_v0  ;;  %v8495_v28 = vadd.f32 %v20604_v44, %v8424_v61  ;;  %v15054_v11 = vpop.f32.mrb[116].mxu0 }
 0x4c2   :  { %v11368_v8 = vadd.f32 %v20604_v44, %v11297_v2  ;;  %v17059_v9 = vpop.eup %17058  ;;  %13138 = vst.msk [vmem:[%s20889_s4 + $0x570] sm:$0xff] %vm2828_vm1, %v17057_v7  ;;  %17078 = vtanh.f32 %v11365_v5  ;;  %v8429_v12 = vmul.f32 %v20593_v21, %v15054_v11  ;;  %v8257_v14 = vpop.f32.mrb[117].mxu0 }
 0x4c3   :  { %v11366_v10 = vadd.f32 %v20604_v44, %v11295_v6  ;;  %v17061_v60 = vpop.eup %17060  ;;  %13136 = vst.msk [vmem:[%s20889_s4 + $0x560] sm:$0xff] %vm2828_vm1, %v17059_v9  ;;  %17080 = vtanh.f32 %v8497_v1  ;;  %v15318_v18 = vpop.f32.mrb[116].mxu1  ;;  %v8427_v20 = vmul.f32 %v20593_v21, %v8257_v14 }
 0x4c4   :  { %v17063_v13 = vpop.eup %17062  ;;  %13726 = vst.msk [vmem:[%s20889_s4 + $0x770] sm:$0xff] %vm2828_vm1, %v17061_v60  ;;  %17082 = vtanh.f32 %v11368_v8  ;;  %v15055_v16 = vpop.f32.mrb[118].mxu0  ;;  %v8500_v17 = vadd.f32 %v20604_v44, %v8429_v12  ;;  %v11300_v42 = vmul.f32 %v20593_v21, %v15318_v18 }
 0x4c5   :  { %v17065_v26 = vpop.eup %17064  ;;  %13724 = vst.msk [vmem:[%s20889_s4 + $0x760] sm:$0xff] %vm2828_vm1, %v17063_v13  ;;  %17084 = vtanh.f32 %v8495_v28  ;;  %v11128_v19 = vpop.f32.mrb[117].mxu1  ;;  %v8430_v22 = vmul.f32 %v20593_v21, %v15055_v16  ;;  %v8498_v24 = vadd.f32 %v20604_v44, %v8427_v20 }
 0x4c6   :  { %v8260_v15 = vpop.f32.mrb[119].mxu0  ;;  %v17067_v23 = vpop.eup %17066  ;;  %13139 = vst.msk [vmem:[%s20889_s4 + $0x578] sm:$0xff] %vm2828_vm1, %v17065_v26  ;;  %17086 = vtanh.f32 %v11366_v10  ;;  %v11298_v25 = vmul.f32 %v20593_v21, %v11128_v19  ;;  %v11371_v62 = vadd.f32 %v20604_v44, %v11300_v42 }
 0x4c7   :  { %v15319_v27 = vpop.f32.mrb[118].mxu1  ;;  %v8428_v29 = vmul.f32 %v20593_v21, %v8260_v15  ;;  %v17069_v30 = vpop.eup %17068  ;;  %13727 = vst.msk [vmem:[%s20889_s4 + $0x778] sm:$0xff] %vm2828_vm1, %v17067_v23  ;;  %17088 = vtanh.f32 %v8500_v17  ;;  %v8501_v31 = vadd.f32 %v20604_v44, %v8430_v22 }
 0x4c8   :  { %v11301_v32 = vmul.f32 %v20593_v21, %v15319_v27  ;;  %v11131_v33 = vpop.f32.mrb[119].mxu1  ;;  %v17071_v34 = vpop.eup %17070  ;;  %13137 = vst.msk [vmem:[%s20889_s4 + $0x568] sm:$0xff] %vm2828_vm1, %v17069_v30  ;;  %17090 = vtanh.f32 %v8498_v24  ;;  %v11369_v35 = vadd.f32 %v20604_v44, %v11298_v25 }
 0x4c9   :  { %v11299_v36 = vmul.f32 %v20593_v21, %v11131_v33  ;;  %v17073_v37 = vpop.eup %17072  ;;  %13725 = vst.msk [vmem:[%s20889_s4 + $0x768] sm:$0xff] %vm2828_vm1, %v17071_v34  ;;  %17092 = vtanh.f32 %v11371_v62  ;;  %v8499_v39 = vadd.f32 %v20604_v44, %v8428_v29  ;;  %v15058_v43 = vpop.f32.mrb[120].mxu0 }
 0x4ca   :  { %v11372_v38 = vadd.f32 %v20604_v44, %v11301_v32  ;;  %v17075_v40 = vpop.eup %17074  ;;  %13142 = vst.msk [vmem:[%s20889_s4 + $0x590] sm:$0xff] %vm2828_vm1, %v17073_v37  ;;  %17094 = vtanh.f32 %v11369_v35  ;;  %v8433_v46 = vmul.f32 %v20593_v21, %v15058_v43  ;;  %v8273_v47 = vpop.f32.mrb[121].mxu0 }
 0x4cb   :  { %v11370_v41 = vadd.f32 %v20604_v44, %v11299_v36  ;;  %v17077_v45 = vpop.eup %17076  ;;  %13140 = vst.msk [vmem:[%s20889_s4 + $0x580] sm:$0xff] %vm2828_vm1, %v17075_v40  ;;  %17096 = vtanh.f32 %v8501_v31  ;;  %v15322_v49 = vpop.f32.mrb[120].mxu1  ;;  %v8431_v50 = vmul.f32 %v20593_v21, %v8273_v47 }
 0x4cc   :  { %v17079_v48 = vpop.eup %17078  ;;  %13730 = vst.msk [vmem:[%s20889_s4 + $0x790] sm:$0xff] %vm2828_vm1, %v17077_v45  ;;  %17098 = vtanh.f32 %v11372_v38  ;;  %v15059_v51 = vpop.f32.mrb[122].mxu0  ;;  %v8504_v53 = vadd.f32 %v20604_v44, %v8433_v46  ;;  %v11304_v54 = vmul.f32 %v20593_v21, %v15322_v49 }
 0x4cd   :  { %v17081_v52 = vpop.eup %17080  ;;  %13728 = vst.msk [vmem:[%s20889_s4 + $0x780] sm:$0xff] %vm2828_vm1, %v17079_v48  ;;  %17100 = vtanh.f32 %v8499_v39  ;;  %v11144_v55 = vpop.f32.mrb[121].mxu1  ;;  %v8434_v56 = vmul.f32 %v20593_v21, %v15059_v51  ;;  %v8502_v59 = vadd.f32 %v20604_v44, %v8431_v50 }
 0x4ce   :  { %v8276_v57 = vpop.f32.mrb[123].mxu0  ;;  %v17083_v58 = vpop.eup %17082  ;;  %13143 = vst.msk [vmem:[%s20889_s4 + $0x598] sm:$0xff] %vm2828_vm1, %v17081_v52  ;;  %17102 = vtanh.f32 %v11370_v41  ;;  %v11302_v61 = vmul.f32 %v20593_v21, %v11144_v55  ;;  %v11375_v2 = vadd.f32 %v20604_v44, %v11304_v54 }
 0x4cf   :  { %v15323_v63 = vpop.f32.mrb[122].mxu1  ;;  %v8432_v0 = vmul.f32 %v20593_v21, %v8276_v57  ;;  %v17085_v1 = vpop.eup %17084  ;;  %13731 = vst.msk [vmem:[%s20889_s4 + $0x798] sm:$0xff] %vm2828_vm1, %v17083_v58  ;;  %17104 = vtanh.f32 %v8504_v53  ;;  %v8505_v3 = vadd.f32 %v20604_v44, %v8434_v56 }
 0x4d0   :  { %v11305_v4 = vmul.f32 %v20593_v21, %v15323_v63  ;;  %v11147_v5 = vpop.f32.mrb[123].mxu1  ;;  %v17087_v6 = vpop.eup %17086  ;;  %13141 = vst.msk [vmem:[%s20889_s4 + $0x588] sm:$0xff] %vm2828_vm1, %v17085_v1  ;;  %17106 = vtanh.f32 %v8502_v59  ;;  %v11373_v7 = vadd.f32 %v20604_v44, %v11302_v61 }
 0x4d1   :  { %v11303_v8 = vmul.f32 %v20593_v21, %v11147_v5  ;;  %v17089_v28 = vpop.eup %17088  ;;  %13729 = vst.msk [vmem:[%s20889_s4 + $0x788] sm:$0xff] %vm2828_vm1, %v17087_v6  ;;  %17108 = vtanh.f32 %v11375_v2  ;;  %v8503_v10 = vadd.f32 %v20604_v44, %v8432_v0  ;;  %v15062_v12 = vpop.f32.mrb[124].mxu0 }
 0x4d2   :  { %v11376_v9 = vadd.f32 %v20604_v44, %v11305_v4  ;;  %v17091_v11 = vpop.eup %17090  ;;  %13146 = vst.msk [vmem:[%s20889_s4 + $0x5b0] sm:$0xff] %vm2828_vm1, %v17089_v28  ;;  %17110 = vtanh.f32 %v11373_v7  ;;  %v8437_v13 = vmul.f32 %v20593_v21, %v15062_v12  ;;  %v8289_v18 = vpop.f32.mrb[125].mxu0 }
 0x4d3   :  { %v11374_v60 = vadd.f32 %v20604_v44, %v11303_v8  ;;  %v17093_v14 = vpop.eup %17092  ;;  %13144 = vst.msk [vmem:[%s20889_s4 + $0x5a0] sm:$0xff] %vm2828_vm1, %v17091_v11  ;;  %17112 = vtanh.f32 %v8505_v3  ;;  %v15326_v16 = vpop.f32.mrb[124].mxu1  ;;  %v8435_v26 = vmul.f32 %v20593_v21, %v8289_v18 }
 0x4d4   :  { %v17095_v20 = vpop.eup %17094  ;;  %13734 = vst.msk [vmem:[%s20889_s4 + $0x7b0] sm:$0xff] %vm2828_vm1, %v17093_v14  ;;  %17114 = vtanh.f32 %v11376_v9  ;;  %v15063_v17 = vpop.f32.mrb[126].mxu0  ;;  %v8508_v19 = vadd.f32 %v20604_v44, %v8437_v13  ;;  %v11308_v22 = vmul.f32 %v20593_v21, %v15326_v16 }
 0x4d5   :  { %v17097_v42 = vpop.eup %17096  ;;  %13732 = vst.msk [vmem:[%s20889_s4 + $0x7a0] sm:$0xff] %vm2828_vm1, %v17095_v20  ;;  %17116 = vtanh.f32 %v8503_v10  ;;  %v11160_v15 = vpop.f32.mrb[125].mxu1  ;;  %v8438_v23 = vmul.f32 %v20593_v21, %v15063_v17  ;;  %v8506_v27 = vadd.f32 %v20604_v44, %v8435_v26 }
 0x4d6   :  { %v8292_v24 = vpop.f32.mrb[127].mxu0  ;;  %v17099_v25 = vpop.eup %17098  ;;  %13147 = vst.msk [vmem:[%s20889_s4 + $0x5b8] sm:$0xff] %vm2828_vm1, %v17097_v42  ;;  %17118 = vtanh.f32 %v11374_v60  ;;  %v11306_v29 = vmul.f32 %v20593_v21, %v11160_v15  ;;  %v11379_v32 = vadd.f32 %v20604_v44, %v11308_v22 }
 0x4d7   :  { %v15327_v30 = vpop.f32.mrb[126].mxu1  ;;  %v8436_v62 = vmul.f32 %v20593_v21, %v8292_v24  ;;  %v17101_v31 = vpop.eup %17100  ;;  %13735 = vst.msk [vmem:[%s20889_s4 + $0x7b8] sm:$0xff] %vm2828_vm1, %v17099_v25  ;;  %17120 = vtanh.f32 %v8508_v19  ;;  %v8509_v33 = vadd.f32 %v20604_v44, %v8438_v23 }
 0x4d8   :  { %v11309_v34 = vmul.f32 %v20593_v21, %v15327_v30  ;;  %v11163_v35 = vpop.f32.mrb[127].mxu1  ;;  %v17103_v36 = vpop.eup %17102  ;;  %13145 = vst.msk [vmem:[%s20889_s4 + $0x5a8] sm:$0xff] %vm2828_vm1, %v17101_v31  ;;  %17122 = vtanh.f32 %v8506_v27  ;;  %v11377_v37 = vadd.f32 %v20604_v44, %v11306_v29 }
 0x4d9   :  { %v11307_v38 = vmul.f32 %v20593_v21, %v11163_v35  ;;  %v17105_v39 = vpop.eup %17104  ;;  %13733 = vst.msk [vmem:[%s20889_s4 + $0x7a8] sm:$0xff] %vm2828_vm1, %v17103_v36  ;;  %17124 = vtanh.f32 %v11379_v32  ;;  %v8507_v41 = vadd.f32 %v20604_v44, %v8436_v62 }
 0x4da   :  { %v11380_v40 = vadd.f32 %v20604_v44, %v11309_v34  ;;  %v17107_v43 = vpop.eup %17106  ;;  %13150 = vst.msk [vmem:[%s20889_s4 + $0x5d0] sm:$0xff] %vm2828_vm1, %v17105_v39  ;;  %17126 = vtanh.f32 %v11377_v37 }
 0x4db   :  { %v11378_v21 = vadd.f32 %v20604_v44, %v11307_v38  ;;  %v17109_v45 = vpop.eup %17108  ;;  %13148 = vst.msk [vmem:[%s20889_s4 + $0x5c0] sm:$0xff] %vm2828_vm1, %v17107_v43  ;;  %17128 = vtanh.f32 %v8509_v33 }
 0x4dc   :  { %v17111_v46 = vpop.eup %17110  ;;  %13738 = vst.msk [vmem:[%s20889_s4 + $0x7d0] sm:$0xff] %vm2828_vm1, %v17109_v45  ;;  %17130 = vtanh.f32 %v11380_v40 }
 0x4dd   :  { %v17113_v47 = vpop.eup %17112  ;;  %13736 = vst.msk [vmem:[%s20889_s4 + $0x7c0] sm:$0xff] %vm2828_vm1, %v17111_v46  ;;  %17132 = vtanh.f32 %v8507_v41 }
 0x4de   :  { %v17115_v44 = vpop.eup %17114  ;;  %13151 = vst.msk [vmem:[%s20889_s4 + $0x5d8] sm:$0xff] %vm2828_vm1, %v17113_v47  ;;  %17134 = vtanh.f32 %v11378_v21 }
 0x4df   :  { %v17117_v48 = vpop.eup %17116  ;;  %13739 = vst.msk [vmem:[%s20889_s4 + $0x7d8] sm:$0xff] %vm2828_vm1, %v17115_v44 }
 0x4e0   :  { %v17119_v49 = vpop.eup %17118  ;;  %13149 = vst.msk [vmem:[%s20889_s4 + $0x5c8] sm:$0xff] %vm2828_vm1, %v17117_v48 }
 0x4e1   :  { %v17121_v50 = vpop.eup %17120  ;;  %13737 = vst.msk [vmem:[%s20889_s4 + $0x7c8] sm:$0xff] %vm2828_vm1, %v17119_v49 }
 0x4e2   :  { %v17123_v51 = vpop.eup %17122  ;;  %13154 = vst.msk [vmem:[%s20889_s4 + $0x5f0] sm:$0xff] %vm2828_vm1, %v17121_v50 }
 0x4e3   :  { %v17125_v52 = vpop.eup %17124  ;;  %13152 = vst.msk [vmem:[%s20889_s4 + $0x5e0] sm:$0xff] %vm2828_vm1, %v17123_v51 }
 0x4e4   :  { %v17127_v53 = vpop.eup %17126  ;;  %13742 = vst.msk [vmem:[%s20889_s4 + $0x7f0] sm:$0xff] %vm2828_vm1, %v17125_v52 }
 0x4e5   :  { %v17129_v54 = vpop.eup %17128  ;;  %13740 = vst.msk [vmem:[%s20889_s4 + $0x7e0] sm:$0xff] %vm2828_vm1, %v17127_v53 }
 0x4e6   :  { %v17131_v55 = vpop.eup %17130  ;;  %13155 = vst.msk [vmem:[%s20889_s4 + $0x5f8] sm:$0xff] %vm2828_vm1, %v17129_v54 }
 0x4e7   :  { %v17133_v56 = vpop.eup %17132  ;;  %13743 = vst.msk [vmem:[%s20889_s4 + $0x7f8] sm:$0xff] %vm2828_vm1, %v17131_v55 }
 0x4e8   :  { %v17135_v57 = vpop.eup %17134  ;;  %13153 = vst.msk [vmem:[%s20889_s4 + $0x5e8] sm:$0xff] %vm2828_vm1, %v17133_v56 }
 0x4e9   :  { %13741 = vst.msk [vmem:[%s20889_s4 + $0x7e8] sm:$0xff] %vm2828_vm1, %v17135_v57 }

</bundles_post_ra>
